<compile_context>
chip_gen: v6e
topology: v6e:2x2x1
jax: 0.10.0
libtpu: 0.0.40
codegen_flags: <defaults>
</compile_context>

<pallas_src>
import jax
import jax.numpy as jnp
import numpy as np
from jax.experimental import pallas as pl
from jax.experimental.pallas import tpu as pltpu

# ----------------------------------------------------------------------------- layout constants
C0, H0, W0 = 4, 84, 84            # input (NCHW from torch)
W0P = 96                          # W padded so chunks-per-row is a multiple of 8
CPR = W0P // 4                    # 24 chunks (of 4 pixels x 4 ch = 16 cols) per image row
K1, S1, C1, HW1 = 8, 4, 32, 20    # conv1: 4->32, k8 s4, 84 -> 20
K2, S2, C2, HW2 = 4, 2, 64, 9     # conv2: 32->64, k4 s2, 20 -> 9
U2 = 17                           # stride-1 horizontal positions computed for conv2
K3, C3, HW3 = 3, 64, 7            # conv3: 64->64, k3 s1, 9 -> 7
R1, R2, RA2, R3 = 24, 24, 16, 8   # 8-aligned row strides of the VMEM patch/act buffers
FDIM = HW3 * HW3 * C3             # 3136
APAD = 128                        # padded action dim (lane-dense output)

# constant 0/1 matrix that picks the stride-2 columns out of conv2's stride-1 output
_SEL = np.zeros((HW2 * RA2, HW2 * R2), np.float32)
for _h in range(HW2):
    for _w in range(HW2):
        _SEL[_h * RA2 + _w, _h * R2 + 2 * _w] = 1.0


# ----------------------------------------------------------------------------- fused kernel
def _qnet_kernel(x_ref, sel_ref, w1_ref, b1_ref, w2_ref, b2_ref, w3_ref, b3_ref,
                 wf1_ref, bf1_ref, wf2_ref, bf2_ref, out_ref,
                 p1_ref, a1_ref, p2_ref, a2_ref, p3_ref, f_ref):
    f32, bf16 = jnp.float32, jnp.bfloat16

    # p2 has unused pad rows that get multiplied by 0.0 in the decimation matmul;
    # keep them finite (scratch is otherwise uninitialized).
    p2_ref[...] = jnp.zeros_like(p2_ref)

    # ---------------- conv1: 4 -> 32, k=8, s=4  (84x84 -> 20x20) -----------------
    def conv1_row(ho, carry):
        dst = pl.multiple_of(ho * R1, 8)
        for kh in range(K1):
            base = pl.multiple_of((S1 * ho + kh) * CPR, 8)
            blk = x_ref[pl.ds(base, R1), :] * (1.0 / 255.0)       # (24, 16) f32
            for d in range(2):                                    # kw 0..3 | 4..7
                piece = blk[d:d + HW1, :]                         # (20, 16)
                col = kh * 32 + d * 16
                p1_ref[pl.ds(dst, HW1), col:col + 16] = piece
        return carry
    jax.lax.fori_loop(0, HW1, conv1_row, 0)

    h1 = jnp.dot(p1_ref[...].astype(bf16), w1_ref[...], preferred_element_type=f32)
    a1_ref[...] = jnp.maximum(h1 + b1_ref[...], 0.0)              # (480, 32) f32

    # ---------------- conv2: 32 -> 64, k=4, s=2  (20x20 -> 9x9) ------------------
    # compute all 17 stride-1 horizontal positions, decimate with the Sel matmul
    def conv2_row(ho2, carry):
        dst = pl.multiple_of(ho2 * R2, 8)
        for kh in range(K2):
            src = pl.multiple_of((S2 * ho2 + kh) * R1, 8)
            blk = a1_ref[pl.ds(src, R1), :]                       # (24, 32)
            for kw in range(K2):
                piece = blk[kw:kw + U2, :]                        # (17, 32)
                col = (kh * K2 + kw) * C1
                p2_ref[pl.ds(dst, U2), col:col + C1] = piece
        return carry
    jax.lax.fori_loop(0, HW2, conv2_row, 0)

    full2 = jnp.dot(p2_ref[...].astype(bf16), w2_ref[...], preferred_element_type=f32)
    a2v = jnp.dot(sel_ref[...], full2, preferred_element_type=f32)  # (144, 64)
    a2_ref[...] = jnp.maximum(a2v + b2_ref[...], 0.0)

    # ---------------- conv3: 64 -> 64, k=3, s=1  (9x9 -> 7x7) --------------------
    def conv3_row(ho3, carry):
        dst = pl.multiple_of(ho3 * R3, 8)
        for kh in range(K3):
            src = pl.multiple_of((ho3 + kh) * RA2, 8)
            blk = a2_ref[pl.ds(src, RA2), :]                      # (16, 64)
            for kw in range(K3):
                piece = blk[kw:kw + HW3, :]                       # (7, 64)
                col = (kh * K3 + kw) * C3
                p3_ref[pl.ds(dst, HW3), col:col + C3] = piece
        return carry
    jax.lax.fori_loop(0, HW3, conv3_row, 0)

    h3 = jnp.dot(p3_ref[...].astype(bf16), w3_ref[...], preferred_element_type=f32)
    h3 = jnp.maximum(h3 + b3_ref[...], 0.0)                       # (56, 64)

    # ---------------- flatten ((h,w,c) order; fc1 weight was permuted to match) --
    for ho3 in range(HW3):
        for wo3 in range(HW3):
            cc = (ho3 * HW3 + wo3) * C3
            f_ref[0:1, cc:cc + C3] = h3[ho3 * R3 + wo3:ho3 * R3 + wo3 + 1, :]

    # ---------------- fc1 + ReLU, fc2 --------------------------------------------
    y1 = jnp.dot(f_ref[...].astype(bf16), wf1_ref[...], preferred_element_type=f32)
    y1 = jnp.maximum(y1 + bf1_ref[...], 0.0)                      # (1, 512) f32
    q = jnp.dot(y1.astype(bf16), wf2_ref[...], preferred_element_type=f32)
    q = q + bf2_ref[...]                                          # (1, 128)
    out_ref[...] = jnp.broadcast_to(q, out_ref.shape)


# ----------------------------------------------------------------------------- wrapper
def qnetwork_forward(params, x):
    """x: (B, 4, 84, 84) float32 in [0, 255); returns (B, n_actions)."""
    B = x.shape[0]
    A = params["wf2"].shape[1]
    bf16 = jnp.bfloat16

    # input: NCHW -> channels-last, W padded 84->96, chunked into (B, 84*24, 16)
    xh = jnp.transpose(x, (0, 2, 3, 1))
    xh = jnp.pad(xh, ((0, 0), (0, 0), (0, W0P - W0), (0, 0)))
    xc = xh.reshape(B, H0 * CPR, 16)

    # weights reordered to the kernel's (kh, kw, c_in) patch order, cast to bf16
    w1p = jnp.transpose(params["w1"], (2, 3, 1, 0)).reshape(K1 * K1 * C0, C1).astype(bf16)
    w2p = jnp.transpose(params["w2"], (2, 3, 1, 0)).reshape(K2 * K2 * C1, C2).astype(bf16)
    w3p = jnp.transpose(params["w3"], (2, 3, 1, 0)).reshape(K3 * K3 * C2, C3).astype(bf16)
    # torch Flatten is (c, h, w); kernel flattens (h, w, c) -> permute fc1 rows once
    wf1p = params["wf1"].reshape(C3, HW3 * HW3, 512).transpose(1, 0, 2).reshape(FDIM, 512).astype(bf16)
    wf2p = jnp.pad(params["wf2"].astype(bf16), ((0, 0), (0, APAD - A)))

    b1 = params["b1"].reshape(1, C1)
    b2 = params["b2"].reshape(1, C2)
    b3 = params["b3"].reshape(1, C3)
    bf1 = params["bf1"].reshape(1, 512)
    bf2 = jnp.pad(params["bf2"], (0, APAD - A)).reshape(1, APAD)
    sel = jnp.asarray(_SEL)

    full = lambda shape: pl.BlockSpec(shape, lambda b: (0,) * len(shape))
    grid_spec = pltpu.PrefetchScalarGridSpec(
        num_scalar_prefetch=0,
        grid=(B,),
        in_specs=[
            pl.BlockSpec((None, H0 * CPR, 16), lambda b: (b, 0, 0)),   # x (per image)
            full(sel.shape), full(w1p.shape), full(b1.shape),
            full(w2p.shape), full(b2.shape), full(w3p.shape), full(b3.shape),
            full(wf1p.shape), full(bf1.shape), full(wf2p.shape), full(bf2.shape),
        ],
        out_specs=pl.BlockSpec((None, 8, APAD), lambda b: (b, 0, 0)),
        scratch_shapes=[
            pltpu.VMEM((HW1 * R1, K1 * K1 * C0), jnp.float32),   # p1 (480, 256)
            pltpu.VMEM((HW1 * R1, C1), jnp.float32),             # a1 (480, 32)
            pltpu.VMEM((HW2 * R2, K2 * K2 * C1), jnp.float32),   # p2 (216, 512)
            pltpu.VMEM((HW2 * RA2, C2), jnp.float32),            # a2 (144, 64)
            pltpu.VMEM((HW3 * R3, K3 * K3 * C2), jnp.float32),   # p3 (56, 576)
            pltpu.VMEM((1, FDIM), jnp.float32),                  # flattened features
        ],
    )
    out = pl.pallas_call(
        _qnet_kernel,
        out_shape=jax.ShapeDtypeStruct((B, 8, APAD), jnp.float32),
        grid_spec=grid_spec,
        compiler_params=pltpu.CompilerParams(
            dimension_semantics=("parallel",),
            vmem_limit_bytes=32 * 1024 * 1024,
        ),
    )(xc, sel, w1p, b1, w2p, b2, w3p, b3, wf1p, bf1, wf2p, bf2)
    return out[:, 0, :A]


# ----------------------------------------------------------------------------- params / reference
def init_params(key, n_actions):
    ks = jax.random.split(key, 10)

    def w(k, shape):
        fan_in = int(np.prod(shape[1:])) if len(shape) == 4 else shape[0]
        return jax.random.normal(k, shape, jnp.float32) / jnp.sqrt(fan_in)

    return {
        "w1": w(ks[0], (32, 4, 8, 8)),   "b1": jax.random.normal(ks[1], (32,), jnp.float32) * 0.01,
        "w2": w(ks[2], (64, 32, 4, 4)),  "b2": jax.random.normal(ks[3], (64,), jnp.float32) * 0.01,
        "w3": w(ks[4], (64, 64, 3, 3)),  "b3": jax.random.normal(ks[5], (64,), jnp.float32) * 0.01,
        "wf1": w(ks[6], (3136, 512)),    "bf1": jax.random.normal(ks[7], (512,), jnp.float32) * 0.01,
        "wf2": w(ks[8], (512, n_actions)),
        "bf2": jax.random.normal(ks[9], (n_actions,), jnp.float32) * 0.01,
    }


def reference_forward(params, x):
    h = x / 255.0

    def conv(h, w, b, s):
        y = jax.lax.conv_general_dilated(
            h, w, (s, s), "VALID", dimension_numbers=("NCHW", "OIHW", "NCHW"))
        return jax.nn.relu(y + b[None, :, None, None])

    h = conv(h, params["w1"], params["b1"], 4)
    h = conv(h, params["w2"], params["b2"], 2)
    h = conv(h, params["w3"], params["b3"], 1)
    h = h.reshape(h.shape[0], -1)
    h = jax.nn.relu(h @ params["wf1"] + params["bf1"])
    return h @ params["wf2"] + params["bf2"]


# ----------------------------------------------------------------------------- main
if __name__ == "__main__":
    key = jax.random.PRNGKey(0)
    kx, kp = jax.random.split(key)

    N_ACTIONS = 6          # env.single_action_space.n (synthetic)
    B = 2                  # 84x84 spatial is forced by Linear(3136, 512) = 64*7*7
    x = jax.random.uniform(kx, (B, 4, 84, 84), jnp.float32, 0.0, 255.0)
    params = init_params(kp, N_ACTIONS)

    q = jax.jit(qnetwork_forward)(params, x)
    q = jax.block_until_ready(q)

    ref = reference_forward(params, x)
    assert q.shape == (B, N_ACTIONS)
    # bf16 matmuls (f32 accumulation) -> loosened tolerance vs the f32 reference
    if not np.allclose(np.asarray(q), np.asarray(ref), rtol=5e-2, atol=5e-2):
        raise AssertionError("Pallas QNetwork output mismatch vs JAX reference")

    print("KERNEL_OK")
</pallas_src>

<mosaic_0001>
module attributes {stable_mosaic.version = 11 : i64} {
  func.func @_qnet_kernel(%arg0: i32, %arg1: memref<1x2016x16xf32, #tpu.memory_space<vmem>>, %arg2: memref<144x216xf32, #tpu.memory_space<vmem>>, %arg3: memref<256x32xbf16, #tpu.memory_space<vmem>>, %arg4: memref<1x32xf32, #tpu.memory_space<vmem>>, %arg5: memref<512x64xbf16, #tpu.memory_space<vmem>>, %arg6: memref<1x64xf32, #tpu.memory_space<vmem>>, %arg7: memref<576x64xbf16, #tpu.memory_space<vmem>>, %arg8: memref<1x64xf32, #tpu.memory_space<vmem>>, %arg9: memref<3136x512xbf16, #tpu.memory_space<vmem>>, %arg10: memref<1x512xf32, #tpu.memory_space<vmem>>, %arg11: memref<512x128xbf16, #tpu.memory_space<vmem>>, %arg12: memref<1x128xf32, #tpu.memory_space<vmem>>, %arg13: memref<1x8x128xf32, #tpu.memory_space<vmem>>, %arg14: memref<480x256xf32, #tpu.memory_space<vmem>>, %arg15: memref<480x32xf32, #tpu.memory_space<vmem>>, %arg16: memref<216x512xf32, #tpu.memory_space<vmem>>, %arg17: memref<144x64xf32, #tpu.memory_space<vmem>>, %arg18: memref<56x576xf32, #tpu.memory_space<vmem>>, %arg19: memref<1x3136xf32, #tpu.memory_space<vmem>>) attributes {dimension_semantics = [#tpu.dimension_semantics<parallel>], iteration_bounds = array<i64: 2>, scalar_prefetch = 0 : i64, scratch_operands = 6 : i64, tpu.core_type = #tpu.core_type<tc>, window_params = [{transform_indices = @transform_0, window_bounds = array<i64: 1, 2016, 16>}, {pipeline_mode = #tpu.pipeline_mode<synchronous>, transform_indices = @transform_1, window_bounds = array<i64: 144, 216>}, {pipeline_mode = #tpu.pipeline_mode<synchronous>, transform_indices = @transform_2, window_bounds = array<i64: 256, 32>}, {pipeline_mode = #tpu.pipeline_mode<synchronous>, transform_indices = @transform_3, window_bounds = array<i64: 1, 32>}, {pipeline_mode = #tpu.pipeline_mode<synchronous>, transform_indices = @transform_4, window_bounds = array<i64: 512, 64>}, {pipeline_mode = #tpu.pipeline_mode<synchronous>, transform_indices = @transform_5, window_bounds = array<i64: 1, 64>}, {pipeline_mode = #tpu.pipeline_mode<synchronous>, transform_indices = @transform_6, window_bounds = array<i64: 576, 64>}, {pipeline_mode = #tpu.pipeline_mode<synchronous>, transform_indices = @transform_7, window_bounds = array<i64: 1, 64>}, {pipeline_mode = #tpu.pipeline_mode<synchronous>, transform_indices = @transform_8, window_bounds = array<i64: 3136, 512>}, {pipeline_mode = #tpu.pipeline_mode<synchronous>, transform_indices = @transform_9, window_bounds = array<i64: 1, 512>}, {pipeline_mode = #tpu.pipeline_mode<synchronous>, transform_indices = @transform_10, window_bounds = array<i64: 512, 128>}, {pipeline_mode = #tpu.pipeline_mode<synchronous>, transform_indices = @transform_11, window_bounds = array<i64: 1, 128>}, {transform_indices = @transform_12, window_bounds = array<i64: 1, 8, 128>}]} {
    %cst = arith.constant 0.000000e+00 : f32
    %0 = vector.broadcast %cst : f32 to vector<216x512xf32>
    %c0 = arith.constant 0 : index
    %c0_0 = arith.constant 0 : index
    %1 = vector.load %arg16[%c0, %c0_0] : memref<216x512xf32, #tpu.memory_space<vmem>>, vector<216x512xf32>
    tpu.vector_store %arg16[%c0, %c0_0], %0 {strides = array<i32>} : memref<216x512xf32, #tpu.memory_space<vmem>>, vector<216x512xf32>,
    %c0_i32 = arith.constant 0 : i32
    %c20_i32 = arith.constant 20 : i32
    %2 = arith.addi %c0_i32, %c20_i32 : i32
    %c1_i32 = arith.constant 1 : i32
    scf.for %arg20 = %c0_i32 to %2 step %c1_i32  : i32 {
      %c24_i32 = arith.constant 24 : i32
      %152 = arith.muli %arg20, %c24_i32 : i32
      %153 = tpu.assume_multiple %152, 8 : i32
      %c4_i32 = arith.constant 4 : i32
      %154 = arith.muli %c4_i32, %arg20 : i32
      %c0_i32_105 = arith.constant 0 : i32
      %155 = arith.addi %154, %c0_i32_105 : i32
      %c24_i32_106 = arith.constant 24 : i32
      %156 = arith.muli %155, %c24_i32_106 : i32
      %157 = tpu.assume_multiple %156, 8 : i32
      %c0_107 = arith.constant 0 : index
      %158 = arith.index_cast %157 : i32 to index
      %c0_108 = arith.constant 0 : index
      %159 = vector.load %arg1[%c0_107, %158, %c0_108] : memref<1x2016x16xf32, #tpu.memory_space<vmem>>, vector<1x24x16xf32>
      %160 = vector.shape_cast %159 : vector<1x24x16xf32> to vector<24x16xf32>
      %cst_109 = arith.constant 0.00392156886 : f32
      %161 = vector.broadcast %cst_109 : f32 to vector<24x16xf32>
      %162 = arith.mulf %160, %161 : vector<24x16xf32>
      %163 = vector.extract_strided_slice %162 {offsets = [0, 0], sizes = [20, 16], strides = [1, 1]} : vector<24x16xf32> to vector<20x16xf32>
      %164 = arith.index_cast %153 : i32 to index
      %c0_110 = arith.constant 0 : index
      %165 = vector.load %arg14[%164, %c0_110] : memref<480x256xf32, #tpu.memory_space<vmem>>, vector<20x16xf32>
      tpu.vector_store %arg14[%164, %c0_110], %163 {strides = array<i32>} : memref<480x256xf32, #tpu.memory_space<vmem>>, vector<20x16xf32>,
      %166 = vector.extract_strided_slice %162 {offsets = [1, 0], sizes = [20, 16], strides = [1, 1]} : vector<24x16xf32> to vector<20x16xf32>
      %167 = arith.index_cast %153 : i32 to index
      %c16 = arith.constant 16 : index
      %168 = vector.load %arg14[%167, %c16] : memref<480x256xf32, #tpu.memory_space<vmem>>, vector<20x16xf32>
      tpu.vector_store %arg14[%167, %c16], %166 {strides = array<i32>} : memref<480x256xf32, #tpu.memory_space<vmem>>, vector<20x16xf32>,
      %c4_i32_111 = arith.constant 4 : i32
      %169 = arith.muli %c4_i32_111, %arg20 : i32
      %c1_i32_112 = arith.constant 1 : i32
      %170 = arith.addi %169, %c1_i32_112 : i32
      %c24_i32_113 = arith.constant 24 : i32
      %171 = arith.muli %170, %c24_i32_113 : i32
      %172 = tpu.assume_multiple %171, 8 : i32
      %c0_114 = arith.constant 0 : index
      %173 = arith.index_cast %172 : i32 to index
      %c0_115 = arith.constant 0 : index
      %174 = vector.load %arg1[%c0_114, %173, %c0_115] : memref<1x2016x16xf32, #tpu.memory_space<vmem>>, vector<1x24x16xf32>
      %175 = vector.shape_cast %174 : vector<1x24x16xf32> to vector<24x16xf32>
      %cst_116 = arith.constant 0.00392156886 : f32
      %176 = vector.broadcast %cst_116 : f32 to vector<24x16xf32>
      %177 = arith.mulf %175, %176 : vector<24x16xf32>
      %178 = vector.extract_strided_slice %177 {offsets = [0, 0], sizes = [20, 16], strides = [1, 1]} : vector<24x16xf32> to vector<20x16xf32>
      %179 = arith.index_cast %153 : i32 to index
      %c32 = arith.constant 32 : index
      %180 = vector.load %arg14[%179, %c32] : memref<480x256xf32, #tpu.memory_space<vmem>>, vector<20x16xf32>
      tpu.vector_store %arg14[%179, %c32], %178 {strides = array<i32>} : memref<480x256xf32, #tpu.memory_space<vmem>>, vector<20x16xf32>,
      %181 = vector.extract_strided_slice %177 {offsets = [1, 0], sizes = [20, 16], strides = [1, 1]} : vector<24x16xf32> to vector<20x16xf32>
      %182 = arith.index_cast %153 : i32 to index
      %c48 = arith.constant 48 : index
      %183 = vector.load %arg14[%182, %c48] : memref<480x256xf32, #tpu.memory_space<vmem>>, vector<20x16xf32>
      tpu.vector_store %arg14[%182, %c48], %181 {strides = array<i32>} : memref<480x256xf32, #tpu.memory_space<vmem>>, vector<20x16xf32>,
      %c4_i32_117 = arith.constant 4 : i32
      %184 = arith.muli %c4_i32_117, %arg20 : i32
      %c2_i32 = arith.constant 2 : i32
      %185 = arith.addi %184, %c2_i32 : i32
      %c24_i32_118 = arith.constant 24 : i32
      %186 = arith.muli %185, %c24_i32_118 : i32
      %187 = tpu.assume_multiple %186, 8 : i32
      %c0_119 = arith.constant 0 : index
      %188 = arith.index_cast %187 : i32 to index
      %c0_120 = arith.constant 0 : index
      %189 = vector.load %arg1[%c0_119, %188, %c0_120] : memref<1x2016x16xf32, #tpu.memory_space<vmem>>, vector<1x24x16xf32>
      %190 = vector.shape_cast %189 : vector<1x24x16xf32> to vector<24x16xf32>
      %cst_121 = arith.constant 0.00392156886 : f32
      %191 = vector.broadcast %cst_121 : f32 to vector<24x16xf32>
      %192 = arith.mulf %190, %191 : vector<24x16xf32>
      %193 = vector.extract_strided_slice %192 {offsets = [0, 0], sizes = [20, 16], strides = [1, 1]} : vector<24x16xf32> to vector<20x16xf32>
      %194 = arith.index_cast %153 : i32 to index
      %c64_122 = arith.constant 64 : index
      %195 = vector.load %arg14[%194, %c64_122] : memref<480x256xf32, #tpu.memory_space<vmem>>, vector<20x16xf32>
      tpu.vector_store %arg14[%194, %c64_122], %193 {strides = array<i32>} : memref<480x256xf32, #tpu.memory_space<vmem>>, vector<20x16xf32>,
      %196 = vector.extract_strided_slice %192 {offsets = [1, 0], sizes = [20, 16], strides = [1, 1]} : vector<24x16xf32> to vector<20x16xf32>
      %197 = arith.index_cast %153 : i32 to index
      %c80 = arith.constant 80 : index
      %198 = vector.load %arg14[%197, %c80] : memref<480x256xf32, #tpu.memory_space<vmem>>, vector<20x16xf32>
      tpu.vector_store %arg14[%197, %c80], %196 {strides = array<i32>} : memref<480x256xf32, #tpu.memory_space<vmem>>, vector<20x16xf32>,
      %c4_i32_123 = arith.constant 4 : i32
      %199 = arith.muli %c4_i32_123, %arg20 : i32
      %c3_i32 = arith.constant 3 : i32
      %200 = arith.addi %199, %c3_i32 : i32
      %c24_i32_124 = arith.constant 24 : i32
      %201 = arith.muli %200, %c24_i32_124 : i32
      %202 = tpu.assume_multiple %201, 8 : i32
      %c0_125 = arith.constant 0 : index
      %203 = arith.index_cast %202 : i32 to index
      %c0_126 = arith.constant 0 : index
      %204 = vector.load %arg1[%c0_125, %203, %c0_126] : memref<1x2016x16xf32, #tpu.memory_space<vmem>>, vector<1x24x16xf32>
      %205 = vector.shape_cast %204 : vector<1x24x16xf32> to vector<24x16xf32>
      %cst_127 = arith.constant 0.00392156886 : f32
      %206 = vector.broadcast %cst_127 : f32 to vector<24x16xf32>
      %207 = arith.mulf %205, %206 : vector<24x16xf32>
      %208 = vector.extract_strided_slice %207 {offsets = [0, 0], sizes = [20, 16], strides = [1, 1]} : vector<24x16xf32> to vector<20x16xf32>
      %209 = arith.index_cast %153 : i32 to index
      %c96 = arith.constant 96 : index
      %210 = vector.load %arg14[%209, %c96] : memref<480x256xf32, #tpu.memory_space<vmem>>, vector<20x16xf32>
      tpu.vector_store %arg14[%209, %c96], %208 {strides = array<i32>} : memref<480x256xf32, #tpu.memory_space<vmem>>, vector<20x16xf32>,
      %211 = vector.extract_strided_slice %207 {offsets = [1, 0], sizes = [20, 16], strides = [1, 1]} : vector<24x16xf32> to vector<20x16xf32>
      %212 = arith.index_cast %153 : i32 to index
      %c112 = arith.constant 112 : index
      %213 = vector.load %arg14[%212, %c112] : memref<480x256xf32, #tpu.memory_space<vmem>>, vector<20x16xf32>
      tpu.vector_store %arg14[%212, %c112], %211 {strides = array<i32>} : memref<480x256xf32, #tpu.memory_space<vmem>>, vector<20x16xf32>,
      %c4_i32_128 = arith.constant 4 : i32
      %214 = arith.muli %c4_i32_128, %arg20 : i32
      %c4_i32_129 = arith.constant 4 : i32
      %215 = arith.addi %214, %c4_i32_129 : i32
      %c24_i32_130 = arith.constant 24 : i32
      %216 = arith.muli %215, %c24_i32_130 : i32
      %217 = tpu.assume_multiple %216, 8 : i32
      %c0_131 = arith.constant 0 : index
      %218 = arith.index_cast %217 : i32 to index
      %c0_132 = arith.constant 0 : index
      %219 = vector.load %arg1[%c0_131, %218, %c0_132] : memref<1x2016x16xf32, #tpu.memory_space<vmem>>, vector<1x24x16xf32>
      %220 = vector.shape_cast %219 : vector<1x24x16xf32> to vector<24x16xf32>
      %cst_133 = arith.constant 0.00392156886 : f32
      %221 = vector.broadcast %cst_133 : f32 to vector<24x16xf32>
      %222 = arith.mulf %220, %221 : vector<24x16xf32>
      %223 = vector.extract_strided_slice %222 {offsets = [0, 0], sizes = [20, 16], strides = [1, 1]} : vector<24x16xf32> to vector<20x16xf32>
      %224 = arith.index_cast %153 : i32 to index
      %c128_134 = arith.constant 128 : index
      %225 = vector.load %arg14[%224, %c128_134] : memref<480x256xf32, #tpu.memory_space<vmem>>, vector<20x16xf32>
      tpu.vector_store %arg14[%224, %c128_134], %223 {strides = array<i32>} : memref<480x256xf32, #tpu.memory_space<vmem>>, vector<20x16xf32>,
      %226 = vector.extract_strided_slice %222 {offsets = [1, 0], sizes = [20, 16], strides = [1, 1]} : vector<24x16xf32> to vector<20x16xf32>
      %227 = arith.index_cast %153 : i32 to index
      %c144 = arith.constant 144 : index
      %228 = vector.load %arg14[%227, %c144] : memref<480x256xf32, #tpu.memory_space<vmem>>, vector<20x16xf32>
      tpu.vector_store %arg14[%227, %c144], %226 {strides = array<i32>} : memref<480x256xf32, #tpu.memory_space<vmem>>, vector<20x16xf32>,
      %c4_i32_135 = arith.constant 4 : i32
      %229 = arith.muli %c4_i32_135, %arg20 : i32
      %c5_i32 = arith.constant 5 : i32
      %230 = arith.addi %229, %c5_i32 : i32
      %c24_i32_136 = arith.constant 24 : i32
      %231 = arith.muli %230, %c24_i32_136 : i32
      %232 = tpu.assume_multiple %231, 8 : i32
      %c0_137 = arith.constant 0 : index
      %233 = arith.index_cast %232 : i32 to index
      %c0_138 = arith.constant 0 : index
      %234 = vector.load %arg1[%c0_137, %233, %c0_138] : memref<1x2016x16xf32, #tpu.memory_space<vmem>>, vector<1x24x16xf32>
      %235 = vector.shape_cast %234 : vector<1x24x16xf32> to vector<24x16xf32>
      %cst_139 = arith.constant 0.00392156886 : f32
      %236 = vector.broadcast %cst_139 : f32 to vector<24x16xf32>
      %237 = arith.mulf %235, %236 : vector<24x16xf32>
      %238 = vector.extract_strided_slice %237 {offsets = [0, 0], sizes = [20, 16], strides = [1, 1]} : vector<24x16xf32> to vector<20x16xf32>
      %239 = arith.index_cast %153 : i32 to index
      %c160 = arith.constant 160 : index
      %240 = vector.load %arg14[%239, %c160] : memref<480x256xf32, #tpu.memory_space<vmem>>, vector<20x16xf32>
      tpu.vector_store %arg14[%239, %c160], %238 {strides = array<i32>} : memref<480x256xf32, #tpu.memory_space<vmem>>, vector<20x16xf32>,
      %241 = vector.extract_strided_slice %237 {offsets = [1, 0], sizes = [20, 16], strides = [1, 1]} : vector<24x16xf32> to vector<20x16xf32>
      %242 = arith.index_cast %153 : i32 to index
      %c176 = arith.constant 176 : index
      %243 = vector.load %arg14[%242, %c176] : memref<480x256xf32, #tpu.memory_space<vmem>>, vector<20x16xf32>
      tpu.vector_store %arg14[%242, %c176], %241 {strides = array<i32>} : memref<480x256xf32, #tpu.memory_space<vmem>>, vector<20x16xf32>,
      %c4_i32_140 = arith.constant 4 : i32
      %244 = arith.muli %c4_i32_140, %arg20 : i32
      %c6_i32 = arith.constant 6 : i32
      %245 = arith.addi %244, %c6_i32 : i32
      %c24_i32_141 = arith.constant 24 : i32
      %246 = arith.muli %245, %c24_i32_141 : i32
      %247 = tpu.assume_multiple %246, 8 : i32
      %c0_142 = arith.constant 0 : index
      %248 = arith.index_cast %247 : i32 to index
      %c0_143 = arith.constant 0 : index
      %249 = vector.load %arg1[%c0_142, %248, %c0_143] : memref<1x2016x16xf32, #tpu.memory_space<vmem>>, vector<1x24x16xf32>
      %250 = vector.shape_cast %249 : vector<1x24x16xf32> to vector<24x16xf32>
      %cst_144 = arith.constant 0.00392156886 : f32
      %251 = vector.broadcast %cst_144 : f32 to vector<24x16xf32>
      %252 = arith.mulf %250, %251 : vector<24x16xf32>
      %253 = vector.extract_strided_slice %252 {offsets = [0, 0], sizes = [20, 16], strides = [1, 1]} : vector<24x16xf32> to vector<20x16xf32>
      %254 = arith.index_cast %153 : i32 to index
      %c192_145 = arith.constant 192 : index
      %255 = vector.load %arg14[%254, %c192_145] : memref<480x256xf32, #tpu.memory_space<vmem>>, vector<20x16xf32>
      tpu.vector_store %arg14[%254, %c192_145], %253 {strides = array<i32>} : memref<480x256xf32, #tpu.memory_space<vmem>>, vector<20x16xf32>,
      %256 = vector.extract_strided_slice %252 {offsets = [1, 0], sizes = [20, 16], strides = [1, 1]} : vector<24x16xf32> to vector<20x16xf32>
      %257 = arith.index_cast %153 : i32 to index
      %c208 = arith.constant 208 : index
      %258 = vector.load %arg14[%257, %c208] : memref<480x256xf32, #tpu.memory_space<vmem>>, vector<20x16xf32>
      tpu.vector_store %arg14[%257, %c208], %256 {strides = array<i32>} : memref<480x256xf32, #tpu.memory_space<vmem>>, vector<20x16xf32>,
      %c4_i32_146 = arith.constant 4 : i32
      %259 = arith.muli %c4_i32_146, %arg20 : i32
      %c7_i32_147 = arith.constant 7 : i32
      %260 = arith.addi %259, %c7_i32_147 : i32
      %c24_i32_148 = arith.constant 24 : i32
      %261 = arith.muli %260, %c24_i32_148 : i32
      %262 = tpu.assume_multiple %261, 8 : i32
      %c0_149 = arith.constant 0 : index
      %263 = arith.index_cast %262 : i32 to index
      %c0_150 = arith.constant 0 : index
      %264 = vector.load %arg1[%c0_149, %263, %c0_150] : memref<1x2016x16xf32, #tpu.memory_space<vmem>>, vector<1x24x16xf32>
      %265 = vector.shape_cast %264 : vector<1x24x16xf32> to vector<24x16xf32>
      %cst_151 = arith.constant 0.00392156886 : f32
      %266 = vector.broadcast %cst_151 : f32 to vector<24x16xf32>
      %267 = arith.mulf %265, %266 : vector<24x16xf32>
      %268 = vector.extract_strided_slice %267 {offsets = [0, 0], sizes = [20, 16], strides = [1, 1]} : vector<24x16xf32> to vector<20x16xf32>
      %269 = arith.index_cast %153 : i32 to index
      %c224 = arith.constant 224 : index
      %270 = vector.load %arg14[%269, %c224] : memref<480x256xf32, #tpu.memory_space<vmem>>, vector<20x16xf32>
      tpu.vector_store %arg14[%269, %c224], %268 {strides = array<i32>} : memref<480x256xf32, #tpu.memory_space<vmem>>, vector<20x16xf32>,
      %271 = vector.extract_strided_slice %267 {offsets = [1, 0], sizes = [20, 16], strides = [1, 1]} : vector<24x16xf32> to vector<20x16xf32>
      %272 = arith.index_cast %153 : i32 to index
      %c240 = arith.constant 240 : index
      %273 = vector.load %arg14[%272, %c240] : memref<480x256xf32, #tpu.memory_space<vmem>>, vector<20x16xf32>
      tpu.vector_store %arg14[%272, %c240], %271 {strides = array<i32>} : memref<480x256xf32, #tpu.memory_space<vmem>>, vector<20x16xf32>,
    }
    %c20_i32_1 = arith.constant 20 : i32
    %c0_2 = arith.constant 0 : index
    %c0_3 = arith.constant 0 : index
    %3 = vector.load %arg14[%c0_2, %c0_3] : memref<480x256xf32, #tpu.memory_space<vmem>>, vector<480x256xf32>
    %4 = arith.truncf %3 : vector<480x256xf32> to vector<480x256xbf16>
    %c0_4 = arith.constant 0 : index
    %c0_5 = arith.constant 0 : index
    %5 = vector.load %arg3[%c0_4, %c0_5] : memref<256x32xbf16, #tpu.memory_space<vmem>>, vector<256x32xbf16>
    %cst_6 = arith.constant dense<0.000000e+00> : vector<480x32xf32>
    %6 = tpu.matmul %4, %5, %cst_6 {dimension_numbers = #tpu.dot_dimension_numbers<[1], [0], [0], [1], [0, 0, 1, 1], [], []>} : vector<480x256xbf16>, vector<256x32xbf16>, vector<480x32xf32> -> vector<480x32xf32>
    %c0_7 = arith.constant 0 : index
    %c0_8 = arith.constant 0 : index
    %7 = vector.load %arg4[%c0_7, %c0_8] : memref<1x32xf32, #tpu.memory_space<vmem>>, vector<1x32xf32>
    %8 = vector.broadcast %7 : vector<1x32xf32> to vector<480x32xf32>
    %9 = arith.addf %6, %8 : vector<480x32xf32>
    %cst_9 = arith.constant 0.000000e+00 : f32
    %10 = vector.broadcast %cst_9 : f32 to vector<480x32xf32>
    %11 = arith.maximumf %9, %10 : vector<480x32xf32>
    %c0_10 = arith.constant 0 : index
    %c0_11 = arith.constant 0 : index
    %12 = vector.load %arg15[%c0_10, %c0_11] : memref<480x32xf32, #tpu.memory_space<vmem>>, vector<480x32xf32>
    tpu.vector_store %arg15[%c0_10, %c0_11], %11 {strides = array<i32>} : memref<480x32xf32, #tpu.memory_space<vmem>>, vector<480x32xf32>,
    %c0_i32_12 = arith.constant 0 : i32
    %c9_i32 = arith.constant 9 : i32
    %13 = arith.addi %c0_i32_12, %c9_i32 : i32
    %c1_i32_13 = arith.constant 1 : i32
    scf.for %arg20 = %c0_i32_12 to %13 step %c1_i32_13  : i32 {
      %c24_i32 = arith.constant 24 : i32
      %152 = arith.muli %arg20, %c24_i32 : i32
      %153 = tpu.assume_multiple %152, 8 : i32
      %c2_i32 = arith.constant 2 : i32
      %154 = arith.muli %c2_i32, %arg20 : i32
      %c0_i32_105 = arith.constant 0 : i32
      %155 = arith.addi %154, %c0_i32_105 : i32
      %c24_i32_106 = arith.constant 24 : i32
      %156 = arith.muli %155, %c24_i32_106 : i32
      %157 = tpu.assume_multiple %156, 8 : i32
      %158 = arith.index_cast %157 : i32 to index
      %c0_107 = arith.constant 0 : index
      %159 = vector.load %arg15[%158, %c0_107] : memref<480x32xf32, #tpu.memory_space<vmem>>, vector<24x32xf32>
      %160 = vector.extract_strided_slice %159 {offsets = [0, 0], sizes = [17, 32], strides = [1, 1]} : vector<24x32xf32> to vector<17x32xf32>
      %161 = arith.index_cast %153 : i32 to index
      %c0_108 = arith.constant 0 : index
      %162 = vector.load %arg16[%161, %c0_108] : memref<216x512xf32, #tpu.memory_space<vmem>>, vector<17x32xf32>
      tpu.vector_store %arg16[%161, %c0_108], %160 {strides = array<i32>} : memref<216x512xf32, #tpu.memory_space<vmem>>, vector<17x32xf32>,
      %163 = vector.extract_strided_slice %159 {offsets = [1, 0], sizes = [17, 32], strides = [1, 1]} : vector<24x32xf32> to vector<17x32xf32>
      %164 = arith.index_cast %153 : i32 to index
      %c32 = arith.constant 32 : index
      %165 = vector.load %arg16[%164, %c32] : memref<216x512xf32, #tpu.memory_space<vmem>>, vector<17x32xf32>
      tpu.vector_store %arg16[%164, %c32], %163 {strides = array<i32>} : memref<216x512xf32, #tpu.memory_space<vmem>>, vector<17x32xf32>,
      %166 = vector.extract_strided_slice %159 {offsets = [2, 0], sizes = [17, 32], strides = [1, 1]} : vector<24x32xf32> to vector<17x32xf32>
      %167 = arith.index_cast %153 : i32 to index
      %c64_109 = arith.constant 64 : index
      %168 = vector.load %arg16[%167, %c64_109] : memref<216x512xf32, #tpu.memory_space<vmem>>, vector<17x32xf32>
      tpu.vector_store %arg16[%167, %c64_109], %166 {strides = array<i32>} : memref<216x512xf32, #tpu.memory_space<vmem>>, vector<17x32xf32>,
      %169 = vector.extract_strided_slice %159 {offsets = [3, 0], sizes = [17, 32], strides = [1, 1]} : vector<24x32xf32> to vector<17x32xf32>
      %170 = arith.index_cast %153 : i32 to index
      %c96 = arith.constant 96 : index
      %171 = vector.load %arg16[%170, %c96] : memref<216x512xf32, #tpu.memory_space<vmem>>, vector<17x32xf32>
      tpu.vector_store %arg16[%170, %c96], %169 {strides = array<i32>} : memref<216x512xf32, #tpu.memory_space<vmem>>, vector<17x32xf32>,
      %c2_i32_110 = arith.constant 2 : i32
      %172 = arith.muli %c2_i32_110, %arg20 : i32
      %c1_i32_111 = arith.constant 1 : i32
      %173 = arith.addi %172, %c1_i32_111 : i32
      %c24_i32_112 = arith.constant 24 : i32
      %174 = arith.muli %173, %c24_i32_112 : i32
      %175 = tpu.assume_multiple %174, 8 : i32
      %176 = arith.index_cast %175 : i32 to index
      %c0_113 = arith.constant 0 : index
      %177 = vector.load %arg15[%176, %c0_113] : memref<480x32xf32, #tpu.memory_space<vmem>>, vector<24x32xf32>
      %178 = vector.extract_strided_slice %177 {offsets = [0, 0], sizes = [17, 32], strides = [1, 1]} : vector<24x32xf32> to vector<17x32xf32>
      %179 = arith.index_cast %153 : i32 to index
      %c128_114 = arith.constant 128 : index
      %180 = vector.load %arg16[%179, %c128_114] : memref<216x512xf32, #tpu.memory_space<vmem>>, vector<17x32xf32>
      tpu.vector_store %arg16[%179, %c128_114], %178 {strides = array<i32>} : memref<216x512xf32, #tpu.memory_space<vmem>>, vector<17x32xf32>,
      %181 = vector.extract_strided_slice %177 {offsets = [1, 0], sizes = [17, 32], strides = [1, 1]} : vector<24x32xf32> to vector<17x32xf32>
      %182 = arith.index_cast %153 : i32 to index
      %c160 = arith.constant 160 : index
      %183 = vector.load %arg16[%182, %c160] : memref<216x512xf32, #tpu.memory_space<vmem>>, vector<17x32xf32>
      tpu.vector_store %arg16[%182, %c160], %181 {strides = array<i32>} : memref<216x512xf32, #tpu.memory_space<vmem>>, vector<17x32xf32>,
      %184 = vector.extract_strided_slice %177 {offsets = [2, 0], sizes = [17, 32], strides = [1, 1]} : vector<24x32xf32> to vector<17x32xf32>
      %185 = arith.index_cast %153 : i32 to index
      %c192_115 = arith.constant 192 : index
      %186 = vector.load %arg16[%185, %c192_115] : memref<216x512xf32, #tpu.memory_space<vmem>>, vector<17x32xf32>
      tpu.vector_store %arg16[%185, %c192_115], %184 {strides = array<i32>} : memref<216x512xf32, #tpu.memory_space<vmem>>, vector<17x32xf32>,
      %187 = vector.extract_strided_slice %177 {offsets = [3, 0], sizes = [17, 32], strides = [1, 1]} : vector<24x32xf32> to vector<17x32xf32>
      %188 = arith.index_cast %153 : i32 to index
      %c224 = arith.constant 224 : index
      %189 = vector.load %arg16[%188, %c224] : memref<216x512xf32, #tpu.memory_space<vmem>>, vector<17x32xf32>
      tpu.vector_store %arg16[%188, %c224], %187 {strides = array<i32>} : memref<216x512xf32, #tpu.memory_space<vmem>>, vector<17x32xf32>,
      %c2_i32_116 = arith.constant 2 : i32
      %190 = arith.muli %c2_i32_116, %arg20 : i32
      %c2_i32_117 = arith.constant 2 : i32
      %191 = arith.addi %190, %c2_i32_117 : i32
      %c24_i32_118 = arith.constant 24 : i32
      %192 = arith.muli %191, %c24_i32_118 : i32
      %193 = tpu.assume_multiple %192, 8 : i32
      %194 = arith.index_cast %193 : i32 to index
      %c0_119 = arith.constant 0 : index
      %195 = vector.load %arg15[%194, %c0_119] : memref<480x32xf32, #tpu.memory_space<vmem>>, vector<24x32xf32>
      %196 = vector.extract_strided_slice %195 {offsets = [0, 0], sizes = [17, 32], strides = [1, 1]} : vector<24x32xf32> to vector<17x32xf32>
      %197 = arith.index_cast %153 : i32 to index
      %c256_120 = arith.constant 256 : index
      %198 = vector.load %arg16[%197, %c256_120] : memref<216x512xf32, #tpu.memory_space<vmem>>, vector<17x32xf32>
      tpu.vector_store %arg16[%197, %c256_120], %196 {strides = array<i32>} : memref<216x512xf32, #tpu.memory_space<vmem>>, vector<17x32xf32>,
      %199 = vector.extract_strided_slice %195 {offsets = [1, 0], sizes = [17, 32], strides = [1, 1]} : vector<24x32xf32> to vector<17x32xf32>
      %200 = arith.index_cast %153 : i32 to index
      %c288 = arith.constant 288 : index
      %201 = vector.load %arg16[%200, %c288] : memref<216x512xf32, #tpu.memory_space<vmem>>, vector<17x32xf32>
      tpu.vector_store %arg16[%200, %c288], %199 {strides = array<i32>} : memref<216x512xf32, #tpu.memory_space<vmem>>, vector<17x32xf32>,
      %202 = vector.extract_strided_slice %195 {offsets = [2, 0], sizes = [17, 32], strides = [1, 1]} : vector<24x32xf32> to vector<17x32xf32>
      %203 = arith.index_cast %153 : i32 to index
      %c320_121 = arith.constant 320 : index
      %204 = vector.load %arg16[%203, %c320_121] : memref<216x512xf32, #tpu.memory_space<vmem>>, vector<17x32xf32>
      tpu.vector_store %arg16[%203, %c320_121], %202 {strides = array<i32>} : memref<216x512xf32, #tpu.memory_space<vmem>>, vector<17x32xf32>,
      %205 = vector.extract_strided_slice %195 {offsets = [3, 0], sizes = [17, 32], strides = [1, 1]} : vector<24x32xf32> to vector<17x32xf32>
      %206 = arith.index_cast %153 : i32 to index
      %c352 = arith.constant 352 : index
      %207 = vector.load %arg16[%206, %c352] : memref<216x512xf32, #tpu.memory_space<vmem>>, vector<17x32xf32>
      tpu.vector_store %arg16[%206, %c352], %205 {strides = array<i32>} : memref<216x512xf32, #tpu.memory_space<vmem>>, vector<17x32xf32>,
      %c2_i32_122 = arith.constant 2 : i32
      %208 = arith.muli %c2_i32_122, %arg20 : i32
      %c3_i32 = arith.constant 3 : i32
      %209 = arith.addi %208, %c3_i32 : i32
      %c24_i32_123 = arith.constant 24 : i32
      %210 = arith.muli %209, %c24_i32_123 : i32
      %211 = tpu.assume_multiple %210, 8 : i32
      %212 = arith.index_cast %211 : i32 to index
      %c0_124 = arith.constant 0 : index
      %213 = vector.load %arg15[%212, %c0_124] : memref<480x32xf32, #tpu.memory_space<vmem>>, vector<24x32xf32>
      %214 = vector.extract_strided_slice %213 {offsets = [0, 0], sizes = [17, 32], strides = [1, 1]} : vector<24x32xf32> to vector<17x32xf32>
      %215 = arith.index_cast %153 : i32 to index
      %c384_125 = arith.constant 384 : index
      %216 = vector.load %arg16[%215, %c384_125] : memref<216x512xf32, #tpu.memory_space<vmem>>, vector<17x32xf32>
      tpu.vector_store %arg16[%215, %c384_125], %214 {strides = array<i32>} : memref<216x512xf32, #tpu.memory_space<vmem>>, vector<17x32xf32>,
      %217 = vector.extract_strided_slice %213 {offsets = [1, 0], sizes = [17, 32], strides = [1, 1]} : vector<24x32xf32> to vector<17x32xf32>
      %218 = arith.index_cast %153 : i32 to index
      %c416 = arith.constant 416 : index
      %219 = vector.load %arg16[%218, %c416] : memref<216x512xf32, #tpu.memory_space<vmem>>, vector<17x32xf32>
      tpu.vector_store %arg16[%218, %c416], %217 {strides = array<i32>} : memref<216x512xf32, #tpu.memory_space<vmem>>, vector<17x32xf32>,
      %220 = vector.extract_strided_slice %213 {offsets = [2, 0], sizes = [17, 32], strides = [1, 1]} : vector<24x32xf32> to vector<17x32xf32>
      %221 = arith.index_cast %153 : i32 to index
      %c448_126 = arith.constant 448 : index
      %222 = vector.load %arg16[%221, %c448_126] : memref<216x512xf32, #tpu.memory_space<vmem>>, vector<17x32xf32>
      tpu.vector_store %arg16[%221, %c448_126], %220 {strides = array<i32>} : memref<216x512xf32, #tpu.memory_space<vmem>>, vector<17x32xf32>,
      %223 = vector.extract_strided_slice %213 {offsets = [3, 0], sizes = [17, 32], strides = [1, 1]} : vector<24x32xf32> to vector<17x32xf32>
      %224 = arith.index_cast %153 : i32 to index
      %c480 = arith.constant 480 : index
      %225 = vector.load %arg16[%224, %c480] : memref<216x512xf32, #tpu.memory_space<vmem>>, vector<17x32xf32>
      tpu.vector_store %arg16[%224, %c480], %223 {strides = array<i32>} : memref<216x512xf32, #tpu.memory_space<vmem>>, vector<17x32xf32>,
    }
    %c9_i32_14 = arith.constant 9 : i32
    %c0_15 = arith.constant 0 : index
    %c0_16 = arith.constant 0 : index
    %14 = vector.load %arg16[%c0_15, %c0_16] : memref<216x512xf32, #tpu.memory_space<vmem>>, vector<216x512xf32>
    %15 = arith.truncf %14 : vector<216x512xf32> to vector<216x512xbf16>
    %c0_17 = arith.constant 0 : index
    %c0_18 = arith.constant 0 : index
    %16 = vector.load %arg5[%c0_17, %c0_18] : memref<512x64xbf16, #tpu.memory_space<vmem>>, vector<512x64xbf16>
    %cst_19 = arith.constant dense<0.000000e+00> : vector<216x64xf32>
    %17 = tpu.matmul %15, %16, %cst_19 {dimension_numbers = #tpu.dot_dimension_numbers<[1], [0], [0], [1], [0, 0, 1, 1], [], []>} : vector<216x512xbf16>, vector<512x64xbf16>, vector<216x64xf32> -> vector<216x64xf32>
    %c0_20 = arith.constant 0 : index
    %c0_21 = arith.constant 0 : index
    %18 = vector.load %arg2[%c0_20, %c0_21] : memref<144x216xf32, #tpu.memory_space<vmem>>, vector<144x216xf32>
    %cst_22 = arith.constant dense<0.000000e+00> : vector<144x64xf32>
    %19 = tpu.matmul %18, %17, %cst_22 {dimension_numbers = #tpu.dot_dimension_numbers<[1], [0], [0], [1], [0, 0, 1, 1], [], []>} : vector<144x216xf32>, vector<216x64xf32>, vector<144x64xf32> -> vector<144x64xf32>
    %c0_23 = arith.constant 0 : index
    %c0_24 = arith.constant 0 : index
    %20 = vector.load %arg6[%c0_23, %c0_24] : memref<1x64xf32, #tpu.memory_space<vmem>>, vector<1x64xf32>
    %21 = vector.broadcast %20 : vector<1x64xf32> to vector<144x64xf32>
    %22 = arith.addf %19, %21 : vector<144x64xf32>
    %cst_25 = arith.constant 0.000000e+00 : f32
    %23 = vector.broadcast %cst_25 : f32 to vector<144x64xf32>
    %24 = arith.maximumf %22, %23 : vector<144x64xf32>
    %c0_26 = arith.constant 0 : index
    %c0_27 = arith.constant 0 : index
    %25 = vector.load %arg17[%c0_26, %c0_27] : memref<144x64xf32, #tpu.memory_space<vmem>>, vector<144x64xf32>
    tpu.vector_store %arg17[%c0_26, %c0_27], %24 {strides = array<i32>} : memref<144x64xf32, #tpu.memory_space<vmem>>, vector<144x64xf32>,
    %c0_i32_28 = arith.constant 0 : i32
    %c7_i32 = arith.constant 7 : i32
    %26 = arith.addi %c0_i32_28, %c7_i32 : i32
    %c1_i32_29 = arith.constant 1 : i32
    scf.for %arg20 = %c0_i32_28 to %26 step %c1_i32_29  : i32 {
      %c8_i32 = arith.constant 8 : i32
      %152 = arith.muli %arg20, %c8_i32 : i32
      %153 = tpu.assume_multiple %152, 8 : i32
      %c0_i32_105 = arith.constant 0 : i32
      %154 = arith.addi %arg20, %c0_i32_105 : i32
      %c16_i32 = arith.constant 16 : i32
      %155 = arith.muli %154, %c16_i32 : i32
      %156 = tpu.assume_multiple %155, 8 : i32
      %157 = arith.index_cast %156 : i32 to index
      %c0_106 = arith.constant 0 : index
      %158 = vector.load %arg17[%157, %c0_106] : memref<144x64xf32, #tpu.memory_space<vmem>>, vector<16x64xf32>
      %159 = vector.extract_strided_slice %158 {offsets = [0, 0], sizes = [7, 64], strides = [1, 1]} : vector<16x64xf32> to vector<7x64xf32>
      %160 = arith.index_cast %153 : i32 to index
      %c0_107 = arith.constant 0 : index
      %161 = vector.load %arg18[%160, %c0_107] : memref<56x576xf32, #tpu.memory_space<vmem>>, vector<7x64xf32>
      tpu.vector_store %arg18[%160, %c0_107], %159 {strides = array<i32>} : memref<56x576xf32, #tpu.memory_space<vmem>>, vector<7x64xf32>,
      %162 = vector.extract_strided_slice %158 {offsets = [1, 0], sizes = [7, 64], strides = [1, 1]} : vector<16x64xf32> to vector<7x64xf32>
      %163 = arith.index_cast %153 : i32 to index
      %c64_108 = arith.constant 64 : index
      %164 = vector.load %arg18[%163, %c64_108] : memref<56x576xf32, #tpu.memory_space<vmem>>, vector<7x64xf32>
      tpu.vector_store %arg18[%163, %c64_108], %162 {strides = array<i32>} : memref<56x576xf32, #tpu.memory_space<vmem>>, vector<7x64xf32>,
      %165 = vector.extract_strided_slice %158 {offsets = [2, 0], sizes = [7, 64], strides = [1, 1]} : vector<16x64xf32> to vector<7x64xf32>
      %166 = arith.index_cast %153 : i32 to index
      %c128_109 = arith.constant 128 : index
      %167 = vector.load %arg18[%166, %c128_109] : memref<56x576xf32, #tpu.memory_space<vmem>>, vector<7x64xf32>
      tpu.vector_store %arg18[%166, %c128_109], %165 {strides = array<i32>} : memref<56x576xf32, #tpu.memory_space<vmem>>, vector<7x64xf32>,
      %c1_i32_110 = arith.constant 1 : i32
      %168 = arith.addi %arg20, %c1_i32_110 : i32
      %c16_i32_111 = arith.constant 16 : i32
      %169 = arith.muli %168, %c16_i32_111 : i32
      %170 = tpu.assume_multiple %169, 8 : i32
      %171 = arith.index_cast %170 : i32 to index
      %c0_112 = arith.constant 0 : index
      %172 = vector.load %arg17[%171, %c0_112] : memref<144x64xf32, #tpu.memory_space<vmem>>, vector<16x64xf32>
      %173 = vector.extract_strided_slice %172 {offsets = [0, 0], sizes = [7, 64], strides = [1, 1]} : vector<16x64xf32> to vector<7x64xf32>
      %174 = arith.index_cast %153 : i32 to index
      %c192_113 = arith.constant 192 : index
      %175 = vector.load %arg18[%174, %c192_113] : memref<56x576xf32, #tpu.memory_space<vmem>>, vector<7x64xf32>
      tpu.vector_store %arg18[%174, %c192_113], %173 {strides = array<i32>} : memref<56x576xf32, #tpu.memory_space<vmem>>, vector<7x64xf32>,
      %176 = vector.extract_strided_slice %172 {offsets = [1, 0], sizes = [7, 64], strides = [1, 1]} : vector<16x64xf32> to vector<7x64xf32>
      %177 = arith.index_cast %153 : i32 to index
      %c256_114 = arith.constant 256 : index
      %178 = vector.load %arg18[%177, %c256_114] : memref<56x576xf32, #tpu.memory_space<vmem>>, vector<7x64xf32>
      tpu.vector_store %arg18[%177, %c256_114], %176 {strides = array<i32>} : memref<56x576xf32, #tpu.memory_space<vmem>>, vector<7x64xf32>,
      %179 = vector.extract_strided_slice %172 {offsets = [2, 0], sizes = [7, 64], strides = [1, 1]} : vector<16x64xf32> to vector<7x64xf32>
      %180 = arith.index_cast %153 : i32 to index
      %c320_115 = arith.constant 320 : index
      %181 = vector.load %arg18[%180, %c320_115] : memref<56x576xf32, #tpu.memory_space<vmem>>, vector<7x64xf32>
      tpu.vector_store %arg18[%180, %c320_115], %179 {strides = array<i32>} : memref<56x576xf32, #tpu.memory_space<vmem>>, vector<7x64xf32>,
      %c2_i32 = arith.constant 2 : i32
      %182 = arith.addi %arg20, %c2_i32 : i32
      %c16_i32_116 = arith.constant 16 : i32
      %183 = arith.muli %182, %c16_i32_116 : i32
      %184 = tpu.assume_multiple %183, 8 : i32
      %185 = arith.index_cast %184 : i32 to index
      %c0_117 = arith.constant 0 : index
      %186 = vector.load %arg17[%185, %c0_117] : memref<144x64xf32, #tpu.memory_space<vmem>>, vector<16x64xf32>
      %187 = vector.extract_strided_slice %186 {offsets = [0, 0], sizes = [7, 64], strides = [1, 1]} : vector<16x64xf32> to vector<7x64xf32>
      %188 = arith.index_cast %153 : i32 to index
      %c384_118 = arith.constant 384 : index
      %189 = vector.load %arg18[%188, %c384_118] : memref<56x576xf32, #tpu.memory_space<vmem>>, vector<7x64xf32>
      tpu.vector_store %arg18[%188, %c384_118], %187 {strides = array<i32>} : memref<56x576xf32, #tpu.memory_space<vmem>>, vector<7x64xf32>,
      %190 = vector.extract_strided_slice %186 {offsets = [1, 0], sizes = [7, 64], strides = [1, 1]} : vector<16x64xf32> to vector<7x64xf32>
      %191 = arith.index_cast %153 : i32 to index
      %c448_119 = arith.constant 448 : index
      %192 = vector.load %arg18[%191, %c448_119] : memref<56x576xf32, #tpu.memory_space<vmem>>, vector<7x64xf32>
      tpu.vector_store %arg18[%191, %c448_119], %190 {strides = array<i32>} : memref<56x576xf32, #tpu.memory_space<vmem>>, vector<7x64xf32>,
      %193 = vector.extract_strided_slice %186 {offsets = [2, 0], sizes = [7, 64], strides = [1, 1]} : vector<16x64xf32> to vector<7x64xf32>
      %194 = arith.index_cast %153 : i32 to index
      %c512_120 = arith.constant 512 : index
      %195 = vector.load %arg18[%194, %c512_120] : memref<56x576xf32, #tpu.memory_space<vmem>>, vector<7x64xf32>
      tpu.vector_store %arg18[%194, %c512_120], %193 {strides = array<i32>} : memref<56x576xf32, #tpu.memory_space<vmem>>, vector<7x64xf32>,
    }
    %c7_i32_30 = arith.constant 7 : i32
    %c0_31 = arith.constant 0 : index
    %c0_32 = arith.constant 0 : index
    %27 = vector.load %arg18[%c0_31, %c0_32] : memref<56x576xf32, #tpu.memory_space<vmem>>, vector<56x576xf32>
    %28 = arith.truncf %27 : vector<56x576xf32> to vector<56x576xbf16>
    %c0_33 = arith.constant 0 : index
    %c0_34 = arith.constant 0 : index
    %29 = vector.load %arg7[%c0_33, %c0_34] : memref<576x64xbf16, #tpu.memory_space<vmem>>, vector<576x64xbf16>
    %cst_35 = arith.constant dense<0.000000e+00> : vector<56x64xf32>
    %30 = tpu.matmul %28, %29, %cst_35 {dimension_numbers = #tpu.dot_dimension_numbers<[1], [0], [0], [1], [0, 0, 1, 1], [], []>} : vector<56x576xbf16>, vector<576x64xbf16>, vector<56x64xf32> -> vector<56x64xf32>
    %c0_36 = arith.constant 0 : index
    %c0_37 = arith.constant 0 : index
    %31 = vector.load %arg8[%c0_36, %c0_37] : memref<1x64xf32, #tpu.memory_space<vmem>>, vector<1x64xf32>
    %32 = vector.broadcast %31 : vector<1x64xf32> to vector<56x64xf32>
    %33 = arith.addf %30, %32 : vector<56x64xf32>
    %cst_38 = arith.constant 0.000000e+00 : f32
    %34 = vector.broadcast %cst_38 : f32 to vector<56x64xf32>
    %35 = arith.maximumf %33, %34 : vector<56x64xf32>
    %36 = vector.extract_strided_slice %35 {offsets = [0, 0], sizes = [1, 64], strides = [1, 1]} : vector<56x64xf32> to vector<1x64xf32>
    %c0_39 = arith.constant 0 : index
    %c0_40 = arith.constant 0 : index
    %37 = vector.load %arg19[%c0_39, %c0_40] : memref<1x3136xf32, #tpu.memory_space<vmem>>, vector<1x64xf32>
    tpu.vector_store %arg19[%c0_39, %c0_40], %36 {strides = array<i32>} : memref<1x3136xf32, #tpu.memory_space<vmem>>, vector<1x64xf32>,
    %38 = vector.extract_strided_slice %35 {offsets = [1, 0], sizes = [1, 64], strides = [1, 1]} : vector<56x64xf32> to vector<1x64xf32>
    %c0_41 = arith.constant 0 : index
    %c64 = arith.constant 64 : index
    %39 = vector.load %arg19[%c0_41, %c64] : memref<1x3136xf32, #tpu.memory_space<vmem>>, vector<1x64xf32>
    tpu.vector_store %arg19[%c0_41, %c64], %38 {strides = array<i32>} : memref<1x3136xf32, #tpu.memory_space<vmem>>, vector<1x64xf32>,
    %40 = vector.extract_strided_slice %35 {offsets = [2, 0], sizes = [1, 64], strides = [1, 1]} : vector<56x64xf32> to vector<1x64xf32>
    %c0_42 = arith.constant 0 : index
    %c128 = arith.constant 128 : index
    %41 = vector.load %arg19[%c0_42, %c128] : memref<1x3136xf32, #tpu.memory_space<vmem>>, vector<1x64xf32>
    tpu.vector_store %arg19[%c0_42, %c128], %40 {strides = array<i32>} : memref<1x3136xf32, #tpu.memory_space<vmem>>, vector<1x64xf32>,
    %42 = vector.extract_strided_slice %35 {offsets = [3, 0], sizes = [1, 64], strides = [1, 1]} : vector<56x64xf32> to vector<1x64xf32>
    %c0_43 = arith.constant 0 : index
    %c192 = arith.constant 192 : index
    %43 = vector.load %arg19[%c0_43, %c192] : memref<1x3136xf32, #tpu.memory_space<vmem>>, vector<1x64xf32>
    tpu.vector_store %arg19[%c0_43, %c192], %42 {strides = array<i32>} : memref<1x3136xf32, #tpu.memory_space<vmem>>, vector<1x64xf32>,
    %44 = vector.extract_strided_slice %35 {offsets = [4, 0], sizes = [1, 64], strides = [1, 1]} : vector<56x64xf32> to vector<1x64xf32>
    %c0_44 = arith.constant 0 : index
    %c256 = arith.constant 256 : index
    %45 = vector.load %arg19[%c0_44, %c256] : memref<1x3136xf32, #tpu.memory_space<vmem>>, vector<1x64xf32>
    tpu.vector_store %arg19[%c0_44, %c256], %44 {strides = array<i32>} : memref<1x3136xf32, #tpu.memory_space<vmem>>, vector<1x64xf32>,
    %46 = vector.extract_strided_slice %35 {offsets = [5, 0], sizes = [1, 64], strides = [1, 1]} : vector<56x64xf32> to vector<1x64xf32>
    %c0_45 = arith.constant 0 : index
    %c320 = arith.constant 320 : index
    %47 = vector.load %arg19[%c0_45, %c320] : memref<1x3136xf32, #tpu.memory_space<vmem>>, vector<1x64xf32>
    tpu.vector_store %arg19[%c0_45, %c320], %46 {strides = array<i32>} : memref<1x3136xf32, #tpu.memory_space<vmem>>, vector<1x64xf32>,
    %48 = vector.extract_strided_slice %35 {offsets = [6, 0], sizes = [1, 64], strides = [1, 1]} : vector<56x64xf32> to vector<1x64xf32>
    %c0_46 = arith.constant 0 : index
    %c384 = arith.constant 384 : index
    %49 = vector.load %arg19[%c0_46, %c384] : memref<1x3136xf32, #tpu.memory_space<vmem>>, vector<1x64xf32>
    tpu.vector_store %arg19[%c0_46, %c384], %48 {strides = array<i32>} : memref<1x3136xf32, #tpu.memory_space<vmem>>, vector<1x64xf32>,
    %50 = vector.extract_strided_slice %35 {offsets = [8, 0], sizes = [1, 64], strides = [1, 1]} : vector<56x64xf32> to vector<1x64xf32>
    %c0_47 = arith.constant 0 : index
    %c448 = arith.constant 448 : index
    %51 = vector.load %arg19[%c0_47, %c448] : memref<1x3136xf32, #tpu.memory_space<vmem>>, vector<1x64xf32>
    tpu.vector_store %arg19[%c0_47, %c448], %50 {strides = array<i32>} : memref<1x3136xf32, #tpu.memory_space<vmem>>, vector<1x64xf32>,
    %52 = vector.extract_strided_slice %35 {offsets = [9, 0], sizes = [1, 64], strides = [1, 1]} : vector<56x64xf32> to vector<1x64xf32>
    %c0_48 = arith.constant 0 : index
    %c512 = arith.constant 512 : index
    %53 = vector.load %arg19[%c0_48, %c512] : memref<1x3136xf32, #tpu.memory_space<vmem>>, vector<1x64xf32>
    tpu.vector_store %arg19[%c0_48, %c512], %52 {strides = array<i32>} : memref<1x3136xf32, #tpu.memory_space<vmem>>, vector<1x64xf32>,
    %54 = vector.extract_strided_slice %35 {offsets = [10, 0], sizes = [1, 64], strides = [1, 1]} : vector<56x64xf32> to vector<1x64xf32>
    %c0_49 = arith.constant 0 : index
    %c576 = arith.constant 576 : index
    %55 = vector.load %arg19[%c0_49, %c576] : memref<1x3136xf32, #tpu.memory_space<vmem>>, vector<1x64xf32>
    tpu.vector_store %arg19[%c0_49, %c576], %54 {strides = array<i32>} : memref<1x3136xf32, #tpu.memory_space<vmem>>, vector<1x64xf32>,
    %56 = vector.extract_strided_slice %35 {offsets = [11, 0], sizes = [1, 64], strides = [1, 1]} : vector<56x64xf32> to vector<1x64xf32>
    %c0_50 = arith.constant 0 : index
    %c640 = arith.constant 640 : index
    %57 = vector.load %arg19[%c0_50, %c640] : memref<1x3136xf32, #tpu.memory_space<vmem>>, vector<1x64xf32>
    tpu.vector_store %arg19[%c0_50, %c640], %56 {strides = array<i32>} : memref<1x3136xf32, #tpu.memory_space<vmem>>, vector<1x64xf32>,
    %58 = vector.extract_strided_slice %35 {offsets = [12, 0], sizes = [1, 64], strides = [1, 1]} : vector<56x64xf32> to vector<1x64xf32>
    %c0_51 = arith.constant 0 : index
    %c704 = arith.constant 704 : index
    %59 = vector.load %arg19[%c0_51, %c704] : memref<1x3136xf32, #tpu.memory_space<vmem>>, vector<1x64xf32>
    tpu.vector_store %arg19[%c0_51, %c704], %58 {strides = array<i32>} : memref<1x3136xf32, #tpu.memory_space<vmem>>, vector<1x64xf32>,
    %60 = vector.extract_strided_slice %35 {offsets = [13, 0], sizes = [1, 64], strides = [1, 1]} : vector<56x64xf32> to vector<1x64xf32>
    %c0_52 = arith.constant 0 : index
    %c768 = arith.constant 768 : index
    %61 = vector.load %arg19[%c0_52, %c768] : memref<1x3136xf32, #tpu.memory_space<vmem>>, vector<1x64xf32>
    tpu.vector_store %arg19[%c0_52, %c768], %60 {strides = array<i32>} : memref<1x3136xf32, #tpu.memory_space<vmem>>, vector<1x64xf32>,
    %62 = vector.extract_strided_slice %35 {offsets = [14, 0], sizes = [1, 64], strides = [1, 1]} : vector<56x64xf32> to vector<1x64xf32>
    %c0_53 = arith.constant 0 : index
    %c832 = arith.constant 832 : index
    %63 = vector.load %arg19[%c0_53, %c832] : memref<1x3136xf32, #tpu.memory_space<vmem>>, vector<1x64xf32>
    tpu.vector_store %arg19[%c0_53, %c832], %62 {strides = array<i32>} : memref<1x3136xf32, #tpu.memory_space<vmem>>, vector<1x64xf32>,
    %64 = vector.extract_strided_slice %35 {offsets = [16, 0], sizes = [1, 64], strides = [1, 1]} : vector<56x64xf32> to vector<1x64xf32>
    %c0_54 = arith.constant 0 : index
    %c896 = arith.constant 896 : index
    %65 = vector.load %arg19[%c0_54, %c896] : memref<1x3136xf32, #tpu.memory_space<vmem>>, vector<1x64xf32>
    tpu.vector_store %arg19[%c0_54, %c896], %64 {strides = array<i32>} : memref<1x3136xf32, #tpu.memory_space<vmem>>, vector<1x64xf32>,
    %66 = vector.extract_strided_slice %35 {offsets = [17, 0], sizes = [1, 64], strides = [1, 1]} : vector<56x64xf32> to vector<1x64xf32>
    %c0_55 = arith.constant 0 : index
    %c960 = arith.constant 960 : index
    %67 = vector.load %arg19[%c0_55, %c960] : memref<1x3136xf32, #tpu.memory_space<vmem>>, vector<1x64xf32>
    tpu.vector_store %arg19[%c0_55, %c960], %66 {strides = array<i32>} : memref<1x3136xf32, #tpu.memory_space<vmem>>, vector<1x64xf32>,
    %68 = vector.extract_strided_slice %35 {offsets = [18, 0], sizes = [1, 64], strides = [1, 1]} : vector<56x64xf32> to vector<1x64xf32>
    %c0_56 = arith.constant 0 : index
    %c1024 = arith.constant 1024 : index
    %69 = vector.load %arg19[%c0_56, %c1024] : memref<1x3136xf32, #tpu.memory_space<vmem>>, vector<1x64xf32>
    tpu.vector_store %arg19[%c0_56, %c1024], %68 {strides = array<i32>} : memref<1x3136xf32, #tpu.memory_space<vmem>>, vector<1x64xf32>,
    %70 = vector.extract_strided_slice %35 {offsets = [19, 0], sizes = [1, 64], strides = [1, 1]} : vector<56x64xf32> to vector<1x64xf32>
    %c0_57 = arith.constant 0 : index
    %c1088 = arith.constant 1088 : index
    %71 = vector.load %arg19[%c0_57, %c1088] : memref<1x3136xf32, #tpu.memory_space<vmem>>, vector<1x64xf32>
    tpu.vector_store %arg19[%c0_57, %c1088], %70 {strides = array<i32>} : memref<1x3136xf32, #tpu.memory_space<vmem>>, vector<1x64xf32>,
    %72 = vector.extract_strided_slice %35 {offsets = [20, 0], sizes = [1, 64], strides = [1, 1]} : vector<56x64xf32> to vector<1x64xf32>
    %c0_58 = arith.constant 0 : index
    %c1152 = arith.constant 1152 : index
    %73 = vector.load %arg19[%c0_58, %c1152] : memref<1x3136xf32, #tpu.memory_space<vmem>>, vector<1x64xf32>
    tpu.vector_store %arg19[%c0_58, %c1152], %72 {strides = array<i32>} : memref<1x3136xf32, #tpu.memory_space<vmem>>, vector<1x64xf32>,
    %74 = vector.extract_strided_slice %35 {offsets = [21, 0], sizes = [1, 64], strides = [1, 1]} : vector<56x64xf32> to vector<1x64xf32>
    %c0_59 = arith.constant 0 : index
    %c1216 = arith.constant 1216 : index
    %75 = vector.load %arg19[%c0_59, %c1216] : memref<1x3136xf32, #tpu.memory_space<vmem>>, vector<1x64xf32>
    tpu.vector_store %arg19[%c0_59, %c1216], %74 {strides = array<i32>} : memref<1x3136xf32, #tpu.memory_space<vmem>>, vector<1x64xf32>,
    %76 = vector.extract_strided_slice %35 {offsets = [22, 0], sizes = [1, 64], strides = [1, 1]} : vector<56x64xf32> to vector<1x64xf32>
    %c0_60 = arith.constant 0 : index
    %c1280 = arith.constant 1280 : index
    %77 = vector.load %arg19[%c0_60, %c1280] : memref<1x3136xf32, #tpu.memory_space<vmem>>, vector<1x64xf32>
    tpu.vector_store %arg19[%c0_60, %c1280], %76 {strides = array<i32>} : memref<1x3136xf32, #tpu.memory_space<vmem>>, vector<1x64xf32>,
    %78 = vector.extract_strided_slice %35 {offsets = [24, 0], sizes = [1, 64], strides = [1, 1]} : vector<56x64xf32> to vector<1x64xf32>
    %c0_61 = arith.constant 0 : index
    %c1344 = arith.constant 1344 : index
    %79 = vector.load %arg19[%c0_61, %c1344] : memref<1x3136xf32, #tpu.memory_space<vmem>>, vector<1x64xf32>
    tpu.vector_store %arg19[%c0_61, %c1344], %78 {strides = array<i32>} : memref<1x3136xf32, #tpu.memory_space<vmem>>, vector<1x64xf32>,
    %80 = vector.extract_strided_slice %35 {offsets = [25, 0], sizes = [1, 64], strides = [1, 1]} : vector<56x64xf32> to vector<1x64xf32>
    %c0_62 = arith.constant 0 : index
    %c1408 = arith.constant 1408 : index
    %81 = vector.load %arg19[%c0_62, %c1408] : memref<1x3136xf32, #tpu.memory_space<vmem>>, vector<1x64xf32>
    tpu.vector_store %arg19[%c0_62, %c1408], %80 {strides = array<i32>} : memref<1x3136xf32, #tpu.memory_space<vmem>>, vector<1x64xf32>,
    %82 = vector.extract_strided_slice %35 {offsets = [26, 0], sizes = [1, 64], strides = [1, 1]} : vector<56x64xf32> to vector<1x64xf32>
    %c0_63 = arith.constant 0 : index
    %c1472 = arith.constant 1472 : index
    %83 = vector.load %arg19[%c0_63, %c1472] : memref<1x3136xf32, #tpu.memory_space<vmem>>, vector<1x64xf32>
    tpu.vector_store %arg19[%c0_63, %c1472], %82 {strides = array<i32>} : memref<1x3136xf32, #tpu.memory_space<vmem>>, vector<1x64xf32>,
    %84 = vector.extract_strided_slice %35 {offsets = [27, 0], sizes = [1, 64], strides = [1, 1]} : vector<56x64xf32> to vector<1x64xf32>
    %c0_64 = arith.constant 0 : index
    %c1536 = arith.constant 1536 : index
    %85 = vector.load %arg19[%c0_64, %c1536] : memref<1x3136xf32, #tpu.memory_space<vmem>>, vector<1x64xf32>
    tpu.vector_store %arg19[%c0_64, %c1536], %84 {strides = array<i32>} : memref<1x3136xf32, #tpu.memory_space<vmem>>, vector<1x64xf32>,
    %86 = vector.extract_strided_slice %35 {offsets = [28, 0], sizes = [1, 64], strides = [1, 1]} : vector<56x64xf32> to vector<1x64xf32>
    %c0_65 = arith.constant 0 : index
    %c1600 = arith.constant 1600 : index
    %87 = vector.load %arg19[%c0_65, %c1600] : memref<1x3136xf32, #tpu.memory_space<vmem>>, vector<1x64xf32>
    tpu.vector_store %arg19[%c0_65, %c1600], %86 {strides = array<i32>} : memref<1x3136xf32, #tpu.memory_space<vmem>>, vector<1x64xf32>,
    %88 = vector.extract_strided_slice %35 {offsets = [29, 0], sizes = [1, 64], strides = [1, 1]} : vector<56x64xf32> to vector<1x64xf32>
    %c0_66 = arith.constant 0 : index
    %c1664 = arith.constant 1664 : index
    %89 = vector.load %arg19[%c0_66, %c1664] : memref<1x3136xf32, #tpu.memory_space<vmem>>, vector<1x64xf32>
    tpu.vector_store %arg19[%c0_66, %c1664], %88 {strides = array<i32>} : memref<1x3136xf32, #tpu.memory_space<vmem>>, vector<1x64xf32>,
    %90 = vector.extract_strided_slice %35 {offsets = [30, 0], sizes = [1, 64], strides = [1, 1]} : vector<56x64xf32> to vector<1x64xf32>
    %c0_67 = arith.constant 0 : index
    %c1728 = arith.constant 1728 : index
    %91 = vector.load %arg19[%c0_67, %c1728] : memref<1x3136xf32, #tpu.memory_space<vmem>>, vector<1x64xf32>
    tpu.vector_store %arg19[%c0_67, %c1728], %90 {strides = array<i32>} : memref<1x3136xf32, #tpu.memory_space<vmem>>, vector<1x64xf32>,
    %92 = vector.extract_strided_slice %35 {offsets = [32, 0], sizes = [1, 64], strides = [1, 1]} : vector<56x64xf32> to vector<1x64xf32>
    %c0_68 = arith.constant 0 : index
    %c1792 = arith.constant 1792 : index
    %93 = vector.load %arg19[%c0_68, %c1792] : memref<1x3136xf32, #tpu.memory_space<vmem>>, vector<1x64xf32>
    tpu.vector_store %arg19[%c0_68, %c1792], %92 {strides = array<i32>} : memref<1x3136xf32, #tpu.memory_space<vmem>>, vector<1x64xf32>,
    %94 = vector.extract_strided_slice %35 {offsets = [33, 0], sizes = [1, 64], strides = [1, 1]} : vector<56x64xf32> to vector<1x64xf32>
    %c0_69 = arith.constant 0 : index
    %c1856 = arith.constant 1856 : index
    %95 = vector.load %arg19[%c0_69, %c1856] : memref<1x3136xf32, #tpu.memory_space<vmem>>, vector<1x64xf32>
    tpu.vector_store %arg19[%c0_69, %c1856], %94 {strides = array<i32>} : memref<1x3136xf32, #tpu.memory_space<vmem>>, vector<1x64xf32>,
    %96 = vector.extract_strided_slice %35 {offsets = [34, 0], sizes = [1, 64], strides = [1, 1]} : vector<56x64xf32> to vector<1x64xf32>
    %c0_70 = arith.constant 0 : index
    %c1920 = arith.constant 1920 : index
    %97 = vector.load %arg19[%c0_70, %c1920] : memref<1x3136xf32, #tpu.memory_space<vmem>>, vector<1x64xf32>
    tpu.vector_store %arg19[%c0_70, %c1920], %96 {strides = array<i32>} : memref<1x3136xf32, #tpu.memory_space<vmem>>, vector<1x64xf32>,
    %98 = vector.extract_strided_slice %35 {offsets = [35, 0], sizes = [1, 64], strides = [1, 1]} : vector<56x64xf32> to vector<1x64xf32>
    %c0_71 = arith.constant 0 : index
    %c1984 = arith.constant 1984 : index
    %99 = vector.load %arg19[%c0_71, %c1984] : memref<1x3136xf32, #tpu.memory_space<vmem>>, vector<1x64xf32>
    tpu.vector_store %arg19[%c0_71, %c1984], %98 {strides = array<i32>} : memref<1x3136xf32, #tpu.memory_space<vmem>>, vector<1x64xf32>,
    %100 = vector.extract_strided_slice %35 {offsets = [36, 0], sizes = [1, 64], strides = [1, 1]} : vector<56x64xf32> to vector<1x64xf32>
    %c0_72 = arith.constant 0 : index
    %c2048 = arith.constant 2048 : index
    %101 = vector.load %arg19[%c0_72, %c2048] : memref<1x3136xf32, #tpu.memory_space<vmem>>, vector<1x64xf32>
    tpu.vector_store %arg19[%c0_72, %c2048], %100 {strides = array<i32>} : memref<1x3136xf32, #tpu.memory_space<vmem>>, vector<1x64xf32>,
    %102 = vector.extract_strided_slice %35 {offsets = [37, 0], sizes = [1, 64], strides = [1, 1]} : vector<56x64xf32> to vector<1x64xf32>
    %c0_73 = arith.constant 0 : index
    %c2112 = arith.constant 2112 : index
    %103 = vector.load %arg19[%c0_73, %c2112] : memref<1x3136xf32, #tpu.memory_space<vmem>>, vector<1x64xf32>
    tpu.vector_store %arg19[%c0_73, %c2112], %102 {strides = array<i32>} : memref<1x3136xf32, #tpu.memory_space<vmem>>, vector<1x64xf32>,
    %104 = vector.extract_strided_slice %35 {offsets = [38, 0], sizes = [1, 64], strides = [1, 1]} : vector<56x64xf32> to vector<1x64xf32>
    %c0_74 = arith.constant 0 : index
    %c2176 = arith.constant 2176 : index
    %105 = vector.load %arg19[%c0_74, %c2176] : memref<1x3136xf32, #tpu.memory_space<vmem>>, vector<1x64xf32>
    tpu.vector_store %arg19[%c0_74, %c2176], %104 {strides = array<i32>} : memref<1x3136xf32, #tpu.memory_space<vmem>>, vector<1x64xf32>,
    %106 = vector.extract_strided_slice %35 {offsets = [40, 0], sizes = [1, 64], strides = [1, 1]} : vector<56x64xf32> to vector<1x64xf32>
    %c0_75 = arith.constant 0 : index
    %c2240 = arith.constant 2240 : index
    %107 = vector.load %arg19[%c0_75, %c2240] : memref<1x3136xf32, #tpu.memory_space<vmem>>, vector<1x64xf32>
    tpu.vector_store %arg19[%c0_75, %c2240], %106 {strides = array<i32>} : memref<1x3136xf32, #tpu.memory_space<vmem>>, vector<1x64xf32>,
    %108 = vector.extract_strided_slice %35 {offsets = [41, 0], sizes = [1, 64], strides = [1, 1]} : vector<56x64xf32> to vector<1x64xf32>
    %c0_76 = arith.constant 0 : index
    %c2304 = arith.constant 2304 : index
    %109 = vector.load %arg19[%c0_76, %c2304] : memref<1x3136xf32, #tpu.memory_space<vmem>>, vector<1x64xf32>
    tpu.vector_store %arg19[%c0_76, %c2304], %108 {strides = array<i32>} : memref<1x3136xf32, #tpu.memory_space<vmem>>, vector<1x64xf32>,
    %110 = vector.extract_strided_slice %35 {offsets = [42, 0], sizes = [1, 64], strides = [1, 1]} : vector<56x64xf32> to vector<1x64xf32>
    %c0_77 = arith.constant 0 : index
    %c2368 = arith.constant 2368 : index
    %111 = vector.load %arg19[%c0_77, %c2368] : memref<1x3136xf32, #tpu.memory_space<vmem>>, vector<1x64xf32>
    tpu.vector_store %arg19[%c0_77, %c2368], %110 {strides = array<i32>} : memref<1x3136xf32, #tpu.memory_space<vmem>>, vector<1x64xf32>,
    %112 = vector.extract_strided_slice %35 {offsets = [43, 0], sizes = [1, 64], strides = [1, 1]} : vector<56x64xf32> to vector<1x64xf32>
    %c0_78 = arith.constant 0 : index
    %c2432 = arith.constant 2432 : index
    %113 = vector.load %arg19[%c0_78, %c2432] : memref<1x3136xf32, #tpu.memory_space<vmem>>, vector<1x64xf32>
    tpu.vector_store %arg19[%c0_78, %c2432], %112 {strides = array<i32>} : memref<1x3136xf32, #tpu.memory_space<vmem>>, vector<1x64xf32>,
    %114 = vector.extract_strided_slice %35 {offsets = [44, 0], sizes = [1, 64], strides = [1, 1]} : vector<56x64xf32> to vector<1x64xf32>
    %c0_79 = arith.constant 0 : index
    %c2496 = arith.constant 2496 : index
    %115 = vector.load %arg19[%c0_79, %c2496] : memref<1x3136xf32, #tpu.memory_space<vmem>>, vector<1x64xf32>
    tpu.vector_store %arg19[%c0_79, %c2496], %114 {strides = array<i32>} : memref<1x3136xf32, #tpu.memory_space<vmem>>, vector<1x64xf32>,
    %116 = vector.extract_strided_slice %35 {offsets = [45, 0], sizes = [1, 64], strides = [1, 1]} : vector<56x64xf32> to vector<1x64xf32>
    %c0_80 = arith.constant 0 : index
    %c2560 = arith.constant 2560 : index
    %117 = vector.load %arg19[%c0_80, %c2560] : memref<1x3136xf32, #tpu.memory_space<vmem>>, vector<1x64xf32>
    tpu.vector_store %arg19[%c0_80, %c2560], %116 {strides = array<i32>} : memref<1x3136xf32, #tpu.memory_space<vmem>>, vector<1x64xf32>,
    %118 = vector.extract_strided_slice %35 {offsets = [46, 0], sizes = [1, 64], strides = [1, 1]} : vector<56x64xf32> to vector<1x64xf32>
    %c0_81 = arith.constant 0 : index
    %c2624 = arith.constant 2624 : index
    %119 = vector.load %arg19[%c0_81, %c2624] : memref<1x3136xf32, #tpu.memory_space<vmem>>, vector<1x64xf32>
    tpu.vector_store %arg19[%c0_81, %c2624], %118 {strides = array<i32>} : memref<1x3136xf32, #tpu.memory_space<vmem>>, vector<1x64xf32>,
    %120 = vector.extract_strided_slice %35 {offsets = [48, 0], sizes = [1, 64], strides = [1, 1]} : vector<56x64xf32> to vector<1x64xf32>
    %c0_82 = arith.constant 0 : index
    %c2688 = arith.constant 2688 : index
    %121 = vector.load %arg19[%c0_82, %c2688] : memref<1x3136xf32, #tpu.memory_space<vmem>>, vector<1x64xf32>
    tpu.vector_store %arg19[%c0_82, %c2688], %120 {strides = array<i32>} : memref<1x3136xf32, #tpu.memory_space<vmem>>, vector<1x64xf32>,
    %122 = vector.extract_strided_slice %35 {offsets = [49, 0], sizes = [1, 64], strides = [1, 1]} : vector<56x64xf32> to vector<1x64xf32>
    %c0_83 = arith.constant 0 : index
    %c2752 = arith.constant 2752 : index
    %123 = vector.load %arg19[%c0_83, %c2752] : memref<1x3136xf32, #tpu.memory_space<vmem>>, vector<1x64xf32>
    tpu.vector_store %arg19[%c0_83, %c2752], %122 {strides = array<i32>} : memref<1x3136xf32, #tpu.memory_space<vmem>>, vector<1x64xf32>,
    %124 = vector.extract_strided_slice %35 {offsets = [50, 0], sizes = [1, 64], strides = [1, 1]} : vector<56x64xf32> to vector<1x64xf32>
    %c0_84 = arith.constant 0 : index
    %c2816 = arith.constant 2816 : index
    %125 = vector.load %arg19[%c0_84, %c2816] : memref<1x3136xf32, #tpu.memory_space<vmem>>, vector<1x64xf32>
    tpu.vector_store %arg19[%c0_84, %c2816], %124 {strides = array<i32>} : memref<1x3136xf32, #tpu.memory_space<vmem>>, vector<1x64xf32>,
    %126 = vector.extract_strided_slice %35 {offsets = [51, 0], sizes = [1, 64], strides = [1, 1]} : vector<56x64xf32> to vector<1x64xf32>
    %c0_85 = arith.constant 0 : index
    %c2880 = arith.constant 2880 : index
    %127 = vector.load %arg19[%c0_85, %c2880] : memref<1x3136xf32, #tpu.memory_space<vmem>>, vector<1x64xf32>
    tpu.vector_store %arg19[%c0_85, %c2880], %126 {strides = array<i32>} : memref<1x3136xf32, #tpu.memory_space<vmem>>, vector<1x64xf32>,
    %128 = vector.extract_strided_slice %35 {offsets = [52, 0], sizes = [1, 64], strides = [1, 1]} : vector<56x64xf32> to vector<1x64xf32>
    %c0_86 = arith.constant 0 : index
    %c2944 = arith.constant 2944 : index
    %129 = vector.load %arg19[%c0_86, %c2944] : memref<1x3136xf32, #tpu.memory_space<vmem>>, vector<1x64xf32>
    tpu.vector_store %arg19[%c0_86, %c2944], %128 {strides = array<i32>} : memref<1x3136xf32, #tpu.memory_space<vmem>>, vector<1x64xf32>,
    %130 = vector.extract_strided_slice %35 {offsets = [53, 0], sizes = [1, 64], strides = [1, 1]} : vector<56x64xf32> to vector<1x64xf32>
    %c0_87 = arith.constant 0 : index
    %c3008 = arith.constant 3008 : index
    %131 = vector.load %arg19[%c0_87, %c3008] : memref<1x3136xf32, #tpu.memory_space<vmem>>, vector<1x64xf32>
    tpu.vector_store %arg19[%c0_87, %c3008], %130 {strides = array<i32>} : memref<1x3136xf32, #tpu.memory_space<vmem>>, vector<1x64xf32>,
    %132 = vector.extract_strided_slice %35 {offsets = [54, 0], sizes = [1, 64], strides = [1, 1]} : vector<56x64xf32> to vector<1x64xf32>
    %c0_88 = arith.constant 0 : index
    %c3072 = arith.constant 3072 : index
    %133 = vector.load %arg19[%c0_88, %c3072] : memref<1x3136xf32, #tpu.memory_space<vmem>>, vector<1x64xf32>
    tpu.vector_store %arg19[%c0_88, %c3072], %132 {strides = array<i32>} : memref<1x3136xf32, #tpu.memory_space<vmem>>, vector<1x64xf32>,
    %c0_89 = arith.constant 0 : index
    %c0_90 = arith.constant 0 : index
    %134 = vector.load %arg19[%c0_89, %c0_90] : memref<1x3136xf32, #tpu.memory_space<vmem>>, vector<1x3136xf32>
    %135 = arith.truncf %134 : vector<1x3136xf32> to vector<1x3136xbf16>
    %c0_91 = arith.constant 0 : index
    %c0_92 = arith.constant 0 : index
    %136 = vector.load %arg9[%c0_91, %c0_92] : memref<3136x512xbf16, #tpu.memory_space<vmem>>, vector<3136x512xbf16>
    %cst_93 = arith.constant dense<0.000000e+00> : vector<1x512xf32>
    %137 = tpu.matmul %135, %136, %cst_93 {dimension_numbers = #tpu.dot_dimension_numbers<[1], [0], [0], [1], [0, 0, 1, 1], [], []>} : vector<1x3136xbf16>, vector<3136x512xbf16>, vector<1x512xf32> -> vector<1x512xf32>
    %c0_94 = arith.constant 0 : index
    %c0_95 = arith.constant 0 : index
    %138 = vector.load %arg10[%c0_94, %c0_95] : memref<1x512xf32, #tpu.memory_space<vmem>>, vector<1x512xf32>
    %139 = arith.addf %137, %138 : vector<1x512xf32>
    %cst_96 = arith.constant 0.000000e+00 : f32
    %140 = vector.broadcast %cst_96 : f32 to vector<1x512xf32>
    %141 = arith.maximumf %139, %140 : vector<1x512xf32>
    %142 = arith.truncf %141 : vector<1x512xf32> to vector<1x512xbf16>
    %c0_97 = arith.constant 0 : index
    %c0_98 = arith.constant 0 : index
    %143 = vector.load %arg11[%c0_97, %c0_98] : memref<512x128xbf16, #tpu.memory_space<vmem>>, vector<512x128xbf16>
    %cst_99 = arith.constant dense<0.000000e+00> : vector<1x128xf32>
    %144 = tpu.matmul %142, %143, %cst_99 {dimension_numbers = #tpu.dot_dimension_numbers<[1], [0], [0], [1], [0, 0, 1, 1], [], []>} : vector<1x512xbf16>, vector<512x128xbf16>, vector<1x128xf32> -> vector<1x128xf32>
    %c0_100 = arith.constant 0 : index
    %c0_101 = arith.constant 0 : index
    %145 = vector.load %arg12[%c0_100, %c0_101] : memref<1x128xf32, #tpu.memory_space<vmem>>, vector<1x128xf32>
    %146 = arith.addf %144, %145 : vector<1x128xf32>
    %147 = vector.shape_cast %146 : vector<1x128xf32> to vector<1x128xf32>
    %148 = vector.broadcast %147 : vector<1x128xf32> to vector<8x128xf32>
    %c0_102 = arith.constant 0 : index
    %c0_103 = arith.constant 0 : index
    %c0_104 = arith.constant 0 : index
    %149 = vector.load %arg13[%c0_102, %c0_103, %c0_104] : memref<1x8x128xf32, #tpu.memory_space<vmem>>, vector<1x8x128xf32>
    %150 = vector.shape_cast %149 : vector<1x8x128xf32> to vector<8x128xf32>
    %151 = vector.shape_cast %148 : vector<8x128xf32> to vector<1x8x128xf32>
    tpu.vector_store %arg13[%c0_102, %c0_103, %c0_104], %151 {strides = array<i32>} : memref<1x8x128xf32, #tpu.memory_space<vmem>>, vector<1x8x128xf32>,
    return
  }
  func.func @transform_0(%arg0: i32) -> (i32, i32, i32) {
    %c0_i32 = arith.constant 0 : i32
    %c0_i32_0 = arith.constant 0 : i32
    %c0_i32_1 = arith.constant 0 : i32
    return %arg0, %c0_i32, %c0_i32_0 : i32, i32, i32
  }
  func.func @transform_1(%arg0: i32) -> (i32, i32) {
    %c0_i32 = arith.constant 0 : i32
    %c0_i32_0 = arith.constant 0 : i32
    %c0_i32_1 = arith.constant 0 : i32
    return %c0_i32, %c0_i32_0 : i32, i32
  }
  func.func @transform_2(%arg0: i32) -> (i32, i32) {
    %c0_i32 = arith.constant 0 : i32
    %c0_i32_0 = arith.constant 0 : i32
    %c0_i32_1 = arith.constant 0 : i32
    return %c0_i32, %c0_i32_0 : i32, i32
  }
  func.func @transform_3(%arg0: i32) -> (i32, i32) {
    %c0_i32 = arith.constant 0 : i32
    %c0_i32_0 = arith.constant 0 : i32
    %c0_i32_1 = arith.constant 0 : i32
    return %c0_i32, %c0_i32_0 : i32, i32
  }
  func.func @transform_4(%arg0: i32) -> (i32, i32) {
    %c0_i32 = arith.constant 0 : i32
    %c0_i32_0 = arith.constant 0 : i32
    %c0_i32_1 = arith.constant 0 : i32
    return %c0_i32, %c0_i32_0 : i32, i32
  }
  func.func @transform_5(%arg0: i32) -> (i32, i32) {
    %c0_i32 = arith.constant 0 : i32
    %c0_i32_0 = arith.constant 0 : i32
    %c0_i32_1 = arith.constant 0 : i32
    return %c0_i32, %c0_i32_0 : i32, i32
  }
  func.func @transform_6(%arg0: i32) -> (i32, i32) {
    %c0_i32 = arith.constant 0 : i32
    %c0_i32_0 = arith.constant 0 : i32
    %c0_i32_1 = arith.constant 0 : i32
    return %c0_i32, %c0_i32_0 : i32, i32
  }
  func.func @transform_7(%arg0: i32) -> (i32, i32) {
    %c0_i32 = arith.constant 0 : i32
    %c0_i32_0 = arith.constant 0 : i32
    %c0_i32_1 = arith.constant 0 : i32
    return %c0_i32, %c0_i32_0 : i32, i32
  }
  func.func @transform_8(%arg0: i32) -> (i32, i32) {
    %c0_i32 = arith.constant 0 : i32
    %c0_i32_0 = arith.constant 0 : i32
    %c0_i32_1 = arith.constant 0 : i32
    return %c0_i32, %c0_i32_0 : i32, i32
  }
  func.func @transform_9(%arg0: i32) -> (i32, i32) {
    %c0_i32 = arith.constant 0 : i32
    %c0_i32_0 = arith.constant 0 : i32
    %c0_i32_1 = arith.constant 0 : i32
    return %c0_i32, %c0_i32_0 : i32, i32
  }
  func.func @transform_10(%arg0: i32) -> (i32, i32) {
    %c0_i32 = arith.constant 0 : i32
    %c0_i32_0 = arith.constant 0 : i32
    %c0_i32_1 = arith.constant 0 : i32
    return %c0_i32, %c0_i32_0 : i32, i32
  }
  func.func @transform_11(%arg0: i32) -> (i32, i32) {
    %c0_i32 = arith.constant 0 : i32
    %c0_i32_0 = arith.constant 0 : i32
    %c0_i32_1 = arith.constant 0 : i32
    return %c0_i32, %c0_i32_0 : i32, i32
  }
  func.func @transform_12(%arg0: i32) -> (i32, i32, i32) {
    %c0_i32 = arith.constant 0 : i32
    %c0_i32_0 = arith.constant 0 : i32
    %c0_i32_1 = arith.constant 0 : i32
    return %arg0, %c0_i32, %c0_i32_0 : i32, i32, i32
  }
}

</mosaic_0001>

<bundles_post_ra>
// kernel: qnetwork_forward.1
= control target key start
LH: loop header
LB: loop body
LE: loop exit
PB: predicated region body
PF: predicated region fallthrough
CT: control target
= control target key end

     0   :  { %s13198_s21 = smov 0   ;;  %s17573_s0 = inlined_call_operand.vmem [shape: f32[2,2016,16], index: 0, kind: input, shape index: {}]   ;;  %s17574_s1 = inlined_call_operand.vmem [shape: f32[144,216], index: 1, kind: input, shape index: {}]   ;;  %s17575_s2 = inlined_call_operand.vmem [shape: bf16[256,32], index: 2, kind: input, shape index: {}]   ;;  %s17576_s3 = inlined_call_operand.vmem [shape: f32[1,32], index: 3, kind: input, shape index: {}]   ;;  %s17577_s4 = inlined_call_operand.vmem [shape: bf16[512,64], index: 4, kind: input, shape index: {}]   ;;  %s17578_s5 = inlined_call_operand.vmem [shape: f32[1,64], index: 5, kind: input, shape index: {}]   ;;  %s17579_s6 = inlined_call_operand.vmem [shape: bf16[576,64], index: 6, kind: input, shape index: {}]   ;;  %s17580_s7 = inlined_call_operand.vmem [shape: f32[1,64], index: 7, kind: input, shape index: {}]   ;;  %s17581_s8 = inlined_call_operand.vmem [shape: bf16[3136,512], index: 8, kind: input, shape index: {}]   ;;  %s17582_s9 = inlined_call_operand.vmem [shape: f32[1,512], index: 9, kind: input, shape index: {}]   ;;  %s17583_s10 = inlined_call_operand.vmem [shape: bf16[512,128], index: 10, kind: input, shape index: {}]   ;;  %s17584_s11 = inlined_call_operand.vmem [shape: f32[1,128], index: 11, kind: input, shape index: {}]   ;;  %s17585_s12 = inlined_call_operand.vmem [shape: f32[2,8,128], index: 12, kind: output, shape index: {}]  }
   0x1 LB: > { %s10394_s22 = sadd.s32 4294967295, %s13104_s21   ;;  %p10398_p0 = scmp.ge.s32.totalorder %s13104_s21, 1  ;;  %s13104_s21 = sphi %s13198_s21, %s22_s21  }
   0x2   : > { %p362_p1 = scmp.lt.s32.totalorder %s13104_s21, 3 }
   0x4   : > { %p363_p2 = pnand %p10398_p0, %p362_p1 }
   0x6   : > { %366 = sbr.rel (%p363_p2) target bundleno = 3266 (0xcc2), region = 68 }
   0xb   : > { %p13208_p3 = scmp.lt.s32.totalorder %s10394_s22, 1  ;;  %v17588_v0 = vmov 0.0   ;;  %s13334_s14 = smov 0  }
   0xc   : > { %413 = vst [vmem:[#allocation4] sm:$0xff] %v17588_v0  ;;  %414 = vst [vmem:[#allocation4 + $0x8] sm:$0xff] %v17588_v0 }
   0xd   : > { %415 = vst [vmem:[#allocation4 + $0x10] sm:$0xff] %v17588_v0  ;;  %416 = vst [vmem:[#allocation4 + $0x18] sm:$0xff] %v17588_v0  ;;  %s17618_s22 = smov (!%p13208_p3, %s10394_s22), 1 }
   0xe   : > { %417 = vst [vmem:[#allocation4 + $0x20] sm:$0xff] %v17588_v0  ;;  %418 = vst [vmem:[#allocation4 + $0x28] sm:$0xff] %v17588_v0  ;;  %s11745_s24 = smul.u32 2016, %s17618_s22  ;;  %s10400_s25 = sshll.u32 %s17618_s22, 3 }
   0xf   : > { %419 = vst [vmem:[#allocation4 + $0x30] sm:$0xff] %v17588_v0  ;;  %420 = vst [vmem:[#allocation4 + $0x38] sm:$0xff] %v17588_v0  ;;  %s13327_s28 = scalar_lea.vmem %s17585_s12, %s10400_s25 }
  0x10   : > { %421 = vst [vmem:[#allocation4 + $0x40] sm:$0xff] %v17588_v0  ;;  %422 = vst [vmem:[#allocation4 + $0x48] sm:$0xff] %v17588_v0  ;;  %s13332_s13 = scalar_lea.vmem %s17573_s0, %s11745_s24 }
  0x11   : > { %423 = vst [vmem:[#allocation4 + $0x50] sm:$0xff] %v17588_v0  ;;  %424 = vst [vmem:[#allocation4 + $0x58] sm:$0xff] %v17588_v0 }
  0x12   : > { %425 = vst [vmem:[#allocation4 + $0x60] sm:$0xff] %v17588_v0  ;;  %426 = vst [vmem:[#allocation4 + $0x68] sm:$0xff] %v17588_v0 }
  0x13   : > { %427 = vst [vmem:[#allocation4 + $0x70] sm:$0xff] %v17588_v0  ;;  %428 = vst [vmem:[#allocation4 + $0x78] sm:$0xff] %v17588_v0 }
  0x14   : > { %429 = vst [vmem:[#allocation4 + $0x80] sm:$0xff] %v17588_v0  ;;  %430 = vst [vmem:[#allocation4 + $0x88] sm:$0xff] %v17588_v0 }
  0x15   : > { %431 = vst [vmem:[#allocation4 + $0x90] sm:$0xff] %v17588_v0  ;;  %432 = vst [vmem:[#allocation4 + $0x98] sm:$0xff] %v17588_v0 }
  0x16   : > { %433 = vst [vmem:[#allocation4 + $0xa0] sm:$0xff] %v17588_v0  ;;  %434 = vst [vmem:[#allocation4 + $0xa8] sm:$0xff] %v17588_v0 }
  0x17   : > { %435 = vst [vmem:[#allocation4 + $0xb0] sm:$0xff] %v17588_v0  ;;  %436 = vst [vmem:[#allocation4 + $0xb8] sm:$0xff] %v17588_v0 }
  0x18   : > { %437 = vst [vmem:[#allocation4 + $0xc0] sm:$0xff] %v17588_v0  ;;  %438 = vst [vmem:[#allocation4 + $0xc8] sm:$0xff] %v17588_v0 }
  0x19   : > { %439 = vst [vmem:[#allocation4 + $0xd0] sm:$0xff] %v17588_v0  ;;  %440 = vst [vmem:[#allocation4 + $0xd8] sm:$0xff] %v17588_v0 }
  0x1a   : > { %441 = vst [vmem:[#allocation4 + $0xe0] sm:$0xff] %v17588_v0  ;;  %442 = vst [vmem:[#allocation4 + $0xe8] sm:$0xff] %v17588_v0 }
  0x1b   : > { %443 = vst [vmem:[#allocation4 + $0xf0] sm:$0xff] %v17588_v0  ;;  %444 = vst [vmem:[#allocation4 + $0xf8] sm:$0xff] %v17588_v0 }
  0x1c   : > { %445 = vst [vmem:[#allocation4 + $0x100] sm:$0xff] %v17588_v0  ;;  %446 = vst [vmem:[#allocation4 + $0x108] sm:$0xff] %v17588_v0 }
  0x1d   : > { %447 = vst [vmem:[#allocation4 + $0x110] sm:$0xff] %v17588_v0  ;;  %448 = vst [vmem:[#allocation4 + $0x118] sm:$0xff] %v17588_v0 }
  0x1e   : > { %449 = vst [vmem:[#allocation4 + $0x120] sm:$0xff] %v17588_v0  ;;  %450 = vst [vmem:[#allocation4 + $0x128] sm:$0xff] %v17588_v0 }
  0x1f   : > { %451 = vst [vmem:[#allocation4 + $0x130] sm:$0xff] %v17588_v0  ;;  %452 = vst [vmem:[#allocation4 + $0x138] sm:$0xff] %v17588_v0 }
  0x20   : > { %453 = vst [vmem:[#allocation4 + $0x140] sm:$0xff] %v17588_v0  ;;  %454 = vst [vmem:[#allocation4 + $0x148] sm:$0xff] %v17588_v0 }
  0x21   : > { %455 = vst [vmem:[#allocation4 + $0x150] sm:$0xff] %v17588_v0  ;;  %456 = vst [vmem:[#allocation4 + $0x158] sm:$0xff] %v17588_v0 }
  0x22   : > { %457 = vst [vmem:[#allocation4 + $0x160] sm:$0xff] %v17588_v0  ;;  %458 = vst [vmem:[#allocation4 + $0x168] sm:$0xff] %v17588_v0 }
  0x23   : > { %459 = vst [vmem:[#allocation4 + $0x170] sm:$0xff] %v17588_v0  ;;  %460 = vst [vmem:[#allocation4 + $0x178] sm:$0xff] %v17588_v0 }
  0x24   : > { %461 = vst [vmem:[#allocation4 + $0x180] sm:$0xff] %v17588_v0  ;;  %462 = vst [vmem:[#allocation4 + $0x188] sm:$0xff] %v17588_v0 }
  0x25   : > { %463 = vst [vmem:[#allocation4 + $0x190] sm:$0xff] %v17588_v0  ;;  %464 = vst [vmem:[#allocation4 + $0x198] sm:$0xff] %v17588_v0 }
  0x26   : > { %465 = vst [vmem:[#allocation4 + $0x1a0] sm:$0xff] %v17588_v0  ;;  %466 = vst [vmem:[#allocation4 + $0x1a8] sm:$0xff] %v17588_v0 }
  0x27   : > { %467 = vst [vmem:[#allocation4 + $0x1b0] sm:$0xff] %v17588_v0  ;;  %468 = vst [vmem:[#allocation4 + $0x1b8] sm:$0xff] %v17588_v0 }
  0x28   : > { %469 = vst [vmem:[#allocation4 + $0x1c0] sm:$0xff] %v17588_v0  ;;  %470 = vst [vmem:[#allocation4 + $0x1c8] sm:$0xff] %v17588_v0 }
  0x29   : > { %471 = vst [vmem:[#allocation4 + $0x1d0] sm:$0xff] %v17588_v0  ;;  %472 = vst [vmem:[#allocation4 + $0x1d8] sm:$0xff] %v17588_v0 }
  0x2a   : > { %473 = vst [vmem:[#allocation4 + $0x1e0] sm:$0xff] %v17588_v0  ;;  %474 = vst [vmem:[#allocation4 + $0x1e8] sm:$0xff] %v17588_v0 }
  0x2b   : > { %475 = vst [vmem:[#allocation4 + $0x1f0] sm:$0xff] %v17588_v0  ;;  %476 = vst [vmem:[#allocation4 + $0x1f8] sm:$0xff] %v17588_v0 }
  0x2c   : > { %477 = vst [vmem:[#allocation4 + $0x200] sm:$0xff] %v17588_v0  ;;  %478 = vst [vmem:[#allocation4 + $0x208] sm:$0xff] %v17588_v0 }
  0x2d   : > { %479 = vst [vmem:[#allocation4 + $0x210] sm:$0xff] %v17588_v0  ;;  %480 = vst [vmem:[#allocation4 + $0x218] sm:$0xff] %v17588_v0 }
  0x2e   : > { %481 = vst [vmem:[#allocation4 + $0x220] sm:$0xff] %v17588_v0  ;;  %482 = vst [vmem:[#allocation4 + $0x228] sm:$0xff] %v17588_v0 }
  0x2f   : > { %483 = vst [vmem:[#allocation4 + $0x230] sm:$0xff] %v17588_v0  ;;  %484 = vst [vmem:[#allocation4 + $0x238] sm:$0xff] %v17588_v0 }
  0x30   : > { %485 = vst [vmem:[#allocation4 + $0x240] sm:$0xff] %v17588_v0  ;;  %486 = vst [vmem:[#allocation4 + $0x248] sm:$0xff] %v17588_v0 }
  0x31   : > { %487 = vst [vmem:[#allocation4 + $0x250] sm:$0xff] %v17588_v0  ;;  %488 = vst [vmem:[#allocation4 + $0x258] sm:$0xff] %v17588_v0 }
  0x32   : > { %489 = vst [vmem:[#allocation4 + $0x260] sm:$0xff] %v17588_v0  ;;  %490 = vst [vmem:[#allocation4 + $0x268] sm:$0xff] %v17588_v0 }
  0x33   : > { %491 = vst [vmem:[#allocation4 + $0x270] sm:$0xff] %v17588_v0  ;;  %492 = vst [vmem:[#allocation4 + $0x278] sm:$0xff] %v17588_v0 }
  0x34   : > { %493 = vst [vmem:[#allocation4 + $0x280] sm:$0xff] %v17588_v0  ;;  %494 = vst [vmem:[#allocation4 + $0x288] sm:$0xff] %v17588_v0 }
  0x35   : > { %495 = vst [vmem:[#allocation4 + $0x290] sm:$0xff] %v17588_v0  ;;  %496 = vst [vmem:[#allocation4 + $0x298] sm:$0xff] %v17588_v0 }
  0x36   : > { %497 = vst [vmem:[#allocation4 + $0x2a0] sm:$0xff] %v17588_v0  ;;  %498 = vst [vmem:[#allocation4 + $0x2a8] sm:$0xff] %v17588_v0 }
  0x37   : > { %499 = vst [vmem:[#allocation4 + $0x2b0] sm:$0xff] %v17588_v0  ;;  %500 = vst [vmem:[#allocation4 + $0x2b8] sm:$0xff] %v17588_v0 }
  0x38   : > { %501 = vst [vmem:[#allocation4 + $0x2c0] sm:$0xff] %v17588_v0  ;;  %502 = vst [vmem:[#allocation4 + $0x2c8] sm:$0xff] %v17588_v0 }
  0x39   : > { %503 = vst [vmem:[#allocation4 + $0x2d0] sm:$0xff] %v17588_v0  ;;  %504 = vst [vmem:[#allocation4 + $0x2d8] sm:$0xff] %v17588_v0 }
  0x3a   : > { %505 = vst [vmem:[#allocation4 + $0x2e0] sm:$0xff] %v17588_v0  ;;  %506 = vst [vmem:[#allocation4 + $0x2e8] sm:$0xff] %v17588_v0 }
  0x3b   : > { %507 = vst [vmem:[#allocation4 + $0x2f0] sm:$0xff] %v17588_v0  ;;  %508 = vst [vmem:[#allocation4 + $0x2f8] sm:$0xff] %v17588_v0 }
  0x3c   : > { %509 = vst [vmem:[#allocation4 + $0x300] sm:$0xff] %v17588_v0  ;;  %510 = vst [vmem:[#allocation4 + $0x308] sm:$0xff] %v17588_v0 }
  0x3d   : > { %511 = vst [vmem:[#allocation4 + $0x310] sm:$0xff] %v17588_v0  ;;  %512 = vst [vmem:[#allocation4 + $0x318] sm:$0xff] %v17588_v0 }
  0x3e   : > { %513 = vst [vmem:[#allocation4 + $0x320] sm:$0xff] %v17588_v0  ;;  %514 = vst [vmem:[#allocation4 + $0x328] sm:$0xff] %v17588_v0 }
  0x3f   : > { %515 = vst [vmem:[#allocation4 + $0x330] sm:$0xff] %v17588_v0  ;;  %516 = vst [vmem:[#allocation4 + $0x338] sm:$0xff] %v17588_v0 }
  0x40   : > { %517 = vst [vmem:[#allocation4 + $0x340] sm:$0xff] %v17588_v0  ;;  %518 = vst [vmem:[#allocation4 + $0x348] sm:$0xff] %v17588_v0 }
  0x41   : > { %519 = vst [vmem:[#allocation4 + $0x350] sm:$0xff] %v17588_v0  ;;  %520 = vst [vmem:[#allocation4 + $0x358] sm:$0xff] %v17588_v0 }
  0x42 LB: >> { %s528_s15 = smul.u32 96, %s13108_s14  ;;  %vm541_vm0 = vcmask 130048   ;;  %s13119_s20 = smov 32   ;;  %vm544_vm1 = vcmask 125952   ;;  %vm549_vm2 = vcmask 1046528   ;;  %vm564_vm3 = vcmask 261248   ;;  %s13108_s14 = sphi %s13334_s14, %s526_s14  }
  0x43   : >> { %s527_s16 = smul.u32 24, %s13108_s14  ;;  %s13120_s23 = smov 16   ;;  %vm591_vm4 = vcmask 392448   ;;  %vm567_vm5 = vcmask 257152   ;;  %vm594_vm6 = vcmask 388352   ;;  %vm610_vm7 = vcmask 523648  }
  0x44   : >> { %s13342_s17 = scalar_lea.vmem %s13332_s13, %s528_s15  ;;  %s13121_s24 = smov 48   ;;  %vm636_vm8 = vcmask 654848   ;;  %vm613_vm9 = vcmask 519552   ;;  %vm639_vm10 = vcmask 650752   ;;  %vm655_vm11 = vcmask 786048  }
  0x45   : >> { %v10406_v1 = vld [vmem:[%s13342_s17 + $0x20] sm:$0xff]  ;;  %s536_s18 = sshra.s32 %s527_s16, 3  ;;  %v10405_v2 = vld [vmem:[%s13342_s17 + $0x18] sm:$0xff]  ;;  %v10407_v3 = vld [vmem:[%s13342_s17 + $0x28] sm:$0xff]  ;;  %s13122_s25 = smov 64   ;;  %vm658_vm12 = vcmask 781952  }
  0x46   : >> { %v577_v4 = vmul.f32 0.003921569, %v10406_v1  ;;  %s11394_s19 = sshll.u32 %s536_s18, 4  ;;  %v576_v5 = vmul.f32 0.003921569, %v10405_v2  ;;  %v530_v6 = vld [vmem:[%s13342_s17] sm:$0xff] }
  0x47   : >> { %v531_v7 = vld [vmem:[%s13342_s17 + $0x8] sm:$0xff]  ;;  %v533_v8 = vmul.f32 0.003921569, %v530_v6  ;;  %v578_v9 = vmul.f32 0.003921569, %v10407_v3  ;;  %v532_v11 = vld [vmem:[%s13342_s17 + $0x10] sm:$0xff] }
  0x48   : >> { %584 = vrot.lane.b32.xlu0 %v577_v4, %s13119_s20  ;;  %582 = vrot.lane.b32.xlu1 %v576_v5, %s13119_s20  ;;  %v534_v10 = vmul.f32 0.003921569, %v531_v7  ;;  %v535_v13 = vmul.f32 0.003921569, %v532_v11  ;;  %s13352_s22 = scalar_lea.vmem [#allocation2], %s11394_s19  ;;  %v10421_v15 = vld [vmem:[%s13342_s17 + $0x68] sm:$0xff] }
  0x49   : >> { %v550_v12 = vrot.slane %v533_v8, 1  ;;  %542 = vst.msk [vmem:[%s13352_s22] sm:$0xff] %vm541_vm0, %v533_v8  ;;  %v10422_v16 = vld [vmem:[%s13342_s17 + $0x70] sm:$0xff]  ;;  %v10420_v17 = vld [vmem:[%s13342_s17 + $0x60] sm:$0xff]  ;;  %v712_v19 = vmul.f32 0.003921569, %v10421_v15 }
  0x4a   : >> { %v551_v14 = vrot.slane %v534_v10, 1  ;;  %543 = vst.msk [vmem:[%s13352_s22 + $0x10] sm:$0xff] %vm541_vm0, %v534_v10  ;;  %v553_v18 = vrot.slane %v535_v13, 1  ;;  %v713_v21 = vmul.f32 0.003921569, %v10422_v16  ;;  %v597_v23 = vrot.slane %v577_v4, 1 }
  0x4b   : >> { %545 = vst.msk [vmem:[%s13352_s22 + $0x20] sm:$0xf] %vm544_vm1, %v535_v13  ;;  %v711_v22 = vmul.f32 0.003921569, %v10420_v17  ;;  %v599_v24 = vrot.slane %v578_v9, 1  ;;  %v596_v25 = vrot.slane %v576_v5, 1 }
  0x4c   : >> { %586 = vrot.lane.b32.xlu1 %v578_v9, %s13119_s20  ;;  %v552_v20 = vsel %vm549_vm2, %v550_v12, %v551_v14  ;;  %715 = vst.msk [vmem:[%s13352_s22 + $0x18] sm:$0xff] %vm541_vm0, %v712_v19  ;;  %v554_v26 = vsel %vm549_vm2, %v551_v14, %v553_v18  ;;  %v10410_v27 = vld [vmem:[%s13342_s17 + $0x30] sm:$0xff]  ;;  %v10435_v32 = vld [vmem:[%s13342_s17 + $0xa8] sm:$0xff]  ;;  %v721_v40 = vrot.slane %v712_v19, 1  ;;  %v723_v41 = vrot.slane %v713_v21, 1  ;;  %s13123_s26 = smov 80  }
  0x4d   : >> { %555 = vrot.lane.b32.xlu0 %v552_v20, %s13120_s23  ;;  %714 = vst.msk [vmem:[%s13352_s22 + $0x8] sm:$0xff] %vm541_vm0, %v711_v22  ;;  %v10416_v28 = vld [vmem:[%s13342_s17 + $0x50] sm:$0xff]  ;;  %v600_v29 = vsel %vm549_vm2, %v597_v23, %v599_v24  ;;  %v598_v30 = vsel %vm549_vm2, %v596_v25, %v597_v23  ;;  %v10417_v33 = vld [vmem:[%s13342_s17 + $0x58] sm:$0xff]  ;;  %v13384_v35 = vmul.f32 0.003921569, %v10410_v27  ;;  %v720_v43 = vrot.slane %v711_v22, 1 }
  0x4e   : >> { %716 = vst.msk [vmem:[%s13352_s22 + $0x28] sm:$0xf] %vm544_vm1, %v713_v21  ;;  %v13379_v31 = vmul.f32 0.003921569, %v10416_v28  ;;  %v10437_v34 = vld [vmem:[%s13342_s17 + $0xb8] sm:$0xff]  ;;  %v10436_v36 = vld [vmem:[%s13342_s17 + $0xb0] sm:$0xff]  ;;  %v724_v50 = vsel %vm549_vm2, %v721_v40, %v723_v41 }
  0x4f   : >> { %v13389_v38 = vmul.f32 0.003921569, %v10435_v32  ;;  %v13391_v39 = vmul.f32 0.003921569, %v10417_v33  ;;  %v13394_v42 = vmul.f32 0.003921569, %v10437_v34  ;;  %v722_v52 = vsel %vm549_vm2, %v720_v43, %v721_v40 }
  0x50   : >> { %559 = vrot.lane.b32.xlu1 %v553_v18, %s13120_s23  ;;  %v687_v37 = vrot.slane %v13379_v31, 1  ;;  %v13398_v46 = vmul.f32 0.003921569, %v10436_v36  ;;  %v10425_v51 = vld [vmem:[%s13342_s17 + $0x78] sm:$0xff]  ;;  %v10427_v53 = vld [vmem:[%s13342_s17 + $0x88] sm:$0xff]  ;;  %v10426_v54 = vld [vmem:[%s13342_s17 + $0x80] sm:$0xff] }
  0x51   : >> { %557 = vrot.lane.b32.xlu0 %v554_v26, %s13120_s23  ;;  %v843_v44 = vrot.slane %v13389_v38, 1  ;;  %v689_v45 = vrot.slane %v13391_v39, 1  ;;  %v846_v47 = vrot.slane %v13394_v42, 1  ;;  %v743_v57 = vmul.f32 0.003921569, %v10425_v51  ;;  %v10411_v1 = vld [vmem:[%s13342_s17 + $0x38] sm:$0xff] }
  0x52   : >> { %v844_v48 = vrot.slane %v13398_v46, 1  ;;  %v745_v58 = vmul.f32 0.003921569, %v10427_v53  ;;  %v744_v59 = vmul.f32 0.003921569, %v10426_v54  ;;  %v10430_v4 = vld [vmem:[%s13342_s17 + $0x90] sm:$0xff] }
  0x53   : >> { %v13409_v49 = vsel %vm549_vm2, %v687_v37, %v689_v45  ;;  %v761_v62 = vrot.slane %v743_v57, 1  ;;  %v622_v3 = vmul.f32 0.003921569, %v10411_v1  ;;  %v10412_v5 = vld [vmem:[%s13342_s17 + $0x40] sm:$0xff]  ;;  %v784_v6 = vmul.f32 0.003921569, %v10430_v4 }
  0x54   : >> { %603 = vrot.lane.b32.xlu1 %v600_v29, %s13121_s24  ;;  %v13418_v55 = vsel %vm549_vm2, %v843_v44, %v844_v48  ;;  %v13423_v56 = vsel %vm549_vm2, %v844_v48, %v846_v47  ;;  %v764_v60 = vrot.slane %v745_v58, 1  ;;  %v762_v61 = vrot.slane %v744_v59, 1  ;;  %v10432_v8 = vld [vmem:[%s13342_s17 + $0xa0] sm:$0xff]  ;;  %v10431_v9 = vld [vmem:[%s13342_s17 + $0x98] sm:$0xff]  ;;  %v10415_v22 = vld [vmem:[%s13342_s17 + $0x48] sm:$0xff]  ;;  %s13124_s27 = smov 96  }
  0x55   : >> { %601 = vrot.lane.b32.xlu0 %v598_v30, %s13121_s24  ;;  %v623_v7 = vmul.f32 0.003921569, %v10412_v5  ;;  %v786_v10 = vmul.f32 0.003921569, %v10432_v8  ;;  %v642_v11 = vrot.slane %v622_v3, 1  ;;  %v641_v14 = vrot.slane %v13384_v35, 1 }
  0x56   : >> { %v765_v63 = vsel %vm549_vm2, %v762_v61, %v764_v60  ;;  %v763_v2 = vsel %vm549_vm2, %v761_v62, %v762_v61  ;;  %v785_v13 = vmul.f32 0.003921569, %v10431_v9  ;;  %v802_v15 = vrot.slane %v784_v6, 1  ;;  %s13125_s29 = smov 112   ;;  %s526_s14 = sadd.s32 1, %s13108_s14  }
  0x57   : >> { %v644_v12 = vrot.slane %v623_v7, 1  ;;  %v643_v18 = vsel %vm549_vm2, %v641_v14, %v642_v11  ;;  %v805_v20 = vrot.slane %v786_v10, 1  ;;  %v666_v23 = vmul.f32 0.003921569, %v10415_v22  ;;  %p523_p4 = scmp.ge.s32.totalorder %s526_s14, 20  }
  0x58   : >> { %627 = vrot.lane.b32.xlu1 %v13384_v35, %s13122_s25  ;;  %v803_v16 = vrot.slane %v785_v13, 1  ;;  %vm681_vm13 = vcmask 917248   ;;  %vm684_vm14 = vcmask 913152   ;;  %vm700_vm15 = vcmask 1048448   ;;  %v11793_v5 = vld [vmem:[%s17575_s2 + $0x38] sm:$0xff] (%p523_p4)   ;;  %v11795_v8 = vld [vmem:[%s17575_s2 + $0x28] sm:$0xff] (%p523_p4)  }
  0x59   : >> { %605 = vrot.lane.b32.xlu0 %v599_v24, %s13121_s24  ;;  %v645_v17 = vsel %vm549_vm2, %v642_v11, %v644_v12  ;;  %v686_v24 = vrot.slane %v666_v23, 1  ;;  %vm703_vm0 = vcmask 1044352   ;;  %v11796_v9 = vld [vmem:[%s17575_s2 + $0x20] sm:$0xff] (%p523_p4)   ;;  %v11798_v14 = vld [vmem:[%s17575_s2 + $0x10] sm:$0xff] (%p523_p4)   ;;  %vm1508_vm1 = vcmask (%p523_p4), 261120   ;;  %s13723_s16 = smov (%p523_p4), 0  }
  0x5a   : >> { %v804_v19 = vsel %vm549_vm2, %v802_v15, %v803_v16  ;;  %v806_v21 = vsel %vm549_vm2, %v803_v16, %v805_v20  ;;  %v11799_v15 = vld [vmem:[%s17575_s2 + $0x8] sm:$0xff] (%p523_p4)   ;;  %v11800_v16 = vld [vmem:[%s17575_s2] sm:$0xff] (%p523_p4)   ;;  %v11806_v22 = vld [vmem:[%s17575_s2 + $0x50] sm:$0xff] (%p523_p4)  }
  0x5b   : >> { %v688_v25 = vsel %vm549_vm2, %v686_v24, %v687_v37  ;;  %v11808_v24 = vld [vmem:[%s17575_s2 + $0x40] sm:$0xff] (%p523_p4)  }
  0x5c   : >> { %727 = vrot.lane.b32.xlu1 %v724_v50, %s13120_s23 }
  0x5d   : >> { %725 = vrot.lane.b32.xlu0 %v722_v52, %s13120_s23 }
  0x60   : >> { %749 = vrot.lane.b32.xlu1 %v743_v57, %s13119_s20 }
  0x61   : >> { %729 = vrot.lane.b32.xlu0 %v723_v41, %s13120_s23 }
  0x64   : >> { %753 = vrot.lane.b32.xlu1 %v745_v58, %s13119_s20 }
  0x65   : >> { %751 = vrot.lane.b32.xlu0 %v744_v59, %s13119_s20 }
  0x68   : >> { %768 = vrot.lane.b32.xlu1 %v765_v63, %s13121_s24 }
  0x69   : >> { %766 = vrot.lane.b32.xlu0 %v763_v2, %s13121_s24 }
  0x6c   : >> { %629 = vrot.lane.b32.xlu1 %v622_v3, %s13122_s25 }
  0x6d   : >> { %770 = vrot.lane.b32.xlu0 %v764_v60, %s13121_s24 }
  0x70   : >> { %790 = vrot.lane.b32.xlu1 %v784_v6, %s13122_s25  ;;  %v17586_v6 = vmov (%p523_p4), 0  }
  0x71   : >> { %631 = vrot.lane.b32.xlu0 %v623_v7, %s13122_s25  ;;  %1175 = vmatprep.subr.bf16.mxu0 (%p523_p4), %v17586_v6  ;;  %v11794_v7 = vld [vmem:[%s17575_s2 + $0x30] sm:$0xff] (%p523_p4)  }
  0x72   : > { %1176 = vmatpush1.bf16.msra.mxu0 (%p523_p4), %v11793_v5 }
  0x73   : > { %1177 = vmatprep.subr.bf16.mxu0 (%p523_p4), %v17586_v6 }
  0x74   : >> { %794 = vrot.lane.b32.xlu1 %v786_v10, %s13122_s25  ;;  %v11797_v10 = vld [vmem:[%s17575_s2 + $0x18] sm:$0xff] (%p523_p4)  }
  0x75   : >> { %792 = vrot.lane.b32.xlu0 %v785_v13, %s13122_s25 }
  0x76   : > { %1178 = vmatpush1.bf16.msra.mxu0 (%p523_p4), %v11794_v7 }
  0x77   : > { %1179 = vmatprep.subr.bf16.mxu0 (%p523_p4), %v17586_v6 }
  0x78   : >> { %648 = vrot.lane.b32.xlu1 %v645_v17, %s13123_s26  ;;  %v11801_v17 = vld [vmem:[%s17575_s2 + $0x78] sm:$0xff] (%p523_p4)  }
  0x79   : >> { %646 = vrot.lane.b32.xlu0 %v643_v18, %s13123_s26  ;;  %v11802_v18 = vld [vmem:[%s17575_s2 + $0x70] sm:$0xff] (%p523_p4)  }
  0x7a   : > { %1180 = vmatpush1.bf16.msra.mxu0 (%p523_p4), %v11795_v8 }
  0x7b   : > { %1181 = vmatprep.subr.bf16.mxu0 (%p523_p4), %v17586_v6 }
  0x7c   : >> { %807 = vrot.lane.b32.xlu1 %v804_v19, %s13123_s26  ;;  %v11803_v19 = vld [vmem:[%s17575_s2 + $0x68] sm:$0xff] (%p523_p4)  }
  0x7d   : >> { %650 = vrot.lane.b32.xlu0 %v644_v12, %s13123_s26 }
  0x7e   : > { %1182 = vmatpush1.bf16.msra.mxu0 (%p523_p4), %v11796_v9 }
  0x7f   : > { %1183 = vmatprep.subr.bf16.mxu0 (%p523_p4), %v17586_v6 }
  0x80   : >> { %811 = vrot.lane.b32.xlu1 %v805_v20, %s13123_s26  ;;  %v11804_v20 = vld [vmem:[%s17575_s2 + $0x60] sm:$0xff] (%p523_p4)  }
  0x81   : >> { %809 = vrot.lane.b32.xlu0 %v806_v21, %s13123_s26  ;;  %v11805_v21 = vld [vmem:[%s17575_s2 + $0x58] sm:$0xff] (%p523_p4)  }
  0x82   : > { %1184 = vmatpush1.bf16.msra.mxu0 (%p523_p4), %v11797_v10 }
  0x83   : > { %1185 = vmatprep.subr.bf16.mxu0 (%p523_p4), %v17586_v6 }
  0x84   : >> { %674 = vrot.lane.b32.xlu1 %v13379_v31, %s13124_s27 }
  0x85   : >> { %672 = vrot.lane.b32.xlu0 %v666_v23, %s13124_s27  ;;  %v11807_v23 = vld [vmem:[%s17575_s2 + $0x48] sm:$0xff] (%p523_p4)  }
  0x86   : > { %1186 = vmatpush1.bf16.msra.mxu0 (%p523_p4), %v11798_v14 }
  0x87   : > { %1187 = vmatprep.subr.bf16.mxu0 (%p523_p4), %v17586_v6 }
  0x88   : >> { %831 = vrot.lane.b32.xlu1 %v13389_v38, %s13124_s27 }
  0x89   : >> { %676 = vrot.lane.b32.xlu0 %v13391_v39, %s13124_s27 }
  0x8a   : > { %1188 = vmatpush1.bf16.msra.mxu0 (%p523_p4), %v11799_v15 }
  0x8b   : > { %1189 = vmatprep.subr.bf16.mxu0 (%p523_p4), %v17586_v6 }
  0x8c   : >> { %835 = vrot.lane.b32.xlu1 %v13394_v42, %s13124_s27 }
  0x8d   : >> { %833 = vrot.lane.b32.xlu0 %v13398_v46, %s13124_s27 }
  0x8e   : > { %1190 = vmatpush1.bf16.msra.mxu0 (%p523_p4), %v11800_v16 }
  0x8f   : > { %1191 = vmatprep.subr.bf16.mxu0 (%p523_p4), %v17586_v6 }
  0x90   : >> { %693 = vrot.lane.b32.xlu1 %v13409_v49, %s13125_s29 }
  0x91   : >> { %691 = vrot.lane.b32.xlu0 %v688_v25, %s13125_s29 }
  0x92   : > { %1192 = vmatpush2.bf16.msra.mxu0 (%p523_p4), %v11801_v17 }
  0x93   : > { %1193 = vmatprep.subr.bf16.mxu0 (%p523_p4), %v17586_v6 }
  0x94   : >> { %848 = vrot.lane.b32.xlu1 %v13418_v55, %s13125_s29 }
  0x95   : >> { %695 = vrot.lane.b32.xlu0 %v689_v45, %s13125_s29 }
  0x96   : > { %1194 = vmatpush2.bf16.msra.mxu0 (%p523_p4), %v11802_v18 }
  0x97   : > { %1195 = vmatprep.subr.bf16.mxu0 (%p523_p4), %v17586_v6 }
  0x98   : >> { %852 = vrot.lane.b32.xlu1 %v846_v47, %s13125_s29 }
  0x99   : >> { %850 = vrot.lane.b32.xlu0 %v13423_v56, %s13125_s29 }
  0x9a   : > { %1196 = vmatpush2.bf16.msra.mxu0 (%p523_p4), %v11803_v19 }
  0x9b   : > { %1197 = vmatprep.subr.bf16.mxu0 (%p523_p4), %v17586_v6 }
  0x9e   : > { %1198 = vmatpush2.bf16.msra.mxu0 (%p523_p4), %v11804_v20 }
  0x9f   : > { %1199 = vmatprep.subr.bf16.mxu0 (%p523_p4), %v17586_v6 }
  0xa2   : > { %1200 = vmatpush2.bf16.msra.mxu0 (%p523_p4), %v11805_v21 }
  0xa3   : > { %1201 = vmatprep.subr.bf16.mxu0 (%p523_p4), %v17586_v6 }
  0xa6   : > { %1202 = vmatpush2.bf16.msra.mxu0 (%p523_p4), %v11806_v22 }
  0xa7   : > { %1203 = vmatprep.subr.bf16.mxu0 (%p523_p4), %v17586_v6 }
  0xaa   : > { %1204 = vmatpush2.bf16.msra.mxu0 (%p523_p4), %v11807_v23 }
  0xab   : > { %1205 = vmatprep.subr.bf16.mxu0 (%p523_p4), %v17586_v6 }
  0xae   : > { %1206 = vmatpush2.bf16.msra.mxu0 (%p523_p4), %v11808_v24 }
  0xba   : >> { %v585_v26 = vpop.permute.xlu0 %584  ;;  %v583_v27 = vpop.permute.xlu1 %582 }
  0xbe   : >> { %v587_v28 = vpop.permute.xlu1 %586 }
  0xbf   : >> { %v556_v29 = vpop.permute.xlu0 %555 }
  0xc0   : >> { %565 = vst.msk [vmem:[%s13352_s22] sm:$0xff] %vm564_vm3, %v556_v29 }
  0xc1   : >> { %592 = vst.msk [vmem:[%s13352_s22] sm:$0xff] %vm591_vm4, %v583_v27 }
  0xc2   : >> { %v560_v30 = vpop.permute.xlu1 %559 }
  0xc3   : >> { %568 = vst.msk [vmem:[%s13352_s22 + $0x20] sm:$0xf] %vm567_vm5, %v560_v30  ;;  %v558_v31 = vpop.permute.xlu0 %557 }
  0xc4   : >> { %566 = vst.msk [vmem:[%s13352_s22 + $0x10] sm:$0xff] %vm564_vm3, %v558_v31 }
  0xc5   : >> { %595 = vst.msk [vmem:[%s13352_s22 + $0x20] sm:$0xf] %vm594_vm6, %v587_v28 }
  0xc6   : >> { %593 = vst.msk [vmem:[%s13352_s22 + $0x10] sm:$0xff] %vm591_vm4, %v585_v26  ;;  %v604_v32 = vpop.permute.xlu1 %603 }
  0xc7   : >> { %612 = vst.msk [vmem:[%s13352_s22 + $0x10] sm:$0xff] %vm610_vm7, %v604_v32  ;;  %v602_v33 = vpop.permute.xlu0 %601 }
  0xc8   : >> { %611 = vst.msk [vmem:[%s13352_s22] sm:$0xff] %vm610_vm7, %v602_v33 }
  0xca   : >> { %v628_v34 = vpop.permute.xlu1 %627 }
  0xcb   : >> { %637 = vst.msk [vmem:[%s13352_s22] sm:$0xff] %vm636_vm8, %v628_v34  ;;  %v606_v35 = vpop.permute.xlu0 %605 }
  0xcc   : >> { %614 = vst.msk [vmem:[%s13352_s22 + $0x20] sm:$0xf] %vm613_vm9, %v606_v35 }
  0xce   : >> { %v728_v36 = vpop.permute.xlu1 %727 }
  0xcf   : >> { %735 = vst.msk [vmem:[%s13352_s22 + $0x18] sm:$0xff] %vm564_vm3, %v728_v36  ;;  %v726_v37 = vpop.permute.xlu0 %725 }
  0xd0   : >> { %734 = vst.msk [vmem:[%s13352_s22 + $0x8] sm:$0xff] %vm564_vm3, %v726_v37 }
  0xd2   : >> { %v750_v38 = vpop.permute.xlu1 %749 }
  0xd3   : >> { %758 = vst.msk [vmem:[%s13352_s22 + $0x8] sm:$0xff] %vm591_vm4, %v750_v38  ;;  %v730_v39 = vpop.permute.xlu0 %729 }
  0xd4   : >> { %736 = vst.msk [vmem:[%s13352_s22 + $0x28] sm:$0xf] %vm567_vm5, %v730_v39 }
  0xd6   : >> { %v754_v40 = vpop.permute.xlu1 %753 }
  0xd7   : >> { %760 = vst.msk [vmem:[%s13352_s22 + $0x28] sm:$0xf] %vm594_vm6, %v754_v40  ;;  %v752_v41 = vpop.permute.xlu0 %751 }
  0xd8   : >> { %759 = vst.msk [vmem:[%s13352_s22 + $0x18] sm:$0xff] %vm591_vm4, %v752_v41 }
  0xda   : >> { %v769_v42 = vpop.permute.xlu1 %768 }
  0xdb   : >> { %776 = vst.msk [vmem:[%s13352_s22 + $0x18] sm:$0xff] %vm610_vm7, %v769_v42  ;;  %v767_v43 = vpop.permute.xlu0 %766 }
  0xdc   : >> { %775 = vst.msk [vmem:[%s13352_s22 + $0x8] sm:$0xff] %vm610_vm7, %v767_v43 }
  0xde   : >> { %v630_v44 = vpop.permute.xlu1 %629 }
  0xdf   : >> { %638 = vst.msk [vmem:[%s13352_s22 + $0x10] sm:$0xff] %vm636_vm8, %v630_v44  ;;  %v771_v45 = vpop.permute.xlu0 %770 }
  0xe0   : >> { %777 = vst.msk [vmem:[%s13352_s22 + $0x28] sm:$0xf] %vm613_vm9, %v771_v45 }
  0xe2   : >> { %v791_v46 = vpop.permute.xlu1 %790 }
  0xe3   : >> { %799 = vst.msk [vmem:[%s13352_s22 + $0x8] sm:$0xff] %vm636_vm8, %v791_v46  ;;  %v632_v47 = vpop.permute.xlu0 %631 }
  0xe4   : >> { %640 = vst.msk [vmem:[%s13352_s22 + $0x20] sm:$0xf] %vm639_vm10, %v632_v47 }
  0xe6   : >> { %v795_v48 = vpop.permute.xlu1 %794 }
  0xe7   : >> { %801 = vst.msk [vmem:[%s13352_s22 + $0x28] sm:$0xf] %vm639_vm10, %v795_v48  ;;  %v793_v49 = vpop.permute.xlu0 %792 }
  0xe8   : >> { %800 = vst.msk [vmem:[%s13352_s22 + $0x18] sm:$0xff] %vm636_vm8, %v793_v49 }
  0xea   : >> { %v649_v50 = vpop.permute.xlu1 %648 }
  0xeb   : >> { %657 = vst.msk [vmem:[%s13352_s22 + $0x10] sm:$0xff] %vm655_vm11, %v649_v50  ;;  %v647_v51 = vpop.permute.xlu0 %646 }
  0xec   : >> { %656 = vst.msk [vmem:[%s13352_s22] sm:$0xff] %vm655_vm11, %v647_v51 }
  0xee   : >> { %v808_v52 = vpop.permute.xlu1 %807 }
  0xef   : >> { %816 = vst.msk [vmem:[%s13352_s22 + $0x8] sm:$0xff] %vm655_vm11, %v808_v52  ;;  %v651_v53 = vpop.permute.xlu0 %650 }
  0xf0   : >> { %659 = vst.msk [vmem:[%s13352_s22 + $0x20] sm:$0xf] %vm658_vm12, %v651_v53 }
  0xf2   : >> { %v812_v54 = vpop.permute.xlu1 %811 }
  0xf3   : >> { %818 = vst.msk [vmem:[%s13352_s22 + $0x28] sm:$0xf] %vm658_vm12, %v812_v54  ;;  %v810_v55 = vpop.permute.xlu0 %809 }
  0xf4   : >> { %817 = vst.msk [vmem:[%s13352_s22 + $0x18] sm:$0xff] %vm655_vm11, %v810_v55 }
  0xf6   : >> { %v675_v56 = vpop.permute.xlu1 %674 }
  0xf7   : >> { %683 = vst.msk [vmem:[%s13352_s22 + $0x10] sm:$0xff] %vm681_vm13, %v675_v56  ;;  %v673_v57 = vpop.permute.xlu0 %672 }
  0xf8   : >> { %682 = vst.msk [vmem:[%s13352_s22] sm:$0xff] %vm681_vm13, %v673_v57 }
  0xfa   : >> { %v832_v58 = vpop.permute.xlu1 %831 }
  0xfb   : >> { %840 = vst.msk [vmem:[%s13352_s22 + $0x8] sm:$0xff] %vm681_vm13, %v832_v58  ;;  %v677_v59 = vpop.permute.xlu0 %676 }
  0xfc   : >> { %685 = vst.msk [vmem:[%s13352_s22 + $0x20] sm:$0xf] %vm684_vm14, %v677_v59 }
  0xfe   : >> { %v836_v60 = vpop.permute.xlu1 %835 }
  0xff   : >> { %842 = vst.msk [vmem:[%s13352_s22 + $0x28] sm:$0xf] %vm684_vm14, %v836_v60  ;;  %v834_v61 = vpop.permute.xlu0 %833 }
 0x100   : >> { %841 = vst.msk [vmem:[%s13352_s22 + $0x18] sm:$0xff] %vm681_vm13, %v834_v61 }
 0x102   : >> { %v694_v62 = vpop.permute.xlu1 %693 }
 0x103   : >> { %702 = vst.msk [vmem:[%s13352_s22 + $0x10] sm:$0xff] %vm700_vm15, %v694_v62  ;;  %v692_v63 = vpop.permute.xlu0 %691 }
 0x104   : >> { %701 = vst.msk [vmem:[%s13352_s22] sm:$0xff] %vm700_vm15, %v692_v63 }
 0x106   : >> { %v849_v1 = vpop.permute.xlu1 %848 }
 0x107   : >> { %857 = vst.msk [vmem:[%s13352_s22 + $0x8] sm:$0xff] %vm700_vm15, %v849_v1  ;;  %v696_v2 = vpop.permute.xlu0 %695 }
 0x108   : >> { %704 = vst.msk [vmem:[%s13352_s22 + $0x20] sm:$0xf] %vm703_vm0, %v696_v2  ;;  %525 = sbr.rel (!%p523_p4) target bundleno = 66 (0x42), region = 137 }
 0x10a   : >> { %v853_v3 = vpop.permute.xlu1 %852 }
 0x10b   : >> { %859 = vst.msk [vmem:[%s13352_s22 + $0x28] sm:$0xf] %vm703_vm0, %v853_v3  ;;  %v851_v4 = vpop.permute.xlu0 %850 }
 0x10c   : >> { %858 = vst.msk [vmem:[%s13352_s22 + $0x18] sm:$0xff] %vm700_vm15, %v851_v4 }
 0x113   : > { %v861_v11 = vld [vmem:[#allocation2 + $0x8] sm:$0xff]  ;;  %v863_v12 = vld [vmem:[#allocation2 + $0x18] sm:$0xff]  ;;  %v860_v25 = vld [vmem:[#allocation2] sm:$0xff] }
 0x114   : > { %v981_v13 = vpack.c.bf16 %v863_v12, %v861_v11  ;;  %v862_v26 = vld [vmem:[#allocation2 + $0x10] sm:$0xff]  ;;  %v865_v27 = vld [vmem:[#allocation2 + $0x28] sm:$0xff]  ;;  %v867_v28 = vld [vmem:[#allocation2 + $0x38] sm:$0xff] }
 0x115   : > { %v980_v29 = vpack.c.bf16 %v862_v26, %v860_v25  ;;  %v983_v30 = vpack.c.bf16 %v867_v28, %v865_v27  ;;  %v864_v31 = vld [vmem:[#allocation2 + $0x20] sm:$0xff]  ;;  %v866_v32 = vld [vmem:[#allocation2 + $0x30] sm:$0xff]  ;;  %v869_v33 = vld [vmem:[#allocation2 + $0x48] sm:$0xff] }
 0x116   : > { %1207 = vmatprep.mubr.bf16.mxu0 %v981_v13  ;;  %v871_v34 = vld [vmem:[#allocation2 + $0x58] sm:$0xff]  ;;  %v982_v35 = vpack.c.bf16 %v866_v32, %v864_v31  ;;  %v868_v37 = vld [vmem:[#allocation2 + $0x40] sm:$0xff]  ;;  %v870_v38 = vld [vmem:[#allocation2 + $0x50] sm:$0xff] }
 0x117   : > { %1208 = vmatmul.mubr.bf16.vlgmr.msra.gmra.mxu0 %v980_v29  ;;  %v985_v36 = vpack.c.bf16 %v871_v34, %v869_v33  ;;  %v873_v39 = vld [vmem:[#allocation2 + $0x68] sm:$0xff]  ;;  %v875_v40 = vld [vmem:[#allocation2 + $0x78] sm:$0xff]  ;;  %v984_v41 = vpack.c.bf16 %v870_v38, %v868_v37  ;;  %v872_v43 = vld [vmem:[#allocation2 + $0x60] sm:$0xff] }
 0x118   : > { %1215 = vmatprep.mubr.bf16.mxu0 %v983_v30  ;;  %v987_v42 = vpack.c.bf16 %v875_v40, %v873_v39  ;;  %v874_v44 = vld [vmem:[#allocation2 + $0x70] sm:$0xff]  ;;  %v877_v45 = vld [vmem:[#allocation2 + $0x88] sm:$0xff]  ;;  %v879_v46 = vld [vmem:[#allocation2 + $0x98] sm:$0xff] }
 0x119   : > { %v986_v47 = vpack.c.bf16 %v874_v44, %v872_v43  ;;  %v989_v48 = vpack.c.bf16 %v879_v46, %v877_v45  ;;  %v876_v49 = vld [vmem:[#allocation2 + $0x80] sm:$0xff]  ;;  %v878_v50 = vld [vmem:[#allocation2 + $0x90] sm:$0xff]  ;;  %v881_v51 = vld [vmem:[#allocation2 + $0xa8] sm:$0xff] }
 0x11a   : > { %v883_v52 = vld [vmem:[#allocation2 + $0xb8] sm:$0xff]  ;;  %v988_v53 = vpack.c.bf16 %v878_v50, %v876_v49  ;;  %v880_v55 = vld [vmem:[#allocation2 + $0xa0] sm:$0xff]  ;;  %v882_v56 = vld [vmem:[#allocation2 + $0xb0] sm:$0xff] }
 0x11b   : > { %v991_v54 = vpack.c.bf16 %v883_v52, %v881_v51  ;;  %v885_v57 = vld [vmem:[#allocation2 + $0xc8] sm:$0xff]  ;;  %v887_v58 = vld [vmem:[#allocation2 + $0xd8] sm:$0xff]  ;;  %v990_v59 = vpack.c.bf16 %v882_v56, %v880_v55  ;;  %v884_v61 = vld [vmem:[#allocation2 + $0xc0] sm:$0xff] }
 0x11c   : > { %v993_v60 = vpack.c.bf16 %v887_v58, %v885_v57  ;;  %v886_v62 = vld [vmem:[#allocation2 + $0xd0] sm:$0xff]  ;;  %v889_v63 = vld [vmem:[#allocation2 + $0xe8] sm:$0xff]  ;;  %v891_v1 = vld [vmem:[#allocation2 + $0xf8] sm:$0xff] }
 0x11d   : > { %v992_v2 = vpack.c.bf16 %v886_v62, %v884_v61  ;;  %v995_v3 = vpack.c.bf16 %v891_v1, %v889_v63  ;;  %v888_v4 = vld [vmem:[#allocation2 + $0xe0] sm:$0xff]  ;;  %v890_v5 = vld [vmem:[#allocation2 + $0xf0] sm:$0xff]  ;;  %v893_v7 = vld [vmem:[#allocation2 + $0x108] sm:$0xff] }
 0x11e   : > { %v895_v8 = vld [vmem:[#allocation2 + $0x118] sm:$0xff]  ;;  %v994_v9 = vpack.c.bf16 %v890_v5, %v888_v4  ;;  %v892_v11 = vld [vmem:[#allocation2 + $0x100] sm:$0xff]  ;;  %v894_v12 = vld [vmem:[#allocation2 + $0x110] sm:$0xff] }
 0x11f   : > { %1216 = vmatmul.mubr.bf16.gmra.mxu0 %v982_v35  ;;  %v997_v10 = vpack.c.bf16 %v895_v8, %v893_v7  ;;  %v897_v13 = vld [vmem:[#allocation2 + $0x128] sm:$0xff]  ;;  %v899_v14 = vld [vmem:[#allocation2 + $0x138] sm:$0xff]  ;;  %v996_v15 = vpack.c.bf16 %v894_v12, %v892_v11  ;;  %v896_v17 = vld [vmem:[#allocation2 + $0x120] sm:$0xff] }
 0x120   : > { %1223 = vmatprep.mubr.bf16.mxu0 %v985_v36  ;;  %v999_v16 = vpack.c.bf16 %v899_v14, %v897_v13  ;;  %v898_v18 = vld [vmem:[#allocation2 + $0x130] sm:$0xff]  ;;  %v901_v19 = vld [vmem:[#allocation2 + $0x148] sm:$0xff]  ;;  %v903_v20 = vld [vmem:[#allocation2 + $0x158] sm:$0xff] }
 0x121   : > { %v998_v21 = vpack.c.bf16 %v898_v18, %v896_v17  ;;  %v1001_v22 = vpack.c.bf16 %v903_v20, %v901_v19  ;;  %v900_v23 = vld [vmem:[#allocation2 + $0x140] sm:$0xff]  ;;  %v902_v24 = vld [vmem:[#allocation2 + $0x150] sm:$0xff]  ;;  %v905_v25 = vld [vmem:[#allocation2 + $0x168] sm:$0xff] }
 0x122   : > { %v907_v26 = vld [vmem:[#allocation2 + $0x178] sm:$0xff]  ;;  %v1000_v27 = vpack.c.bf16 %v902_v24, %v900_v23  ;;  %v904_v29 = vld [vmem:[#allocation2 + $0x160] sm:$0xff]  ;;  %v906_v30 = vld [vmem:[#allocation2 + $0x170] sm:$0xff] }
 0x123   : > { %v1003_v28 = vpack.c.bf16 %v907_v26, %v905_v25  ;;  %v909_v31 = vld [vmem:[#allocation2 + $0x188] sm:$0xff]  ;;  %v911_v32 = vld [vmem:[#allocation2 + $0x198] sm:$0xff]  ;;  %v1002_v33 = vpack.c.bf16 %v906_v30, %v904_v29  ;;  %v908_v35 = vld [vmem:[#allocation2 + $0x180] sm:$0xff] }
 0x124   : > { %v1005_v34 = vpack.c.bf16 %v911_v32, %v909_v31  ;;  %v910_v36 = vld [vmem:[#allocation2 + $0x190] sm:$0xff]  ;;  %v913_v37 = vld [vmem:[#allocation2 + $0x1a8] sm:$0xff]  ;;  %v915_v38 = vld [vmem:[#allocation2 + $0x1b8] sm:$0xff] }
 0x125   : > { %v1004_v39 = vpack.c.bf16 %v910_v36, %v908_v35  ;;  %v1007_v40 = vpack.c.bf16 %v915_v38, %v913_v37  ;;  %v917_v43 = vld [vmem:[#allocation2 + $0x1c8] sm:$0xff]  ;;  %v919_v44 = vld [vmem:[#allocation2 + $0x1d8] sm:$0xff] }
 0x126   : > { %v1009_v46 = vpack.c.bf16 %v919_v44, %v917_v43  ;;  %v921_v49 = vld [vmem:[#allocation2 + $0x1e8] sm:$0xff]  ;;  %v923_v50 = vld [vmem:[#allocation2 + $0x1f8] sm:$0xff] }
 0x127   : > { %1224 = vmatmul.mubr.bf16.gmra.mxu0 %v984_v41  ;;  %v912_v41 = vld [vmem:[#allocation2 + $0x1a0] sm:$0xff]  ;;  %v1011_v52 = vpack.c.bf16 %v923_v50, %v921_v49  ;;  %v925_v55 = vld [vmem:[#allocation2 + $0x208] sm:$0xff]  ;;  %v927_v56 = vld [vmem:[#allocation2 + $0x218] sm:$0xff] }
 0x128   : > { %1231 = vmatprep.mubr.bf16.mxu0 %v987_v42  ;;  %v914_v42 = vld [vmem:[#allocation2 + $0x1b0] sm:$0xff]  ;;  %v1013_v58 = vpack.c.bf16 %v927_v56, %v925_v55  ;;  %v929_v61 = vld [vmem:[#allocation2 + $0x228] sm:$0xff]  ;;  %v931_v62 = vld [vmem:[#allocation2 + $0x238] sm:$0xff] }
 0x129   : > { %v1006_v45 = vpack.c.bf16 %v914_v42, %v912_v41  ;;  %v1015_v1 = vpack.c.bf16 %v931_v62, %v929_v61  ;;  %v933_v4 = vld [vmem:[#allocation2 + $0x248] sm:$0xff]  ;;  %v935_v5 = vld [vmem:[#allocation2 + $0x258] sm:$0xff]  ;;  %v962_v55 = vld [vmem:[#allocation2 + $0x330] sm:$0xff] }
 0x12a   : > { %v1017_v8 = vpack.c.bf16 %v935_v5, %v933_v4  ;;  %v937_v11 = vld [vmem:[#allocation2 + $0x268] sm:$0xff]  ;;  %v939_v12 = vld [vmem:[#allocation2 + $0x278] sm:$0xff]  ;;  %v964_v5 = vld [vmem:[#allocation2 + $0x340] sm:$0xff] }
 0x12b   : > { %v1019_v14 = vpack.c.bf16 %v939_v12, %v937_v11  ;;  %v941_v17 = vld [vmem:[#allocation2 + $0x288] sm:$0xff]  ;;  %v943_v18 = vld [vmem:[#allocation2 + $0x298] sm:$0xff] }
 0x12c   : > { %v1021_v20 = vpack.c.bf16 %v943_v18, %v941_v17  ;;  %v945_v23 = vld [vmem:[#allocation2 + $0x2a8] sm:$0xff]  ;;  %v947_v24 = vld [vmem:[#allocation2 + $0x2b8] sm:$0xff] }
 0x12d   : > { %v1023_v26 = vpack.c.bf16 %v947_v24, %v945_v23  ;;  %v949_v29 = vld [vmem:[#allocation2 + $0x2c8] sm:$0xff]  ;;  %v951_v30 = vld [vmem:[#allocation2 + $0x2d8] sm:$0xff] }
 0x12e   : > { %v1025_v32 = vpack.c.bf16 %v951_v30, %v949_v29  ;;  %v953_v35 = vld [vmem:[#allocation2 + $0x2e8] sm:$0xff]  ;;  %v955_v36 = vld [vmem:[#allocation2 + $0x2f8] sm:$0xff] }
 0x12f   : > { %1232 = vmatmul.mubr.bf16.gmra.mxu0 %v986_v47  ;;  %v916_v47 = vld [vmem:[#allocation2 + $0x1c0] sm:$0xff]  ;;  %v1027_v38 = vpack.c.bf16 %v955_v36, %v953_v35  ;;  %v957_v41 = vld [vmem:[#allocation2 + $0x308] sm:$0xff]  ;;  %v959_v42 = vld [vmem:[#allocation2 + $0x318] sm:$0xff] }
 0x130   : > { %1239 = vmatprep.mubr.bf16.mxu0 %v989_v48  ;;  %v918_v48 = vld [vmem:[#allocation2 + $0x1d0] sm:$0xff]  ;;  %v1029_v44 = vpack.c.bf16 %v959_v42, %v957_v41  ;;  %v973_v23 = vld [vmem:[#allocation2 + $0x388] sm:$0xff]  ;;  %v975_v24 = vld [vmem:[#allocation2 + $0x398] sm:$0xff] }
 0x131   : > { %v1008_v51 = vpack.c.bf16 %v918_v48, %v916_v47  ;;  %v961_v47 = vld [vmem:[#allocation2 + $0x328] sm:$0xff]  ;;  %v963_v48 = vld [vmem:[#allocation2 + $0x338] sm:$0xff]  ;;  %v1037_v29 = vpack.c.bf16 %v975_v24, %v973_v23  ;;  %v974_v35 = vld [vmem:[#allocation2 + $0x390] sm:$0xff] }
 0x132   : > { %v1031_v50 = vpack.c.bf16 %v963_v48, %v961_v47  ;;  %v976_v48 = vld [vmem:[#allocation2 + $0x3a0] sm:$0xff] }
 0x137   : > { %1240 = vmatmul.mubr.bf16.gmra.mxu0 %v988_v53  ;;  %v920_v53 = vld [vmem:[#allocation2 + $0x1e0] sm:$0xff] }
 0x138   : > { %1247 = vmatprep.mubr.bf16.mxu0 %v991_v54  ;;  %v922_v54 = vld [vmem:[#allocation2 + $0x1f0] sm:$0xff] }
 0x139   : > { %v1010_v57 = vpack.c.bf16 %v922_v54, %v920_v53  ;;  %v960_v54 = vld [vmem:[#allocation2 + $0x320] sm:$0xff] }
 0x13a   : > { %v1030_v61 = vpack.c.bf16 %v962_v55, %v960_v54 }
 0x13f   : > { %1248 = vmatmul.mubr.bf16.gmra.mxu0 %v990_v59  ;;  %v924_v59 = vld [vmem:[#allocation2 + $0x200] sm:$0xff] }
 0x140   : > { %1255 = vmatprep.mubr.bf16.mxu0 %v993_v60  ;;  %v926_v60 = vld [vmem:[#allocation2 + $0x210] sm:$0xff] }
 0x141   : > { %v1012_v63 = vpack.c.bf16 %v926_v60, %v924_v59 }
 0x147   : > { %1256 = vmatmul.mubr.bf16.gmra.mxu0 %v992_v2  ;;  %v928_v2 = vld [vmem:[#allocation2 + $0x220] sm:$0xff] }
 0x148   : > { %1263 = vmatprep.mubr.bf16.mxu0 %v995_v3  ;;  %v930_v3 = vld [vmem:[#allocation2 + $0x230] sm:$0xff] }
 0x149   : > { %v1014_v7 = vpack.c.bf16 %v930_v3, %v928_v2 }
 0x14f   : > { %1264 = vmatmul.mubr.bf16.gmra.mxu0 %v994_v9  ;;  %v932_v9 = vld [vmem:[#allocation2 + $0x240] sm:$0xff] }
 0x150   : > { %1271 = vmatprep.mubr.bf16.mxu0 %v997_v10  ;;  %v934_v10 = vld [vmem:[#allocation2 + $0x250] sm:$0xff] }
 0x151   : > { %v1016_v13 = vpack.c.bf16 %v934_v10, %v932_v9  ;;  %v969_v9 = vld [vmem:[#allocation2 + $0x368] sm:$0xff]  ;;  %v971_v10 = vld [vmem:[#allocation2 + $0x378] sm:$0xff] }
 0x157   : > { %1272 = vmatmul.mubr.bf16.gmra.mxu0 %v996_v15  ;;  %v936_v15 = vld [vmem:[#allocation2 + $0x260] sm:$0xff] }
 0x158   : > { %1279 = vmatprep.mubr.bf16.mxu0 %v999_v16  ;;  %v938_v16 = vld [vmem:[#allocation2 + $0x270] sm:$0xff] }
 0x159   : > { %v1018_v19 = vpack.c.bf16 %v938_v16, %v936_v15  ;;  %v1035_v15 = vpack.c.bf16 %v971_v10, %v969_v9 }
 0x15f   : > { %1280 = vmatmul.mubr.bf16.gmra.mxu0 %v998_v21  ;;  %v940_v21 = vld [vmem:[#allocation2 + $0x280] sm:$0xff] }
 0x160   : > { %1287 = vmatprep.mubr.bf16.mxu0 %v1001_v22  ;;  %v942_v22 = vld [vmem:[#allocation2 + $0x290] sm:$0xff] }
 0x161   : > { %v1020_v25 = vpack.c.bf16 %v942_v22, %v940_v21  ;;  %v970_v21 = vld [vmem:[#allocation2 + $0x370] sm:$0xff] }
 0x167   : > { %1288 = vmatmul.mubr.bf16.gmra.mxu0 %v1000_v27  ;;  %v944_v27 = vld [vmem:[#allocation2 + $0x2a0] sm:$0xff] }
 0x168   : > { %1295 = vmatprep.mubr.bf16.mxu0 %v1003_v28  ;;  %v946_v28 = vld [vmem:[#allocation2 + $0x2b0] sm:$0xff] }
 0x169   : > { %v1022_v31 = vpack.c.bf16 %v946_v28, %v944_v27 }
 0x16f   : > { %1296 = vmatmul.mubr.bf16.gmra.mxu0 %v1002_v33  ;;  %v948_v33 = vld [vmem:[#allocation2 + $0x2c0] sm:$0xff] }
 0x170   : > { %1303 = vmatprep.mubr.bf16.mxu0 %v1005_v34  ;;  %v950_v34 = vld [vmem:[#allocation2 + $0x2d0] sm:$0xff] }
 0x171   : > { %v1024_v37 = vpack.c.bf16 %v950_v34, %v948_v33  ;;  %v972_v34 = vld [vmem:[#allocation2 + $0x380] sm:$0xff] }
 0x172   : > { %v1036_v41 = vpack.c.bf16 %v974_v35, %v972_v34 }
 0x177   : > { %1304 = vmatmul.mubr.bf16.gmra.mxu0 %v1004_v39  ;;  %v952_v39 = vld [vmem:[#allocation2 + $0x2e0] sm:$0xff] }
 0x178   : > { %1311 = vmatprep.mubr.bf16.mxu0 %v1007_v40  ;;  %v954_v40 = vld [vmem:[#allocation2 + $0x2f0] sm:$0xff] }
 0x179   : > { %v1026_v43 = vpack.c.bf16 %v954_v40, %v952_v39 }
 0x17f   : > { %1312 = vmatmul.mubr.bf16.gmra.mxu0 %v1006_v45  ;;  %v956_v45 = vld [vmem:[#allocation2 + $0x300] sm:$0xff] }
 0x180   : > { %1319 = vmatprep.mubr.bf16.mxu0 %v1009_v46  ;;  %v958_v46 = vld [vmem:[#allocation2 + $0x310] sm:$0xff] }
 0x181   : > { %v1028_v49 = vpack.c.bf16 %v958_v46, %v956_v45 }
 0x187   : > { %1320 = vmatmul.mubr.bf16.gmra.mxu0 %v1008_v51  ;;  %v13601_v51 = vld [vmem:[%s17576_s3] ss:$0 sm:$0xff] }
 0x188   : > { %1327 = vmatprep.mubr.bf16.mxu0 %v1011_v52 }
 0x18f   : > { %1328 = vmatmul.mubr.bf16.gmra.mxu0 %v1010_v57  ;;  %v965_v57 = vld [vmem:[#allocation2 + $0x348] sm:$0xff] }
 0x190   : > { %1335 = vmatprep.mubr.bf16.mxu0 %v1013_v58  ;;  %v967_v58 = vld [vmem:[#allocation2 + $0x358] sm:$0xff] }
 0x197   : > { %1336 = vmatmul.mubr.bf16.gmra.mxu0 %v1012_v63  ;;  %v1033_v63 = vpack.c.bf16 %v967_v58, %v965_v57 }
 0x198   : > { %1343 = vmatprep.mubr.bf16.mxu0 %v1015_v1 }
 0x19f   : > { %1344 = vmatmul.mubr.bf16.gmra.mxu0 %v1014_v7  ;;  %v966_v7 = vld [vmem:[#allocation2 + $0x350] sm:$0xff] }
 0x1a0   : > { %1351 = vmatprep.mubr.bf16.mxu0 %v1017_v8 }
 0x1a7   : > { %1352 = vmatmul.mubr.bf16.gmra.mxu0 %v1016_v13  ;;  %v1032_v13 = vpack.c.bf16 %v966_v7, %v964_v5 }
 0x1a8   : > { %1359 = vmatprep.mubr.bf16.mxu0 %v1019_v14 }
 0x1af   : > { %1360 = vmatmul.mubr.bf16.gmra.mxu0 %v1018_v19 }
 0x1b0   : > { %1367 = vmatprep.mubr.bf16.mxu0 %v1021_v20  ;;  %v968_v20 = vld [vmem:[#allocation2 + $0x360] sm:$0xff] }
 0x1b1   : > { %v1034_v27 = vpack.c.bf16 %v970_v21, %v968_v20 }
 0x1b7   : > { %1368 = vmatmul.mubr.bf16.gmra.mxu0 %v1020_v25 }
 0x1b8   : > { %1375 = vmatprep.mubr.bf16.mxu0 %v1023_v26 }
 0x1bf   : > { %1376 = vmatmul.mubr.bf16.gmra.mxu0 %v1022_v31 }
 0x1c0   : > { %1383 = vmatprep.mubr.bf16.mxu0 %v1025_v32 }
 0x1c7   : > { %1384 = vmatmul.mubr.bf16.gmra.mxu0 %v1024_v37  ;;  %v977_v37 = vld [vmem:[#allocation2 + $0x3a8] sm:$0xff] }
 0x1c8   : > { %1391 = vmatprep.mubr.bf16.mxu0 %v1027_v38  ;;  %v979_v38 = vld [vmem:[#allocation2 + $0x3b8] sm:$0xff] }
 0x1cf   : > { %1392 = vmatmul.mubr.bf16.gmra.mxu0 %v1026_v43  ;;  %v1039_v43 = vpack.c.bf16 %v979_v38, %v977_v37 }
 0x1d0   : > { %1399 = vmatprep.mubr.bf16.mxu0 %v1029_v44 }
 0x1d7   : > { %v1209_v52 = vpop.f32.mrf.mxu0  ;;  %1400 = vmatmul.mubr.bf16.gmra.mxu0 %v1028_v49  ;;  %v978_v49 = vld [vmem:[#allocation2 + $0x3b0] sm:$0xff] }
 0x1d8   : > { %v1210_v53 = vadd.f32 %v13601_v51, %v1209_v52  ;;  %1407 = vmatprep.mubr.bf16.mxu0 %v1031_v50  ;;  %v1038_v54 = vpack.c.bf16 %v978_v49, %v976_v48 }
 0x1d9   : > { %v1211_v56 = vpop.f32.mrf.mxu0 }
 0x1da   : > { %v1448_v59 = vmax.f32 %v1210_v53, 0.0 }
 0x1db   : > { %v1212_v60 = vpop.f32.mrf.mxu0 }
 0x1dc   : > { %1509 = vst.msk [vmem:[#allocation3] sm:$0xff] %vm1508_vm1, %v1448_v59  ;;  %v1213_v62 = vadd.f32 %v13601_v51, %v1212_v60 }
 0x1dd   : > { %v1214_v1 = vpop.f32.mrf.mxu0 }
 0x1de   : > { %v1449_v2 = vmax.f32 %v1213_v62, 0.0 }
 0x1df   : > { %v1217_v3 = vpop.f32.mrf.mxu0  ;;  %1408 = vmatmul.mubr.bf16.gmra.mxu0 %v1030_v61 }
 0x1e0   : > { %1510 = vst.msk [vmem:[#allocation3 + $0x8] sm:$0xff] %vm1508_vm1, %v1449_v2  ;;  %v1218_v4 = vadd.f32 %v13601_v51, %v1217_v3  ;;  %1415 = vmatprep.mubr.bf16.mxu0 %v1033_v63 }
 0x1e1   : > { %v1219_v8 = vpop.f32.mrf.mxu0 }
 0x1e2   : > { %v1450_v11 = vmax.f32 %v1218_v4, 0.0 }
 0x1e3   : > { %v1220_v12 = vpop.f32.mrf.mxu0 }
 0x1e4   : > { %1511 = vst.msk [vmem:[#allocation3 + $0x10] sm:$0xff] %vm1508_vm1, %v1450_v11  ;;  %v1221_v14 = vadd.f32 %v13601_v51, %v1220_v12 }
 0x1e5   : > { %v1222_v16 = vpop.f32.mrf.mxu0 }
 0x1e6   : > { %v1451_v17 = vmax.f32 %v1221_v14, 0.0 }
 0x1e7   : > { %v1225_v18 = vpop.f32.mrf.mxu0  ;;  %1416 = vmatmul.mubr.bf16.gmra.mxu0 %v1032_v13 }
 0x1e8   : > { %1512 = vst.msk [vmem:[#allocation3 + $0x18] sm:$0xff] %vm1508_vm1, %v1451_v17  ;;  %v1226_v19 = vadd.f32 %v13601_v51, %v1225_v18  ;;  %1423 = vmatprep.mubr.bf16.mxu0 %v1035_v15 }
 0x1e9   : > { %v1227_v22 = vpop.f32.mrf.mxu0 }
 0x1ea   : > { %v1452_v25 = vmax.f32 %v1226_v19, 0.0 }
 0x1eb   : > { %v1228_v26 = vpop.f32.mrf.mxu0 }
 0x1ec   : > { %1513 = vst.msk [vmem:[#allocation3 + $0x20] sm:$0xff] %vm1508_vm1, %v1452_v25  ;;  %v1229_v28 = vadd.f32 %v13601_v51, %v1228_v26 }
 0x1ed   : > { %v1230_v30 = vpop.f32.mrf.mxu0 }
 0x1ee   : > { %v1453_v31 = vmax.f32 %v1229_v28, 0.0 }
 0x1ef   : > { %v1233_v32 = vpop.f32.mrf.mxu0  ;;  %1424 = vmatmul.mubr.bf16.gmra.mxu0 %v1034_v27 }
 0x1f0   : > { %1514 = vst.msk [vmem:[#allocation3 + $0x28] sm:$0xff] %vm1508_vm1, %v1453_v31  ;;  %v1234_v33 = vadd.f32 %v13601_v51, %v1233_v32  ;;  %1431 = vmatprep.mubr.bf16.mxu0 %v1037_v29 }
 0x1f1   : > { %v1235_v36 = vpop.f32.mrf.mxu0 }
 0x1f2   : > { %v1454_v39 = vmax.f32 %v1234_v33, 0.0 }
 0x1f3   : > { %v1236_v40 = vpop.f32.mrf.mxu0 }
 0x1f4   : > { %1515 = vst.msk [vmem:[#allocation3 + $0x30] sm:$0xff] %vm1508_vm1, %v1454_v39  ;;  %v1237_v42 = vadd.f32 %v13601_v51, %v1236_v40 }
 0x1f5   : > { %v1238_v44 = vpop.f32.mrf.mxu0 }
 0x1f6   : > { %v1455_v45 = vmax.f32 %v1237_v42, 0.0 }
 0x1f7   : > { %v1241_v46 = vpop.f32.mrf.mxu0  ;;  %1432 = vmatmul.mubr.bf16.gmra.mxu0 %v1036_v41 }
 0x1f8   : > { %1516 = vst.msk [vmem:[#allocation3 + $0x38] sm:$0xff] %vm1508_vm1, %v1455_v45  ;;  %v1242_v47 = vadd.f32 %v13601_v51, %v1241_v46  ;;  %1439 = vmatprep.mubr.bf16.mxu0 %v1039_v43 }
 0x1f9   : > { %v1243_v50 = vpop.f32.mrf.mxu0 }
 0x1fa   : > { %v1456_v52 = vmax.f32 %v1242_v47, 0.0 }
 0x1fb   : > { %v1244_v53 = vpop.f32.mrf.mxu0 }
 0x1fc   : > { %1517 = vst.msk [vmem:[#allocation3 + $0x40] sm:$0xff] %vm1508_vm1, %v1456_v52  ;;  %v1245_v55 = vadd.f32 %v13601_v51, %v1244_v53 }
 0x1fd   : > { %v1246_v56 = vpop.f32.mrf.mxu0 }
 0x1fe   : > { %v1457_v57 = vmax.f32 %v1245_v55, 0.0 }
 0x1ff   : > { %v1249_v58 = vpop.f32.mrf.mxu0  ;;  %1440 = vmatmul.mubr.bf16.gmra.mxu0 %v1038_v54 }
 0x200   : > { %1518 = vst.msk [vmem:[#allocation3 + $0x48] sm:$0xff] %vm1508_vm1, %v1457_v57  ;;  %v1250_v59 = vadd.f32 %v13601_v51, %v1249_v58 }
 0x201   : > { %v1251_v60 = vpop.f32.mrf.mxu0 }
 0x202   : > { %v1458_v61 = vmax.f32 %v1250_v59, 0.0 }
 0x203   : > { %v1252_v62 = vpop.f32.mrf.mxu0 }
 0x204   : > { %1519 = vst.msk [vmem:[#allocation3 + $0x50] sm:$0xff] %vm1508_vm1, %v1458_v61  ;;  %v1253_v63 = vadd.f32 %v13601_v51, %v1252_v62 }
 0x205   : > { %v1254_v1 = vpop.f32.mrf.mxu0 }
 0x206   : > { %v1459_v2 = vmax.f32 %v1253_v63, 0.0 }
 0x207   : > { %v1257_v3 = vpop.f32.mrf.mxu0 }
 0x208   : > { %1520 = vst.msk [vmem:[#allocation3 + $0x58] sm:$0xff] %vm1508_vm1, %v1459_v2  ;;  %v1258_v4 = vadd.f32 %v13601_v51, %v1257_v3 }
 0x209   : > { %v1259_v5 = vpop.f32.mrf.mxu0 }
 0x20a   : > { %v1460_v7 = vmax.f32 %v1258_v4, 0.0 }
 0x20b   : > { %v1260_v8 = vpop.f32.mrf.mxu0 }
 0x20c   : > { %1521 = vst.msk [vmem:[#allocation3 + $0x60] sm:$0xff] %vm1508_vm1, %v1460_v7  ;;  %v1261_v9 = vadd.f32 %v13601_v51, %v1260_v8 }
 0x20d   : > { %v1262_v10 = vpop.f32.mrf.mxu0 }
 0x20e   : > { %v1461_v11 = vmax.f32 %v1261_v9, 0.0 }
 0x20f   : > { %v1265_v12 = vpop.f32.mrf.mxu0 }
 0x210   : > { %1522 = vst.msk [vmem:[#allocation3 + $0x68] sm:$0xff] %vm1508_vm1, %v1461_v11  ;;  %v1266_v13 = vadd.f32 %v13601_v51, %v1265_v12 }
 0x211   : > { %v1267_v14 = vpop.f32.mrf.mxu0 }
 0x212   : > { %v1462_v15 = vmax.f32 %v1266_v13, 0.0 }
 0x213   : > { %v1268_v16 = vpop.f32.mrf.mxu0 }
 0x214   : > { %1523 = vst.msk [vmem:[#allocation3 + $0x70] sm:$0xff] %vm1508_vm1, %v1462_v15  ;;  %v1269_v17 = vadd.f32 %v13601_v51, %v1268_v16 }
 0x215   : > { %v1270_v18 = vpop.f32.mrf.mxu0 }
 0x216   : > { %v1463_v19 = vmax.f32 %v1269_v17, 0.0 }
 0x217   : > { %v1273_v20 = vpop.f32.mrf.mxu0 }
 0x218   : > { %1524 = vst.msk [vmem:[#allocation3 + $0x78] sm:$0xff] %vm1508_vm1, %v1463_v19  ;;  %v1274_v21 = vadd.f32 %v13601_v51, %v1273_v20 }
 0x219   : > { %v1275_v22 = vpop.f32.mrf.mxu0 }
 0x21a   : > { %v1464_v23 = vmax.f32 %v1274_v21, 0.0 }
 0x21b   : > { %v1276_v24 = vpop.f32.mrf.mxu0 }
 0x21c   : > { %1525 = vst.msk [vmem:[#allocation3 + $0x80] sm:$0xff] %vm1508_vm1, %v1464_v23  ;;  %v1277_v25 = vadd.f32 %v13601_v51, %v1276_v24 }
 0x21d   : > { %v1278_v26 = vpop.f32.mrf.mxu0 }
 0x21e   : > { %v1465_v27 = vmax.f32 %v1277_v25, 0.0 }
 0x21f   : > { %v1281_v28 = vpop.f32.mrf.mxu0 }
 0x220   : > { %1526 = vst.msk [vmem:[#allocation3 + $0x88] sm:$0xff] %vm1508_vm1, %v1465_v27  ;;  %v1282_v29 = vadd.f32 %v13601_v51, %v1281_v28 }
 0x221   : > { %v1283_v30 = vpop.f32.mrf.mxu0 }
 0x222   : > { %v1466_v31 = vmax.f32 %v1282_v29, 0.0 }
 0x223   : > { %v1284_v32 = vpop.f32.mrf.mxu0 }
 0x224   : > { %1527 = vst.msk [vmem:[#allocation3 + $0x90] sm:$0xff] %vm1508_vm1, %v1466_v31  ;;  %v1285_v33 = vadd.f32 %v13601_v51, %v1284_v32 }
 0x225   : > { %v1286_v34 = vpop.f32.mrf.mxu0 }
 0x226   : > { %v1467_v35 = vmax.f32 %v1285_v33, 0.0 }
 0x227   : > { %v1289_v36 = vpop.f32.mrf.mxu0 }
 0x228   : > { %1528 = vst.msk [vmem:[#allocation3 + $0x98] sm:$0xff] %vm1508_vm1, %v1467_v35  ;;  %v1290_v37 = vadd.f32 %v13601_v51, %v1289_v36 }
 0x229   : > { %v1291_v38 = vpop.f32.mrf.mxu0 }
 0x22a   : > { %v1468_v39 = vmax.f32 %v1290_v37, 0.0 }
 0x22b   : > { %v1292_v40 = vpop.f32.mrf.mxu0 }
 0x22c   : > { %1529 = vst.msk [vmem:[#allocation3 + $0xa0] sm:$0xff] %vm1508_vm1, %v1468_v39  ;;  %v1293_v41 = vadd.f32 %v13601_v51, %v1292_v40 }
 0x22d   : > { %v1294_v42 = vpop.f32.mrf.mxu0 }
 0x22e   : > { %v1469_v43 = vmax.f32 %v1293_v41, 0.0 }
 0x22f   : > { %v1297_v44 = vpop.f32.mrf.mxu0 }
 0x230   : > { %1530 = vst.msk [vmem:[#allocation3 + $0xa8] sm:$0xff] %vm1508_vm1, %v1469_v43  ;;  %v1298_v45 = vadd.f32 %v13601_v51, %v1297_v44 }
 0x231   : > { %v1299_v46 = vpop.f32.mrf.mxu0 }
 0x232   : > { %v1470_v47 = vmax.f32 %v1298_v45, 0.0 }
 0x233   : > { %v1300_v48 = vpop.f32.mrf.mxu0 }
 0x234   : > { %1531 = vst.msk [vmem:[#allocation3 + $0xb0] sm:$0xff] %vm1508_vm1, %v1470_v47  ;;  %v1301_v49 = vadd.f32 %v13601_v51, %v1300_v48 }
 0x235   : > { %v1302_v50 = vpop.f32.mrf.mxu0 }
 0x236   : > { %v1471_v52 = vmax.f32 %v1301_v49, 0.0 }
 0x237   : > { %v1305_v53 = vpop.f32.mrf.mxu0 }
 0x238   : > { %1532 = vst.msk [vmem:[#allocation3 + $0xb8] sm:$0xff] %vm1508_vm1, %v1471_v52  ;;  %v1306_v54 = vadd.f32 %v13601_v51, %v1305_v53 }
 0x239   : > { %v1307_v55 = vpop.f32.mrf.mxu0 }
 0x23a   : > { %v1472_v56 = vmax.f32 %v1306_v54, 0.0 }
 0x23b   : > { %v1308_v57 = vpop.f32.mrf.mxu0 }
 0x23c   : > { %1533 = vst.msk [vmem:[#allocation3 + $0xc0] sm:$0xff] %vm1508_vm1, %v1472_v56  ;;  %v1309_v58 = vadd.f32 %v13601_v51, %v1308_v57 }
 0x23d   : > { %v1310_v59 = vpop.f32.mrf.mxu0 }
 0x23e   : > { %v1473_v60 = vmax.f32 %v1309_v58, 0.0 }
 0x23f   : > { %v1313_v61 = vpop.f32.mrf.mxu0 }
 0x240   : > { %1534 = vst.msk [vmem:[#allocation3 + $0xc8] sm:$0xff] %vm1508_vm1, %v1473_v60  ;;  %v1314_v62 = vadd.f32 %v13601_v51, %v1313_v61 }
 0x241   : > { %v1315_v63 = vpop.f32.mrf.mxu0 }
 0x242   : > { %v1474_v1 = vmax.f32 %v1314_v62, 0.0 }
 0x243   : > { %v1316_v2 = vpop.f32.mrf.mxu0 }
 0x244   : > { %1535 = vst.msk [vmem:[#allocation3 + $0xd0] sm:$0xff] %vm1508_vm1, %v1474_v1  ;;  %v1317_v3 = vadd.f32 %v13601_v51, %v1316_v2 }
 0x245   : > { %v1318_v4 = vpop.f32.mrf.mxu0 }
 0x246   : > { %v1475_v5 = vmax.f32 %v1317_v3, 0.0 }
 0x247   : > { %v1321_v7 = vpop.f32.mrf.mxu0 }
 0x248   : > { %1536 = vst.msk [vmem:[#allocation3 + $0xd8] sm:$0xff] %vm1508_vm1, %v1475_v5  ;;  %v1322_v8 = vadd.f32 %v13601_v51, %v1321_v7 }
 0x249   : > { %v1323_v9 = vpop.f32.mrf.mxu0 }
 0x24a   : > { %v1476_v10 = vmax.f32 %v1322_v8, 0.0 }
 0x24b   : > { %v1324_v11 = vpop.f32.mrf.mxu0 }
 0x24c   : > { %1537 = vst.msk [vmem:[#allocation3 + $0xe0] sm:$0xff] %vm1508_vm1, %v1476_v10  ;;  %v1325_v12 = vadd.f32 %v13601_v51, %v1324_v11 }
 0x24d   : > { %v1326_v13 = vpop.f32.mrf.mxu0 }
 0x24e   : > { %v1477_v14 = vmax.f32 %v1325_v12, 0.0 }
 0x24f   : > { %v1329_v15 = vpop.f32.mrf.mxu0 }
 0x250   : > { %1538 = vst.msk [vmem:[#allocation3 + $0xe8] sm:$0xff] %vm1508_vm1, %v1477_v14  ;;  %v1330_v16 = vadd.f32 %v13601_v51, %v1329_v15 }
 0x251   : > { %v1331_v17 = vpop.f32.mrf.mxu0 }
 0x252   : > { %v1478_v18 = vmax.f32 %v1330_v16, 0.0 }
 0x253   : > { %v1332_v19 = vpop.f32.mrf.mxu0 }
 0x254   : > { %1539 = vst.msk [vmem:[#allocation3 + $0xf0] sm:$0xff] %vm1508_vm1, %v1478_v18  ;;  %v1333_v20 = vadd.f32 %v13601_v51, %v1332_v19 }
 0x255   : > { %v1334_v21 = vpop.f32.mrf.mxu0 }
 0x256   : > { %v1479_v22 = vmax.f32 %v1333_v20, 0.0 }
 0x257   : > { %v1337_v23 = vpop.f32.mrf.mxu0 }
 0x258   : > { %1540 = vst.msk [vmem:[#allocation3 + $0xf8] sm:$0xff] %vm1508_vm1, %v1479_v22  ;;  %v1338_v24 = vadd.f32 %v13601_v51, %v1337_v23 }
 0x259   : > { %v1339_v25 = vpop.f32.mrf.mxu0 }
 0x25a   : > { %v1480_v26 = vmax.f32 %v1338_v24, 0.0 }
 0x25b   : > { %v1340_v27 = vpop.f32.mrf.mxu0 }
 0x25c   : > { %1541 = vst.msk [vmem:[#allocation3 + $0x100] sm:$0xff] %vm1508_vm1, %v1480_v26  ;;  %v1341_v28 = vadd.f32 %v13601_v51, %v1340_v27 }
 0x25d   : > { %v1342_v29 = vpop.f32.mrf.mxu0 }
 0x25e   : > { %v1481_v30 = vmax.f32 %v1341_v28, 0.0 }
 0x25f   : > { %v1345_v31 = vpop.f32.mrf.mxu0 }
 0x260   : > { %1542 = vst.msk [vmem:[#allocation3 + $0x108] sm:$0xff] %vm1508_vm1, %v1481_v30  ;;  %v1346_v32 = vadd.f32 %v13601_v51, %v1345_v31 }
 0x261   : > { %v1347_v33 = vpop.f32.mrf.mxu0 }
 0x262   : > { %v1482_v34 = vmax.f32 %v1346_v32, 0.0 }
 0x263   : > { %v1348_v35 = vpop.f32.mrf.mxu0 }
 0x264   : > { %1543 = vst.msk [vmem:[#allocation3 + $0x110] sm:$0xff] %vm1508_vm1, %v1482_v34  ;;  %v1349_v36 = vadd.f32 %v13601_v51, %v1348_v35 }
 0x265   : > { %v1350_v37 = vpop.f32.mrf.mxu0 }
 0x266   : > { %v1483_v38 = vmax.f32 %v1349_v36, 0.0 }
 0x267   : > { %v1353_v39 = vpop.f32.mrf.mxu0 }
 0x268   : > { %1544 = vst.msk [vmem:[#allocation3 + $0x118] sm:$0xff] %vm1508_vm1, %v1483_v38  ;;  %v1354_v40 = vadd.f32 %v13601_v51, %v1353_v39 }
 0x269   : > { %v1355_v41 = vpop.f32.mrf.mxu0 }
 0x26a   : > { %v1484_v42 = vmax.f32 %v1354_v40, 0.0 }
 0x26b   : > { %v1356_v43 = vpop.f32.mrf.mxu0 }
 0x26c   : > { %1545 = vst.msk [vmem:[#allocation3 + $0x120] sm:$0xff] %vm1508_vm1, %v1484_v42  ;;  %v1357_v44 = vadd.f32 %v13601_v51, %v1356_v43 }
 0x26d   : > { %v1358_v45 = vpop.f32.mrf.mxu0 }
 0x26e   : > { %v1485_v46 = vmax.f32 %v1357_v44, 0.0 }
 0x26f   : > { %v1361_v47 = vpop.f32.mrf.mxu0 }
 0x270   : > { %1546 = vst.msk [vmem:[#allocation3 + $0x128] sm:$0xff] %vm1508_vm1, %v1485_v46  ;;  %v1362_v48 = vadd.f32 %v13601_v51, %v1361_v47 }
 0x271   : > { %v1363_v49 = vpop.f32.mrf.mxu0 }
 0x272   : > { %v1486_v50 = vmax.f32 %v1362_v48, 0.0 }
 0x273   : > { %v1364_v52 = vpop.f32.mrf.mxu0 }
 0x274   : > { %1547 = vst.msk [vmem:[#allocation3 + $0x130] sm:$0xff] %vm1508_vm1, %v1486_v50  ;;  %v1365_v53 = vadd.f32 %v13601_v51, %v1364_v52 }
 0x275   : > { %v1366_v54 = vpop.f32.mrf.mxu0 }
 0x276   : > { %v1487_v55 = vmax.f32 %v1365_v53, 0.0 }
 0x277   : > { %v1369_v56 = vpop.f32.mrf.mxu0 }
 0x278   : > { %1548 = vst.msk [vmem:[#allocation3 + $0x138] sm:$0xff] %vm1508_vm1, %v1487_v55  ;;  %v1370_v57 = vadd.f32 %v13601_v51, %v1369_v56 }
 0x279   : > { %v1371_v58 = vpop.f32.mrf.mxu0 }
 0x27a   : > { %v1488_v59 = vmax.f32 %v1370_v57, 0.0 }
 0x27b   : > { %v1372_v60 = vpop.f32.mrf.mxu0 }
 0x27c   : > { %1549 = vst.msk [vmem:[#allocation3 + $0x140] sm:$0xff] %vm1508_vm1, %v1488_v59  ;;  %v1373_v61 = vadd.f32 %v13601_v51, %v1372_v60 }
 0x27d   : > { %v1374_v62 = vpop.f32.mrf.mxu0 }
 0x27e   : > { %v1489_v63 = vmax.f32 %v1373_v61, 0.0 }
 0x27f   : > { %v1377_v1 = vpop.f32.mrf.mxu0 }
 0x280   : > { %1550 = vst.msk [vmem:[#allocation3 + $0x148] sm:$0xff] %vm1508_vm1, %v1489_v63  ;;  %v1378_v2 = vadd.f32 %v13601_v51, %v1377_v1 }
 0x281   : > { %v1379_v3 = vpop.f32.mrf.mxu0 }
 0x282   : > { %v1490_v4 = vmax.f32 %v1378_v2, 0.0 }
 0x283   : > { %v1380_v5 = vpop.f32.mrf.mxu0 }
 0x284   : > { %1551 = vst.msk [vmem:[#allocation3 + $0x150] sm:$0xff] %vm1508_vm1, %v1490_v4  ;;  %v1381_v7 = vadd.f32 %v13601_v51, %v1380_v5 }
 0x285   : > { %v1382_v8 = vpop.f32.mrf.mxu0 }
 0x286   : > { %v1491_v9 = vmax.f32 %v1381_v7, 0.0 }
 0x287   : > { %v1385_v10 = vpop.f32.mrf.mxu0 }
 0x288   : > { %1552 = vst.msk [vmem:[#allocation3 + $0x158] sm:$0xff] %vm1508_vm1, %v1491_v9  ;;  %v1386_v11 = vadd.f32 %v13601_v51, %v1385_v10 }
 0x289   : > { %v1387_v12 = vpop.f32.mrf.mxu0 }
 0x28a   : > { %v1492_v13 = vmax.f32 %v1386_v11, 0.0 }
 0x28b   : > { %v1388_v14 = vpop.f32.mrf.mxu0 }
 0x28c   : > { %1553 = vst.msk [vmem:[#allocation3 + $0x160] sm:$0xff] %vm1508_vm1, %v1492_v13  ;;  %v1389_v15 = vadd.f32 %v13601_v51, %v1388_v14 }
 0x28d   : > { %v1390_v16 = vpop.f32.mrf.mxu0 }
 0x28e   : > { %v1493_v17 = vmax.f32 %v1389_v15, 0.0 }
 0x28f   : > { %v1393_v18 = vpop.f32.mrf.mxu0 }
 0x290   : > { %1554 = vst.msk [vmem:[#allocation3 + $0x168] sm:$0xff] %vm1508_vm1, %v1493_v17  ;;  %v1394_v19 = vadd.f32 %v13601_v51, %v1393_v18 }
 0x291   : > { %v1395_v20 = vpop.f32.mrf.mxu0 }
 0x292   : > { %v1494_v21 = vmax.f32 %v1394_v19, 0.0 }
 0x293   : > { %v1396_v22 = vpop.f32.mrf.mxu0 }
 0x294   : > { %1555 = vst.msk [vmem:[#allocation3 + $0x170] sm:$0xff] %vm1508_vm1, %v1494_v21  ;;  %v1397_v23 = vadd.f32 %v13601_v51, %v1396_v22 }
 0x295   : > { %v1398_v24 = vpop.f32.mrf.mxu0 }
 0x296   : > { %v1495_v25 = vmax.f32 %v1397_v23, 0.0 }
 0x297   : > { %v1401_v26 = vpop.f32.mrf.mxu0 }
 0x298   : > { %1556 = vst.msk [vmem:[#allocation3 + $0x178] sm:$0xff] %vm1508_vm1, %v1495_v25  ;;  %v1402_v27 = vadd.f32 %v13601_v51, %v1401_v26 }
 0x299   : > { %v1403_v28 = vpop.f32.mrf.mxu0 }
 0x29a   : > { %v1496_v29 = vmax.f32 %v1402_v27, 0.0 }
 0x29b   : > { %v1404_v30 = vpop.f32.mrf.mxu0 }
 0x29c   : > { %1557 = vst.msk [vmem:[#allocation3 + $0x180] sm:$0xff] %vm1508_vm1, %v1496_v29  ;;  %v1405_v31 = vadd.f32 %v13601_v51, %v1404_v30 }
 0x29d   : > { %v1406_v32 = vpop.f32.mrf.mxu0 }
 0x29e   : > { %v1497_v33 = vmax.f32 %v1405_v31, 0.0 }
 0x29f   : > { %v1409_v34 = vpop.f32.mrf.mxu0 }
 0x2a0   : > { %1558 = vst.msk [vmem:[#allocation3 + $0x188] sm:$0xff] %vm1508_vm1, %v1497_v33  ;;  %v1410_v35 = vadd.f32 %v13601_v51, %v1409_v34 }
 0x2a1   : > { %v1411_v36 = vpop.f32.mrf.mxu0 }
 0x2a2   : > { %v1498_v37 = vmax.f32 %v1410_v35, 0.0 }
 0x2a3   : > { %v1412_v38 = vpop.f32.mrf.mxu0 }
 0x2a4   : > { %1559 = vst.msk [vmem:[#allocation3 + $0x190] sm:$0xff] %vm1508_vm1, %v1498_v37  ;;  %v1413_v39 = vadd.f32 %v13601_v51, %v1412_v38 }
 0x2a5   : > { %v1414_v40 = vpop.f32.mrf.mxu0 }
 0x2a6   : > { %v1499_v41 = vmax.f32 %v1413_v39, 0.0 }
 0x2a7   : > { %v1417_v42 = vpop.f32.mrf.mxu0 }
 0x2a8   : > { %1560 = vst.msk [vmem:[#allocation3 + $0x198] sm:$0xff] %vm1508_vm1, %v1499_v41  ;;  %v1418_v43 = vadd.f32 %v13601_v51, %v1417_v42 }
 0x2a9   : > { %v1419_v44 = vpop.f32.mrf.mxu0 }
 0x2aa   : > { %v1500_v45 = vmax.f32 %v1418_v43, 0.0 }
 0x2ab   : > { %v1420_v46 = vpop.f32.mrf.mxu0 }
 0x2ac   : > { %1561 = vst.msk [vmem:[#allocation3 + $0x1a0] sm:$0xff] %vm1508_vm1, %v1500_v45  ;;  %v1421_v47 = vadd.f32 %v13601_v51, %v1420_v46 }
 0x2ad   : > { %v1422_v48 = vpop.f32.mrf.mxu0 }
 0x2ae   : > { %v1501_v49 = vmax.f32 %v1421_v47, 0.0 }
 0x2af   : > { %v1425_v50 = vpop.f32.mrf.mxu0 }
 0x2b0   : > { %1562 = vst.msk [vmem:[#allocation3 + $0x1a8] sm:$0xff] %vm1508_vm1, %v1501_v49  ;;  %v1426_v52 = vadd.f32 %v13601_v51, %v1425_v50 }
 0x2b1   : > { %v1427_v53 = vpop.f32.mrf.mxu0 }
 0x2b2   : > { %v1502_v54 = vmax.f32 %v1426_v52, 0.0 }
 0x2b3   : > { %v1428_v55 = vpop.f32.mrf.mxu0 }
 0x2b4   : > { %1563 = vst.msk [vmem:[#allocation3 + $0x1b0] sm:$0xff] %vm1508_vm1, %v1502_v54  ;;  %v1429_v56 = vadd.f32 %v13601_v51, %v1428_v55 }
 0x2b5   : > { %v1430_v57 = vpop.f32.mrf.mxu0 }
 0x2b6   : > { %v1503_v58 = vmax.f32 %v1429_v56, 0.0 }
 0x2b7   : > { %v1433_v59 = vpop.f32.mrf.mxu0 }
 0x2b8   : > { %1564 = vst.msk [vmem:[#allocation3 + $0x1b8] sm:$0xff] %vm1508_vm1, %v1503_v58  ;;  %v1434_v60 = vadd.f32 %v13601_v51, %v1433_v59 }
 0x2b9   : > { %v1435_v61 = vpop.f32.mrf.mxu0 }
 0x2ba   : > { %v1504_v62 = vmax.f32 %v1434_v60, 0.0 }
 0x2bb   : > { %v1436_v63 = vpop.f32.mrf.mxu0 }
 0x2bc   : > { %1565 = vst.msk [vmem:[#allocation3 + $0x1c0] sm:$0xff] %vm1508_vm1, %v1504_v62  ;;  %v1437_v1 = vadd.f32 %v13601_v51, %v1436_v63 }
 0x2bd   : > { %v1438_v2 = vpop.f32.mrf.mxu0 }
 0x2be   : > { %v1505_v3 = vmax.f32 %v1437_v1, 0.0 }
 0x2bf   : > { %v1441_v4 = vpop.f32.mrf.mxu0 }
 0x2c0   : > { %1566 = vst.msk [vmem:[#allocation3 + $0x1c8] sm:$0xff] %vm1508_vm1, %v1505_v3  ;;  %v1442_v5 = vadd.f32 %v13601_v51, %v1441_v4 }
 0x2c1   : > { %v1443_v7 = vpop.f32.mrf.mxu0 }
 0x2c2   : > { %v1506_v8 = vmax.f32 %v1442_v5, 0.0 }
 0x2c3   : > { %v1444_v9 = vpop.f32.mrf.mxu0 }
 0x2c4   : > { %1567 = vst.msk [vmem:[#allocation3 + $0x1d0] sm:$0xff] %vm1508_vm1, %v1506_v8  ;;  %v1445_v10 = vadd.f32 %v13601_v51, %v1444_v9 }
 0x2c5   : > { %v1446_v11 = vpop.f32.mrf.mxu0 }
 0x2c6   : > { %v1507_v12 = vmax.f32 %v1445_v10, 0.0 }
 0x2c8   : > { %1568 = vst.msk [vmem:[#allocation3 + $0x1d8] sm:$0xff] %vm1508_vm1, %v1507_v12 }
 0x2c9 LB: >> { %s1576_s17 = smul.u32 48, %s13112_s16  ;;  %vm1588_vm3 = vcmask 253952   ;;  %s13127_s20 = smov 32   ;;  %vm1613_vm4 = vcmask 1045504   ;;  %vm1633_vm5 = vcmask 1044480   ;;  %vm1611_vm6 = vcmask 516352   ;;  %s13112_s16 = sphi %s13723_s16, %s1574_s16  }
 0x2ca   : >> { %s1575_s18 = smul.u32 24, %s13112_s16  ;;  %s13128_s23 = smov 64   ;;  %vm1608_vm7 = vcmask 523520   ;;  %vm1631_vm8 = vcmask 778752   ;;  %vm1628_vm9 = vcmask 785920   ;;  %vm1648_vm10 = vcmask 1048320  }
 0x2cb   : >> { %s13730_s19 = scalar_lea.vmem [#allocation3], %s1576_s17  ;;  %s13129_s24 = smov 96   ;;  %vm1651_vm11 = vcmask 1041152  }
 0x2cc   : >> { %s1581_s13 = sshra.s32 %s1575_s18, 3  ;;  %s1574_s16 = sadd.s32 1, %s13112_s16  }
 0x2cd   : >> { %s11395_s14 = sshll.u32 %s1581_s13, 5  ;;  %p1571_p5 = scmp.ge.s32.totalorder %s1574_s16, 9  }
 0x2ce   : >> { %s13755_s22 = scalar_lea.vmem [#allocation4], %s11395_s14  ;;  %vm2822_vm12 = vcmask (%p1571_p5), 523264   ;;  %s14441_s13 = smov (%p1571_p5), 0  }
 0x2cf   : >> { %v13733_v51 = vld [vmem:[%s13730_s19 + $0x10] sm:$0xff]  ;;  %v13736_v13 = vld [vmem:[%s13730_s19] sm:$0xff]  ;;  %v13739_v14 = vld [vmem:[%s13730_s19 + $0x8] sm:$0xff] }
 0x2d0   : >> { %v1597_v15 = vrot.slane %v13733_v51, 1  ;;  %v1594_v16 = vrot.slane %v13736_v13, 1  ;;  %v1595_v17 = vrot.slane %v13739_v14, 1  ;;  %v13745_v18 = vld [vmem:[%s13730_s19 + $0x20] sm:$0xff]  ;;  %v13748_v19 = vld [vmem:[%s13730_s19 + $0x28] sm:$0xff]  ;;  %v13751_v20 = vld [vmem:[%s13730_s19 + $0x18] sm:$0xff] }
 0x2d1   : >> { %1586 = vst.msk [vmem:[%s13755_s22] sm:$0xff] %vm1508_vm1, %v13736_v13  ;;  %1587 = vst.msk [vmem:[%s13755_s22 + $0x20] sm:$0xff] %vm1508_vm1, %v13739_v14  ;;  %v1617_v22 = vrot.slane %v13733_v51, 2  ;;  %v13771_v23 = vld [vmem:[%s13730_s19 + $0x30] sm:$0xff]  ;;  %v13774_v24 = vld [vmem:[%s13730_s19 + $0x38] sm:$0xff]  ;;  %v1614_v26 = vrot.slane %v13736_v13, 2 }
 0x2d2   : >> { %1603 = vrot.lane.b32.xlu1 %v1597_v15, %s13127_s20  ;;  %v1596_v21 = vsel %vm549_vm2, %v1594_v16, %v1595_v17  ;;  %1661 = vst.msk [vmem:[%s13755_s22 + $0x28] sm:$0xff] %vm1508_vm1, %v13745_v18  ;;  %1660 = vst.msk [vmem:[%s13755_s22 + $0x8] sm:$0xff] %vm1508_vm1, %v13751_v20  ;;  %v13777_v25 = vld [vmem:[%s13730_s19 + $0x40] sm:$0xff]  ;;  %v1615_v27 = vrot.slane %v13739_v14, 2  ;;  %v1598_v31 = vsel %vm549_vm2, %v1595_v17, %v1597_v15  ;;  %v1667_v33 = vrot.slane %v13745_v18, 1 }
 0x2d3   : >> { %1589 = vst.msk [vmem:[%s13755_s22 + $0x40] sm:$0x1] %vm1588_vm3, %v13733_v51  ;;  %1662 = vst.msk [vmem:[%s13755_s22 + $0x48] sm:$0x1] %vm1588_vm3, %v13748_v19  ;;  %1599 = vrot.lane.b32.xlu0 %v1596_v21, %s13127_s20  ;;  %v13795_v28 = vld [vmem:[%s13730_s19 + $0x50] sm:$0xff]  ;;  %v1669_v34 = vrot.slane %v13748_v19, 1 }
 0x2d4   : >> { %1723 = vst.msk [vmem:[%s13755_s22 + $0x10] sm:$0xff] %vm1508_vm1, %v13771_v23  ;;  %1724 = vst.msk [vmem:[%s13755_s22 + $0x30] sm:$0xff] %vm1508_vm1, %v13774_v24  ;;  %v13798_v29 = vld [vmem:[%s13730_s19 + $0x58] sm:$0xff]  ;;  %v13801_v30 = vld [vmem:[%s13730_s19 + $0x48] sm:$0xff]  ;;  %v1616_v32 = vsel %vm1613_vm4, %v1614_v26, %v1615_v27  ;;  %v1618_v35 = vsel %vm1613_vm4, %v1615_v27, %v1617_v22  ;;  %v1666_v36 = vrot.slane %v13751_v20, 1  ;;  %v1729_v38 = vrot.slane %v13771_v23, 1 }
 0x2d5   : >> { %1725 = vst.msk [vmem:[%s13755_s22 + $0x50] sm:$0x1] %vm1588_vm3, %v13777_v25  ;;  %1788 = vst.msk [vmem:[%s13755_s22 + $0x58] sm:$0x1] %vm1588_vm3, %v13798_v29  ;;  %v1670_v37 = vsel %vm549_vm2, %v1667_v33, %v1669_v34  ;;  %v1730_v39 = vrot.slane %v13774_v24, 1  ;;  %v1732_v42 = vrot.slane %v13777_v25, 1 }
 0x2d6   : >> { %1787 = vst.msk [vmem:[%s13755_s22 + $0x38] sm:$0xff] %vm1508_vm1, %v13795_v28  ;;  %1786 = vst.msk [vmem:[%s13755_s22 + $0x18] sm:$0xff] %vm1508_vm1, %v13801_v30  ;;  %1623 = vrot.lane.b32.xlu1 %v1617_v22, %s13128_s23  ;;  %v1668_v40 = vsel %vm549_vm2, %v1666_v36, %v1667_v33  ;;  %v1793_v43 = vrot.slane %v13795_v28, 1  ;;  %v1795_v44 = vrot.slane %v13798_v29, 1  ;;  %v1792_v46 = vrot.slane %v13801_v30, 1 }
 0x2d7   : >> { %1601 = vrot.lane.b32.xlu0 %v1598_v31, %s13127_s20  ;;  %v1731_v41 = vsel %vm549_vm2, %v1729_v38, %v1730_v39  ;;  %v1733_v45 = vsel %vm549_vm2, %v1730_v39, %v1732_v42  ;;  %v1683_v48 = vrot.slane %v13751_v20, 2  ;;  %v1684_v49 = vrot.slane %v13745_v18, 2 }
 0x2d8   : >> { %v1796_v47 = vsel %vm549_vm2, %v1793_v43, %v1795_v44  ;;  %v1794_v50 = vsel %vm549_vm2, %v1792_v46, %v1793_v43  ;;  %v1686_v53 = vrot.slane %v13748_v19, 2  ;;  %v1747_v54 = vrot.slane %v13774_v24, 2 }
 0x2d9   : >> { %v1685_v52 = vsel %vm1613_vm4, %v1683_v48, %v1684_v49  ;;  %v1749_v55 = vrot.slane %v13777_v25, 2  ;;  %v1746_v57 = vrot.slane %v13771_v23, 2  ;;  %v1809_v59 = vrot.slane %v13801_v30, 2 }
 0x2da   : >> { %1619 = vrot.lane.b32.xlu1 %v1616_v32, %s13128_s23  ;;  %v1687_v56 = vsel %vm1613_vm4, %v1684_v49, %v1686_v53  ;;  %v1810_v60 = vrot.slane %v13795_v28, 2  ;;  %v1812_v63 = vrot.slane %v13798_v29, 2  ;;  %v1635_v1 = vrot.slane %v13739_v14, 3 }
 0x2db   : >> { %1621 = vrot.lane.b32.xlu0 %v1618_v35, %s13128_s23  ;;  %v1750_v58 = vsel %vm1613_vm4, %v1747_v54, %v1749_v55  ;;  %v1748_v61 = vsel %vm1613_vm4, %v1746_v57, %v1747_v54  ;;  %v1637_v2 = vrot.slane %v13733_v51, 3  ;;  %v1634_v4 = vrot.slane %v13736_v13, 3 }
 0x2dc   : >> { %v1811_v62 = vsel %vm1613_vm4, %v1809_v59, %v1810_v60  ;;  %v1813_v3 = vsel %vm1613_vm4, %v1810_v60, %v1812_v63  ;;  %v1700_v7 = vrot.slane %v13751_v20, 3  ;;  %v1701_v8 = vrot.slane %v13745_v18, 3  ;;  %v11809_v59 = vld [vmem:[%s17577_s4 + $0x78] sm:$0xff] (%p1571_p5)  }
 0x2dd   : >> { %v1638_v5 = vsel %vm1633_vm5, %v1635_v1, %v1637_v2  ;;  %v1636_v9 = vsel %vm1633_vm5, %v1634_v4, %v1635_v1  ;;  %v1703_v11 = vrot.slane %v13748_v19, 3  ;;  %v1764_v12 = vrot.slane %v13774_v24, 3  ;;  %v11810_v60 = vld [vmem:[%s17577_s4 + $0x38] sm:$0xff] (%p1571_p5)   ;;  %11397 = vmatprep.subr.bf16.mxu1 (%p1571_p5), %v11809_v59  ;;  %v11814_v1 = vld [vmem:[%s17577_s4 + $0x28] sm:$0xff] (%p1571_p5)  }
 0x2de   : >> { %1673 = vrot.lane.b32.xlu1 %v1670_v37, %s13127_s20  ;;  %v1702_v10 = vsel %vm1633_vm5, %v1700_v7, %v1701_v8  ;;  %v1766_v51 = vrot.slane %v13777_v25, 3  ;;  %v1763_v14 = vrot.slane %v13771_v23, 3  ;;  %v1826_v16 = vrot.slane %v13801_v30, 3  ;;  %11398 = vmatpush3.bf16.msra.mxu1 (%p1571_p5), %v11810_v60  ;;  %v11817_v4 = vld [vmem:[%s17577_s4 + $0x58] sm:$0xff] (%p1571_p5)   ;;  %v11819_v7 = vld [vmem:[%s17577_s4 + $0x50] sm:$0xff] (%p1571_p5)  }
 0x2df   : >> { %1671 = vrot.lane.b32.xlu0 %v1668_v40, %s13127_s20  ;;  %v1704_v13 = vsel %vm1633_vm5, %v1701_v8, %v1703_v11  ;;  %v1827_v17 = vrot.slane %v13795_v28, 3  ;;  %v1829_v20 = vrot.slane %v13798_v29, 3  ;;  %vm2594_vm2 = vcmask (%p1571_p5), 719872  }
 0x2e0   : >> { %v1767_v15 = vsel %vm1633_vm5, %v1764_v12, %v1766_v51  ;;  %v1765_v18 = vsel %vm1633_vm5, %v1763_v14, %v1764_v12  ;;  %v11821_v12 = vld [vmem:[%s17577_s4 + $0x48] sm:$0xff] (%p1571_p5)   ;;  %v11824_v14 = vld [vmem:[%s17577_s4] sm:$0xff] (%p1571_p5)  }
 0x2e1   : >> { %v1828_v19 = vsel %vm1633_vm5, %v1826_v16, %v1827_v17  ;;  %v1830_v21 = vsel %vm1633_vm5, %v1827_v17, %v1829_v20 }
 0x2e2   : >> { %1734 = vrot.lane.b32.xlu1 %v1731_v41, %s13127_s20 }
 0x2e3   : >> { %1675 = vrot.lane.b32.xlu0 %v1669_v34, %s13127_s20 }
 0x2e6   : >> { %1738 = vrot.lane.b32.xlu1 %v1732_v42, %s13127_s20 }
 0x2e7   : >> { %1736 = vrot.lane.b32.xlu0 %v1733_v45, %s13127_s20 }
 0x2ea   : >> { %1799 = vrot.lane.b32.xlu1 %v1796_v47, %s13127_s20 }
 0x2eb   : >> { %1797 = vrot.lane.b32.xlu0 %v1794_v50, %s13127_s20 }
 0x2ee   : >> { %1688 = vrot.lane.b32.xlu1 %v1685_v52, %s13128_s23 }
 0x2ef   : >> { %1801 = vrot.lane.b32.xlu0 %v1795_v44, %s13127_s20 }
 0x2f2   : >> { %1692 = vrot.lane.b32.xlu1 %v1686_v53, %s13128_s23 }
 0x2f3   : >> { %1690 = vrot.lane.b32.xlu0 %v1687_v56, %s13128_s23 }
 0x2f6   : >> { %1753 = vrot.lane.b32.xlu1 %v1750_v58, %s13128_s23 }
 0x2f7   : >> { %1751 = vrot.lane.b32.xlu0 %v1748_v61, %s13128_s23  ;;  %v11811_v61 = vld [vmem:[%s17577_s4 + $0x70] sm:$0xff] (%p1571_p5)  }
 0x2f8   : > { %11399 = vmatprep.subr.bf16.mxu1 (%p1571_p5), %v11811_v61 }
 0x2fa   : >> { %1814 = vrot.lane.b32.xlu1 %v1811_v62, %s13128_s23  ;;  %v11812_v62 = vld [vmem:[%s17577_s4 + $0x30] sm:$0xff] (%p1571_p5)  }
 0x2fb   : >> { %1755 = vrot.lane.b32.xlu0 %v1749_v55, %s13128_s23  ;;  %11400 = vmatpush3.bf16.msra.mxu1 (%p1571_p5), %v11812_v62 }
 0x2fe   : >> { %1818 = vrot.lane.b32.xlu1 %v1812_v63, %s13128_s23  ;;  %v11813_v63 = vld [vmem:[%s17577_s4 + $0x68] sm:$0xff] (%p1571_p5)  }
 0x2ff   : >> { %1816 = vrot.lane.b32.xlu0 %v1813_v3, %s13128_s23  ;;  %11401 = vmatprep.subr.bf16.mxu1 (%p1571_p5), %v11813_v63  ;;  %v11816_v3 = vld [vmem:[%s17577_s4 + $0x20] sm:$0xff] (%p1571_p5)  }
 0x300   : > { %11402 = vmatpush3.bf16.msra.mxu1 (%p1571_p5), %v11814_v1 }
 0x302   : >> { %1641 = vrot.lane.b32.xlu1 %v1638_v5, %s13129_s24  ;;  %v11818_v5 = vld [vmem:[%s17577_s4 + $0x18] sm:$0xff] (%p1571_p5)  }
 0x303   : >> { %1639 = vrot.lane.b32.xlu0 %v1636_v9, %s13129_s24 }
 0x306   : >> { %1705 = vrot.lane.b32.xlu1 %v1702_v10, %s13129_s24 }
 0x307   : >> { %1643 = vrot.lane.b32.xlu0 %v1637_v2, %s13129_s24  ;;  %v11815_v2 = vld [vmem:[%s17577_s4 + $0x60] sm:$0xff] (%p1571_p5)  }
 0x308   : > { %11403 = vmatprep.subr.bf16.mxu1 (%p1571_p5), %v11815_v2 }
 0x309   : > { %11404 = vmatpush3.bf16.msra.mxu1 (%p1571_p5), %v11816_v3 }
 0x30a   : >> { %1709 = vrot.lane.b32.xlu1 %v1703_v11, %s13129_s24  ;;  %11405 = vmatprep.subr.bf16.mxu1 (%p1571_p5), %v11817_v4  ;;  %v11820_v11 = vld [vmem:[%s17577_s4 + $0x10] sm:$0xff] (%p1571_p5)  }
 0x30b   : >> { %1707 = vrot.lane.b32.xlu0 %v1704_v13, %s13129_s24  ;;  %v11823_v13 = vld [vmem:[%s17577_s4 + $0x40] sm:$0xff] (%p1571_p5)  }
 0x30d   : > { %11406 = vmatpush3.bf16.msra.mxu1 (%p1571_p5), %v11818_v5 }
 0x30e   : >> { %1770 = vrot.lane.b32.xlu1 %v1767_v15, %s13129_s24  ;;  %11407 = vmatprep.subr.bf16.mxu1 (%p1571_p5), %v11819_v7 }
 0x30f   : >> { %1768 = vrot.lane.b32.xlu0 %v1765_v18, %s13129_s24 }
 0x311   : > { %11408 = vmatpush3.bf16.msra.mxu1 (%p1571_p5), %v11820_v11 }
 0x312   : >> { %1831 = vrot.lane.b32.xlu1 %v1828_v19, %s13129_s24  ;;  %11409 = vmatprep.subr.bf16.mxu1 (%p1571_p5), %v11821_v12  ;;  %v11825_v19 = vld [vmem:[%s17577_s4 + $0xf8] sm:$0xff] (%p1571_p5)  }
 0x313   : >> { %1772 = vrot.lane.b32.xlu0 %v1766_v51, %s13129_s24  ;;  %v11822_v51 = vld [vmem:[%s17577_s4 + $0x8] sm:$0xff] (%p1571_p5)  }
 0x315   : > { %11410 = vmatpush3.bf16.msra.mxu1 (%p1571_p5), %v11822_v51 }
 0x316   : >> { %1835 = vrot.lane.b32.xlu1 %v1829_v20, %s13129_s24  ;;  %11411 = vmatprep.subr.bf16.mxu1 (%p1571_p5), %v11823_v13 }
 0x317   : >> { %1833 = vrot.lane.b32.xlu0 %v1830_v21, %s13129_s24 }
 0x319   : > { %11412 = vmatpush3.bf16.msra.mxu1 (%p1571_p5), %v11824_v14 }
 0x31a   : > { %11497 = vmatprep.subr.bf16.mxu1 (%p1571_p5), %v11825_v19 }
 0x344   : >> { %v1604_v22 = vpop.permute.xlu1 %1603 }
 0x345   : >> { %1612 = vst.msk [vmem:[%s13755_s22 + $0x40] sm:$0x1] %vm1611_vm6, %v1604_v22  ;;  %v1600_v23 = vpop.permute.xlu0 %1599  ;;  %v11826_v22 = vld [vmem:[%s17577_s4 + $0xb8] sm:$0xff] (%p1571_p5)  }
 0x346   : >> { %1609 = vst.msk [vmem:[%s13755_s22] sm:$0xff] %vm1608_vm7, %v1600_v23  ;;  %v11827_v23 = vld [vmem:[%s17577_s4 + $0xf0] sm:$0xff] (%p1571_p5)  }
 0x348   : >> { %v1624_v24 = vpop.permute.xlu1 %1623 }
 0x349   : >> { %1632 = vst.msk [vmem:[%s13755_s22 + $0x40] sm:$0x1] %vm1631_vm8, %v1624_v24  ;;  %v1602_v25 = vpop.permute.xlu0 %1601 }
 0x34a   : >> { %1610 = vst.msk [vmem:[%s13755_s22 + $0x20] sm:$0xff] %vm1608_vm7, %v1602_v25 }
 0x34c   : >> { %v1620_v26 = vpop.permute.xlu1 %1619 }
 0x34d   : >> { %1629 = vst.msk [vmem:[%s13755_s22] sm:$0xff] %vm1628_vm9, %v1620_v26  ;;  %v1622_v27 = vpop.permute.xlu0 %1621  ;;  %v11828_v26 = vld [vmem:[%s17577_s4 + $0xb0] sm:$0xff] (%p1571_p5)  }
 0x34e   : >> { %1630 = vst.msk [vmem:[%s13755_s22 + $0x20] sm:$0xff] %vm1628_vm9, %v1622_v27 }
 0x350   : >> { %v1674_v28 = vpop.permute.xlu1 %1673 }
 0x351   : >> { %1681 = vst.msk [vmem:[%s13755_s22 + $0x28] sm:$0xff] %vm1608_vm7, %v1674_v28  ;;  %v1672_v29 = vpop.permute.xlu0 %1671 }
 0x352   : >> { %1680 = vst.msk [vmem:[%s13755_s22 + $0x8] sm:$0xff] %vm1608_vm7, %v1672_v29  ;;  %v11829_v29 = vld [vmem:[%s17577_s4 + $0xe8] sm:$0xff] (%p1571_p5)  }
 0x354   : >> { %v1735_v30 = vpop.permute.xlu1 %1734 }
 0x355   : >> { %1743 = vst.msk [vmem:[%s13755_s22 + $0x10] sm:$0xff] %vm1608_vm7, %v1735_v30  ;;  %v1676_v31 = vpop.permute.xlu0 %1675 }
 0x356   : >> { %1682 = vst.msk [vmem:[%s13755_s22 + $0x48] sm:$0x1] %vm1611_vm6, %v1676_v31 }
 0x358   : >> { %v1739_v32 = vpop.permute.xlu1 %1738 }
 0x359   : >> { %1745 = vst.msk [vmem:[%s13755_s22 + $0x50] sm:$0x1] %vm1611_vm6, %v1739_v32  ;;  %v1737_v33 = vpop.permute.xlu0 %1736  ;;  %v11830_v32 = vld [vmem:[%s17577_s4 + $0xa8] sm:$0xff] (%p1571_p5)  }
 0x35a   : >> { %1744 = vst.msk [vmem:[%s13755_s22 + $0x30] sm:$0xff] %vm1608_vm7, %v1737_v33  ;;  %v11831_v33 = vld [vmem:[%s17577_s4 + $0xe0] sm:$0xff] (%p1571_p5)  }
 0x35c   : >> { %v1800_v34 = vpop.permute.xlu1 %1799 }
 0x35d   : >> { %1807 = vst.msk [vmem:[%s13755_s22 + $0x38] sm:$0xff] %vm1608_vm7, %v1800_v34  ;;  %v1798_v35 = vpop.permute.xlu0 %1797 }
 0x35e   : >> { %1806 = vst.msk [vmem:[%s13755_s22 + $0x18] sm:$0xff] %vm1608_vm7, %v1798_v35 }
 0x360   : >> { %v1689_v36 = vpop.permute.xlu1 %1688 }
 0x361   : >> { %1697 = vst.msk [vmem:[%s13755_s22 + $0x8] sm:$0xff] %vm1628_vm9, %v1689_v36  ;;  %v1802_v37 = vpop.permute.xlu0 %1801 }
 0x362   : >> { %1808 = vst.msk [vmem:[%s13755_s22 + $0x58] sm:$0x1] %vm1611_vm6, %v1802_v37 }
 0x364   : >> { %v1693_v38 = vpop.permute.xlu1 %1692 }
 0x365   : >> { %1699 = vst.msk [vmem:[%s13755_s22 + $0x48] sm:$0x1] %vm1631_vm8, %v1693_v38  ;;  %v1691_v39 = vpop.permute.xlu0 %1690  ;;  %v11832_v38 = vld [vmem:[%s17577_s4 + $0xa0] sm:$0xff] (%p1571_p5)  }
 0x366   : >> { %1698 = vst.msk [vmem:[%s13755_s22 + $0x28] sm:$0xff] %vm1628_vm9, %v1691_v39  ;;  %v11833_v39 = vld [vmem:[%s17577_s4 + $0xd8] sm:$0xff] (%p1571_p5)  }
 0x368   : >> { %v1754_v40 = vpop.permute.xlu1 %1753 }
 0x369   : >> { %1761 = vst.msk [vmem:[%s13755_s22 + $0x30] sm:$0xff] %vm1628_vm9, %v1754_v40  ;;  %v1752_v41 = vpop.permute.xlu0 %1751 }
 0x36a   : >> { %1760 = vst.msk [vmem:[%s13755_s22 + $0x10] sm:$0xff] %vm1628_vm9, %v1752_v41 }
 0x36c   : >> { %v1815_v42 = vpop.permute.xlu1 %1814 }
 0x36d   : >> { %1823 = vst.msk [vmem:[%s13755_s22 + $0x18] sm:$0xff] %vm1628_vm9, %v1815_v42  ;;  %v1756_v43 = vpop.permute.xlu0 %1755  ;;  %v11834_v42 = vld [vmem:[%s17577_s4 + $0x98] sm:$0xff] (%p1571_p5)  }
 0x36e   : >> { %1762 = vst.msk [vmem:[%s13755_s22 + $0x50] sm:$0x1] %vm1631_vm8, %v1756_v43  ;;  %v11835_v43 = vld [vmem:[%s17577_s4 + $0xd0] sm:$0xff] (%p1571_p5)  }
 0x370   : >> { %v1819_v44 = vpop.permute.xlu1 %1818 }
 0x371   : >> { %1825 = vst.msk [vmem:[%s13755_s22 + $0x58] sm:$0x1] %vm1631_vm8, %v1819_v44  ;;  %v1817_v45 = vpop.permute.xlu0 %1816 }
 0x372   : >> { %1824 = vst.msk [vmem:[%s13755_s22 + $0x38] sm:$0xff] %vm1628_vm9, %v1817_v45 }
 0x374   : >> { %v1642_v46 = vpop.permute.xlu1 %1641 }
 0x375   : >> { %1650 = vst.msk [vmem:[%s13755_s22 + $0x20] sm:$0xff] %vm1648_vm10, %v1642_v46  ;;  %v1640_v47 = vpop.permute.xlu0 %1639  ;;  %v11836_v46 = vld [vmem:[%s17577_s4 + $0x90] sm:$0xff] (%p1571_p5)  }
 0x376   : >> { %1649 = vst.msk [vmem:[%s13755_s22] sm:$0xff] %vm1648_vm10, %v1640_v47 }
 0x378   : >> { %v1706_v48 = vpop.permute.xlu1 %1705 }
 0x379   : >> { %1714 = vst.msk [vmem:[%s13755_s22 + $0x8] sm:$0xff] %vm1648_vm10, %v1706_v48  ;;  %v1644_v49 = vpop.permute.xlu0 %1643 }
 0x37a   : >> { %1652 = vst.msk [vmem:[%s13755_s22 + $0x40] sm:$0x1] %vm1651_vm11, %v1644_v49  ;;  %v11837_v49 = vld [vmem:[%s17577_s4 + $0xc8] sm:$0xff] (%p1571_p5)  }
 0x37c   : >> { %v1710_v50 = vpop.permute.xlu1 %1709 }
 0x37d   : >> { %1716 = vst.msk [vmem:[%s13755_s22 + $0x48] sm:$0x1] %vm1651_vm11, %v1710_v50  ;;  %v1708_v52 = vpop.permute.xlu0 %1707 }
 0x37e   : >> { %1715 = vst.msk [vmem:[%s13755_s22 + $0x28] sm:$0xff] %vm1648_vm10, %v1708_v52 }
 0x380   : >> { %v1771_v53 = vpop.permute.xlu1 %1770 }
 0x381   : >> { %1778 = vst.msk [vmem:[%s13755_s22 + $0x30] sm:$0xff] %vm1648_vm10, %v1771_v53  ;;  %v1769_v54 = vpop.permute.xlu0 %1768  ;;  %v11838_v53 = vld [vmem:[%s17577_s4 + $0x88] sm:$0xff] (%p1571_p5)  }
 0x382   : >> { %1777 = vst.msk [vmem:[%s13755_s22 + $0x10] sm:$0xff] %vm1648_vm10, %v1769_v54  ;;  %v11839_v54 = vld [vmem:[%s17577_s4 + $0xc0] sm:$0xff] (%p1571_p5)  }
 0x384   : >> { %v1832_v55 = vpop.permute.xlu1 %1831 }
 0x385   : >> { %1840 = vst.msk [vmem:[%s13755_s22 + $0x18] sm:$0xff] %vm1648_vm10, %v1832_v55  ;;  %v1773_v56 = vpop.permute.xlu0 %1772 }
 0x386   : >> { %1779 = vst.msk [vmem:[%s13755_s22 + $0x50] sm:$0x1] %vm1651_vm11, %v1773_v56  ;;  %1573 = sbr.rel (!%p1571_p5) target bundleno = 713 (0x2c9), region = 148 }
 0x388   : >> { %v1836_v57 = vpop.permute.xlu1 %1835 }
 0x389   : >> { %1842 = vst.msk [vmem:[%s13755_s22 + $0x58] sm:$0x1] %vm1651_vm11, %v1836_v57  ;;  %v1834_v58 = vpop.permute.xlu0 %1833  ;;  %v11840_v57 = vld [vmem:[%s17577_s4 + $0x80] sm:$0xff] (%p1571_p5)  }
 0x38a   : >> { %1841 = vst.msk [vmem:[%s13755_s22 + $0x38] sm:$0xff] %vm1648_vm10, %v1834_v58 }
 0x391   : > { %v1844_v8 = vld [vmem:[#allocation4 + $0x8] sm:$0xff]  ;;  %v1843_v15 = vld [vmem:[#allocation4] sm:$0xff] }
 0x392   : > { %v1848_v9 = vld [vmem:[#allocation4 + $0x28] sm:$0xff]  ;;  %v1847_v16 = vld [vmem:[#allocation4 + $0x20] sm:$0xff] }
 0x393   : > { %v1952_v10 = vpack.c.bf16 %v1848_v9, %v1844_v8  ;;  %v1852_v17 = vld [vmem:[#allocation4 + $0x48] sm:$0xff]  ;;  %v1951_v20 = vpack.c.bf16 %v1847_v16, %v1843_v15  ;;  %v1851_v24 = vld [vmem:[#allocation4 + $0x40] sm:$0xff] }
 0x394   : > { %v1856_v18 = vld [vmem:[#allocation4 + $0x68] sm:$0xff]  ;;  %v1855_v25 = vld [vmem:[#allocation4 + $0x60] sm:$0xff] }
 0x395   : > { %2295 = vmatprep.mubr.bf16.mxu1 %v1952_v10  ;;  %v1956_v21 = vpack.c.bf16 %v1856_v18, %v1852_v17  ;;  %v1860_v27 = vld [vmem:[#allocation4 + $0x88] sm:$0xff]  ;;  %v1955_v30 = vpack.c.bf16 %v1855_v25, %v1851_v24  ;;  %v1859_v34 = vld [vmem:[#allocation4 + $0x80] sm:$0xff] }
 0x396   : > { %2296 = vmatmul.mubr.bf16.vlgmr.msra.gmra.mxu1 %v1951_v20  ;;  %v1864_v28 = vld [vmem:[#allocation4 + $0xa8] sm:$0xff]  ;;  %v1863_v35 = vld [vmem:[#allocation4 + $0xa0] sm:$0xff] }
 0x397   : > { %2303 = vmatprep.mubr.bf16.mxu1 %v1956_v21  ;;  %11498 = vmatpush3.bf16.msra.mxu1 %v11826_v22  ;;  %v1960_v31 = vpack.c.bf16 %v1864_v28, %v1860_v27  ;;  %v1868_v36 = vld [vmem:[#allocation4 + $0xc8] sm:$0xff]  ;;  %v1959_v40 = vpack.c.bf16 %v1863_v35, %v1859_v34  ;;  %v1867_v44 = vld [vmem:[#allocation4 + $0xc0] sm:$0xff] }
 0x398   : > { %11499 = vmatprep.subr.bf16.mxu1 %v11827_v23  ;;  %v1872_v37 = vld [vmem:[#allocation4 + $0xe8] sm:$0xff]  ;;  %v1871_v45 = vld [vmem:[#allocation4 + $0xe0] sm:$0xff] }
 0x399   : > { %v1964_v41 = vpack.c.bf16 %v1872_v37, %v1868_v36  ;;  %v1876_v47 = vld [vmem:[#allocation4 + $0x108] sm:$0xff]  ;;  %v1963_v50 = vpack.c.bf16 %v1871_v45, %v1867_v44  ;;  %v1875_v55 = vld [vmem:[#allocation4 + $0x100] sm:$0xff] }
 0x39a   : > { %v1880_v48 = vld [vmem:[#allocation4 + $0x128] sm:$0xff]  ;;  %v1879_v56 = vld [vmem:[#allocation4 + $0x120] sm:$0xff] }
 0x39b   : > { %11500 = vmatpush3.bf16.msra.mxu1 %v11828_v26  ;;  %v1968_v52 = vpack.c.bf16 %v1880_v48, %v1876_v47  ;;  %v1884_v58 = vld [vmem:[#allocation4 + $0x148] sm:$0xff]  ;;  %v1967_v60 = vpack.c.bf16 %v1879_v56, %v1875_v55  ;;  %v1883_v62 = vld [vmem:[#allocation4 + $0x140] sm:$0xff]  ;;  %v1846_v47 = vld [vmem:[#allocation4 + $0x18] sm:$0xff] }
 0x39c   : > { %11501 = vmatprep.subr.bf16.mxu1 %v11829_v29  ;;  %v1888_v59 = vld [vmem:[#allocation4 + $0x168] sm:$0xff]  ;;  %v1887_v63 = vld [vmem:[#allocation4 + $0x160] sm:$0xff]  ;;  %v1850_v48 = vld [vmem:[#allocation4 + $0x38] sm:$0xff] }
 0x39d   : > { %v1972_v61 = vpack.c.bf16 %v1888_v59, %v1884_v58  ;;  %v1892_v1 = vld [vmem:[#allocation4 + $0x188] sm:$0xff]  ;;  %v1971_v3 = vpack.c.bf16 %v1887_v63, %v1883_v62  ;;  %v1891_v5 = vld [vmem:[#allocation4 + $0x180] sm:$0xff]  ;;  %v1858_v55 = vld [vmem:[#allocation4 + $0x78] sm:$0xff] }
 0x39e   : > { %2304 = vmatmul.mubr.bf16.gmra.mxu1 %v1955_v30  ;;  %v1896_v2 = vld [vmem:[#allocation4 + $0x1a8] sm:$0xff]  ;;  %v1895_v7 = vld [vmem:[#allocation4 + $0x1a0] sm:$0xff]  ;;  %v1853_v58 = vld [vmem:[#allocation4 + $0x50] sm:$0xff] }
 0x39f   : > { %2311 = vmatprep.mubr.bf16.mxu1 %v1960_v31  ;;  %11502 = vmatpush3.bf16.msra.mxu1 %v11830_v32  ;;  %v1976_v4 = vpack.c.bf16 %v1896_v2, %v1892_v1  ;;  %v1900_v8 = vld [vmem:[#allocation4 + $0x1c8] sm:$0xff]  ;;  %v1975_v10 = vpack.c.bf16 %v1895_v7, %v1891_v5  ;;  %v1899_v12 = vld [vmem:[#allocation4 + $0x1c0] sm:$0xff]  ;;  %v1857_v59 = vld [vmem:[#allocation4 + $0x70] sm:$0xff] }
 0x3a0   : > { %11503 = vmatprep.subr.bf16.mxu1 %v11831_v33  ;;  %v1904_v9 = vld [vmem:[#allocation4 + $0x1e8] sm:$0xff]  ;;  %v1903_v51 = vld [vmem:[#allocation4 + $0x1e0] sm:$0xff]  ;;  %v1957_v62 = vpack.c.bf16 %v1857_v59, %v1853_v58  ;;  %v1861_v1 = vld [vmem:[#allocation4 + $0x90] sm:$0xff] }
 0x3a1   : > { %v1980_v11 = vpack.c.bf16 %v1904_v9, %v1900_v8  ;;  %v1908_v13 = vld [vmem:[#allocation4 + $0x208] sm:$0xff]  ;;  %v1979_v15 = vpack.c.bf16 %v1903_v51, %v1899_v12  ;;  %v1907_v17 = vld [vmem:[#allocation4 + $0x200] sm:$0xff]  ;;  %v1865_v2 = vld [vmem:[#allocation4 + $0xb0] sm:$0xff] }
 0x3a2   : > { %v1912_v14 = vld [vmem:[#allocation4 + $0x228] sm:$0xff]  ;;  %v1911_v18 = vld [vmem:[#allocation4 + $0x220] sm:$0xff]  ;;  %v1961_v5 = vpack.c.bf16 %v1865_v2, %v1861_v1  ;;  %v1869_v8 = vld [vmem:[#allocation4 + $0xd0] sm:$0xff] }
 0x3a3   : > { %11504 = vmatpush3.bf16.msra.mxu1 %v11832_v38  ;;  %v1984_v16 = vpack.c.bf16 %v1912_v14, %v1908_v13  ;;  %v1916_v19 = vld [vmem:[#allocation4 + $0x248] sm:$0xff]  ;;  %v1983_v21 = vpack.c.bf16 %v1911_v18, %v1907_v17  ;;  %v1915_v23 = vld [vmem:[#allocation4 + $0x240] sm:$0xff]  ;;  %v1873_v9 = vld [vmem:[#allocation4 + $0xf0] sm:$0xff] }
 0x3a4   : > { %11505 = vmatprep.subr.bf16.mxu1 %v11833_v39  ;;  %v1920_v20 = vld [vmem:[#allocation4 + $0x268] sm:$0xff]  ;;  %v1919_v24 = vld [vmem:[#allocation4 + $0x260] sm:$0xff]  ;;  %v1965_v12 = vpack.c.bf16 %v1873_v9, %v1869_v8  ;;  %v1877_v13 = vld [vmem:[#allocation4 + $0x110] sm:$0xff] }
 0x3a5   : > { %v1988_v22 = vpack.c.bf16 %v1920_v20, %v1916_v19  ;;  %v1924_v25 = vld [vmem:[#allocation4 + $0x288] sm:$0xff]  ;;  %v1987_v27 = vpack.c.bf16 %v1919_v24, %v1915_v23  ;;  %v1923_v29 = vld [vmem:[#allocation4 + $0x280] sm:$0xff]  ;;  %v1881_v14 = vld [vmem:[#allocation4 + $0x130] sm:$0xff] }
 0x3a6   : > { %2312 = vmatmul.mubr.bf16.gmra.mxu1 %v1959_v40  ;;  %v1928_v26 = vld [vmem:[#allocation4 + $0x2a8] sm:$0xff]  ;;  %v1927_v30 = vld [vmem:[#allocation4 + $0x2a0] sm:$0xff]  ;;  %v1969_v17 = vpack.c.bf16 %v1881_v14, %v1877_v13  ;;  %v1885_v19 = vld [vmem:[#allocation4 + $0x150] sm:$0xff] }
 0x3a7   : > { %2319 = vmatprep.mubr.bf16.mxu1 %v1964_v41  ;;  %11506 = vmatpush3.bf16.msra.mxu1 %v11834_v42  ;;  %v1992_v28 = vpack.c.bf16 %v1928_v26, %v1924_v25  ;;  %v1932_v31 = vld [vmem:[#allocation4 + $0x2c8] sm:$0xff]  ;;  %v1991_v33 = vpack.c.bf16 %v1927_v30, %v1923_v29  ;;  %v1931_v35 = vld [vmem:[#allocation4 + $0x2c0] sm:$0xff]  ;;  %v1889_v20 = vld [vmem:[#allocation4 + $0x170] sm:$0xff] }
 0x3a8   : > { %11507 = vmatprep.subr.bf16.mxu1 %v11835_v43  ;;  %v1936_v32 = vld [vmem:[#allocation4 + $0x2e8] sm:$0xff]  ;;  %v1935_v36 = vld [vmem:[#allocation4 + $0x2e0] sm:$0xff]  ;;  %v1973_v23 = vpack.c.bf16 %v1889_v20, %v1885_v19  ;;  %v1893_v25 = vld [vmem:[#allocation4 + $0x190] sm:$0xff] }
 0x3a9   : > { %v1996_v34 = vpack.c.bf16 %v1936_v32, %v1932_v31  ;;  %v1940_v37 = vld [vmem:[#allocation4 + $0x308] sm:$0xff]  ;;  %v1995_v39 = vpack.c.bf16 %v1935_v36, %v1931_v35  ;;  %v1939_v41 = vld [vmem:[#allocation4 + $0x300] sm:$0xff]  ;;  %v1897_v26 = vld [vmem:[#allocation4 + $0x1b0] sm:$0xff] }
 0x3aa   : > { %v1944_v38 = vld [vmem:[#allocation4 + $0x328] sm:$0xff]  ;;  %v1943_v42 = vld [vmem:[#allocation4 + $0x320] sm:$0xff]  ;;  %v1977_v29 = vpack.c.bf16 %v1897_v26, %v1893_v25  ;;  %v1901_v31 = vld [vmem:[#allocation4 + $0x1d0] sm:$0xff] }
 0x3ab   : > { %11508 = vmatpush3.bf16.msra.mxu1 %v11836_v46  ;;  %v2000_v40 = vpack.c.bf16 %v1944_v38, %v1940_v37  ;;  %v1948_v43 = vld [vmem:[#allocation4 + $0x348] sm:$0xff]  ;;  %v1999_v44 = vpack.c.bf16 %v1943_v42, %v1939_v41  ;;  %v1947_v46 = vld [vmem:[#allocation4 + $0x340] sm:$0xff]  ;;  %v1905_v32 = vld [vmem:[#allocation4 + $0x1f0] sm:$0xff] }
 0x3ac   : > { %11509 = vmatprep.subr.bf16.mxu1 %v11837_v49  ;;  %v2004_v45 = vpack.c.bf16 %v1948_v43, %v1948_v43  ;;  %v2003_v49 = vpack.c.bf16 %v1947_v46, %v1947_v46  ;;  %v1981_v35 = vpack.c.bf16 %v1905_v32, %v1901_v31  ;;  %v1909_v37 = vld [vmem:[#allocation4 + $0x210] sm:$0xff]  ;;  %v1930_v46 = vld [vmem:[#allocation4 + $0x2b8] sm:$0xff] }
 0x3ad   : > { %v1913_v38 = vld [vmem:[#allocation4 + $0x230] sm:$0xff]  ;;  %v1950_v8 = vld [vmem:[#allocation4 + $0x358] sm:$0xff] }
 0x3ae   : > { %2320 = vmatmul.mubr.bf16.gmra.mxu1 %v1963_v50  ;;  %v1954_v50 = vpack.c.bf16 %v1850_v48, %v1846_v47  ;;  %v1985_v41 = vpack.c.bf16 %v1913_v38, %v1909_v37  ;;  %v1917_v43 = vld [vmem:[#allocation4 + $0x250] sm:$0xff] }
 0x3af   : > { %2327 = vmatprep.mubr.bf16.mxu1 %v1968_v52  ;;  %11510 = vmatpush3.bf16.msra.mxu1 %v11838_v53  ;;  %v1845_v52 = vld [vmem:[#allocation4 + $0x10] sm:$0xff] }
 0x3b0   : > { %11511 = vmatprep.subr.bf16.mxu1 %v11839_v54  ;;  %v1849_v53 = vld [vmem:[#allocation4 + $0x30] sm:$0xff]  ;;  %v1854_v54 = vld [vmem:[#allocation4 + $0x58] sm:$0xff] }
 0x3b1   : > { %v1953_v56 = vpack.c.bf16 %v1849_v53, %v1845_v52  ;;  %v1934_v52 = vld [vmem:[#allocation4 + $0x2d8] sm:$0xff]  ;;  %v1937_v58 = vld [vmem:[#allocation4 + $0x2f0] sm:$0xff] }
 0x3b2   : > { %v1938_v53 = vld [vmem:[#allocation4 + $0x2f8] sm:$0xff]  ;;  %v1949_v13 = vld [vmem:[#allocation4 + $0x350] sm:$0xff] }
 0x3b3   : > { %11512 = vmatpush3.bf16.msra.mxu1 %v11840_v57  ;;  %v1958_v57 = vpack.c.bf16 %v1858_v55, %v1854_v54  ;;  %v1998_v55 = vpack.c.bf16 %v1938_v53, %v1934_v52 }
 0x3b4   : > { %2649 = vmatprep.subr.mxu1 %v17588_v0 }
 0x3b6   : > { %2328 = vmatmul.mubr.bf16.gmra.mxu1 %v1967_v60  ;;  %v1862_v60 = vld [vmem:[#allocation4 + $0x98] sm:$0xff] }
 0x3b7   : > { %2335 = vmatprep.mubr.bf16.mxu1 %v1972_v61  ;;  %v1866_v61 = vld [vmem:[#allocation4 + $0xb8] sm:$0xff] }
 0x3b8   : > { %v1962_v63 = vpack.c.bf16 %v1866_v61, %v1862_v60  ;;  %v1942_v60 = vld [vmem:[#allocation4 + $0x318] sm:$0xff] }
 0x3b9   : > { %v1946_v61 = vld [vmem:[#allocation4 + $0x338] sm:$0xff] }
 0x3ba   : > { %v2002_v1 = vpack.c.bf16 %v1946_v61, %v1942_v60 }
 0x3be   : > { %2336 = vmatmul.mubr.bf16.gmra.mxu1 %v1971_v3  ;;  %v1870_v3 = vld [vmem:[#allocation4 + $0xd8] sm:$0xff] }
 0x3bf   : > { %2343 = vmatprep.mubr.bf16.mxu1 %v1976_v4  ;;  %v1874_v4 = vld [vmem:[#allocation4 + $0xf8] sm:$0xff] }
 0x3c0   : > { %v1966_v7 = vpack.c.bf16 %v1874_v4, %v1870_v3  ;;  %v1941_v4 = vld [vmem:[#allocation4 + $0x310] sm:$0xff] }
 0x3c6   : > { %2344 = vmatmul.mubr.bf16.gmra.mxu1 %v1975_v10  ;;  %v1878_v10 = vld [vmem:[#allocation4 + $0x118] sm:$0xff] }
 0x3c7   : > { %2351 = vmatprep.mubr.bf16.mxu1 %v1980_v11  ;;  %v1882_v11 = vld [vmem:[#allocation4 + $0x138] sm:$0xff] }
 0x3c8   : > { %v1970_v51 = vpack.c.bf16 %v1882_v11, %v1878_v10  ;;  %v2006_v11 = vpack.c.bf16 %v1950_v8, %v1950_v8 }
 0x3ce   : > { %2352 = vmatmul.mubr.bf16.gmra.mxu1 %v1979_v15  ;;  %v1886_v15 = vld [vmem:[#allocation4 + $0x158] sm:$0xff] }
 0x3cf   : > { %2359 = vmatprep.mubr.bf16.mxu1 %v1984_v16  ;;  %v1890_v16 = vld [vmem:[#allocation4 + $0x178] sm:$0xff] }
 0x3d0   : > { %v1974_v18 = vpack.c.bf16 %v1890_v16, %v1886_v15  ;;  %v2005_v16 = vpack.c.bf16 %v1949_v13, %v1949_v13 }
 0x3d6   : > { %2360 = vmatmul.mubr.bf16.gmra.mxu1 %v1983_v21  ;;  %v1894_v21 = vld [vmem:[#allocation4 + $0x198] sm:$0xff] }
 0x3d7   : > { %2367 = vmatprep.mubr.bf16.mxu1 %v1988_v22  ;;  %v1898_v22 = vld [vmem:[#allocation4 + $0x1b8] sm:$0xff] }
 0x3d8   : > { %v1978_v24 = vpack.c.bf16 %v1898_v22, %v1894_v21 }
 0x3de   : > { %2368 = vmatmul.mubr.bf16.gmra.mxu1 %v1987_v27  ;;  %v1902_v27 = vld [vmem:[#allocation4 + $0x1d8] sm:$0xff] }
 0x3df   : > { %2375 = vmatprep.mubr.bf16.mxu1 %v1992_v28  ;;  %v1906_v28 = vld [vmem:[#allocation4 + $0x1f8] sm:$0xff] }
 0x3e0   : > { %v1982_v30 = vpack.c.bf16 %v1906_v28, %v1902_v27 }
 0x3e6   : > { %2376 = vmatmul.mubr.bf16.gmra.mxu1 %v1991_v33  ;;  %v1910_v33 = vld [vmem:[#allocation4 + $0x218] sm:$0xff] }
 0x3e7   : > { %2383 = vmatprep.mubr.bf16.mxu1 %v1996_v34  ;;  %v1914_v34 = vld [vmem:[#allocation4 + $0x238] sm:$0xff] }
 0x3e8   : > { %v1986_v36 = vpack.c.bf16 %v1914_v34, %v1910_v33 }
 0x3ee   : > { %2384 = vmatmul.mubr.bf16.gmra.mxu1 %v1995_v39  ;;  %v1918_v39 = vld [vmem:[#allocation4 + $0x258] sm:$0xff] }
 0x3ef   : > { %2391 = vmatprep.mubr.bf16.mxu1 %v2000_v40  ;;  %v1922_v40 = vld [vmem:[#allocation4 + $0x278] sm:$0xff] }
 0x3f0   : > { %v1990_v42 = vpack.c.bf16 %v1922_v40, %v1918_v39 }
 0x3f6   : > { %2392 = vmatmul.mubr.bf16.gmra.mxu1 %v1999_v44  ;;  %v1921_v44 = vld [vmem:[#allocation4 + $0x270] sm:$0xff] }
 0x3f7   : > { %2399 = vmatprep.mubr.bf16.mxu1 %v2004_v45  ;;  %v1926_v45 = vld [vmem:[#allocation4 + $0x298] sm:$0xff]  ;;  %v1989_v47 = vpack.c.bf16 %v1921_v44, %v1917_v43 }
 0x3f8   : > { %v1994_v48 = vpack.c.bf16 %v1930_v46, %v1926_v45 }
 0x3fe   : > { %2400 = vmatmul.mubr.bf16.gmra.mxu1 %v2003_v49  ;;  %v1925_v49 = vld [vmem:[#allocation4 + $0x290] sm:$0xff] }
 0x3ff   : > { %2439 = vmatprep.mubr.bf16.mxu1 %v1954_v50  ;;  %v1929_v50 = vld [vmem:[#allocation4 + $0x2b0] sm:$0xff] }
 0x400   : > { %v1993_v54 = vpack.c.bf16 %v1929_v50, %v1925_v49 }
 0x406   : > { %2440 = vmatmul.mubr.bf16.vlgmr.msra.gmra.mxu1 %v1953_v56 }
 0x407   : > { %2447 = vmatprep.mubr.bf16.mxu1 %v1958_v57  ;;  %v1933_v57 = vld [vmem:[#allocation4 + $0x2d0] sm:$0xff] }
 0x40e   : > { %2448 = vmatmul.mubr.bf16.gmra.mxu1 %v1957_v62 }
 0x40f   : > { %2455 = vmatprep.mubr.bf16.mxu1 %v1962_v63  ;;  %v1997_v63 = vpack.c.bf16 %v1937_v58, %v1933_v57 }
 0x416   : > { %2456 = vmatmul.mubr.bf16.gmra.mxu1 %v1961_v5  ;;  %v1945_v5 = vld [vmem:[#allocation4 + $0x330] sm:$0xff] }
 0x417   : > { %2463 = vmatprep.mubr.bf16.mxu1 %v1966_v7  ;;  %v2001_v10 = vpack.c.bf16 %v1945_v5, %v1941_v4 }
 0x41e   : > { %2464 = vmatmul.mubr.bf16.gmra.mxu1 %v1965_v12 }
 0x41f   : > { %2471 = vmatprep.mubr.bf16.mxu1 %v1970_v51 }
 0x426   : > { %2472 = vmatmul.mubr.bf16.gmra.mxu1 %v1969_v17 }
 0x427   : > { %2479 = vmatprep.mubr.bf16.mxu1 %v1974_v18 }
 0x42e   : > { %2480 = vmatmul.mubr.bf16.gmra.mxu1 %v1973_v23 }
 0x42f   : > { %2487 = vmatprep.mubr.bf16.mxu1 %v1978_v24 }
 0x436   : > { %2488 = vmatmul.mubr.bf16.gmra.mxu1 %v1977_v29 }
 0x437   : > { %2495 = vmatprep.mubr.bf16.mxu1 %v1982_v30 }
 0x43e   : > { %2496 = vmatmul.mubr.bf16.gmra.mxu1 %v1981_v35 }
 0x43f   : > { %2503 = vmatprep.mubr.bf16.mxu1 %v1986_v36 }
 0x446   : > { %2504 = vmatmul.mubr.bf16.gmra.mxu1 %v1985_v41 }
 0x447   : > { %2511 = vmatprep.mubr.bf16.mxu1 %v1990_v42 }
 0x44e   : > { %2512 = vmatmul.mubr.bf16.gmra.mxu1 %v1989_v47 }
 0x44f   : > { %2519 = vmatprep.mubr.bf16.mxu1 %v1994_v48 }
 0x456   : > { %v14062_v56 = vpop.f32.mrf.mxu1  ;;  %2520 = vmatmul.mubr.bf16.gmra.mxu1 %v1993_v54 }
 0x457   : > { %2527 = vmatprep.mubr.bf16.mxu1 %v1998_v55 }
 0x458   : > { %v14064_v59 = vpop.f32.mrf.mxu1 }
 0x45a   : > { %v14066_v62 = vpop.f32.mrf.mxu1 }
 0x45c   : > { %v14068_v2 = vpop.f32.mrf.mxu1 }
 0x45e   : > { %v14070_v3 = vpop.f32.mrf.mxu1  ;;  %2528 = vmatmul.mubr.bf16.gmra.mxu1 %v1997_v63 }
 0x45f   : > { %2535 = vmatprep.mubr.bf16.mxu1 %v2002_v1 }
 0x460   : > { %v14072_v7 = vpop.f32.mrf.mxu1 }
 0x462   : > { %v14074_v9 = vpop.f32.mrf.mxu1 }
 0x464   : > { %v14076_v12 = vpop.f32.mrf.mxu1 }
 0x466   : > { %v14078_v51 = vpop.f32.mrf.mxu1  ;;  %2536 = vmatmul.mubr.bf16.gmra.mxu1 %v2001_v10 }
 0x467   : > { %2543 = vmatprep.mubr.bf16.mxu1 %v2006_v11 }
 0x468   : > { %v14080_v14 = vpop.f32.mrf.mxu1 }
 0x46a   : > { %v14082_v15 = vpop.f32.mrf.mxu1 }
 0x46c   : > { %v14084_v17 = vpop.f32.mrf.mxu1 }
 0x46e   : > { %v14086_v18 = vpop.f32.mrf.mxu1  ;;  %2544 = vmatmul.mubr.bf16.gmra.mxu1 %v2005_v16 }
 0x470   : > { %v14088_v19 = vpop.f32.mrf.mxu1 }
 0x472   : > { %v14090_v20 = vpop.f32.mrf.mxu1 }
 0x474   : > { %v14092_v21 = vpop.f32.mrf.mxu1 }
 0x476   : > { %v14094_v22 = vpop.f32.mrf.mxu1 }
 0x478   : > { %v14096_v23 = vpop.f32.mrf.mxu1 }
 0x47a   : > { %v14098_v24 = vpop.f32.mrf.mxu1 }
 0x47c   : > { %v14100_v25 = vpop.f32.mrf.mxu1 }
 0x47e   : > { %v14102_v26 = vpop.f32.mrf.mxu1 }
 0x480   : > { %v14104_v27 = vpop.f32.mrf.mxu1 }
 0x482   : > { %v14106_v28 = vpop.f32.mrf.mxu1 }
 0x484   : > { %v14108_v29 = vpop.f32.mrf.mxu1 }
 0x486   : > { %v14110_v30 = vpop.f32.mrf.mxu1 }
 0x488   : > { %v14112_v31 = vpop.f32.mrf.mxu1 }
 0x48a   : > { %v14114_v32 = vpop.f32.mrf.mxu1 }
 0x48c   : > { %v14116_v33 = vpop.f32.mrf.mxu1 }
 0x48e   : > { %v14118_v34 = vpop.f32.mrf.mxu1 }
 0x490   : > { %v14120_v35 = vpop.f32.mrf.mxu1 }
 0x492   : > { %v14122_v36 = vpop.f32.mrf.mxu1 }
 0x494   : > { %v14124_v37 = vpop.f32.mrf.mxu1 }
 0x495   : > { %v11460_v6 = vadd.f32 %v14124_v37, %v14122_v36  ;;  %v17601_v36 = vmov 0.0   ;;  %v11451_v37 = vadd.f32 %v14112_v31, %v14110_v30  ;;  %v11445_v30 = vadd.f32 %v14104_v27, %v14102_v26 }
 0x496   : > { %v14126_v38 = vpop.f32.mrf.mxu1  ;;  %v11439_v26 = vadd.f32 %v14096_v23, %v14094_v22  ;;  %v11433_v22 = vadd.f32 %v14088_v19, %v14086_v18 }
 0x497   : > { %17591 = vst [vmem:[#allocation8_spill] sm:$0xff] %v14126_v38 }
 0x498   : > { %v14128_v39 = vpop.f32.mrf.mxu1 }
 0x499   : > { %17592 = vst [vmem:[#allocation9_spill] sm:$0xff] %v14128_v39 }
 0x49a   : > { %v14130_v40 = vpop.f32.mrf.mxu1 }
 0x49b   : > { %17593 = vst [vmem:[#allocation10_spill] sm:$0xff] %v14130_v40 }
 0x49c   : > { %v14132_v41 = vpop.f32.mrf.mxu1 }
 0x49d   : > { %17594 = vst [vmem:[#allocation11_spill] sm:$0xff] %v14132_v41 }
 0x49e   : > { %v11467_v42 = vpop.f32.mrf.mxu1 }
 0x4a0   : > { %v11468_v43 = vpop.f32.mrf.mxu1 }
 0x4a1   : > { %v14134_v44 = vadd.f32 %v11468_v43, %v11467_v42 }
 0x4a2   : > { %v11470_v45 = vpop.f32.mrf.mxu1 }
 0x4a3   : > { %17595 = vst [vmem:[#allocation12_spill] sm:$0xff] %v14134_v44  ;;  %v11457_v44 = vadd.f32 %v14120_v35, %v14118_v34 }
 0x4a4   : > { %v11471_v46 = vpop.f32.mrf.mxu1 }
 0x4a5   : > { %v14136_v47 = vadd.f32 %v11471_v46, %v11470_v45 }
 0x4a6   : > { %v11473_v48 = vpop.f32.mrf.mxu1 }
 0x4a7   : > { %17596 = vst [vmem:[#allocation13_spill] sm:$0xff] %v14136_v47 }
 0x4a8   : > { %v11474_v49 = vpop.f32.mrf.mxu1 }
 0x4a9   : > { %v14138_v50 = vadd.f32 %v11474_v49, %v11473_v48  ;;  %v2552_v49 = vld [vmem:[%s17574_s1 + $0x8] sm:$0xff] }
 0x4aa   : > { %v11476_v52 = vpop.f32.mrf.mxu1  ;;  %10505 = vmatprep.mubr.msk.f32.mxu1 %vm2594_vm2, %v2552_v49 }
 0x4ab   : > { %17597 = vst [vmem:[#allocation14_spill] sm:$0xff] %v14138_v50  ;;  %v11454_v50 = vadd.f32 %v14116_v33, %v14114_v32 }
 0x4ac   : > { %v11477_v53 = vpop.f32.mrf.mxu1 }
 0x4ad   : > { %v14140_v54 = vadd.f32 %v11477_v53, %v11476_v52  ;;  %v11415_v52 = vadd.f32 %v14064_v59, %v14062_v56 }
 0x4ae   : > { %v11479_v55 = vpop.f32.mrf.mxu1 }
 0x4af   : > { %17598 = vst [vmem:[#allocation15_spill] sm:$0xff] %v14140_v54 }
 0x4b0   : > { %v11480_v57 = vpop.f32.mrf.mxu1 }
 0x4b1   : > { %v14142_v58 = vadd.f32 %v11480_v57, %v11479_v55 }
 0x4b2   : > { %v11482_v60 = vpop.f32.mrf.mxu1 }
 0x4b3   : > { %17599 = vst [vmem:[#allocation16_spill] sm:$0xff] %v14142_v58 }
 0x4b4   : > { %v11483_v61 = vpop.f32.mrf.mxu1 }
 0x4b5   : > { %v14144_v63 = vadd.f32 %v11483_v61, %v11482_v60  ;;  %v11418_v61 = vadd.f32 %v14068_v2, %v14066_v62  ;;  %v11427_v2 = vadd.f32 %v14080_v14, %v14078_v51 }
 0x4b6   : > { %v11485_v1 = vpop.f32.mrf.mxu1 }
 0x4b7   : > { %17600 = vst [vmem:[#allocation17_spill] sm:$0xff] %v14144_v63 }
 0x4b8   : > { %v11486_v4 = vpop.f32.mrf.mxu1 }
 0x4b9   : > { %v14146_v5 = vadd.f32 %v11486_v4, %v11485_v1 }
 0x4ba   : > { %v11488_v8 = vpop.f32.mrf.mxu1 }
 0x4bc   : > { %v11489_v10 = vpop.f32.mrf.mxu1 }
 0x4bd   : > { %v14148_v11 = vadd.f32 %v11489_v10, %v11488_v8 }
 0x4be   : > { %v11491_v13 = vpop.f32.mrf.mxu1 }
 0x4c0   : > { %v11492_v16 = vpop.f32.mrf.mxu1 }
 0x4c1   : > { %v14150_v42 = vadd.f32 %v11492_v16, %v11491_v13  ;;  %v11421_v13 = vadd.f32 %v14072_v7, %v14070_v3 }
 0x4c2   : > { %v11494_v43 = vpop.f32.mrf.mxu1 }
 0x4c4   : > { %v11495_v45 = vpop.f32.mrf.mxu1 }
 0x4c5   : > { %v11424_v45 = vadd.f32 %v14076_v12, %v14074_v9 }
 0x4c6   : > { %v11513_v46 = vpop.f32.mrf.mxu1 }
 0x4c8   : > { %v11514_v48 = vpop.f32.mrf.mxu1 }
 0x4c9   : > { %v11515_v53 = vadd.f32 %v11514_v48, %v11513_v46 }
 0x4ca   : > { %v11516_v55 = vpop.f32.mrf.mxu1 }
 0x4cb   : > { %v14158_v57 = vadd.f32 %v11515_v53, %v11415_v52 }
 0x4cc   : > { %v11517_v60 = vpop.f32.mrf.mxu1 }
 0x4cd   : > { %v11518_v1 = vadd.f32 %v11517_v60, %v11516_v55 }
 0x4ce   : > { %v11519_v4 = vpop.f32.mrf.mxu1 }
 0x4cf   : > { %v14162_v8 = vadd.f32 %v11518_v1, %v11418_v61 }
 0x4d0   : > { %v11520_v10 = vpop.f32.mrf.mxu1 }
 0x4d1   : > { %v11521_v16 = vadd.f32 %v11520_v10, %v11519_v4 }
 0x4d2   : > { %v11522_v56 = vpop.f32.mrf.mxu1 }
 0x4d3   : > { %v14166_v59 = vadd.f32 %v11521_v16, %v11421_v13 }
 0x4d4   : > { %v11523_v43 = vpop.f32.mrf.mxu1 }
 0x4d5   : > { %v11524_v46 = vadd.f32 %v11523_v43, %v11522_v56 }
 0x4d6   : > { %v11525_v48 = vpop.f32.mrf.mxu1 }
 0x4d7   : > { %v14170_v49 = vadd.f32 %v11524_v46, %v11424_v45 }
 0x4d8   : > { %v11526_v62 = vpop.f32.mrf.mxu1 }
 0x4d9   : > { %v11527_v52 = vadd.f32 %v11526_v62, %v11525_v48 }
 0x4da   : > { %v14174_v53 = vpop.f32.mrf.mxu1 }
 0x4db   : > { %v14176_v3 = vadd.f32 %v11527_v52, %v11427_v2 }
 0x4dc   : > { %v14178_v7 = vpop.f32.mrf.mxu1 }
 0x4dd   : > { %v11530_v23 = vadd.f32 %v14178_v7, %v14174_v53 }
 0x4de   : > { %v14180_v55 = vpop.f32.mrf.mxu1 }
 0x4e0   : > { %v14182_v60 = vpop.f32.mrf.mxu1 }
 0x4e2   : > { %v11534_v9 = vpop.f32.mrf.mxu1 }
 0x4e4   : > { %v11535_v12 = vpop.f32.mrf.mxu1 }
 0x4e5   : > { %v11536_v27 = vadd.f32 %v11535_v12, %v11534_v9 }
 0x4e6   : > { %v11537_v61 = vpop.f32.mrf.mxu1 }
 0x4e8   : > { %v11538_v1 = vpop.f32.mrf.mxu1 }
 0x4ea   : > { %v11540_v4 = vpop.f32.mrf.mxu1 }
 0x4ec   : > { %v11541_v10 = vpop.f32.mrf.mxu1 }
 0x4ed   : > { %v11542_v31 = vadd.f32 %v11541_v10, %v11540_v4 }
 0x4ee   : > { %v11543_v13 = vpop.f32.mrf.mxu1 }
 0x4f0   : > { %v11544_v16 = vpop.f32.mrf.mxu1 }
 0x4f1   : > { %v11545_v32 = vadd.f32 %v11544_v16, %v11543_v13 }
 0x4f2   : > { %v11546_v51 = vpop.f32.mrf.mxu1 }
 0x4f4   : > { %v11547_v14 = vpop.f32.mrf.mxu1 }
 0x4f6   : > { %v11549_v56 = vpop.f32.mrf.mxu1 }
 0x4f8   : > { %v11550_v43 = vpop.f32.mrf.mxu1 }
 0x4f9   : > { %v11551_v54 = vadd.f32 %v11550_v43, %v11549_v56 }
 0x4fa   : > { %v11552_v45 = vpop.f32.mrf.mxu1 }
 0x4fc   : > { %v11553_v46 = vpop.f32.mrf.mxu1 }
 0x4fd   : > { %v11554_v41 = vadd.f32 %v11553_v46, %v11552_v45  ;;  %v17602_v46 = vld [vmem:[#allocation17_spill] sm:$0xff] }
 0x4fe   : > { %v11555_v48 = vpop.f32.mrf.mxu1 }
 0x500   : > { %v11556_v62 = vpop.f32.mrf.mxu1 }
 0x501   : > { %v11557_v0 = vadd.f32 %v11556_v62, %v11555_v48  ;;  %v11548_v48 = vadd.f32 %v11547_v14, %v11546_v51  ;;  %v2493_v62 = vadd.f32 %v11554_v41, %v11454_v50 }
 0x502   : > { %v11558_v2 = vpop.f32.mrf.mxu1 }
 0x503   : > { %v2498_v58 = vadd.f32 %v11557_v0, %v11457_v44  ;;  %v2490_v0 = vadd.f32 %v11551_v54, %v11451_v37 }
 0x504   : > { %v11559_v52 = vpop.f32.mrf.mxu1 }
 0x505   : > { %v11560_v39 = vadd.f32 %v11559_v52, %v11558_v2  ;;  %v17603_v52 = vld [vmem:[#allocation16_spill] sm:$0xff] }
 0x506   : > { %v14186_v38 = vpop.f32.mrf.mxu1 }
 0x507   : > { %v2501_v40 = vadd.f32 %v11560_v39, %v11460_v6  ;;  %v11448_v6 = vadd.f32 %v14108_v29, %v14106_v28  ;;  %v11442_v28 = vadd.f32 %v14100_v25, %v14098_v24  ;;  %v11539_v29 = vadd.f32 %v11538_v1, %v11537_v61 }
 0x508   : > { %v14190_v47 = vpop.f32.mrf.mxu1  ;;  %v11436_v24 = vadd.f32 %v14092_v21, %v14090_v20  ;;  %v11533_v25 = vadd.f32 %v14182_v60, %v14180_v55  ;;  %v11430_v20 = vadd.f32 %v14084_v17, %v14082_v15 }
 0x509   : > { %2650 = vmatpush1.msra.mxu1 %v2501_v40  ;;  %v2485_v35 = vadd.f32 %v11548_v48, %v11448_v6  ;;  %v2482_v40 = vadd.f32 %v11545_v32, %v11445_v30  ;;  %v2477_v44 = vadd.f32 %v11542_v31, %v11442_v28  ;;  %v2474_v54 = vadd.f32 %v11539_v29, %v11439_v26  ;;  %v17604_v48 = vld [vmem:[#allocation15_spill] sm:$0xff]  ;;  %v17605_v6 = vld [vmem:[#allocation14_spill] sm:$0xff]  ;;  %v17606_v30 = vld [vmem:[#allocation13_spill] sm:$0xff] }
 0x50a   : > { %v14194_v63 = vpop.f32.mrf.mxu1  ;;  %2651 = vmatprep.subr.mxu1 %v17601_v36  ;;  %v2469_v9 = vadd.f32 %v11536_v27, %v11436_v24  ;;  %v2466_v21 = vadd.f32 %v11533_v25, %v11433_v22  ;;  %v2461_v60 = vadd.f32 %v11530_v23, %v11430_v20  ;;  %v17608_v28 = vld [vmem:[#allocation11_spill] sm:$0xff]  ;;  %v17611_v26 = vld [vmem:[#allocation9_spill] sm:$0xff] }
 0x50b   : > { %2652 = vmatpush1.msra.mxu1 %v2498_v58  ;;  %v2558_v24 = vld [vmem:[%s17574_s1 + $0x38] sm:$0xff]  ;;  %v2557_v25 = vld [vmem:[%s17574_s1 + $0x30] sm:$0xff] }
 0x50c   : > { %v14199_v34 = vpop.f32.mrf.mxu1  ;;  %2653 = vmatprep.subr.mxu1 %v17601_v36  ;;  %v2562_v22 = vld [vmem:[%s17574_s1 + $0x58] sm:$0xff]  ;;  %v2561_v23 = vld [vmem:[%s17574_s1 + $0x50] sm:$0xff] }
 0x50d   : > { %2654 = vmatpush1.msra.mxu1 %v2493_v62  ;;  %v2566_v20 = vld [vmem:[%s17574_s1 + $0x78] sm:$0xff] }
 0x50e   : > { %v14204_v33 = vpop.f32.mrf.mxu1  ;;  %2655 = vmatprep.subr.mxu1 %v17601_v36 }
 0x50f   : > { %2656 = vmatpush1.msra.mxu1 %v2490_v0  ;;  %v11566_v0 = vadd.f32 %v14199_v34, %v14194_v63 }
 0x510   : > { %v14209_v39 = vpop.f32.mrf.mxu1  ;;  %2657 = vmatprep.subr.mxu1 %v17601_v36 }
 0x511   : > { %2658 = vmatpush1.msra.mxu1 %v2485_v35  ;;  %v11569_v62 = vadd.f32 %v14209_v39, %v14204_v33  ;;  %v17607_v35 = vld [vmem:[#allocation10_spill] sm:$0xff]  ;;  %v17609_v33 = vld [vmem:[#allocation12_spill] sm:$0xff] }
 0x512   : > { %v14214_v41 = vpop.f32.mrf.mxu1  ;;  %2659 = vmatprep.subr.mxu1 %v17601_v36  ;;  %v11466_v29 = vadd.f32 %v17608_v28, %v17607_v35 }
 0x513   : > { %2660 = vmatpush1.msra.mxu1 %v2482_v40  ;;  %v11563_v40 = vadd.f32 %v14190_v47, %v14186_v38  ;;  %v2514_v39 = vadd.f32 %v11569_v62, %v17609_v33  ;;  %v2554_v38 = vld [vmem:[%s17574_s1 + $0x18] sm:$0xff]  ;;  %v2553_v47 = vld [vmem:[%s17574_s1 + $0x10] sm:$0xff] }
 0x514   : > { %v14219_v50 = vpop.f32.mrf.mxu1  ;;  %2661 = vmatprep.subr.mxu1 %v17601_v36  ;;  %v2509_v63 = vadd.f32 %v11566_v0, %v11466_v29 }
 0x515   : > { %2662 = vmatpush1.msra.mxu1 %v2477_v44  ;;  %v2551_v44 = vld [vmem:[%s17574_s1] sm:$0xff] }
 0x516   : > { %v11573_v58 = vpop.f32.mrf.mxu1  ;;  %2663 = vmatprep.subr.mxu1 %v17601_v36 }
 0x517   : > { %2664 = vmatpush1.msra.mxu1 %v2474_v54  ;;  %v2560_v54 = vld [vmem:[%s17574_s1 + $0x48] sm:$0xff] }
 0x518   : > { %v11574_v12 = vpop.f32.mrf.mxu1  ;;  %2665 = vmatprep.subr.mxu1 %v17601_v36 }
 0x519   : > { %2666 = vmatpush1.msra.mxu1 %v2469_v9  ;;  %v2564_v9 = vld [vmem:[%s17574_s1 + $0x68] sm:$0xff] }
 0x51a   : > { %v11576_v55 = vpop.f32.mrf.mxu1  ;;  %2667 = vmatprep.subr.mxu1 %v17601_v36 }
 0x51b   : > { %2668 = vmatpush1.msra.mxu1 %v2466_v21  ;;  %v2565_v21 = vld [vmem:[%s17574_s1 + $0x70] sm:$0xff] }
 0x51c   : > { %v11577_v61 = vpop.f32.mrf.mxu1  ;;  %2669 = vmatprep.subr.mxu1 %v17601_v36 }
 0x51d   : > { %2670 = vmatpush1.msra.mxu1 %v2461_v60  ;;  %v11578_v45 = vadd.f32 %v11577_v61, %v11576_v55  ;;  %v2568_v55 = vld [vmem:[%s17574_s1 + $0x88] sm:$0xff]  ;;  %v2567_v60 = vld [vmem:[%s17574_s1 + $0x80] sm:$0xff]  ;;  %v2570_v61 = vld [vmem:[%s17574_s1 + $0x98] sm:$0xff] }
 0x51e   : > { %v11579_v18 = vpop.f32.mrf.mxu1  ;;  %2671 = vmatprep.subr.mxu1 %v17601_v36 }
 0x51f   : > { %2672 = vmatpush1.msra.mxu1 %v14176_v3 }
 0x520   : > { %v11580_v19 = vpop.f32.mrf.mxu1  ;;  %2673 = vmatprep.subr.mxu1 %v17601_v36 }
 0x521   : > { %2674 = vmatpush1.msra.mxu1 %v14170_v49 }
 0x522   : > { %v11582_v15 = vpop.f32.mrf.mxu1  ;;  %2675 = vmatprep.subr.mxu1 %v17601_v36 }
 0x523   : > { %2676 = vmatpush1.msra.mxu1 %v14166_v59 }
 0x524   : > { %v11583_v17 = vpop.f32.mrf.mxu1  ;;  %2677 = vmatprep.subr.mxu1 %v17601_v36 }
 0x525   : > { %2678 = vmatpush1.msra.mxu1 %v14162_v8  ;;  %v11584_v8 = vadd.f32 %v11583_v17, %v11582_v15  ;;  %v2571_v15 = vld [vmem:[%s17574_s1 + $0xa0] sm:$0xff]  ;;  %v2574_v17 = vld [vmem:[%s17574_s1 + $0xb8] sm:$0xff] }
 0x526   : > { %v11585_v53 = vpop.f32.mrf.mxu1  ;;  %2679 = vmatprep.subr.mxu1 %v17601_v36 }
 0x527   : > { %2680 = vmatpush1.msra.mxu1 %v14158_v57  ;;  %v11581_v57 = vadd.f32 %v11580_v19, %v11579_v18  ;;  %v2533_v2 = vadd.f32 %v11584_v8, %v17602_v46  ;;  %v2569_v18 = vld [vmem:[%s17574_s1 + $0x90] sm:$0xff]  ;;  %v2572_v19 = vld [vmem:[%s17574_s1 + $0xa8] sm:$0xff] }
 0x528   : > { %v11586_v3 = vpop.f32.mrf.mxu1  ;;  %2691 = vmatprep.subr.mxu1 %v17601_v36  ;;  %v2585_v8 = vld [vmem:[%s17574_s1 + $0x110] sm:$0xff] }
 0x529   : > { %v11587_v16 = vadd.f32 %v11586_v3, %v11585_v53  ;;  %v2530_v37 = vadd.f32 %v11581_v57, %v17603_v52  ;;  %v2573_v53 = vld [vmem:[%s17574_s1 + $0xb0] sm:$0xff]  ;;  %v2576_v3 = vld [vmem:[%s17574_s1 + $0xc8] sm:$0xff] }
 0x52a   : > { %v11588_v7 = vpop.f32.mrf.mxu1 }
 0x52b   : > { %v2538_v43 = vadd.f32 %v11587_v16, %v14146_v5  ;;  %v2525_v5 = vadd.f32 %v11578_v45, %v17604_v48  ;;  %v2584_v16 = vld [vmem:[%s17574_s1 + $0x108] sm:$0xff] }
 0x52c   : > { %v11589_v49 = vpop.f32.mrf.mxu1 }
 0x52d   : > { %v11590_v10 = vadd.f32 %v11589_v49, %v11588_v7  ;;  %v2575_v7 = vld [vmem:[%s17574_s1 + $0xc0] sm:$0xff]  ;;  %v2578_v49 = vld [vmem:[%s17574_s1 + $0xd8] sm:$0xff] }
 0x52e   : > { %v11591_v1 = vpop.f32.mrf.mxu1 }
 0x52f   : > { %v2541_v56 = vadd.f32 %v11590_v10, %v14148_v11  ;;  %v11572_v11 = vadd.f32 %v14219_v50, %v14214_v41  ;;  %v17610_v41 = vld [vmem:[#allocation8_spill] sm:$0xff] }
 0x530   : > { %v11592_v4 = vpop.f32.mrf.mxu1  ;;  %v11463_v27 = vadd.f32 %v17611_v26, %v17610_v41  ;;  %v2556_v50 = vld [vmem:[%s17574_s1 + $0x28] sm:$0xff]  ;;  %v2579_v10 = vld [vmem:[%s17574_s1 + $0xe0] sm:$0xff] }
 0x531   : > { %v11593_v13 = vadd.f32 %v11592_v4, %v11591_v1  ;;  %v2517_v31 = vadd.f32 %v11572_v11, %v17606_v30  ;;  %v2577_v1 = vld [vmem:[%s17574_s1 + $0xd0] sm:$0xff]  ;;  %v2580_v4 = vld [vmem:[%s17574_s1 + $0xe8] sm:$0xff] }
 0x532   : > { %v11594_v59 = vpop.f32.mrf.mxu1  ;;  %v2506_v34 = vadd.f32 %v11563_v40, %v11463_v27 }
 0x533   : > { %v2546_v51 = vadd.f32 %v11593_v13, %v14150_v42  ;;  %v11575_v42 = vadd.f32 %v11574_v12, %v11573_v58  ;;  %v2559_v58 = vld [vmem:[%s17574_s1 + $0x40] sm:$0xff]  ;;  %v2582_v13 = vld [vmem:[%s17574_s1 + $0xf8] sm:$0xff]  ;;  %v2581_v59 = vld [vmem:[%s17574_s1 + $0xf0] sm:$0xff] }
 0x534   : > { %v11595_v14 = vpop.f32.mrf.mxu1  ;;  %v2563_v12 = vld [vmem:[%s17574_s1 + $0x60] sm:$0xff] }
 0x535   : > { %2692 = vmatpush2.msra.mxu1 %v2546_v51  ;;  %v2522_v32 = vadd.f32 %v11575_v42, %v17605_v6  ;;  %v2583_v51 = vld [vmem:[%s17574_s1 + $0x100] sm:$0xff]  ;;  %v2586_v14 = vld [vmem:[%s17574_s1 + $0x118] sm:$0xff] }
 0x536   : > { %2693 = vmatprep.subr.mxu1 %v17601_v36 }
 0x537   : > { %2694 = vmatpush2.msra.mxu1 %v2541_v56  ;;  %v14403_v56 = vld [vmem:[%s17578_s5] ss:$0 sm:$0xff] }
 0x538   : > { %2695 = vmatprep.subr.mxu1 %v17601_v36 }
 0x539   : > { %2696 = vmatpush2.msra.mxu1 %v2538_v43 }
 0x53a   : > { %2697 = vmatprep.subr.mxu1 %v17601_v36 }
 0x53b   : > { %2698 = vmatpush2.msra.mxu1 %v2533_v2 }
 0x53c   : > { %2699 = vmatprep.subr.mxu1 %v17601_v36 }
 0x53d   : > { %2700 = vmatpush2.msra.mxu1 %v2530_v37 }
 0x53e   : > { %2701 = vmatprep.subr.mxu1 %v17601_v36 }
 0x53f   : > { %2702 = vmatpush2.msra.mxu1 %v2525_v5 }
 0x540   : > { %2703 = vmatprep.subr.mxu1 %v17601_v36 }
 0x541   : > { %2704 = vmatpush2.msra.mxu1 %v2522_v32 }
 0x542   : > { %2705 = vmatprep.subr.mxu1 %v17601_v36 }
 0x543   : > { %2706 = vmatpush2.msra.mxu1 %v2517_v31 }
 0x544   : > { %2707 = vmatprep.subr.mxu1 %v17601_v36 }
 0x545   : > { %2708 = vmatpush2.msra.mxu1 %v2514_v39 }
 0x546   : > { %2709 = vmatprep.subr.mxu1 %v17601_v36 }
 0x547   : > { %2710 = vmatpush2.msra.mxu1 %v2509_v63 }
 0x548   : > { %2711 = vmatprep.subr.mxu1 %v17601_v36  ;;  %v2555_v36 = vld [vmem:[%s17574_s1 + $0x20] sm:$0xff] }
 0x549   : > { %2712 = vmatpush2.msra.mxu1 %v2506_v34 }
 0x54a   : > { %2714 = vmatmul.mubr.f32.vlgmr.msra.gmra.mxu1 %v2551_v44 }
 0x54b   : > { %10506 = vmatprep.mubr.msk.f32.mxu1 %vm2594_vm2, %v2554_v38 }
 0x54e   : > { %2719 = vmatmul.mubr.f32.gmra.mxu1 %v2553_v47 }
 0x54f   : > { %10507 = vmatprep.mubr.msk.f32.mxu1 %vm2594_vm2, %v2556_v50 }
 0x552   : > { %2724 = vmatmul.mubr.f32.gmra.mxu1 %v2555_v36 }
 0x553   : > { %10508 = vmatprep.mubr.msk.f32.mxu1 %vm2594_vm2, %v2558_v24 }
 0x556   : > { %2729 = vmatmul.mubr.f32.gmra.mxu1 %v2557_v25 }
 0x557   : > { %10509 = vmatprep.mubr.msk.f32.mxu1 %vm2594_vm2, %v2560_v54 }
 0x55a   : > { %2734 = vmatmul.mubr.f32.gmra.mxu1 %v2559_v58 }
 0x55b   : > { %10510 = vmatprep.mubr.msk.f32.mxu1 %vm2594_vm2, %v2562_v22 }
 0x55e   : > { %2739 = vmatmul.mubr.f32.gmra.mxu1 %v2561_v23 }
 0x55f   : > { %10511 = vmatprep.mubr.msk.f32.mxu1 %vm2594_vm2, %v2564_v9 }
 0x562   : > { %2744 = vmatmul.mubr.f32.gmra.mxu1 %v2563_v12 }
 0x563   : > { %10512 = vmatprep.mubr.msk.f32.mxu1 %vm2594_vm2, %v2566_v20 }
 0x566   : > { %2749 = vmatmul.mubr.f32.gmra.mxu1 %v2565_v21 }
 0x567   : > { %10513 = vmatprep.mubr.msk.f32.mxu1 %vm2594_vm2, %v2568_v55 }
 0x56a   : > { %2754 = vmatmul.mubr.f32.gmra.mxu1 %v2567_v60 }
 0x56b   : > { %10514 = vmatprep.mubr.msk.f32.mxu1 %vm2594_vm2, %v2570_v61 }
 0x56e   : > { %2759 = vmatmul.mubr.f32.gmra.mxu1 %v2569_v18 }
 0x56f   : > { %10515 = vmatprep.mubr.msk.f32.mxu1 %vm2594_vm2, %v2572_v19 }
 0x572   : > { %2764 = vmatmul.mubr.f32.gmra.mxu1 %v2571_v15 }
 0x573   : > { %10516 = vmatprep.mubr.msk.f32.mxu1 %vm2594_vm2, %v2574_v17 }
 0x576   : > { %2769 = vmatmul.mubr.f32.gmra.mxu1 %v2573_v53 }
 0x577   : > { %10517 = vmatprep.mubr.msk.f32.mxu1 %vm2594_vm2, %v2576_v3 }
 0x57a   : > { %2774 = vmatmul.mubr.f32.gmra.mxu1 %v2575_v7 }
 0x57b   : > { %10518 = vmatprep.mubr.msk.f32.mxu1 %vm2594_vm2, %v2578_v49 }
 0x57e   : > { %2779 = vmatmul.mubr.f32.gmra.mxu1 %v2577_v1 }
 0x57f   : > { %10519 = vmatprep.mubr.msk.f32.mxu1 %vm2594_vm2, %v2580_v4 }
 0x582   : > { %2784 = vmatmul.mubr.f32.gmra.mxu1 %v2579_v10 }
 0x583   : > { %10520 = vmatprep.mubr.msk.f32.mxu1 %vm2594_vm2, %v2582_v13 }
 0x586   : > { %2789 = vmatmul.mubr.f32.gmra.mxu1 %v2581_v59 }
 0x587   : > { %10521 = vmatprep.mubr.msk.f32.mxu1 %vm2594_vm2, %v2584_v16 }
 0x58a   : > { %2794 = vmatmul.mubr.f32.gmra.mxu1 %v2583_v51 }
 0x58b   : > { %10522 = vmatprep.mubr.msk.f32.mxu1 %vm2594_vm2, %v2586_v14 }
 0x58e   : > { %2799 = vmatmul.mubr.f32.gmra.mxu1 %v2585_v8 }
 0x60a   : > { %v2715_v57 = vpop.f32.mrf.mxu1 }
 0x60b   : > { %v2716_v43 = vadd.f32 %v14403_v56, %v2715_v57 }
 0x60c   : > { %v2717_v45 = vpop.f32.mrf.mxu1 }
 0x60d   : > { %v2804_v46 = vmax.f32 %v2716_v43, 0.0 }
 0x60e   : > { %v2720_v2 = vpop.f32.mrf.mxu1 }
 0x60f   : > { %2823 = vst.msk [vmem:[#allocation5] sm:$0xff] %vm2822_vm12, %v2804_v46  ;;  %v2721_v42 = vadd.f32 %v14403_v56, %v2720_v2 }
 0x610   : > { %v2722_v52 = vpop.f32.mrf.mxu1 }
 0x611   : > { %v2805_v37 = vmax.f32 %v2721_v42, 0.0 }
 0x612   : > { %v2725_v11 = vpop.f32.mrf.mxu1 }
 0x613   : > { %2824 = vst.msk [vmem:[#allocation5 + $0x8] sm:$0xff] %vm2822_vm12, %v2805_v37  ;;  %v2726_v48 = vadd.f32 %v14403_v56, %v2725_v11 }
 0x614   : > { %v2727_v5 = vpop.f32.mrf.mxu1 }
 0x615   : > { %v2806_v62 = vmax.f32 %v2726_v48, 0.0 }
 0x616   : > { %v2730_v6 = vpop.f32.mrf.mxu1 }
 0x617   : > { %2825 = vst.msk [vmem:[#allocation5 + $0x10] sm:$0xff] %vm2822_vm12, %v2806_v62  ;;  %v2731_v32 = vadd.f32 %v14403_v56, %v2730_v6 }
 0x618   : > { %v2732_v0 = vpop.f32.mrf.mxu1 }
 0x619   : > { %v2807_v30 = vmax.f32 %v2731_v32, 0.0 }
 0x61a   : > { %v2735_v31 = vpop.f32.mrf.mxu1 }
 0x61b   : > { %2826 = vst.msk [vmem:[#allocation5 + $0x18] sm:$0xff] %vm2822_vm12, %v2807_v30  ;;  %v2736_v35 = vadd.f32 %v14403_v56, %v2735_v31 }
 0x61c   : > { %v2737_v28 = vpop.f32.mrf.mxu1 }
 0x61d   : > { %v2808_v29 = vmax.f32 %v2736_v35, 0.0 }
 0x61e   : > { %v2740_v40 = vpop.f32.mrf.mxu1 }
 0x61f   : > { %2827 = vst.msk [vmem:[#allocation5 + $0x20] sm:$0xff] %vm2822_vm12, %v2808_v29  ;;  %v2741_v33 = vadd.f32 %v14403_v56, %v2740_v40 }
 0x620   : > { %v2742_v39 = vpop.f32.mrf.mxu1 }
 0x621   : > { %v2809_v41 = vmax.f32 %v2741_v33, 0.0 }
 0x622   : > { %v2745_v26 = vpop.f32.mrf.mxu1 }
 0x623   : > { %2828 = vst.msk [vmem:[#allocation5 + $0x28] sm:$0xff] %vm2822_vm12, %v2809_v41  ;;  %v2746_v27 = vadd.f32 %v14403_v56, %v2745_v26 }
 0x624   : > { %v2747_v63 = vpop.f32.mrf.mxu1 }
 0x625   : > { %v2810_v34 = vmax.f32 %v2746_v27, 0.0 }
 0x626   : > { %v2750_v44 = vpop.f32.mrf.mxu1 }
 0x627   : > { %2829 = vst.msk [vmem:[#allocation5 + $0x30] sm:$0xff] %vm2822_vm12, %v2810_v34  ;;  %v2751_v38 = vadd.f32 %v14403_v56, %v2750_v44 }
 0x628   : > { %v2752_v47 = vpop.f32.mrf.mxu1 }
 0x629   : > { %v2811_v50 = vmax.f32 %v2751_v38, 0.0 }
 0x62a   : > { %v2755_v36 = vpop.f32.mrf.mxu1 }
 0x62b   : > { %2830 = vst.msk [vmem:[#allocation5 + $0x38] sm:$0xff] %vm2822_vm12, %v2811_v50  ;;  %v2756_v24 = vadd.f32 %v14403_v56, %v2755_v36 }
 0x62c   : > { %v2757_v25 = vpop.f32.mrf.mxu1 }
 0x62d   : > { %v2812_v54 = vmax.f32 %v2756_v24, 0.0 }
 0x62e   : > { %v2760_v58 = vpop.f32.mrf.mxu1 }
 0x62f   : > { %2831 = vst.msk [vmem:[#allocation5 + $0x40] sm:$0xff] %vm2822_vm12, %v2812_v54  ;;  %v2761_v22 = vadd.f32 %v14403_v56, %v2760_v58 }
 0x630   : > { %v2762_v23 = vpop.f32.mrf.mxu1 }
 0x631   : > { %v2813_v9 = vmax.f32 %v2761_v22, 0.0 }
 0x632   : > { %v2765_v12 = vpop.f32.mrf.mxu1 }
 0x633   : > { %2832 = vst.msk [vmem:[#allocation5 + $0x48] sm:$0xff] %vm2822_vm12, %v2813_v9  ;;  %v2766_v20 = vadd.f32 %v14403_v56, %v2765_v12 }
 0x634   : > { %v2767_v21 = vpop.f32.mrf.mxu1 }
 0x635   : > { %v2814_v55 = vmax.f32 %v2766_v20, 0.0 }
 0x636   : > { %v2770_v60 = vpop.f32.mrf.mxu1 }
 0x637   : > { %2833 = vst.msk [vmem:[#allocation5 + $0x50] sm:$0xff] %vm2822_vm12, %v2814_v55  ;;  %v2771_v61 = vadd.f32 %v14403_v56, %v2770_v60 }
 0x638   : > { %v2772_v18 = vpop.f32.mrf.mxu1 }
 0x639   : > { %v2815_v19 = vmax.f32 %v2771_v61, 0.0 }
 0x63a   : > { %v2775_v15 = vpop.f32.mrf.mxu1 }
 0x63b   : > { %2834 = vst.msk [vmem:[#allocation5 + $0x58] sm:$0xff] %vm2822_vm12, %v2815_v19  ;;  %v2776_v17 = vadd.f32 %v14403_v56, %v2775_v15 }
 0x63c   : > { %v2777_v53 = vpop.f32.mrf.mxu1 }
 0x63d   : > { %v2816_v3 = vmax.f32 %v2776_v17, 0.0 }
 0x63e   : > { %v2780_v7 = vpop.f32.mrf.mxu1 }
 0x63f   : > { %2835 = vst.msk [vmem:[#allocation5 + $0x60] sm:$0xff] %vm2822_vm12, %v2816_v3  ;;  %v2781_v49 = vadd.f32 %v14403_v56, %v2780_v7 }
 0x640   : > { %v2782_v1 = vpop.f32.mrf.mxu1 }
 0x641   : > { %v2817_v4 = vmax.f32 %v2781_v49, 0.0 }
 0x642   : > { %v2785_v10 = vpop.f32.mrf.mxu1 }
 0x643   : > { %2836 = vst.msk [vmem:[#allocation5 + $0x68] sm:$0xff] %vm2822_vm12, %v2817_v4  ;;  %v2786_v13 = vadd.f32 %v14403_v56, %v2785_v10 }
 0x644   : > { %v2787_v59 = vpop.f32.mrf.mxu1 }
 0x645   : > { %v2818_v16 = vmax.f32 %v2786_v13, 0.0 }
 0x646   : > { %v2790_v51 = vpop.f32.mrf.mxu1 }
 0x647   : > { %2837 = vst.msk [vmem:[#allocation5 + $0x70] sm:$0xff] %vm2822_vm12, %v2818_v16  ;;  %v2791_v14 = vadd.f32 %v14403_v56, %v2790_v51 }
 0x648   : > { %v2792_v8 = vpop.f32.mrf.mxu1 }
 0x649   : > { %v2819_v57 = vmax.f32 %v2791_v14, 0.0 }
 0x64a   : > { %v2795_v43 = vpop.f32.mrf.mxu1 }
 0x64b   : > { %2838 = vst.msk [vmem:[#allocation5 + $0x78] sm:$0xff] %vm2822_vm12, %v2819_v57  ;;  %v2796_v45 = vadd.f32 %v14403_v56, %v2795_v43 }
 0x64c   : > { %v2797_v46 = vpop.f32.mrf.mxu1 }
 0x64d   : > { %v2820_v2 = vmax.f32 %v2796_v45, 0.0 }
 0x64e   : > { %v2800_v42 = vpop.f32.mrf.mxu1 }
 0x64f   : > { %2839 = vst.msk [vmem:[#allocation5 + $0x80] sm:$0xff] %vm2822_vm12, %v2820_v2  ;;  %v2801_v52 = vadd.f32 %v14403_v56, %v2800_v42 }
 0x650   : > { %v2802_v37 = vpop.f32.mrf.mxu1 }
 0x651   : > { %v2821_v11 = vmax.f32 %v2801_v52, 0.0 }
 0x653   : > { %2840 = vst.msk [vmem:[#allocation5 + $0x88] sm:$0xff] %vm2822_vm12, %v2821_v11 }
 0x654 LB: >> { %s10524_s14 = sshll.u32 %s13116_s13, 4  ;;  %s10523_s20 = sshll.u32 %s13116_s13, 3  ;;  %vm2857_vm13 = vcmask 522240   ;;  %vm2864_vm14 = vcmask 1047040   ;;  %s13116_s13 = sphi %s14441_s13, %s2846_s13  }
 0x655   : >> { %s2852_s22 = sshra.s32 %s10523_s20, 3  ;;  %s2849_s23 = scalar_lea.vmem [#allocation5], %s10524_s14 }
 0x656   : >> { %s11396_s24 = smul.u32 40, %s2852_s22  ;;  %s13130_s25 = smov 64  }
 0x657   : >> { %s2846_s13 = sadd.s32 1, %s13116_s13  }
 0x658   : >> { %s2856_s26 = scalar_lea.vmem [#allocation6], %s11396_s24  ;;  %p2843_p6 = scmp.ge.s32.totalorder %s2846_s13, 7  }
 0x659   : > { %v11841_v47 = vld [vmem:[%s17579_s6 + $0x78] sm:$0xff] (%p2843_p6)   ;;  %v11845_v25 = vld [vmem:[%s17579_s6 + $0x70] sm:$0xff] (%p2843_p6)   ;;  %v11849_v23 = vld [vmem:[%s17579_s6 + $0x68] sm:$0xff] (%p2843_p6)   ;;  %s13132_s30 = smov (%p2843_p6), 64  }
 0x65a   : >> { %v10527_v48 = vld [vmem:[%s2849_s23 + $0x10] sm:$0xff]  ;;  %v10528_v5 = vld [vmem:[%s2849_s23 + $0x18] sm:$0xff]  ;;  %v2850_v56 = vld [vmem:[%s2849_s23] sm:$0xff]  ;;  %11597 = vmatprep.subr.bf16.mxu0 (%p2843_p6), %v11841_v47 }
 0x65b   : >> { %v2887_v62 = vrot.slane %v10527_v48, 2  ;;  %v2888_v6 = vrot.slane %v10528_v5, 2  ;;  %v2883_v32 = vrot.slane %v10527_v48, 1  ;;  %v2851_v0 = vld [vmem:[%s2849_s23 + $0x8] sm:$0xff]  ;;  %v2860_v30 = vrot.slane %v2850_v56, 1  ;;  %v10530_v31 = vld [vmem:[%s2849_s23 + $0x20] sm:$0xff] }
 0x65c   : >> { %v2868_v35 = vrot.slane %v2850_v56, 2  ;;  %v2869_v28 = vrot.slane %v2851_v0, 2  ;;  %v10531_v29 = vld [vmem:[%s2849_s23 + $0x28] sm:$0xff]  ;;  %v2907_v40 = vrot.slane %v10530_v31, 2  ;;  %2858 = vst.msk [vmem:[%s2856_s26] sm:$0x7f] %vm2857_vm13, %v2850_v56 }
 0x65d   : >> { %v2889_v33 = vsel %vm1613_vm4, %v2887_v62, %v2888_v6  ;;  %2861 = vrot.lane.b32.xlu0 %v2860_v30, %s13130_s25  ;;  %2885 = vst.msk [vmem:[%s2856_s26 + $0x10] sm:$0x7f] %vm2857_vm13, %v2883_v32  ;;  %v2908_v39 = vrot.slane %v10531_v29, 2  ;;  %2899 = vst.msk [vmem:[%s2856_s26 + $0x18] sm:$0x7f] %vm2857_vm13, %v10530_v31  ;;  %v2901_v26 = vrot.slane %v10530_v31, 1 }
 0x65e   : >> { %2890 = vrot.lane.b32.xlu1 %v2889_v33, %s13130_s25  ;;  %v2870_v41 = vsel %vm1613_vm4, %v2868_v35, %v2869_v28  ;;  %v11842_v50 = vld [vmem:[%s17579_s6 + $0x38] sm:$0xff] (%p2843_p6)   ;;  %v11846_v54 = vld [vmem:[%s17579_s6 + $0x30] sm:$0xff] (%p2843_p6)   ;;  %v11850_v9 = vld [vmem:[%s17579_s6 + $0x28] sm:$0xff] (%p2843_p6)  }
 0x65f   : >> { %2872 = vst.msk [vmem:[%s2856_s26 + $0x8] sm:$0x7f] %vm2857_vm13, %v2870_v41  ;;  %v2909_v27 = vsel %vm1613_vm4, %v2907_v40, %v2908_v39  ;;  %v11843_v36 = vld [vmem:[%s17579_s6 + $0xf8] sm:$0xff] (%p2843_p6)   ;;  %11598 = vmatpush3.bf16.msra.mxu0 (%p2843_p6), %v11842_v50  ;;  %v11847_v58 = vld [vmem:[%s17579_s6 + $0xf0] sm:$0xff] (%p2843_p6)   ;;  %v11851_v12 = vld [vmem:[%s17579_s6 + $0xe8] sm:$0xff] (%p2843_p6)  }
 0x660   : >> { %2911 = vst.msk [vmem:[%s2856_s26 + $0x20] sm:$0x7f] %vm2857_vm13, %v2909_v27  ;;  %v11844_v24 = vld [vmem:[%s17579_s6 + $0xb8] sm:$0xff] (%p2843_p6)   ;;  %11637 = vmatprep.subr.bf16.mxu1 (%p2843_p6), %v11843_v36  ;;  %11599 = vmatprep.subr.bf16.mxu0 (%p2843_p6), %v11845_v25  ;;  %v11848_v22 = vld [vmem:[%s17579_s6 + $0xb0] sm:$0xff] (%p2843_p6)   ;;  %v11852_v20 = vld [vmem:[%s17579_s6 + $0xa8] sm:$0xff] (%p2843_p6)  }
 0x661   : >> { %2879 = vrot.lane.b32.xlu0 %v10527_v48, %s13130_s25  ;;  %11638 = vmatpush3.bf16.msra.mxu1 (%p2843_p6), %v11844_v24  ;;  %v11853_v21 = vld [vmem:[%s17579_s6 + $0x60] sm:$0xff] (%p2843_p6)   ;;  %v11857_v18 = vld [vmem:[%s17579_s6 + $0x58] sm:$0xff] (%p2843_p6)   ;;  %v11861_v53 = vld [vmem:[%s17579_s6 + $0x50] sm:$0xff] (%p2843_p6)  }
 0x662   : >> { %2902 = vrot.lane.b32.xlu1 %v2901_v26, %s13130_s25  ;;  %11639 = vmatprep.subr.bf16.mxu1 (%p2843_p6), %v11847_v58  ;;  %v11854_v55 = vld [vmem:[%s17579_s6 + $0x20] sm:$0xff] (%p2843_p6)   ;;  %v11858_v19 = vld [vmem:[%s17579_s6 + $0x18] sm:$0xff] (%p2843_p6)   ;;  %v11862_v3 = vld [vmem:[%s17579_s6 + $0x10] sm:$0xff] (%p2843_p6)  }
 0x663   : > { %11600 = vmatpush3.bf16.msra.mxu0 (%p2843_p6), %v11846_v54  ;;  %v11855_v60 = vld [vmem:[%s17579_s6 + $0xe0] sm:$0xff] (%p2843_p6)   ;;  %v11859_v15 = vld [vmem:[%s17579_s6 + $0xd8] sm:$0xff] (%p2843_p6)   ;;  %v11863_v7 = vld [vmem:[%s17579_s6 + $0xd0] sm:$0xff] (%p2843_p6)  }
 0x664   : > { %11601 = vmatprep.subr.bf16.mxu0 (%p2843_p6), %v11849_v23  ;;  %v11856_v61 = vld [vmem:[%s17579_s6 + $0xa0] sm:$0xff] (%p2843_p6)   ;;  %v11860_v17 = vld [vmem:[%s17579_s6 + $0x98] sm:$0xff] (%p2843_p6)   ;;  %v11864_v49 = vld [vmem:[%s17579_s6 + $0x90] sm:$0xff] (%p2843_p6)  }
 0x665   : > { %11640 = vmatpush3.bf16.msra.mxu1 (%p2843_p6), %v11848_v22  ;;  %v11865_v1 = vld [vmem:[%s17579_s6 + $0x48] sm:$0xff] (%p2843_p6)   ;;  %v11869_v59 = vld [vmem:[%s17579_s6 + $0x40] sm:$0xff] (%p2843_p6)   ;;  %v11873_v42 = vld [vmem:[%s17579_s6 + $0x118] sm:$0xff] (%p2843_p6)  }
 0x666   : > { %11641 = vmatprep.subr.bf16.mxu1 (%p2843_p6), %v11851_v12  ;;  %v11866_v4 = vld [vmem:[%s17579_s6 + $0x8] sm:$0xff] (%p2843_p6)   ;;  %v11870_v16 = vld [vmem:[%s17579_s6] sm:$0xff] (%p2843_p6)   ;;  %v11874_v31 = vld [vmem:[%s17579_s6 + $0x110] sm:$0xff] (%p2843_p6)  }
 0x667   : > { %11602 = vmatpush3.bf16.msra.mxu0 (%p2843_p6), %v11850_v9  ;;  %v11867_v10 = vld [vmem:[%s17579_s6 + $0xc8] sm:$0xff] (%p2843_p6)   ;;  %v11871_v51 = vld [vmem:[%s17579_s6 + $0xc0] sm:$0xff] (%p2843_p6)  }
 0x668   : > { %11603 = vmatprep.subr.bf16.mxu0 (%p2843_p6), %v11853_v21  ;;  %v11868_v13 = vld [vmem:[%s17579_s6 + $0x88] sm:$0xff] (%p2843_p6)   ;;  %v11872_v43 = vld [vmem:[%s17579_s6 + $0x80] sm:$0xff] (%p2843_p6)  }
 0x669   : > { %11642 = vmatpush3.bf16.msra.mxu1 (%p2843_p6), %v11852_v20  ;;  %v11876_v50 = vld [vmem:[%s17579_s6 + $0x100] sm:$0xff] (%p2843_p6)  }
 0x66a   : > { %11643 = vmatprep.subr.bf16.mxu1 (%p2843_p6), %v11855_v60 }
 0x66b   : > { %11604 = vmatpush3.bf16.msra.mxu0 (%p2843_p6), %v11854_v55 }
 0x66c   : > { %11605 = vmatprep.subr.bf16.mxu0 (%p2843_p6), %v11857_v18 }
 0x66d   : > { %11644 = vmatpush3.bf16.msra.mxu1 (%p2843_p6), %v11856_v61 }
 0x66e   : > { %11645 = vmatprep.subr.bf16.mxu1 (%p2843_p6), %v11859_v15 }
 0x66f   : > { %11606 = vmatpush3.bf16.msra.mxu0 (%p2843_p6), %v11858_v19 }
 0x670   : > { %11607 = vmatprep.subr.bf16.mxu0 (%p2843_p6), %v11861_v53 }
 0x671   : > { %11646 = vmatpush3.bf16.msra.mxu1 (%p2843_p6), %v11860_v17 }
 0x672   : > { %11647 = vmatprep.subr.bf16.mxu1 (%p2843_p6), %v11863_v7 }
 0x673   : > { %11608 = vmatpush3.bf16.msra.mxu0 (%p2843_p6), %v11862_v3 }
 0x674   : > { %11609 = vmatprep.subr.bf16.mxu0 (%p2843_p6), %v11865_v1 }
 0x675   : > { %11648 = vmatpush3.bf16.msra.mxu1 (%p2843_p6), %v11864_v49 }
 0x676   : > { %11649 = vmatprep.subr.bf16.mxu1 (%p2843_p6), %v11867_v10 }
 0x677   : > { %11610 = vmatpush3.bf16.msra.mxu0 (%p2843_p6), %v11866_v4 }
 0x678   : > { %11611 = vmatprep.subr.bf16.mxu0 (%p2843_p6), %v11869_v59  ;;  %v11879_v59 = vld [vmem:[%s17581_s8 + $0xe4] ss:$16 sps:$4 sm:$0xff] (%p2843_p6)  }
 0x679   : > { %11650 = vmatpush3.bf16.msra.mxu1 (%p2843_p6), %v11868_v13  ;;  %v11877_v13 = vld [vmem:[%s17581_s8 + $0xe0] ss:$16 sps:$4 sm:$0xff] (%p2843_p6)  }
 0x67a   : > { %11651 = vmatprep.subr.bf16.mxu1 (%p2843_p6), %v11871_v51  ;;  %v11882_v51 = vld [vmem:[%s17581_s8 + $0x2e4] ss:$16 sps:$4 sm:$0xff] (%p2843_p6)  }
 0x67b   : > { %11612 = vmatpush3.bf16.msra.mxu0 (%p2843_p6), %v11870_v16  ;;  %v11880_v16 = vld [vmem:[%s17581_s8 + $0x2e0] ss:$16 sps:$4 sm:$0xff] (%p2843_p6)  }
 0x67c   : > { %11729 = vmatprep.subr.bf16.mxu0 (%p2843_p6), %v11873_v42 }
 0x67d   : > { %11652 = vmatpush3.bf16.msra.mxu1 (%p2843_p6), %v11872_v43  ;;  %v11886_v43 = vld [vmem:[%s17581_s8 + $0x2c0] ss:$16 sps:$4 sm:$0xff] (%p2843_p6)  }
 0x67e   : > { %8852 = vmatprep.subr.bf16.mxu1 (%p2843_p6), %v11879_v59 }
 0x6cf   : >> { %v2862_v63 = vpop.permute.xlu0 %2861 }
 0x6d0   : >> { %v2891_v34 = vpop.permute.xlu1 %2890  ;;  %2865 = vst.msk [vmem:[%s2856_s26] sm:$0x7f] %vm2864_vm14, %v2862_v63  ;;  %v11875_v63 = vld [vmem:[%s17579_s6 + $0x108] sm:$0xff] (%p2843_p6)  }
 0x6d1   : >> { %2893 = vst.msk [vmem:[%s2856_s26 + $0x10] sm:$0x7f] %vm2864_vm14, %v2891_v34  ;;  %2845 = sbr.rel (!%p2843_p6) target bundleno = 1620 (0x654), region = 159 }
 0x6d3   : >> { %v2880_v44 = vpop.permute.xlu0 %2879 }
 0x6d4   : >> { %v2903_v38 = vpop.permute.xlu1 %2902  ;;  %2882 = vst.msk [vmem:[%s2856_s26 + $0x8] sm:$0x7f] %vm2864_vm14, %v2880_v44 }
 0x6d5   : >> { %2905 = vst.msk [vmem:[%s2856_s26 + $0x18] sm:$0x7f] %vm2864_vm14, %v2903_v38 }
 0x6dc   : > { %v2913_v14 = vld [vmem:[#allocation6 + $0x8] sm:$0xff]  ;;  %v2918_v8 = vld [vmem:[#allocation6 + $0x30] sm:$0xff]  ;;  %v2912_v45 = vld [vmem:[#allocation6] sm:$0xff] }
 0x6dd   : > { %v2948_v57 = vpack.c.bf16 %v2918_v8, %v2913_v14  ;;  %v2917_v46 = vld [vmem:[#allocation6 + $0x28] sm:$0xff]  ;;  %v2915_v52 = vld [vmem:[#allocation6 + $0x18] sm:$0xff]  ;;  %v2920_v37 = vld [vmem:[#allocation6 + $0x40] sm:$0xff] }
 0x6de   : > { %v2947_v2 = vpack.c.bf16 %v2917_v46, %v2912_v45  ;;  %v2950_v11 = vpack.c.bf16 %v2920_v37, %v2915_v52  ;;  %v2914_v48 = vld [vmem:[#allocation6 + $0x10] sm:$0xff]  ;;  %v2919_v5 = vld [vmem:[#allocation6 + $0x38] sm:$0xff]  ;;  %v2928_v6 = vld [vmem:[#allocation6 + $0x80] sm:$0xff] }
 0x6df   : > { %3306 = vmatprep.mubr.bf16.mxu0 %v2948_v57  ;;  %v2923_v56 = vld [vmem:[#allocation6 + $0x58] sm:$0xff]  ;;  %v2949_v62 = vpack.c.bf16 %v2919_v5, %v2914_v48  ;;  %v2922_v32 = vld [vmem:[#allocation6 + $0x50] sm:$0xff]  ;;  %v2925_v35 = vld [vmem:[#allocation6 + $0x68] sm:$0xff] }
 0x6e0   : > { %3307 = vmatmul.mubr.bf16.vlgmr.msra.gmra.mxu0 %v2947_v2  ;;  %v2927_v0 = vld [vmem:[#allocation6 + $0x78] sm:$0xff]  ;;  %3370 = vmatprep.mubr.bf16.mxu1 %v2950_v11  ;;  %v2953_v30 = vpack.c.bf16 %v2928_v6, %v2923_v56  ;;  %v2930_v28 = vld [vmem:[#allocation6 + $0x90] sm:$0xff]  ;;  %v2924_v29 = vld [vmem:[#allocation6 + $0x60] sm:$0xff] }
 0x6e1   : > { %11730 = vmatpush3.bf16.msra.mxu0 %v11873_v42  ;;  %3371 = vmatmul.mubr.bf16.vlgmr.msra.gmra.mxu1 %v2949_v62  ;;  %v2955_v40 = vpack.c.bf16 %v2930_v28, %v2925_v35  ;;  %v2929_v33 = vld [vmem:[#allocation6 + $0x88] sm:$0xff]  ;;  %v2938_v41 = vld [vmem:[#allocation6 + $0xd0] sm:$0xff]  ;;  %v2952_v26 = vpack.c.bf16 %v2927_v0, %v2922_v32  ;;  %v2935_v34 = vld [vmem:[#allocation6 + $0xb8] sm:$0xff] }
 0x6e2   : > { %3314 = vmatprep.mubr.bf16.mxu0 %v2953_v30  ;;  %11731 = vmatprep.subr.bf16.mxu0 %v11874_v31  ;;  %v2933_v39 = vld [vmem:[#allocation6 + $0xa8] sm:$0xff]  ;;  %v2954_v44 = vpack.c.bf16 %v2929_v33, %v2924_v29  ;;  %v2940_v38 = vld [vmem:[#allocation6 + $0xe0] sm:$0xff]  ;;  %v2934_v25 = vld [vmem:[#allocation6 + $0xb0] sm:$0xff] }
 0x6e3   : > { %3378 = vmatprep.mubr.bf16.mxu1 %v2955_v40  ;;  %v2958_v27 = vpack.c.bf16 %v2938_v41, %v2933_v39  ;;  %v2960_v47 = vpack.c.bf16 %v2940_v38, %v2935_v34  ;;  %v2932_v36 = vld [vmem:[#allocation6 + $0xa0] sm:$0xff]  ;;  %v2937_v24 = vld [vmem:[#allocation6 + $0xc8] sm:$0xff]  ;;  %v2943_v54 = vld [vmem:[#allocation6 + $0xf8] sm:$0xff]  ;;  %8853 = vmatpush1.bf16.msra.mxu1 %v11877_v13 }
 0x6e4   : > { %v2939_v58 = vld [vmem:[#allocation6 + $0xd8] sm:$0xff]  ;;  %v2945_v22 = vld [vmem:[#allocation6 + $0x108] sm:$0xff]  ;;  %v2957_v23 = vpack.c.bf16 %v2937_v24, %v2932_v36  ;;  %v2963_v9 = vpack.c.bf16 %v2943_v54, %v2943_v54  ;;  %v2942_v20 = vld [vmem:[#allocation6 + $0xf0] sm:$0xff] }
 0x6e5   : > { %11732 = vmatpush3.bf16.msra.mxu0 %v11874_v31  ;;  %v2959_v12 = vpack.c.bf16 %v2939_v58, %v2934_v25  ;;  %v2965_v21 = vpack.c.bf16 %v2945_v22, %v2945_v22  ;;  %v2916_v55 = vld [vmem:[#allocation6 + $0x20] sm:$0xff]  ;;  %v2921_v60 = vld [vmem:[#allocation6 + $0x48] sm:$0xff]  ;;  %v2962_v18 = vpack.c.bf16 %v2942_v20, %v2942_v20  ;;  %v2926_v17 = vld [vmem:[#allocation6 + $0x70] sm:$0xff] }
 0x6e6   : > { %11733 = vmatprep.subr.bf16.mxu0 %v11875_v63  ;;  %v2944_v61 = vld [vmem:[#allocation6 + $0x100] sm:$0xff]  ;;  %v2951_v19 = vpack.c.bf16 %v2921_v60, %v2916_v55  ;;  %v2931_v53 = vld [vmem:[#allocation6 + $0x98] sm:$0xff]  ;;  %v2941_v7 = vld [vmem:[#allocation6 + $0xe8] sm:$0xff] }
 0x6e7   : > { %v2964_v15 = vpack.c.bf16 %v2944_v61, %v2944_v61  ;;  %v2936_v3 = vld [vmem:[#allocation6 + $0xc0] sm:$0xff]  ;;  %v2956_v49 = vpack.c.bf16 %v2931_v53, %v2926_v17  ;;  %v2946_v4 = vld [vmem:[#allocation6 + $0x110] sm:$0xff] }
 0x6e8   : > { %3315 = vmatmul.mubr.bf16.gmra.mxu0 %v2952_v26  ;;  %v2961_v1 = vpack.c.bf16 %v2941_v7, %v2936_v3  ;;  %v2966_v10 = vpack.c.bf16 %v2946_v4, %v2946_v4  ;;  %v11885_v14 = vld [vmem:[%s17581_s8 + $0xc4] ss:$16 sps:$4 sm:$0xff]   ;;  %v11883_v57 = vld [vmem:[%s17581_s8 + $0xc0] ss:$16 sps:$4 sm:$0xff]  }
 0x6e9   : > { %3322 = vmatprep.mubr.bf16.mxu0 %v2958_v27  ;;  %11734 = vmatpush3.bf16.msra.mxu0 %v11875_v63  ;;  %v11888_v8 = vld [vmem:[%s17581_s8 + $0x2c4] ss:$16 sps:$4 sm:$0xff]   ;;  %v11889_v2 = vld [vmem:[%s17581_s8 + $0xa0] ss:$16 sps:$4 sm:$0xff]  }
 0x6ea   : > { %3379 = vmatmul.mubr.bf16.gmra.mxu1 %v2954_v44  ;;  %11735 = vmatprep.subr.bf16.mxu0 %v11876_v50  ;;  %v11891_v45 = vld [vmem:[%s17581_s8 + $0xa4] ss:$16 sps:$4 sm:$0xff]   ;;  %v11892_v42 = vld [vmem:[%s17581_s8 + $0x2a0] ss:$16 sps:$4 sm:$0xff]  }
 0x6eb   : > { %3386 = vmatprep.mubr.bf16.mxu1 %v2960_v47  ;;  %8854 = vmatprep.subr.bf16.mxu1 %v11885_v14  ;;  %v11894_v46 = vld [vmem:[%s17581_s8 + $0x2a4] ss:$16 sps:$4 sm:$0xff]   ;;  %v11895_v11 = vld [vmem:[%s17581_s8 + $0x80] ss:$16 sps:$4 sm:$0xff]  }
 0x6ec   : > { %8855 = vmatpush1.bf16.msra.mxu1 %v11883_v57  ;;  %v11897_v52 = vld [vmem:[%s17581_s8 + $0x84] ss:$16 sps:$4 sm:$0xff]   ;;  %v11898_v48 = vld [vmem:[%s17581_s8 + $0x280] ss:$16 sps:$4 sm:$0xff]  }
 0x6ed   : > { %11736 = vmatpush3.bf16.msra.mxu0 %v11876_v50  ;;  %8856 = vmatprep.subr.bf16.mxu1 %v11891_v45  ;;  %v11900_v37 = vld [vmem:[%s17581_s8 + $0x284] ss:$16 sps:$4 sm:$0xff]   ;;  %v11901_v56 = vld [vmem:[%s17581_s8 + $0x60] ss:$16 sps:$4 sm:$0xff]  }
 0x6ee   : > { %8893 = vmatprep.subr.bf16.mxu0 %v11882_v51  ;;  %v11903_v5 = vld [vmem:[%s17581_s8 + $0x64] ss:$16 sps:$4 sm:$0xff]   ;;  %v11904_v6 = vld [vmem:[%s17581_s8 + $0x260] ss:$16 sps:$4 sm:$0xff]  }
 0x6ef   : > { %v11906_v62 = vld [vmem:[%s17581_s8 + $0x264] ss:$16 sps:$4 sm:$0xff]   ;;  %v11907_v30 = vld [vmem:[%s17581_s8 + $0x40] ss:$16 sps:$4 sm:$0xff]  }
 0x6f0   : > { %3323 = vmatmul.mubr.bf16.gmra.mxu0 %v2957_v23  ;;  %8857 = vmatpush1.bf16.msra.mxu1 %v11889_v2  ;;  %v11909_v32 = vld [vmem:[%s17581_s8 + $0x44] ss:$16 sps:$4 sm:$0xff]   ;;  %v11910_v31 = vld [vmem:[%s17581_s8 + $0x240] ss:$16 sps:$4 sm:$0xff]  }
 0x6f1   : > { %3330 = vmatprep.mubr.bf16.mxu0 %v2963_v9  ;;  %8858 = vmatprep.subr.bf16.mxu1 %v11897_v52  ;;  %v11912_v0 = vld [vmem:[%s17581_s8 + $0x244] ss:$16 sps:$4 sm:$0xff]   ;;  %v11913_v29 = vld [vmem:[%s17581_s8 + $0x20] ss:$16 sps:$4 sm:$0xff]  }
 0x6f2   : > { %3387 = vmatmul.mubr.bf16.gmra.mxu1 %v2959_v12  ;;  %v11915_v35 = vld [vmem:[%s17581_s8 + $0x24] ss:$16 sps:$4 sm:$0xff]   ;;  %v11916_v40 = vld [vmem:[%s17581_s8 + $0x220] ss:$16 sps:$4 sm:$0xff]  }
 0x6f3   : > { %3394 = vmatprep.mubr.bf16.mxu1 %v2965_v21  ;;  %v11918_v28 = vld [vmem:[%s17581_s8 + $0x224] ss:$16 sps:$4 sm:$0xff]   ;;  %v11919_v41 = vld [vmem:[%s17581_s8] ss:$16 sps:$4 sm:$0xff]  }
 0x6f4   : > { %8859 = vmatpush1.bf16.msra.mxu1 %v11895_v11  ;;  %v11921_v33 = vld [vmem:[%s17581_s8 + $0x4] ss:$16 sps:$4 sm:$0xff]   ;;  %v11922_v26 = vld [vmem:[%s17581_s8 + $0x200] ss:$16 sps:$4 sm:$0xff]  }
 0x6f5   : > { %8860 = vmatprep.subr.bf16.mxu1 %v11903_v5  ;;  %v11924_v39 = vld [vmem:[%s17581_s8 + $0x204] ss:$16 sps:$4 sm:$0xff]   ;;  %v11925_v34 = vld [vmem:[%s17581_s8 + $0x1e0] ss:$16 sps:$4 sm:$0xff]   ;;  %v13131_v5 = vmov 1966171168  }
 0x6f6   : > { %v11927_v27 = vld [vmem:[%s17581_s8 + $0x1e4] ss:$16 sps:$4 sm:$0xff]   ;;  %v11928_v44 = vld [vmem:[%s17581_s8 + $0x3e0] ss:$16 sps:$4 sm:$0xff]  }
 0x6f7   : > { %v11930_v63 = vld [vmem:[%s17581_s8 + $0x3e4] ss:$16 sps:$4 sm:$0xff]   ;;  %v11931_v50 = vld [vmem:[%s17581_s8 + $0x1c0] ss:$16 sps:$4 sm:$0xff]  }
 0x6f8   : > { %3331 = vmatmul.mubr.bf16.gmra.mxu0 %v2962_v18  ;;  %8861 = vmatpush1.bf16.msra.mxu1 %v11901_v56  ;;  %v11933_v38 = vld [vmem:[%s17581_s8 + $0x1c4] ss:$16 sps:$4 sm:$0xff]   ;;  %v11934_v36 = vld [vmem:[%s17581_s8 + $0x3c0] ss:$16 sps:$4 sm:$0xff]   ;;  %v3480_v56 = vunpack.c.l.s4 %v13131_v5 }
 0x6f9   : > { %11737 = vmatprep.mubr.msk.bf16.mxu0 %vm2822_vm12, %v2951_v19  ;;  %8862 = vmatprep.subr.bf16.mxu1 %v11909_v32  ;;  %v11936_v47 = vld [vmem:[%s17581_s8 + $0x3c4] ss:$16 sps:$4 sm:$0xff]   ;;  %v14696_v13 = vld [vmem:[%s17580_s7] ss:$0 sm:$0xff] }
 0x6fa   : > { %3395 = vmatmul.mubr.bf16.gmra.mxu1 %v2964_v15 }
 0x6fc   : > { %8863 = vmatpush1.bf16.msra.mxu1 %v11907_v30 }
 0x6fd   : > { %8864 = vmatprep.subr.bf16.mxu1 %v11915_v35 }
 0x700   : > { %11738 = vmatmul.mubr.msk.bf16.vlgmr.msra.gmra.mxu0 %vm2822_vm12, %v2956_v49  ;;  %8865 = vmatpush1.bf16.msra.mxu1 %v11913_v29 }
 0x701   : > { %11741 = vmatprep.mubr.msk.bf16.mxu0 %vm2822_vm12, %v2961_v1  ;;  %8894 = vmatpush1.bf16.msra.mxu0 %v11880_v16 }
 0x702   : > { %8895 = vmatprep.subr.bf16.mxu0 %v11888_v8  ;;  %8866 = vmatprep.subr.bf16.mxu1 %v11921_v33 }
 0x704   : > { %8867 = vmatpush1.bf16.msra.mxu1 %v11919_v41  ;;  %v3481_v41 = vunpack.c.0.s8 %v3480_v56 }
 0x705   : > { %8896 = vmatpush1.bf16.msra.mxu0 %v11886_v43  ;;  %8868 = vmatprep.subr.bf16.mxu1 %v11927_v27 }
 0x706   : > { %8897 = vmatprep.subr.bf16.mxu0 %v11894_v46 }
 0x708   : > { %11742 = vmatmul.mubr.msk.bf16.gmra.mxu0 %vm2822_vm12, %v2966_v10  ;;  %8869 = vmatpush2.bf16.msra.mxu1 %v11925_v34 }
 0x709   : > { %8898 = vmatpush1.bf16.msra.mxu0 %v11892_v42  ;;  %8870 = vmatprep.subr.bf16.mxu1 %v11933_v38 }
 0x70a   : > { %8899 = vmatprep.subr.bf16.mxu0 %v11900_v37 }
 0x70c   : > { %8871 = vmatpush2.bf16.msra.mxu1 %v11931_v50 }
 0x70d   : > { %8900 = vmatpush1.bf16.msra.mxu0 %v11898_v48  ;;  %v3473_v48 = vlaneseq }
 0x70e   : > { %8901 = vmatprep.subr.bf16.mxu0 %v11906_v62 }
 0x70f   : > { %vm14708_vm15 = vcmp.lt.s32.totalorder %v3473_v48, 64  ;;  %vm3504_vm0 = vcmp.ge.s32.totalorder %v3473_v48, 64  ;;  %vm3505_vm1 = vcmp.lt.s32.totalorder %v3473_v48, 128 }
 0x710   : > { %vm14991_vm3 = vmand %vm3504_vm0, %vm3505_vm1 }
 0x711   : > { %8902 = vmatpush1.bf16.msra.mxu0 %v11904_v6 }
 0x712   : > { %8903 = vmatprep.subr.bf16.mxu0 %v11912_v0 }
 0x715   : > { %8904 = vmatpush1.bf16.msra.mxu0 %v11910_v31 }
 0x716   : > { %8905 = vmatprep.subr.bf16.mxu0 %v11918_v28 }
 0x719   : > { %8906 = vmatpush1.bf16.msra.mxu0 %v11916_v40 }
 0x71a   : > { %8907 = vmatprep.subr.bf16.mxu0 %v11924_v39 }
 0x71d   : > { %8908 = vmatpush1.bf16.msra.mxu0 %v11922_v26  ;;  %v14705_v26 = vshrl.u32 %v3473_v48, 7 }
 0x71e   : > { %8909 = vmatprep.subr.bf16.mxu0 %v11930_v63 }
 0x721   : > { %8910 = vmatpush2.bf16.msra.mxu0 %v11928_v44 }
 0x722   : > { %8911 = vmatprep.subr.bf16.mxu0 %v11936_v47 }
 0x725   : > { %8912 = vmatpush2.bf16.msra.mxu0 %v11934_v36 }
 0x7a0   : > { %v11613_v24 = vpop.f32.mrf.mxu0 }
 0x7a1   : > { %v11653_v54 = vpop.f32.mrf.mxu1 }
 0x7a2   : > { %v11614_v25 = vpop.f32.mrf.mxu0 }
 0x7a3   : > { %v11654_v22 = vpop.f32.mrf.mxu1  ;;  %v11615_v51 = vadd.f32 %v11614_v25, %v11613_v24  ;;  %v11937_v24 = vld [vmem:[%s17581_s8 + $0x1a0] ss:$16 sps:$4 sm:$0xff]   ;;  %v11939_v25 = vld [vmem:[%s17581_s8 + $0x1a4] ss:$16 sps:$4 sm:$0xff]  }
 0x7a4   : > { %v11616_v58 = vpop.f32.mrf.mxu0  ;;  %v11655_v52 = vadd.f32 %v11654_v22, %v11653_v54  ;;  %v11940_v54 = vld [vmem:[%s17581_s8 + $0x3a0] ss:$16 sps:$4 sm:$0xff]   ;;  %8872 = vmatprep.subr.bf16.mxu1 %v11939_v25 }
 0x7a5   : > { %v11656_v9 = vpop.f32.mrf.mxu1  ;;  %v3309_v42 = vadd.f32 %v11615_v51, %v14696_v13  ;;  %8873 = vmatpush2.bf16.msra.mxu1 %v11937_v24  ;;  %v11948_v51 = vld [vmem:[%s17581_s8 + $0x384] ss:$16 sps:$4 sm:$0xff]  }
 0x7a6   : > { %v11617_v23 = vpop.f32.mrf.mxu0 }
 0x7a7   : > { %v11657_v20 = vpop.f32.mrf.mxu1  ;;  %v11618_v37 = vadd.f32 %v11617_v23, %v11616_v58  ;;  %v3373_v33 = vadd.f32 %v11655_v52, %v3309_v42 }
 0x7a8   : > { %v11619_v12 = vpop.f32.mrf.mxu0  ;;  %v11658_v29 = vadd.f32 %v11657_v20, %v11656_v9  ;;  %v11942_v9 = vld [vmem:[%s17581_s8 + $0x3a4] ss:$16 sps:$4 sm:$0xff]  }
 0x7a9   : > { %v3312_v28 = vadd.f32 %v11618_v37, %v14696_v13  ;;  %8913 = vmatprep.subr.bf16.mxu0 %v11942_v9  ;;  %v11949_v37 = vld [vmem:[%s17581_s8 + $0x160] ss:$16 sps:$4 sm:$0xff]  }
 0x7aa   : > { %v11620_v21 = vpop.f32.mrf.mxu0  ;;  %v11659_v55 = vpop.f32.mrf.mxu1  ;;  %8914 = vmatpush2.bf16.msra.mxu0 %v11940_v54 }
 0x7ab   : > { %v11621_v10 = vadd.f32 %v11620_v21, %v11619_v12  ;;  %v3376_v23 = vadd.f32 %v11658_v29, %v3312_v28  ;;  %v14732_v21 = vsub.s32 %v3481_v41, %v14705_v26  ;;  %8915 = vmatprep.subr.bf16.mxu0 %v11948_v51 }
 0x7ac   : > { %v11622_v60 = vpop.f32.mrf.mxu0  ;;  %v11660_v61 = vpop.f32.mrf.mxu1 }
 0x7ad   : > { %v3317_v57 = vadd.f32 %v11621_v10, %v14696_v13  ;;  %v11661_v43 = vadd.f32 %v11660_v61, %v11659_v55 }
 0x7ae   : > { %v11623_v18 = vpop.f32.mrf.mxu0  ;;  %v11662_v19 = vpop.f32.mrf.mxu1 }
 0x7af   : > { %v11624_v45 = vadd.f32 %v11623_v18, %v11622_v60  ;;  %v3381_v32 = vadd.f32 %v11661_v43, %v3317_v57 }
 0x7b0   : > { %v11625_v15 = vpop.f32.mrf.mxu0  ;;  %v11663_v17 = vpop.f32.mrf.mxu1 }
 0x7b1   : > { %v3320_v0 = vadd.f32 %v11624_v45, %v14696_v13  ;;  %v11664_v30 = vadd.f32 %v11663_v17, %v11662_v19 }
 0x7b2   : > { %v11626_v53 = vpop.f32.mrf.mxu0  ;;  %v11665_v3 = vpop.f32.mrf.mxu1 }
 0x7b3   : > { %v11627_v39 = vadd.f32 %v11626_v53, %v11625_v15  ;;  %v3384_v50 = vadd.f32 %v11664_v30, %v3320_v0  ;;  %v11943_v53 = vld [vmem:[%s17581_s8 + $0x180] ss:$16 sps:$4 sm:$0xff]  }
 0x7b4   : > { %v11628_v7 = vpop.f32.mrf.mxu0  ;;  %v11666_v49 = vpop.f32.mrf.mxu1 }
 0x7b5   : > { %v3325_v12 = vadd.f32 %v11627_v39, %v14696_v13  ;;  %v11667_v20 = vadd.f32 %v11666_v49, %v11665_v3  ;;  %v11945_v3 = vld [vmem:[%s17581_s8 + $0x184] ss:$16 sps:$4 sm:$0xff]  }
 0x7b6   : > { %v11629_v1 = vpop.f32.mrf.mxu0  ;;  %v14691_v4 = vpop.f32.mrf.mxu1  ;;  %8874 = vmatprep.subr.bf16.mxu1 %v11945_v3  ;;  %v11957_v39 = vld [vmem:[%s17581_s8 + $0x144] ss:$16 sps:$4 sm:$0xff]  }
 0x7b7   : > { %v11630_v58 = vadd.f32 %v11629_v1, %v11628_v7  ;;  %v11946_v7 = vld [vmem:[%s17581_s8 + $0x380] ss:$16 sps:$4 sm:$0xff]   ;;  %8875 = vmatpush2.bf16.msra.mxu1 %v11943_v53  ;;  %v11966_v53 = vld [vmem:[%s17581_s8 + $0x324] ss:$16 sps:$4 sm:$0xff]  }
 0x7b8   : > { %v11631_v59 = vpop.f32.mrf.mxu0  ;;  %v14698_v16 = vpop.f32.mrf.mxu1  ;;  %8916 = vmatpush2.bf16.msra.mxu0 %v11946_v7 }
 0x7b9   : > { %v3328_v49 = vadd.f32 %v11630_v58, %v14696_v13  ;;  %v11670_v1 = vadd.f32 %v14698_v16, %v14691_v4 }
 0x7ba   : > { %v11632_v14 = vpop.f32.mrf.mxu0  ;;  %v11671_v8 = vpop.f32.mrf.mxu1 }
 0x7bb   : > { %v11633_v6 = vadd.f32 %v11632_v14, %v11631_v59 }
 0x7bc   : > { %v11634_v46 = vpop.f32.mrf.mxu0  ;;  %v11672_v2 = vpop.f32.mrf.mxu1 }
 0x7bd   : > { %v3333_v34 = vadd.f32 %v11633_v6, %v14696_v13  ;;  %v11673_v44 = vadd.f32 %v11672_v2, %v11671_v8  ;;  %v3389_v8 = vadd.f32 %v11667_v20, %v3325_v12  ;;  %v11952_v6 = vld [vmem:[%s17581_s8 + $0x360] ss:$16 sps:$4 sm:$0xff]  }
 0x7be   : > { %v11635_v11 = vpop.f32.mrf.mxu0  ;;  %v11674_v62 = vpop.f32.mrf.mxu1  ;;  %v11958_v12 = vld [vmem:[%s17581_s8 + $0x340] ss:$16 sps:$4 sm:$0xff]  }
 0x7bf   : > { %v3397_v19 = vadd.f32 %v11673_v44, %v3333_v34  ;;  %v11951_v11 = vld [vmem:[%s17581_s8 + $0x164] ss:$16 sps:$4 sm:$0xff]   ;;  %v3392_v62 = vadd.f32 %v11670_v1, %v3328_v49 }
 0x7c0   : > { %v11739_v31 = vpop.f32.mrf.mxu0  ;;  %v11675_v35 = vpop.f32.mrf.mxu1  ;;  %8876 = vmatprep.subr.bf16.mxu1 %v11951_v11 }
 0x7c1   : > { %v3445_v40 = vadd.f32 %v11739_v31, %v3381_v32  ;;  %v11954_v32 = vld [vmem:[%s17581_s8 + $0x364] ss:$16 sps:$4 sm:$0xff]   ;;  %8877 = vmatpush2.bf16.msra.mxu1 %v11949_v37 }
 0x7c2   : > { %v3436_v27 = vpop.f32.mrf.mxu0  ;;  %8917 = vmatprep.subr.bf16.mxu0 %v11954_v32  ;;  %8878 = vmatprep.subr.bf16.mxu1 %v11957_v39 }
 0x7c3   : > { %v14713_v38 = vmax.f32 %v3445_v40, 0.0  ;;  %v3437_v47 = vadd.f32 %v3436_v27, %v3373_v33  ;;  %8918 = vmatpush2.bf16.msra.mxu0 %v11952_v6 }
 0x7c4   : > { %v11740_v36 = vpop.f32.mrf.mxu0 }
 0x7c5   : > { %v3466_v22 = vmax.f32 %v3437_v47, 0.0  ;;  %3619 = vst.msk [vmem:[#allocation7 + $0x7] sm:$0x1] %vm14708_vm15, %v14713_v38  ;;  %v3448_v55 = vadd.f32 %v11740_v36, %v3384_v50  ;;  %v3627_v5 = vrot.slane %v14713_v38, %v14732_v21  ;;  %v3655_v56 = vcombine.high %v14713_v38, %v14713_v38  ;;  %v11955_v38 = vld [vmem:[%s17581_s8 + $0x140] ss:$16 sps:$4 sm:$0xff]  }
 0x7c6   : > { %v3439_v60 = vpop.f32.mrf.mxu0  ;;  %v11960_v47 = vld [vmem:[%s17581_s8 + $0x344] ss:$16 sps:$4 sm:$0xff]   ;;  %8879 = vmatpush2.bf16.msra.mxu1 %v11955_v38 }
 0x7c7   : > { %v3516_v61 = vcombine.high %v3466_v22, %v3466_v22  ;;  %v3440_v18 = vadd.f32 %v3439_v60, %v3376_v23  ;;  %3477 = vst.msk [vmem:[#allocation7] sm:$0x1] %vm14708_vm15, %v3466_v22  ;;  %v14737_v17 = vrot.slane %v3466_v22, %v14732_v21  ;;  %v3469_v14 = vmax.f32 %v3448_v55, 0.0  ;;  %8919 = vmatprep.subr.bf16.mxu0 %v11960_v47  ;;  %v11963_v55 = vld [vmem:[%s17581_s8 + $0x124] ss:$16 sps:$4 sm:$0xff]  }
 0x7c8   : > { %v11743_v15 = vpop.f32.mrf.mxu0  ;;  %v14797_v41 = vrot.slane %v3655_v56, %v14732_v21  ;;  %v3628_v44 = vcombine.high %v3627_v5, %v3627_v5  ;;  %v3635_v20 = vrot.slane %v3627_v5, %v14732_v21  ;;  %8920 = vmatpush2.bf16.msra.mxu0 %v11958_v12  ;;  %8880 = vmatprep.subr.bf16.mxu1 %v11963_v55 }
 0x7c9   : > { %v3467_v10 = vmax.f32 %v3440_v18, 0.0  ;;  %v3461_v59 = vadd.f32 %v11743_v15, %v3397_v19  ;;  %v3486_v43 = vcombine.high %v14737_v17, %v14737_v17  ;;  %v14757_v45 = vrot.slane %v3516_v61, %v14732_v21  ;;  %v11961_v15 = vld [vmem:[%s17581_s8 + $0x120] ss:$16 sps:$4 sm:$0xff]   ;;  %8921 = vmatprep.subr.bf16.mxu0 %v11966_v53 }
 0x7ca   : > { %v3452_v57 = vpop.f32.mrf.mxu0  ;;  %v3724_v0 = vcombine.high %v3469_v14, %v3469_v14  ;;  %v14800_v27 = vrot.slane %v3469_v14, %v14732_v21  ;;  %v3642_v18 = vrot.slane %v3628_v44, %v14732_v21  ;;  %v3672_v19 = vcombine.high %v14797_v41, %v14797_v41  ;;  %8881 = vmatpush2.bf16.msra.mxu1 %v11961_v15 }
 0x7cb   : > { %v14760_v13 = vrot.slane %v3467_v10, %v14732_v21  ;;  %v3585_v4 = vcombine.high %v3467_v10, %v3467_v10  ;;  %v14762_v16 = vmax.f32 %v3461_v59, 0.0  ;;  %v3453_v46 = vadd.f32 %v3452_v57, %v3389_v8 }
 0x7cc   : > { %v11744_v2 = vpop.f32.mrf.mxu0  ;;  %v3500_v42 = vrot.slane %v3486_v43, %v14732_v21  ;;  %v3533_v52 = vcombine.high %v14757_v45, %v14757_v45  ;;  %v14810_v50 = vrot.slane %v3724_v0, %v14732_v21  ;;  %v3706_v60 = vcombine.high %v14800_v27, %v14800_v27  ;;  %v11970_v0 = vld [vmem:[%s17581_s8 + $0x300] ss:$16 sps:$4 sm:$0xff]  }
 0x7cd   : > { %v3470_v30 = vmax.f32 %v3453_v46, 0.0  ;;  %3897 = vst.msk [vmem:[#allocation7 + $0x15] sm:$0x1] %vm14708_vm15, %v14762_v16  ;;  %v3592_v35 = vrot.slane %v3585_v4, %v14732_v21  ;;  %v3562_v33 = vrot.slane %v14760_v13, %v14732_v21  ;;  %v3933_v36 = vcombine.high %v14762_v16, %v14762_v16  ;;  %v11969_v4 = vld [vmem:[%s17581_s8 + $0x104] ss:$16 sps:$4 sm:$0xff]  }
 0x7ce   : > { %3501 = vrot.lane.b32.xlu0 %v3500_v42, %s13132_s30  ;;  %v3455_v31 = vpop.f32.mrf.mxu0  ;;  %v3540_v29 = vrot.slane %v3533_v52, %v14732_v21  ;;  %v3511_v40 = vcombine.high %v3500_v42, %v3500_v42  ;;  %v3567_v22 = vcombine.high %v14760_v13, %v14760_v13  ;;  %v3743_v3 = vcombine.high %v14810_v50, %v14810_v50  ;;  %v11964_v13 = vld [vmem:[%s17581_s8 + $0x320] ss:$16 sps:$4 sm:$0xff]   ;;  %v11972_v42 = vld [vmem:[%s17581_s8 + $0x304] ss:$16 sps:$4 sm:$0xff]  }
 0x7cf   : > { %v3456_v28 = vadd.f32 %v3455_v31, %v3392_v62  ;;  %3758 = vst.msk [vmem:[#allocation7 + $0xe] sm:$0x1] %vm14708_vm15, %v3470_v30  ;;  %v3794_v24 = vcombine.high %v3470_v30, %v3470_v30  ;;  %v3599_v58 = vrot.slane %v3592_v35, %v14732_v21  ;;  %v3604_v23 = vcombine.high %v3592_v35, %v3592_v35  ;;  %v11967_v2 = vld [vmem:[%s17581_s8 + $0x100] ss:$16 sps:$4 sm:$0xff]   ;;  %v11975_v31 = vld [vmem:[%s17581_s8 + $0x4e4] ss:$16 sps:$4 sm:$0xff]  }
 0x7d0   : > { %3541 = vrot.lane.b32.xlu1 %v3540_v29, %s13132_s30  ;;  %v3577_v9 = vcombine.high %v3562_v33, %v3562_v33  ;;  %v14847_v7 = vrot.slane %v14762_v16, %v14732_v21  ;;  %v14850_v49 = vrot.slane %v3933_v36, %v14732_v21  ;;  %v3530_v1 = vrot.slane %v14757_v45, %v14732_v21 }
 0x7d1   : > { %v3471_v34 = vmax.f32 %v3456_v28, 0.0  ;;  %v14856_v10 = vrot.slane %v3470_v30, %v14732_v21  ;;  %v14859_v59 = vrot.slane %v3794_v24, %v14732_v21  ;;  %v3614_v14 = vcombine.high %v3599_v58, %v3599_v58  ;;  %8922 = vmatpush2.bf16.msra.mxu0 %v11964_v13  ;;  %8882 = vmatprep.subr.bf16.mxu1 %v11969_v4  ;;  %v11978_v28 = vld [vmem:[%s17581_s8 + $0x6e4] ss:$16 sps:$4 sm:$0xff]  }
 0x7d2   : > { %3512 = vrot.lane.b32.xlu0 %v3511_v40, %s13132_s30  ;;  %3532 = vst.msk [vmem:[#allocation7 + $0x2] sm:$0x1] %vm14708_vm15, %v3530_v1  ;;  %v3493_v8 = vrot.slane %v14737_v17, %v14732_v21  ;;  %v3545_v57 = vcombine.high %v3530_v1, %v3530_v1  ;;  %v3574_v43 = vrot.slane %v3567_v22, %v14732_v21  ;;  %v15030_v13 = vsub.s32 5, %v14705_v26 }
 0x7d3   : > { %v14816_v25 = vrot.slane %v3471_v34, %v14732_v21  ;;  %v3863_v54 = vcombine.high %v3471_v34, %v3471_v34  ;;  %v3611_v45 = vrot.slane %v3604_v23, %v14732_v21  ;;  %v3647_v17 = vcombine.high %v3635_v20, %v3635_v20  ;;  %8923 = vmatprep.subr.bf16.mxu0 %v11972_v42 }
 0x7d4   : > { %3563 = vrot.lane.b32.xlu1 %v3562_v33, %s13132_s30  ;;  %v3669_v46 = vrot.slane %v14797_v41, %v14732_v21  ;;  %v3508_v52 = vcombine.high %v3493_v8, %v3493_v8  ;;  %3547 = vst.msk [vmem:[#allocation7 + $0x3] sm:$0x1] %vm14708_vm15, %v3545_v57  ;;  %3576 = vst.msk [vmem:[#allocation7 + $0x4] sm:$0x1] %vm14708_vm15, %v3574_v43  ;;  %v3582_v37 = vcombine.high %v3574_v43, %v3574_v43 }
 0x7d5   : > { %v14831_v61 = vrot.slane %v3863_v54, %v14732_v21  ;;  %v3845_v51 = vcombine.high %v14816_v25, %v14816_v25  ;;  %3613 = vst.msk [vmem:[#allocation7 + $0x6] sm:$0x1] %vm14708_vm15, %v3611_v45  ;;  %v3713_v11 = vrot.slane %v3706_v60, %v14732_v21  ;;  %3649 = vst.msk [vmem:[#allocation7 + $0x8] sm:$0x1] %vm14708_vm15, %v3647_v17  ;;  %8883 = vmatpush2.bf16.msra.mxu1 %v11967_v2 }
 0x7d6   : > { %3578 = vrot.lane.b32.xlu0 %v3577_v9, %s13132_s30  ;;  %3671 = vst.msk [vmem:[#allocation7 + $0x9] sm:$0x1] %vm14708_vm15, %v3669_v46  ;;  %v3684_v5 = vcombine.high %v3669_v46, %v3669_v46  ;;  %v3750_v56 = vrot.slane %v3743_v3, %v14732_v21  ;;  %v3774_v62 = vrot.slane %v14856_v10, %v14732_v21  ;;  %3510 = vst.msk [vmem:[#allocation7 + $0x1] sm:$0x1] %vm14708_vm15, %v3508_v52 }
 0x7d7   : > { %v3882_v16 = vcombine.high %v14831_v61, %v14831_v61  ;;  %v3808_v6 = vrot.slane %v14859_v59, %v14732_v21  ;;  %v3650_v32 = vcombine.high %v3642_v18, %v3642_v18  ;;  %3584 = vst.msk [vmem:[#allocation7 + $0x5] sm:$0x1] %vm14708_vm15, %v3582_v37  ;;  %3715 = vst.msk [vmem:[#allocation7 + $0xb] sm:$0x1] %vm14708_vm15, %v3713_v11  ;;  %8924 = vmatpush2.bf16.msra.mxu0 %v11970_v0 }
 0x7d8   : > { %3600 = vrot.lane.b32.xlu1 %v3599_v58, %s13132_s30  ;;  %v3721_v30 = vcombine.high %v3713_v11, %v3713_v11  ;;  %v3852_v35 = vrot.slane %v3845_v51, %v14732_v21  ;;  %3686 = vst.msk [vmem:[#allocation7 + $0xa] sm:$0x1] %vm14708_vm15, %v3684_v5  ;;  %3752 = vst.msk [vmem:[#allocation7 + $0xd] sm:$0x1] %vm14708_vm15, %v3750_v56  ;;  %v3786_v29 = vcombine.high %v3774_v62, %v3774_v62 }
 0x7d9   : > { %3810 = vst.msk [vmem:[#allocation7 + $0x10] sm:$0x1] %vm14708_vm15, %v3808_v6  ;;  %v3823_v40 = vcombine.high %v3808_v6, %v3808_v6  ;;  %v3889_v33 = vrot.slane %v3882_v16, %v14732_v21  ;;  %v3913_v34 = vrot.slane %v14847_v7, %v14732_v21  ;;  %v3679_v44 = vrot.slane %v3672_v19, %v14732_v21  ;;  %v11973_v6 = vld [vmem:[%s17581_s8 + $0x4e0] ss:$16 sps:$4 sm:$0xff]  }
 0x7da   : > { %3615 = vrot.lane.b32.xlu0 %v3614_v14, %s13132_s30  ;;  %3723 = vst.msk [vmem:[#allocation7 + $0xc] sm:$0x1] %vm14708_vm15, %v3721_v30  ;;  %3854 = vst.msk [vmem:[#allocation7 + $0x12] sm:$0x1] %vm14708_vm15, %v3852_v35  ;;  %v3860_v39 = vcombine.high %v3852_v35, %v3852_v35  ;;  %v3701_v38 = vrot.slane %v14800_v27, %v14732_v21  ;;  %v3947_v47 = vrot.slane %v14850_v49, %v14732_v21 }
 0x7db   : > { %3788 = vst.msk [vmem:[#allocation7 + $0xf] sm:$0x1] %vm14708_vm15, %v3786_v29  ;;  %3825 = vst.msk [vmem:[#allocation7 + $0x11] sm:$0x1] %vm14708_vm15, %v3823_v40  ;;  %8934 = vmatprep.subr.bf16.mxu1 %v11975_v31  ;;  %v3925_v41 = vcombine.high %v3913_v34, %v3913_v34  ;;  %8975 = vmatprep.subr.bf16.mxu0 %v11978_v28  ;;  %v3738_v24 = vrot.slane %v14810_v50, %v14732_v21  ;;  %v15016_v8 = vsub.s32 1, %v14705_v26 }
 0x7dc   : > { %3643 = vrot.lane.b32.xlu1 %v3642_v18, %s13132_s30  ;;  %3891 = vst.msk [vmem:[#allocation7 + $0x14] sm:$0x1] %vm14708_vm15, %v3889_v33  ;;  %3862 = vst.msk [vmem:[#allocation7 + $0x13] sm:$0x1] %vm14708_vm15, %v3860_v39  ;;  %v3962_v27 = vcombine.high %v3947_v47, %v3947_v47  ;;  %v3716_v36 = vcombine.high %v3701_v38, %v3701_v38  ;;  %v3767_v54 = vcombine.high %v14856_v10, %v14856_v10  ;;  %v11981_v28 = vld [vmem:[%s17581_s8 + $0x4c4] ss:$16 sps:$4 sm:$0xff]  }
 0x7dd   : > { %3949 = vst.msk [vmem:[#allocation7 + $0x17] sm:$0x1] %vm14708_vm15, %v3947_v47  ;;  %3927 = vst.msk [vmem:[#allocation7 + $0x16] sm:$0x1] %vm14708_vm15, %v3925_v41  ;;  %v3753_v58 = vcombine.high %v3738_v24, %v3738_v24  ;;  %v3811_v23 = vcombine.high %v14859_v59, %v14859_v59  ;;  %v3906_v9 = vcombine.high %v14847_v7, %v14847_v7  ;;  %v15019_v57 = vsub.s32 3, %v14705_v26 }
 0x7de   : > { %3651 = vrot.lane.b32.xlu0 %v3650_v32, %s13132_s30  ;;  %3964 = vst.msk [vmem:[#allocation7 + $0x18] sm:$0x1] %vm14708_vm15, %v3962_v27  ;;  %v3781_v22 = vrot.slane %v3767_v54, %v14732_v21  ;;  %v3840_v63 = vrot.slane %v14816_v25, %v14732_v21  ;;  %v3877_v60 = vrot.slane %v14831_v61, %v14732_v21  ;;  %v15022_v43 = vsub.s32 0, %v14705_v26  ;;  %v11976_v32 = vld [vmem:[%s17581_s8 + $0x6e0] ss:$16 sps:$4 sm:$0xff]  }
 0x7df   : > { %v3818_v12 = vrot.slane %v3811_v23, %v14732_v21  ;;  %v3920_v20 = vrot.slane %v3906_v9, %v14732_v21  ;;  %v3950_v25 = vcombine.high %v14850_v49, %v14850_v49  ;;  %v15025_v45 = vsub.s32 2, %v14705_v26  ;;  %v11984_v29 = vld [vmem:[%s17581_s8 + $0x6c4] ss:$16 sps:$4 sm:$0xff]   ;;  %v11979_v39 = vld [vmem:[%s17581_s8 + $0x4c0] ss:$16 sps:$4 sm:$0xff]  }
 0x7e0   : > { %3680 = vrot.lane.b32.xlu1 %v3679_v44, %s13132_s30  ;;  %v3789_v50 = vcombine.high %v3781_v22, %v3781_v22  ;;  %v3855_v55 = vcombine.high %v3840_v63, %v3840_v63  ;;  %v3892_v18 = vcombine.high %v3877_v60, %v3877_v60  ;;  %v15033_v4 = vsub.s32 7, %v14705_v26  ;;  %v11982_v34 = vld [vmem:[%s17581_s8 + $0x6c0] ss:$16 sps:$4 sm:$0xff]   ;;  %v11990_v47 = vld [vmem:[%s17581_s8 + $0x6a4] ss:$16 sps:$4 sm:$0xff]  }
 0x7e1   : > { %v3928_v19 = vcombine.high %v3920_v20, %v3920_v20  ;;  %v3957_v15 = vrot.slane %v3950_v25, %v14732_v21  ;;  %v11985_v27 = vld [vmem:[%s17581_s8 + $0x4a0] ss:$16 sps:$4 sm:$0xff]   ;;  %v11993_v54 = vld [vmem:[%s17581_s8 + $0x484] ss:$16 sps:$4 sm:$0xff]   ;;  %v15126_v9 = vsub.s32 4, %v14705_v26 }
 0x7e2   : > { %3702 = vrot.lane.b32.xlu0 %v3701_v38, %s13132_s30  ;;  %v11987_v38 = vld [vmem:[%s17581_s8 + $0x4a4] ss:$16 sps:$4 sm:$0xff]   ;;  %v11991_v23 = vld [vmem:[%s17581_s8 + $0x480] ss:$16 sps:$4 sm:$0xff]  }
 0x7e3   : > { %v12020_v61 = vld [vmem:[%s17581_s8 + $0x604] ss:$16 sps:$4 sm:$0xff]  }
 0x7e4   : > { %3717 = vrot.lane.b32.xlu1 %v3716_v36, %s13132_s30  ;;  %v11988_v36 = vld [vmem:[%s17581_s8 + $0x6a0] ss:$16 sps:$4 sm:$0xff]  }
 0x7e6   : > { %3739 = vrot.lane.b32.xlu0 %v3738_v24, %s13132_s30 }
 0x7e8   : > { %3754 = vrot.lane.b32.xlu1 %v3753_v58, %s13132_s30  ;;  %v11996_v58 = vld [vmem:[%s17581_s8 + $0x684] ss:$16 sps:$4 sm:$0xff]  }
 0x7ea   : > { %3782 = vrot.lane.b32.xlu0 %v3781_v22, %s13132_s30 }
 0x7ec   : > { %3790 = vrot.lane.b32.xlu1 %v3789_v50, %s13132_s30  ;;  %v11994_v50 = vld [vmem:[%s17581_s8 + $0x680] ss:$16 sps:$4 sm:$0xff]  }
 0x7ee   : > { %3819 = vrot.lane.b32.xlu0 %v3818_v12, %s13132_s30  ;;  %v11999_v12 = vld [vmem:[%s17581_s8 + $0x464] ss:$16 sps:$4 sm:$0xff]  }
 0x7f0   : > { %3921 = vrot.lane.b32.xlu1 %v3920_v20, %s13132_s30  ;;  %v12002_v20 = vld [vmem:[%s17581_s8 + $0x664] ss:$16 sps:$4 sm:$0xff]  }
 0x7f2   : > { %3856 = vrot.lane.b32.xlu0 %v3855_v55, %s13132_s30  ;;  %v15135_v55 = vsub.s32 6, %v14705_v26 }
 0x7f4   : > { %3841 = vrot.lane.b32.xlu1 %v3840_v63, %s13132_s30 }
 0x7f6   : > { %3893 = vrot.lane.b32.xlu0 %v3892_v18, %s13132_s30 }
 0x7f8   : > { %3878 = vrot.lane.b32.xlu1 %v3877_v60, %s13132_s30 }
 0x7fa   : > { %3929 = vrot.lane.b32.xlu0 %v3928_v19, %s13132_s30 }
 0x7fc   : > { %3958 = vrot.lane.b32.xlu1 %v3957_v15, %s13132_s30 }
 0x840   : > { %v3502_v53 = vpop.permute.xlu0 %3501 }
 0x841   : > { %3507 = vst.msk [vmem:[#allocation7] sm:$0x1] %vm14991_vm3, %v3502_v53  ;;  %v11997_v53 = vld [vmem:[%s17581_s8 + $0x460] ss:$16 sps:$4 sm:$0xff]  }
 0x842   : > { %v3542_v3 = vpop.permute.xlu1 %3541 }
 0x843   : > { %3544 = vst.msk [vmem:[#allocation7 + $0x2] sm:$0x1] %vm14991_vm3, %v3542_v3  ;;  %v12000_v3 = vld [vmem:[%s17581_s8 + $0x660] ss:$16 sps:$4 sm:$0xff]  }
 0x844   : > { %v3513_v7 = vpop.permute.xlu0 %3512 }
 0x845   : > { %3515 = vst.msk [vmem:[#allocation7 + $0x1] sm:$0x1] %vm14991_vm3, %v3513_v7 }
 0x846   : > { %v3564_v21 = vpop.permute.xlu1 %3563 }
 0x847   : > { %3566 = vst.msk [vmem:[#allocation7 + $0x3] sm:$0x1] %vm14991_vm3, %v3564_v21  ;;  %v12005_v21 = vld [vmem:[%s17581_s8 + $0x444] ss:$16 sps:$4 sm:$0xff]  }
 0x848   : > { %v3579_v48 = vpop.permute.xlu0 %3578 }
 0x849   : > { %3581 = vst.msk [vmem:[#allocation7 + $0x4] sm:$0x1] %vm14991_vm3, %v3579_v48  ;;  %v12008_v48 = vld [vmem:[%s17581_s8 + $0x644] ss:$16 sps:$4 sm:$0xff]  }
 0x84a   : > { %v3601_v49 = vpop.permute.xlu1 %3600 }
 0x84b   : > { %3603 = vst.msk [vmem:[#allocation7 + $0x5] sm:$0x1] %vm14991_vm3, %v3601_v49 }
 0x84c   : > { %v3616_v1 = vpop.permute.xlu0 %3615 }
 0x84d   : > { %3618 = vst.msk [vmem:[#allocation7 + $0x6] sm:$0x1] %vm14991_vm3, %v3616_v1  ;;  %v12003_v1 = vld [vmem:[%s17581_s8 + $0x440] ss:$16 sps:$4 sm:$0xff]  }
 0x84e   : > { %v3644_v10 = vpop.permute.xlu1 %3643 }
 0x84f   : > { %3646 = vst.msk [vmem:[#allocation7 + $0x7] sm:$0x1] %vm14991_vm3, %v3644_v10  ;;  %v12006_v10 = vld [vmem:[%s17581_s8 + $0x640] ss:$16 sps:$4 sm:$0xff]  }
 0x850   : > { %v3652_v59 = vpop.permute.xlu0 %3651 }
 0x851   : > { %3654 = vst.msk [vmem:[#allocation7 + $0x8] sm:$0x1] %vm14991_vm3, %v3652_v59 }
 0x852   : > { %v3681_v51 = vpop.permute.xlu1 %3680 }
 0x853   : > { %3683 = vst.msk [vmem:[#allocation7 + $0x9] sm:$0x1] %vm14991_vm3, %v3681_v51  ;;  %v12011_v51 = vld [vmem:[%s17581_s8 + $0x424] ss:$16 sps:$4 sm:$0xff]  }
 0x854   : > { %v3703_v14 = vpop.permute.xlu0 %3702 }
 0x855   : > { %3705 = vst.msk [vmem:[#allocation7 + $0xa] sm:$0x1] %vm14991_vm3, %v3703_v14  ;;  %v12014_v14 = vld [vmem:[%s17581_s8 + $0x624] ss:$16 sps:$4 sm:$0xff]  }
 0x856   : > { %v3718_v16 = vpop.permute.xlu1 %3717  ;;  %v15035_v17 = vld [vmem:[#allocation7] sm:$0xff] }
 0x857   : > { %3720 = vst.msk [vmem:[#allocation7 + $0xb] sm:$0x1] %vm14991_vm3, %v3718_v16  ;;  %v3980_v2 = vrot.slane %v15035_v17, %v15016_v8  ;;  %v3988_v42 = vrot.slane %v15035_v17, %v15019_v57  ;;  %v3976_v52 = vrot.slane %v15035_v17, %v15022_v43  ;;  %v3984_v37 = vrot.slane %v15035_v17, %v15025_v45  ;;  %v12009_v16 = vld [vmem:[%s17581_s8 + $0x420] ss:$16 sps:$4 sm:$0xff]  }
 0x858   : > { %v3740_v46 = vpop.permute.xlu0 %3739  ;;  %v3996_v11 = vrot.slane %v15035_v17, %v15030_v13  ;;  %v4004_v5 = vrot.slane %v15035_v17, %v15033_v4 }
 0x859   : > { %3742 = vst.msk [vmem:[#allocation7 + $0xc] sm:$0x1] %vm14991_vm3, %v3740_v46  ;;  %v15053_v56 = vpack.c.bf16 %v3980_v2, %v3980_v2  ;;  %v15055_v62 = vpack.c.bf16 %v3988_v42, %v3988_v42  ;;  %v15063_v0 = vpack.c.bf16 %v3976_v52, %v3976_v52  ;;  %v15065_v30 = vpack.c.bf16 %v3984_v37, %v3984_v37  ;;  %v12012_v46 = vld [vmem:[%s17581_s8 + $0x620] ss:$16 sps:$4 sm:$0xff]   ;;  %v12017_v2 = vld [vmem:[%s17581_s8 + $0x404] ss:$16 sps:$4 sm:$0xff]  }
 0x85a   : > { %v3755_v31 = vpop.permute.xlu1 %3754  ;;  %v15081_v40 = vpack.c.bf16 %v3996_v11, %v3996_v11  ;;  %v15083_v33 = vpack.c.bf16 %v4004_v5, %v4004_v5  ;;  %v12015_v42 = vld [vmem:[%s17581_s8 + $0x400] ss:$16 sps:$4 sm:$0xff]   ;;  %v12023_v37 = vld [vmem:[%s17581_s8 + $0x5e4] ss:$16 sps:$4 sm:$0xff]  }
 0x85b   : > { %3757 = vst.msk [vmem:[#allocation7 + $0xd] sm:$0x1] %vm14991_vm3, %v3755_v31  ;;  %8884 = vmatprep.mubr.bf16.mxu1 %v15053_v56  ;;  %8925 = vmatprep.mubr.bf16.mxu0 %v15055_v62  ;;  %v12018_v52 = vld [vmem:[%s17581_s8 + $0x600] ss:$16 sps:$4 sm:$0xff]   ;;  %v12026_v11 = vld [vmem:[%s17581_s8 + $0x7e4] ss:$16 sps:$4 sm:$0xff]  }
 0x85c   : > { %v3783_v35 = vpop.permute.xlu0 %3782  ;;  %8885 = vmatmul.mubr.bf16.vlgmr.msra.gmra.mxu1 %v15063_v0  ;;  %8926 = vmatmul.mubr.bf16.vlgmr.msra.gmra.mxu0 %v15065_v30 }
 0x85d   : > { %3785 = vst.msk [vmem:[#allocation7 + $0xe] sm:$0x1] %vm14991_vm3, %v3783_v35  ;;  %8935 = vmatpush1.bf16.msra.mxu1 %v11973_v6  ;;  %8976 = vmatpush1.bf16.msra.mxu0 %v11976_v32  ;;  %v12021_v6 = vld [vmem:[%s17581_s8 + $0x5e0] ss:$16 sps:$4 sm:$0xff]  }
 0x85e   : > { %8966 = vmatprep.mubr.bf16.mxu1 %v15081_v40  ;;  %9007 = vmatprep.mubr.bf16.mxu0 %v15083_v33  ;;  %v3791_v44 = vpop.permute.xlu1 %3790  ;;  %v12024_v32 = vld [vmem:[%s17581_s8 + $0x7e0] ss:$16 sps:$4 sm:$0xff]  }
 0x85f   : > { %3793 = vst.msk [vmem:[#allocation7 + $0xf] sm:$0x1] %vm14991_vm3, %v3791_v44  ;;  %8936 = vmatprep.subr.bf16.mxu1 %v11981_v28  ;;  %8977 = vmatprep.subr.bf16.mxu0 %v11984_v29  ;;  %v12029_v29 = vld [vmem:[%s17581_s8 + $0x5c4] ss:$16 sps:$4 sm:$0xff]  }
 0x860   : > { %v3820_v41 = vpop.permute.xlu0 %3819  ;;  %v12035_v44 = vld [vmem:[%s17581_s8 + $0x5a4] ss:$16 sps:$4 sm:$0xff]  }
 0x861   : > { %3822 = vst.msk [vmem:[#allocation7 + $0x10] sm:$0x1] %vm14991_vm3, %v3820_v41  ;;  %8937 = vmatpush1.bf16.msra.mxu1 %v11979_v39  ;;  %8978 = vmatpush1.bf16.msra.mxu0 %v11982_v34  ;;  %v12032_v39 = vld [vmem:[%s17581_s8 + $0x7c4] ss:$16 sps:$4 sm:$0xff]   ;;  %v12030_v34 = vld [vmem:[%s17581_s8 + $0x7c0] ss:$16 sps:$4 sm:$0xff]  }
 0x862   : > { %v3922_v24 = vpop.permute.xlu1 %3921  ;;  %8938 = vmatprep.subr.bf16.mxu1 %v11987_v38  ;;  %8979 = vmatprep.subr.bf16.mxu0 %v11990_v47  ;;  %v12038_v38 = vld [vmem:[%s17581_s8 + $0x7a4] ss:$16 sps:$4 sm:$0xff]   ;;  %v12033_v47 = vld [vmem:[%s17581_s8 + $0x5a0] ss:$16 sps:$4 sm:$0xff]  }
 0x863   : > { %3924 = vst.msk [vmem:[#allocation7 + $0x15] sm:$0x1] %vm14991_vm3, %v3922_v24  ;;  %v12036_v41 = vld [vmem:[%s17581_s8 + $0x7a0] ss:$16 sps:$4 sm:$0xff]  }
 0x864   : > { %v3857_v22 = vpop.permute.xlu0 %3856  ;;  %v12039_v24 = vld [vmem:[%s17581_s8 + $0x580] ss:$16 sps:$4 sm:$0xff]  }
 0x865   : > { %3859 = vst.msk [vmem:[#allocation7 + $0x12] sm:$0x1] %vm14991_vm3, %v3857_v22  ;;  %8939 = vmatpush1.bf16.msra.mxu1 %v11985_v27  ;;  %8980 = vmatpush1.bf16.msra.mxu0 %v11988_v36  ;;  %v12041_v27 = vld [vmem:[%s17581_s8 + $0x584] ss:$16 sps:$4 sm:$0xff]  }
 0x866   : > { %v3842_v63 = vpop.permute.xlu1 %3841  ;;  %8940 = vmatprep.subr.bf16.mxu1 %v11993_v54  ;;  %8981 = vmatprep.subr.bf16.mxu0 %v11996_v58  ;;  %v15137_v60 = vld [vmem:[#allocation7 + $0x8] sm:$0xff] }
 0x867   : > { %3844 = vst.msk [vmem:[#allocation7 + $0x11] sm:$0x1] %vm14991_vm3, %v3842_v63  ;;  %v15145_v25 = vrot.slane %v15137_v60, %v15030_v13  ;;  %v15149_v19 = vrot.slane %v15137_v60, %v15033_v4  ;;  %v15153_v26 = vrot.slane %v15137_v60, %v15126_v9  ;;  %v15157_v15 = vrot.slane %v15137_v60, %v15135_v55  ;;  %v12044_v36 = vld [vmem:[%s17581_s8 + $0x784] ss:$16 sps:$4 sm:$0xff]   ;;  %v12042_v54 = vld [vmem:[%s17581_s8 + $0x780] ss:$16 sps:$4 sm:$0xff]  }
 0x868   : > { %v3894_v18 = vpop.permute.xlu0 %3893  ;;  %v12047_v58 = vld [vmem:[%s17581_s8 + $0x564] ss:$16 sps:$4 sm:$0xff]  }
 0x869   : > { %3896 = vst.msk [vmem:[#allocation7 + $0x14] sm:$0x1] %vm14991_vm3, %v3894_v18  ;;  %8941 = vmatpush1.bf16.msra.mxu1 %v11991_v23  ;;  %8982 = vmatpush1.bf16.msra.mxu0 %v11994_v50  ;;  %v12050_v22 = vld [vmem:[%s17581_s8 + $0x764] ss:$16 sps:$4 sm:$0xff]   ;;  %v12045_v23 = vld [vmem:[%s17581_s8 + $0x560] ss:$16 sps:$4 sm:$0xff]  }
 0x86a   : > { %v3879_v7 = vpop.permute.xlu1 %3878  ;;  %8942 = vmatprep.subr.bf16.mxu1 %v11999_v12  ;;  %8983 = vmatprep.subr.bf16.mxu0 %v12002_v20  ;;  %v12048_v50 = vld [vmem:[%s17581_s8 + $0x760] ss:$16 sps:$4 sm:$0xff]   ;;  %v12053_v63 = vld [vmem:[%s17581_s8 + $0x544] ss:$16 sps:$4 sm:$0xff]  }
 0x86b   : > { %3881 = vst.msk [vmem:[#allocation7 + $0x13] sm:$0x1] %vm14991_vm3, %v3879_v7  ;;  %v12056_v12 = vld [vmem:[%s17581_s8 + $0x744] ss:$16 sps:$4 sm:$0xff]   ;;  %v12051_v20 = vld [vmem:[%s17581_s8 + $0x540] ss:$16 sps:$4 sm:$0xff]  }
 0x86c   : > { %v3930_v49 = vpop.permute.xlu0 %3929  ;;  %v12054_v18 = vld [vmem:[%s17581_s8 + $0x740] ss:$16 sps:$4 sm:$0xff]  }
 0x86d   : > { %3932 = vst.msk [vmem:[#allocation7 + $0x16] sm:$0x1] %vm14991_vm3, %v3930_v49  ;;  %8943 = vmatpush1.bf16.msra.mxu1 %v11997_v53  ;;  %8984 = vmatpush1.bf16.msra.mxu0 %v12000_v3  ;;  %v12059_v53 = vld [vmem:[%s17581_s8 + $0x524] ss:$16 sps:$4 sm:$0xff]   ;;  %v12057_v7 = vld [vmem:[%s17581_s8 + $0x520] ss:$16 sps:$4 sm:$0xff]  }
 0x86e   : > { %v3959_v59 = vpop.permute.xlu1 %3958  ;;  %8944 = vmatprep.subr.bf16.mxu1 %v12005_v21  ;;  %8985 = vmatprep.subr.bf16.mxu0 %v12008_v48  ;;  %v12062_v3 = vld [vmem:[%s17581_s8 + $0x724] ss:$16 sps:$4 sm:$0xff]   ;;  %v12060_v21 = vld [vmem:[%s17581_s8 + $0x720] ss:$16 sps:$4 sm:$0xff]  }
 0x86f   : > { %3961 = vst.msk [vmem:[#allocation7 + $0x17] sm:$0x1] %vm14991_vm3, %v3959_v59  ;;  %v12065_v48 = vld [vmem:[%s17581_s8 + $0x504] ss:$16 sps:$4 sm:$0xff]   ;;  %v3992_v59 = vrot.slane %v15035_v17, %v15126_v9 }
 0x870   : > { %v12068_v49 = vld [vmem:[%s17581_s8 + $0x704] ss:$16 sps:$4 sm:$0xff]  }
 0x871   : > { %8945 = vmatpush1.bf16.msra.mxu1 %v12003_v1  ;;  %8986 = vmatpush1.bf16.msra.mxu0 %v12006_v10  ;;  %v12063_v1 = vld [vmem:[%s17581_s8 + $0x500] ss:$16 sps:$4 sm:$0xff]  }
 0x872   : > { %8946 = vmatprep.subr.bf16.mxu1 %v12011_v51  ;;  %8987 = vmatprep.subr.bf16.mxu0 %v12014_v14  ;;  %v12066_v10 = vld [vmem:[%s17581_s8 + $0x700] ss:$16 sps:$4 sm:$0xff]   ;;  %v4000_v51 = vrot.slane %v15035_v17, %v15135_v55  ;;  %v12071_v14 = vld [vmem:[%s17581_s8 + $0x8e4] ss:$16 sps:$4 sm:$0xff]  }
 0x873   : > { %v12069_v17 = vld [vmem:[%s17581_s8 + $0x8e0] ss:$16 sps:$4 sm:$0xff]  }
 0x875   : > { %8947 = vmatpush1.bf16.msra.mxu1 %v12009_v16  ;;  %8988 = vmatpush1.bf16.msra.mxu0 %v12012_v46  ;;  %v12074_v16 = vld [vmem:[%s17581_s8 + $0xae4] ss:$16 sps:$4 sm:$0xff]   ;;  %v4012_v46 = vrot.slane %v15137_v60, %v15016_v8 }
 0x876   : > { %8948 = vmatprep.subr.bf16.mxu1 %v12017_v2  ;;  %8989 = vmatprep.subr.bf16.mxu0 %v12020_v61  ;;  %v15213_v5 = vld [vmem:[#allocation7 + $0x10] sm:$0xff]  ;;  %v4020_v2 = vrot.slane %v15137_v60, %v15019_v57  ;;  %v12072_v61 = vld [vmem:[%s17581_s8 + $0xae0] ss:$16 sps:$4 sm:$0xff]  }
 0x877   : > { %v15223_v31 = vrot.slane %v15213_v5, %v15030_v13  ;;  %v15227_v35 = vrot.slane %v15213_v5, %v15033_v4  ;;  %v15231_v28 = vrot.slane %v15213_v5, %v15126_v9  ;;  %v15241_v13 = vrot.slane %v15213_v5, %v15135_v55  ;;  %v12027_v4 = vld [vmem:[%s17581_s8 + $0x5c0] ss:$16 sps:$4 sm:$0xff]  }
 0x878   : > { %v15338_v9 = vpack.c.bf16 %v3992_v59, %v3992_v59  ;;  %v15340_v55 = vpack.c.bf16 %v4000_v51, %v4000_v51  ;;  %v12125_v59 = vld [vmem:[%s17581_s8 + $0x9c4] ss:$16 sps:$4 sm:$0xff]  }
 0x879   : > { %8949 = vmatpush1.bf16.msra.mxu1 %v12015_v42  ;;  %8990 = vmatpush1.bf16.msra.mxu0 %v12018_v52  ;;  %v15345_v42 = vpack.c.bf16 %v4012_v46, %v4012_v46  ;;  %v12077_v52 = vld [vmem:[%s17581_s8 + $0x8c4] ss:$16 sps:$4 sm:$0xff]  }
 0x87a   : > { %8950 = vmatprep.subr.bf16.mxu1 %v12023_v37  ;;  %8991 = vmatprep.subr.bf16.mxu0 %v12026_v11  ;;  %v12080_v37 = vld [vmem:[%s17581_s8 + $0xac4] ss:$16 sps:$4 sm:$0xff]   ;;  %v15355_v11 = vpack.c.bf16 %v4020_v2, %v4020_v2 }
 0x87b   : > { %v12128_v51 = vld [vmem:[%s17581_s8 + $0xbc4] ss:$16 sps:$4 sm:$0xff]  }
 0x87c   : > { %v12131_v46 = vld [vmem:[%s17581_s8 + $0x9a4] ss:$16 sps:$4 sm:$0xff]  }
 0x87d   : > { %8951 = vmatpush2.bf16.msra.mxu1 %v12021_v6  ;;  %8992 = vmatpush2.bf16.msra.mxu0 %v12024_v32  ;;  %v12075_v6 = vld [vmem:[%s17581_s8 + $0x8c0] ss:$16 sps:$4 sm:$0xff]   ;;  %v12134_v2 = vld [vmem:[%s17581_s8 + $0xba4] ss:$16 sps:$4 sm:$0xff]  }
 0x87e   : > { %8952 = vmatprep.subr.bf16.mxu1 %v12029_v29  ;;  %8993 = vmatprep.subr.bf16.mxu0 %v12032_v39  ;;  %v12078_v32 = vld [vmem:[%s17581_s8 + $0xac0] ss:$16 sps:$4 sm:$0xff]   ;;  %v12083_v29 = vld [vmem:[%s17581_s8 + $0x8a4] ss:$16 sps:$4 sm:$0xff]  }
 0x87f   : > { %v12086_v39 = vld [vmem:[%s17581_s8 + $0xaa4] ss:$16 sps:$4 sm:$0xff]  }
 0x881   : > { %8953 = vmatpush2.bf16.msra.mxu1 %v12027_v4  ;;  %8994 = vmatpush2.bf16.msra.mxu0 %v12030_v34  ;;  %v12081_v4 = vld [vmem:[%s17581_s8 + $0x8a0] ss:$16 sps:$4 sm:$0xff]  }
 0x882   : > { %8954 = vmatprep.subr.bf16.mxu1 %v12035_v44  ;;  %8995 = vmatprep.subr.bf16.mxu0 %v12038_v38  ;;  %v12084_v34 = vld [vmem:[%s17581_s8 + $0xaa0] ss:$16 sps:$4 sm:$0xff]   ;;  %v12089_v44 = vld [vmem:[%s17581_s8 + $0x884] ss:$16 sps:$4 sm:$0xff]  }
 0x883   : > { %v12092_v38 = vld [vmem:[%s17581_s8 + $0xa84] ss:$16 sps:$4 sm:$0xff]  }
 0x885   : > { %8955 = vmatpush2.bf16.msra.mxu1 %v12033_v47  ;;  %8996 = vmatpush2.bf16.msra.mxu0 %v12036_v41  ;;  %v12087_v47 = vld [vmem:[%s17581_s8 + $0x880] ss:$16 sps:$4 sm:$0xff]  }
 0x886   : > { %8956 = vmatprep.subr.bf16.mxu1 %v12041_v27  ;;  %8997 = vmatprep.subr.bf16.mxu0 %v12044_v36  ;;  %v12090_v41 = vld [vmem:[%s17581_s8 + $0xa80] ss:$16 sps:$4 sm:$0xff]   ;;  %v12095_v27 = vld [vmem:[%s17581_s8 + $0x864] ss:$16 sps:$4 sm:$0xff]  }
 0x887   : > { %v12098_v36 = vld [vmem:[%s17581_s8 + $0xa64] ss:$16 sps:$4 sm:$0xff]  }
 0x889   : > { %8957 = vmatpush2.bf16.msra.mxu1 %v12039_v24  ;;  %8998 = vmatpush2.bf16.msra.mxu0 %v12042_v54  ;;  %v12093_v24 = vld [vmem:[%s17581_s8 + $0x860] ss:$16 sps:$4 sm:$0xff]  }
 0x88a   : > { %8958 = vmatprep.subr.bf16.mxu1 %v12047_v58  ;;  %8999 = vmatprep.subr.bf16.mxu0 %v12050_v22  ;;  %v12096_v54 = vld [vmem:[%s17581_s8 + $0xa60] ss:$16 sps:$4 sm:$0xff]   ;;  %v12101_v58 = vld [vmem:[%s17581_s8 + $0x844] ss:$16 sps:$4 sm:$0xff]  }
 0x88b   : > { %v12104_v22 = vld [vmem:[%s17581_s8 + $0xa44] ss:$16 sps:$4 sm:$0xff]  }
 0x88d   : > { %8959 = vmatpush2.bf16.msra.mxu1 %v12045_v23  ;;  %9000 = vmatpush2.bf16.msra.mxu0 %v12048_v50  ;;  %v12099_v23 = vld [vmem:[%s17581_s8 + $0x840] ss:$16 sps:$4 sm:$0xff]  }
 0x88e   : > { %8960 = vmatprep.subr.bf16.mxu1 %v12053_v63  ;;  %9001 = vmatprep.subr.bf16.mxu0 %v12056_v12  ;;  %v12102_v50 = vld [vmem:[%s17581_s8 + $0xa40] ss:$16 sps:$4 sm:$0xff]   ;;  %v12107_v63 = vld [vmem:[%s17581_s8 + $0x824] ss:$16 sps:$4 sm:$0xff]  }
 0x88f   : > { %v12110_v12 = vld [vmem:[%s17581_s8 + $0xa24] ss:$16 sps:$4 sm:$0xff]  }
 0x891   : > { %8961 = vmatpush2.bf16.msra.mxu1 %v12051_v20  ;;  %9002 = vmatpush2.bf16.msra.mxu0 %v12054_v18  ;;  %v12105_v20 = vld [vmem:[%s17581_s8 + $0x820] ss:$16 sps:$4 sm:$0xff]  }
 0x892   : > { %8962 = vmatprep.subr.bf16.mxu1 %v12059_v53  ;;  %9003 = vmatprep.subr.bf16.mxu0 %v12062_v3  ;;  %v12108_v18 = vld [vmem:[%s17581_s8 + $0xa20] ss:$16 sps:$4 sm:$0xff]   ;;  %v12113_v53 = vld [vmem:[%s17581_s8 + $0x804] ss:$16 sps:$4 sm:$0xff]  }
 0x893   : > { %v12116_v3 = vld [vmem:[%s17581_s8 + $0xa04] ss:$16 sps:$4 sm:$0xff]  }
 0x895   : > { %8963 = vmatpush2.bf16.msra.mxu1 %v12057_v7  ;;  %9004 = vmatpush2.bf16.msra.mxu0 %v12060_v21  ;;  %v12111_v7 = vld [vmem:[%s17581_s8 + $0x800] ss:$16 sps:$4 sm:$0xff]  }
 0x896   : > { %8964 = vmatprep.subr.bf16.mxu1 %v12065_v48  ;;  %9005 = vmatprep.subr.bf16.mxu0 %v12068_v49  ;;  %v12114_v21 = vld [vmem:[%s17581_s8 + $0xa00] ss:$16 sps:$4 sm:$0xff]   ;;  %v12119_v48 = vld [vmem:[%s17581_s8 + $0x9e4] ss:$16 sps:$4 sm:$0xff]  }
 0x897   : > { %v12122_v49 = vld [vmem:[%s17581_s8 + $0xbe4] ss:$16 sps:$4 sm:$0xff]  }
 0x899   : > { %8965 = vmatpush2.bf16.msra.mxu1 %v12063_v1  ;;  %9006 = vmatpush2.bf16.msra.mxu0 %v12066_v10  ;;  %v12117_v1 = vld [vmem:[%s17581_s8 + $0x9e0] ss:$16 sps:$4 sm:$0xff]  }
 0x89a   : > { %9016 = vmatprep.subr.bf16.mxu1 %v12071_v14  ;;  %9057 = vmatprep.subr.bf16.mxu0 %v12074_v16  ;;  %v12120_v10 = vld [vmem:[%s17581_s8 + $0xbe0] ss:$16 sps:$4 sm:$0xff]  }
 0x89b   : > { %v12123_v14 = vld [vmem:[%s17581_s8 + $0x9c0] ss:$16 sps:$4 sm:$0xff]  }
 0x89c   : > { %8967 = vmatmul.mubr.bf16.vlgmr.msra.gmra.mxu1 %v15338_v9  ;;  %9008 = vmatmul.mubr.bf16.vlgmr.msra.gmra.mxu0 %v15340_v55  ;;  %v12126_v16 = vld [vmem:[%s17581_s8 + $0xbc0] ss:$16 sps:$4 sm:$0xff]  }
 0x89d   : > { %9017 = vmatpush1.bf16.msra.mxu1 %v12069_v17  ;;  %9048 = vmatprep.mubr.bf16.mxu1 %v15345_v42  ;;  %v12129_v17 = vld [vmem:[%s17581_s8 + $0x9a0] ss:$16 sps:$4 sm:$0xff]  }
 0x89e   : > { %9058 = vmatpush1.bf16.msra.mxu0 %v12072_v61  ;;  %9089 = vmatprep.mubr.bf16.mxu0 %v15355_v11  ;;  %v12132_v61 = vld [vmem:[%s17581_s8 + $0xba0] ss:$16 sps:$4 sm:$0xff]  }
 0x89f   : > { %9018 = vmatprep.subr.bf16.mxu1 %v12077_v52  ;;  %9059 = vmatprep.subr.bf16.mxu0 %v12080_v37  ;;  %v12137_v52 = vld [vmem:[%s17581_s8 + $0x984] ss:$16 sps:$4 sm:$0xff]  }
 0x8a0   : > { %v12140_v37 = vld [vmem:[%s17581_s8 + $0xb84] ss:$16 sps:$4 sm:$0xff]  }
 0x8a1   : > { %9019 = vmatpush1.bf16.msra.mxu1 %v12075_v6  ;;  %v12135_v6 = vld [vmem:[%s17581_s8 + $0x980] ss:$16 sps:$4 sm:$0xff]  }
 0x8a2   : > { %9060 = vmatpush1.bf16.msra.mxu0 %v12078_v32  ;;  %9020 = vmatprep.subr.bf16.mxu1 %v12083_v29  ;;  %v12138_v32 = vld [vmem:[%s17581_s8 + $0xb80] ss:$16 sps:$4 sm:$0xff]   ;;  %v12143_v29 = vld [vmem:[%s17581_s8 + $0x964] ss:$16 sps:$4 sm:$0xff]  }
 0x8a3   : > { %9061 = vmatprep.subr.bf16.mxu0 %v12086_v39  ;;  %v12146_v39 = vld [vmem:[%s17581_s8 + $0xb64] ss:$16 sps:$4 sm:$0xff]  }
 0x8a5   : > { %9021 = vmatpush1.bf16.msra.mxu1 %v12081_v4  ;;  %v12141_v4 = vld [vmem:[%s17581_s8 + $0x960] ss:$16 sps:$4 sm:$0xff]  }
 0x8a6   : > { %9062 = vmatpush1.bf16.msra.mxu0 %v12084_v34  ;;  %9022 = vmatprep.subr.bf16.mxu1 %v12089_v44  ;;  %v12144_v34 = vld [vmem:[%s17581_s8 + $0xb60] ss:$16 sps:$4 sm:$0xff]   ;;  %v12149_v44 = vld [vmem:[%s17581_s8 + $0x944] ss:$16 sps:$4 sm:$0xff]  }
 0x8a7   : > { %9063 = vmatprep.subr.bf16.mxu0 %v12092_v38  ;;  %v12152_v38 = vld [vmem:[%s17581_s8 + $0xb44] ss:$16 sps:$4 sm:$0xff]  }
 0x8a9   : > { %9023 = vmatpush1.bf16.msra.mxu1 %v12087_v47  ;;  %v12147_v47 = vld [vmem:[%s17581_s8 + $0x940] ss:$16 sps:$4 sm:$0xff]  }
 0x8aa   : > { %9064 = vmatpush1.bf16.msra.mxu0 %v12090_v41  ;;  %9024 = vmatprep.subr.bf16.mxu1 %v12095_v27  ;;  %v12150_v41 = vld [vmem:[%s17581_s8 + $0xb40] ss:$16 sps:$4 sm:$0xff]   ;;  %v12155_v27 = vld [vmem:[%s17581_s8 + $0x924] ss:$16 sps:$4 sm:$0xff]  }
 0x8ab   : > { %9065 = vmatprep.subr.bf16.mxu0 %v12098_v36  ;;  %v12158_v36 = vld [vmem:[%s17581_s8 + $0xb24] ss:$16 sps:$4 sm:$0xff]  }
 0x8ad   : > { %9025 = vmatpush1.bf16.msra.mxu1 %v12093_v24  ;;  %v12153_v24 = vld [vmem:[%s17581_s8 + $0x920] ss:$16 sps:$4 sm:$0xff]  }
 0x8ae   : > { %9066 = vmatpush1.bf16.msra.mxu0 %v12096_v54  ;;  %9026 = vmatprep.subr.bf16.mxu1 %v12101_v58  ;;  %v12156_v54 = vld [vmem:[%s17581_s8 + $0xb20] ss:$16 sps:$4 sm:$0xff]   ;;  %v12161_v58 = vld [vmem:[%s17581_s8 + $0x904] ss:$16 sps:$4 sm:$0xff]  }
 0x8af   : > { %9067 = vmatprep.subr.bf16.mxu0 %v12104_v22  ;;  %v12164_v22 = vld [vmem:[%s17581_s8 + $0xb04] ss:$16 sps:$4 sm:$0xff]  }
 0x8b1   : > { %9027 = vmatpush1.bf16.msra.mxu1 %v12099_v23  ;;  %v12159_v23 = vld [vmem:[%s17581_s8 + $0x900] ss:$16 sps:$4 sm:$0xff]  }
 0x8b2   : > { %9068 = vmatpush1.bf16.msra.mxu0 %v12102_v50  ;;  %9028 = vmatprep.subr.bf16.mxu1 %v12107_v63  ;;  %v12162_v50 = vld [vmem:[%s17581_s8 + $0xb00] ss:$16 sps:$4 sm:$0xff]   ;;  %v4008_v63 = vrot.slane %v15137_v60, %v15022_v43 }
 0x8b3   : > { %9069 = vmatprep.subr.bf16.mxu0 %v12110_v12  ;;  %v12167_v12 = vld [vmem:[%s17581_s8 + $0xce4] ss:$16 sps:$4 sm:$0xff]  }
 0x8b5   : > { %9029 = vmatpush1.bf16.msra.mxu1 %v12105_v20  ;;  %v4016_v20 = vrot.slane %v15137_v60, %v15025_v45  ;;  %v12173_v60 = vld [vmem:[%s17581_s8 + $0xcc4] ss:$16 sps:$4 sm:$0xff]  }
 0x8b6   : > { %9070 = vmatpush1.bf16.msra.mxu0 %v12108_v18  ;;  %9030 = vmatprep.subr.bf16.mxu1 %v12113_v53  ;;  %v12170_v18 = vld [vmem:[%s17581_s8 + $0xee4] ss:$16 sps:$4 sm:$0xff]   ;;  %v12165_v53 = vld [vmem:[%s17581_s8 + $0xce0] ss:$16 sps:$4 sm:$0xff]  }
 0x8b7   : > { %9071 = vmatprep.subr.bf16.mxu0 %v12116_v3  ;;  %v15546_v3 = vpack.c.bf16 %v4008_v63, %v4008_v63  ;;  %v12224_v63 = vld [vmem:[%s17581_s8 + $0xfc4] ss:$16 sps:$4 sm:$0xff]  }
 0x8b9   : > { %9031 = vmatpush1.bf16.msra.mxu1 %v12111_v7  ;;  %v12168_v7 = vld [vmem:[%s17581_s8 + $0xee0] ss:$16 sps:$4 sm:$0xff]  }
 0x8ba   : > { %9072 = vmatpush1.bf16.msra.mxu0 %v12114_v21  ;;  %9032 = vmatprep.subr.bf16.mxu1 %v12119_v48  ;;  %v15551_v21 = vpack.c.bf16 %v4016_v20, %v4016_v20  ;;  %v15559_v48 = vpack.c.bf16 %v15145_v25, %v15145_v25  ;;  %v12174_v25 = vld [vmem:[%s17581_s8 + $0xec0] ss:$16 sps:$4 sm:$0xff]  }
 0x8bb   : > { %9073 = vmatprep.subr.bf16.mxu0 %v12122_v49  ;;  %v12176_v49 = vld [vmem:[%s17581_s8 + $0xec4] ss:$16 sps:$4 sm:$0xff]   ;;  %v12222_v20 = vld [vmem:[%s17581_s8 + $0xfc0] ss:$16 sps:$4 sm:$0xff]  }
 0x8bd   : > { %9033 = vmatpush2.bf16.msra.mxu1 %v12117_v1  ;;  %v15567_v1 = vpack.c.bf16 %v15149_v19, %v15149_v19  ;;  %v12182_v19 = vld [vmem:[%s17581_s8 + $0xea4] ss:$16 sps:$4 sm:$0xff]  }
 0x8be   : > { %9074 = vmatpush2.bf16.msra.mxu0 %v12120_v10  ;;  %9034 = vmatprep.subr.bf16.mxu1 %v12125_v59  ;;  %v12171_v10 = vld [vmem:[%s17581_s8 + $0xcc0] ss:$16 sps:$4 sm:$0xff]   ;;  %v12179_v59 = vld [vmem:[%s17581_s8 + $0xca4] ss:$16 sps:$4 sm:$0xff]  }
 0x8bf   : > { %9075 = vmatprep.subr.bf16.mxu0 %v12128_v51  ;;  %v12177_v51 = vld [vmem:[%s17581_s8 + $0xca0] ss:$16 sps:$4 sm:$0xff]  }
 0x8c1   : > { %9035 = vmatpush2.bf16.msra.mxu1 %v12123_v14  ;;  %v12180_v14 = vld [vmem:[%s17581_s8 + $0xea0] ss:$16 sps:$4 sm:$0xff]  }
 0x8c2   : > { %9076 = vmatpush2.bf16.msra.mxu0 %v12126_v16  ;;  %9036 = vmatprep.subr.bf16.mxu1 %v12131_v46  ;;  %v12185_v16 = vld [vmem:[%s17581_s8 + $0xc84] ss:$16 sps:$4 sm:$0xff]  }
 0x8c3   : > { %9077 = vmatprep.subr.bf16.mxu0 %v12134_v2  ;;  %v12188_v46 = vld [vmem:[%s17581_s8 + $0xe84] ss:$16 sps:$4 sm:$0xff]   ;;  %v12183_v2 = vld [vmem:[%s17581_s8 + $0xc80] ss:$16 sps:$4 sm:$0xff]  }
 0x8c5   : > { %9037 = vmatpush2.bf16.msra.mxu1 %v12129_v17  ;;  %v12186_v17 = vld [vmem:[%s17581_s8 + $0xe80] ss:$16 sps:$4 sm:$0xff]  }
 0x8c6   : > { %9078 = vmatpush2.bf16.msra.mxu0 %v12132_v61  ;;  %9038 = vmatprep.subr.bf16.mxu1 %v12137_v52  ;;  %v12191_v61 = vld [vmem:[%s17581_s8 + $0xc64] ss:$16 sps:$4 sm:$0xff]  }
 0x8c7   : > { %9079 = vmatprep.subr.bf16.mxu0 %v12140_v37  ;;  %v12194_v52 = vld [vmem:[%s17581_s8 + $0xe64] ss:$16 sps:$4 sm:$0xff]   ;;  %v12189_v37 = vld [vmem:[%s17581_s8 + $0xc60] ss:$16 sps:$4 sm:$0xff]  }
 0x8c9   : > { %9039 = vmatpush2.bf16.msra.mxu1 %v12135_v6  ;;  %v12192_v6 = vld [vmem:[%s17581_s8 + $0xe60] ss:$16 sps:$4 sm:$0xff]  }
 0x8ca   : > { %9080 = vmatpush2.bf16.msra.mxu0 %v12138_v32  ;;  %9040 = vmatprep.subr.bf16.mxu1 %v12143_v29  ;;  %v12197_v32 = vld [vmem:[%s17581_s8 + $0xc44] ss:$16 sps:$4 sm:$0xff]  }
 0x8cb   : > { %9081 = vmatprep.subr.bf16.mxu0 %v12146_v39  ;;  %v12200_v29 = vld [vmem:[%s17581_s8 + $0xe44] ss:$16 sps:$4 sm:$0xff]   ;;  %v12195_v39 = vld [vmem:[%s17581_s8 + $0xc40] ss:$16 sps:$4 sm:$0xff]  }
 0x8cd   : > { %9041 = vmatpush2.bf16.msra.mxu1 %v12141_v4  ;;  %v12198_v4 = vld [vmem:[%s17581_s8 + $0xe40] ss:$16 sps:$4 sm:$0xff]  }
 0x8ce   : > { %9082 = vmatpush2.bf16.msra.mxu0 %v12144_v34  ;;  %9042 = vmatprep.subr.bf16.mxu1 %v12149_v44  ;;  %v12203_v34 = vld [vmem:[%s17581_s8 + $0xc24] ss:$16 sps:$4 sm:$0xff]  }
 0x8cf   : > { %9083 = vmatprep.subr.bf16.mxu0 %v12152_v38  ;;  %v12206_v44 = vld [vmem:[%s17581_s8 + $0xe24] ss:$16 sps:$4 sm:$0xff]   ;;  %v12201_v38 = vld [vmem:[%s17581_s8 + $0xc20] ss:$16 sps:$4 sm:$0xff]  }
 0x8d1   : > { %9043 = vmatpush2.bf16.msra.mxu1 %v12147_v47  ;;  %v12204_v47 = vld [vmem:[%s17581_s8 + $0xe20] ss:$16 sps:$4 sm:$0xff]  }
 0x8d2   : > { %9084 = vmatpush2.bf16.msra.mxu0 %v12150_v41  ;;  %9044 = vmatprep.subr.bf16.mxu1 %v12155_v27  ;;  %v12209_v41 = vld [vmem:[%s17581_s8 + $0xc04] ss:$16 sps:$4 sm:$0xff]  }
 0x8d3   : > { %9085 = vmatprep.subr.bf16.mxu0 %v12158_v36  ;;  %v12212_v27 = vld [vmem:[%s17581_s8 + $0xe04] ss:$16 sps:$4 sm:$0xff]   ;;  %v12207_v36 = vld [vmem:[%s17581_s8 + $0xc00] ss:$16 sps:$4 sm:$0xff]  }
 0x8d5   : > { %9045 = vmatpush2.bf16.msra.mxu1 %v12153_v24  ;;  %v12210_v24 = vld [vmem:[%s17581_s8 + $0xe00] ss:$16 sps:$4 sm:$0xff]  }
 0x8d6   : > { %9086 = vmatpush2.bf16.msra.mxu0 %v12156_v54  ;;  %9046 = vmatprep.subr.bf16.mxu1 %v12161_v58  ;;  %v12215_v54 = vld [vmem:[%s17581_s8 + $0xde4] ss:$16 sps:$4 sm:$0xff]  }
 0x8d7   : > { %9087 = vmatprep.subr.bf16.mxu0 %v12164_v22  ;;  %v12218_v58 = vld [vmem:[%s17581_s8 + $0xfe4] ss:$16 sps:$4 sm:$0xff]   ;;  %v12213_v22 = vld [vmem:[%s17581_s8 + $0xde0] ss:$16 sps:$4 sm:$0xff]  }
 0x8d9   : > { %9047 = vmatpush2.bf16.msra.mxu1 %v12159_v23  ;;  %v12216_v23 = vld [vmem:[%s17581_s8 + $0xfe0] ss:$16 sps:$4 sm:$0xff]  }
 0x8da   : > { %9088 = vmatpush2.bf16.msra.mxu0 %v12162_v50  ;;  %9098 = vmatprep.subr.bf16.mxu1 %v12167_v12  ;;  %v12221_v50 = vld [vmem:[%s17581_s8 + $0xdc4] ss:$16 sps:$4 sm:$0xff]   ;;  %v12219_v12 = vld [vmem:[%s17581_s8 + $0xdc0] ss:$16 sps:$4 sm:$0xff]  }
 0x8db   : > { %9139 = vmatprep.subr.bf16.mxu0 %v12170_v18  ;;  %v12227_v18 = vld [vmem:[%s17581_s8 + $0xda4] ss:$16 sps:$4 sm:$0xff]  }
 0x8dc   : > { %9049 = vmatmul.mubr.bf16.vlgmr.msra.gmra.mxu1 %v15546_v3 }
 0x8dd   : > { %9090 = vmatmul.mubr.bf16.vlgmr.msra.gmra.mxu0 %v15551_v21  ;;  %9099 = vmatpush1.bf16.msra.mxu1 %v12165_v53  ;;  %v12230_v53 = vld [vmem:[%s17581_s8 + $0xfa4] ss:$16 sps:$4 sm:$0xff]  }
 0x8de   : > { %9130 = vmatprep.mubr.bf16.mxu1 %v15559_v48  ;;  %9140 = vmatpush1.bf16.msra.mxu0 %v12168_v7  ;;  %v12225_v7 = vld [vmem:[%s17581_s8 + $0xda0] ss:$16 sps:$4 sm:$0xff]  }
 0x8df   : > { %9171 = vmatprep.mubr.bf16.mxu0 %v15567_v1  ;;  %9100 = vmatprep.subr.bf16.mxu1 %v12173_v60  ;;  %v12228_v60 = vld [vmem:[%s17581_s8 + $0xfa0] ss:$16 sps:$4 sm:$0xff]  }
 0x8e0   : > { %9141 = vmatprep.subr.bf16.mxu0 %v12176_v49  ;;  %v12233_v49 = vld [vmem:[%s17581_s8 + $0xd84] ss:$16 sps:$4 sm:$0xff]  }
 0x8e1   : > { %9101 = vmatpush1.bf16.msra.mxu1 %v12171_v10  ;;  %v12236_v10 = vld [vmem:[%s17581_s8 + $0xf84] ss:$16 sps:$4 sm:$0xff]  }
 0x8e2   : > { %9142 = vmatpush1.bf16.msra.mxu0 %v12174_v25  ;;  %9102 = vmatprep.subr.bf16.mxu1 %v12179_v59  ;;  %v12231_v25 = vld [vmem:[%s17581_s8 + $0xd80] ss:$16 sps:$4 sm:$0xff]  }
 0x8e3   : > { %9143 = vmatprep.subr.bf16.mxu0 %v12182_v19  ;;  %v12234_v59 = vld [vmem:[%s17581_s8 + $0xf80] ss:$16 sps:$4 sm:$0xff]   ;;  %v12239_v19 = vld [vmem:[%s17581_s8 + $0xd64] ss:$16 sps:$4 sm:$0xff]  }
 0x8e5   : > { %9103 = vmatpush1.bf16.msra.mxu1 %v12177_v51  ;;  %v12242_v51 = vld [vmem:[%s17581_s8 + $0xf64] ss:$16 sps:$4 sm:$0xff]  }
 0x8e6   : > { %9144 = vmatpush1.bf16.msra.mxu0 %v12180_v14  ;;  %9104 = vmatprep.subr.bf16.mxu1 %v12185_v16  ;;  %v12237_v14 = vld [vmem:[%s17581_s8 + $0xd60] ss:$16 sps:$4 sm:$0xff]  }
 0x8e7   : > { %9145 = vmatprep.subr.bf16.mxu0 %v12188_v46  ;;  %v12240_v16 = vld [vmem:[%s17581_s8 + $0xf60] ss:$16 sps:$4 sm:$0xff]   ;;  %v12245_v46 = vld [vmem:[%s17581_s8 + $0xd44] ss:$16 sps:$4 sm:$0xff]  }
 0x8e9   : > { %9105 = vmatpush1.bf16.msra.mxu1 %v12183_v2  ;;  %v12248_v2 = vld [vmem:[%s17581_s8 + $0xf44] ss:$16 sps:$4 sm:$0xff]  }
 0x8ea   : > { %9146 = vmatpush1.bf16.msra.mxu0 %v12186_v17  ;;  %9106 = vmatprep.subr.bf16.mxu1 %v12191_v61  ;;  %v12243_v17 = vld [vmem:[%s17581_s8 + $0xd40] ss:$16 sps:$4 sm:$0xff]  }
 0x8eb   : > { %9147 = vmatprep.subr.bf16.mxu0 %v12194_v52  ;;  %v12246_v61 = vld [vmem:[%s17581_s8 + $0xf40] ss:$16 sps:$4 sm:$0xff]   ;;  %v12251_v52 = vld [vmem:[%s17581_s8 + $0xd24] ss:$16 sps:$4 sm:$0xff]  }
 0x8ed   : > { %9107 = vmatpush1.bf16.msra.mxu1 %v12189_v37  ;;  %v12254_v37 = vld [vmem:[%s17581_s8 + $0xf24] ss:$16 sps:$4 sm:$0xff]  }
 0x8ee   : > { %9148 = vmatpush1.bf16.msra.mxu0 %v12192_v6  ;;  %9108 = vmatprep.subr.bf16.mxu1 %v12197_v32  ;;  %v12249_v6 = vld [vmem:[%s17581_s8 + $0xd20] ss:$16 sps:$4 sm:$0xff]  }
 0x8ef   : > { %9149 = vmatprep.subr.bf16.mxu0 %v12200_v29  ;;  %v12252_v32 = vld [vmem:[%s17581_s8 + $0xf20] ss:$16 sps:$4 sm:$0xff]   ;;  %v12257_v29 = vld [vmem:[%s17581_s8 + $0xd04] ss:$16 sps:$4 sm:$0xff]  }
 0x8f1   : > { %9109 = vmatpush1.bf16.msra.mxu1 %v12195_v39  ;;  %v12260_v39 = vld [vmem:[%s17581_s8 + $0xf04] ss:$16 sps:$4 sm:$0xff]  }
 0x8f2   : > { %9150 = vmatpush1.bf16.msra.mxu0 %v12198_v4  ;;  %9110 = vmatprep.subr.bf16.mxu1 %v12203_v34  ;;  %v12255_v4 = vld [vmem:[%s17581_s8 + $0xd00] ss:$16 sps:$4 sm:$0xff]  }
 0x8f3   : > { %9151 = vmatprep.subr.bf16.mxu0 %v12206_v44  ;;  %v12258_v34 = vld [vmem:[%s17581_s8 + $0xf00] ss:$16 sps:$4 sm:$0xff]   ;;  %v12263_v44 = vld [vmem:[%s17581_s8 + $0x10e4] ss:$16 sps:$4 sm:$0xff]  }
 0x8f5   : > { %9111 = vmatpush1.bf16.msra.mxu1 %v12201_v38  ;;  %v4907_v38 = vld [vmem:[%s17582_s9] sm:$0xf] }
 0x8f6   : > { %9152 = vmatpush1.bf16.msra.mxu0 %v12204_v47  ;;  %9112 = vmatprep.subr.bf16.mxu1 %v12209_v41  ;;  %v12266_v47 = vld [vmem:[%s17581_s8 + $0x12e4] ss:$16 sps:$4 sm:$0xff]   ;;  %v4044_v41 = vrot.slane %v15213_v5, %v15016_v8 }
 0x8f7   : > { %9153 = vmatprep.subr.bf16.mxu0 %v12212_v27  ;;  %v12261_v27 = vld [vmem:[%s17581_s8 + $0x10e0] ss:$16 sps:$4 sm:$0xff]  }
 0x8f9   : > { %9113 = vmatpush1.bf16.msra.mxu1 %v12207_v36  ;;  %v8832_v36 = vrot.slane %v4907_v38, %v15022_v43 }
 0x8fa   : > { %9154 = vmatpush1.bf16.msra.mxu0 %v12210_v24  ;;  %9114 = vmatprep.subr.bf16.mxu1 %v12215_v54  ;;  %v4052_v24 = vrot.slane %v15213_v5, %v15019_v57  ;;  %v15764_v54 = vpack.c.bf16 %v15153_v26, %v15153_v26 }
 0x8fb   : > { %9155 = vmatprep.subr.bf16.mxu0 %v12218_v58  ;;  %v12264_v58 = vld [vmem:[%s17581_s8 + $0x12e0] ss:$16 sps:$4 sm:$0xff]  }
 0x8fd   : > { %9115 = vmatpush2.bf16.msra.mxu1 %v12213_v22  ;;  %v15771_v22 = vpack.c.bf16 %v15157_v15, %v15157_v15 }
 0x8fe   : > { %9156 = vmatpush2.bf16.msra.mxu0 %v12216_v23  ;;  %9116 = vmatprep.subr.bf16.mxu1 %v12221_v50  ;;  %v8836_v23 = vrot.slane %v4907_v38, %v15016_v8  ;;  %v12269_v50 = vld [vmem:[%s17581_s8 + $0x10c4] ss:$16 sps:$4 sm:$0xff]   ;;  %v12267_v8 = vld [vmem:[%s17581_s8 + $0x10c0] ss:$16 sps:$4 sm:$0xff]  }
 0x8ff   : > { %9157 = vmatprep.subr.bf16.mxu0 %v12224_v63  ;;  %v12291_v38 = vld [vmem:[%s17581_s8 + $0x1040] ss:$16 sps:$4 sm:$0xff]  }
 0x901   : > { %9117 = vmatpush2.bf16.msra.mxu1 %v12219_v12  ;;  %v15778_v12 = vpack.c.bf16 %v4044_v41, %v4044_v41  ;;  %v12299_v41 = vld [vmem:[%s17581_s8 + $0x1024] ss:$16 sps:$4 sm:$0xff]  }
 0x902   : > { %9158 = vmatpush2.bf16.msra.mxu0 %v12222_v20  ;;  %9118 = vmatprep.subr.bf16.mxu1 %v12227_v18  ;;  %v12272_v20 = vld [vmem:[%s17581_s8 + $0x12c4] ss:$16 sps:$4 sm:$0xff]   ;;  %v15784_v18 = vpack.c.bf16 %v4052_v24, %v4052_v24  ;;  %v12300_v24 = vld [vmem:[%s17581_s8 + $0x1220] ss:$16 sps:$4 sm:$0xff]  }
 0x903   : > { %9159 = vmatprep.subr.bf16.mxu0 %v12230_v53 }
 0x905   : > { %9119 = vmatpush2.bf16.msra.mxu1 %v12225_v7 }
 0x906   : > { %9160 = vmatpush2.bf16.msra.mxu0 %v12228_v60  ;;  %9120 = vmatprep.subr.bf16.mxu1 %v12233_v49  ;;  %v12270_v60 = vld [vmem:[%s17581_s8 + $0x12c0] ss:$16 sps:$4 sm:$0xff]   ;;  %v12275_v49 = vld [vmem:[%s17581_s8 + $0x10a4] ss:$16 sps:$4 sm:$0xff]  }
 0x907   : > { %9161 = vmatprep.subr.bf16.mxu0 %v12236_v10 }
 0x909   : > { %9121 = vmatpush2.bf16.msra.mxu1 %v12231_v25 }
 0x90a   : > { %9162 = vmatpush2.bf16.msra.mxu0 %v12234_v59  ;;  %9122 = vmatprep.subr.bf16.mxu1 %v12239_v19  ;;  %v12278_v59 = vld [vmem:[%s17581_s8 + $0x12a4] ss:$16 sps:$4 sm:$0xff]  }
 0x90b   : > { %9163 = vmatprep.subr.bf16.mxu0 %v12242_v51 }
 0x90d   : > { %9123 = vmatpush2.bf16.msra.mxu1 %v12237_v14 }
 0x90e   : > { %9164 = vmatpush2.bf16.msra.mxu0 %v12240_v16  ;;  %9124 = vmatprep.subr.bf16.mxu1 %v12245_v46  ;;  %v12273_v16 = vld [vmem:[%s17581_s8 + $0x10a0] ss:$16 sps:$4 sm:$0xff]  }
 0x90f   : > { %9165 = vmatprep.subr.bf16.mxu0 %v12248_v2 }
 0x911   : > { %9125 = vmatpush2.bf16.msra.mxu1 %v12243_v17  ;;  %v12276_v17 = vld [vmem:[%s17581_s8 + $0x12a0] ss:$16 sps:$4 sm:$0xff]  }
 0x912   : > { %9166 = vmatpush2.bf16.msra.mxu0 %v12246_v61  ;;  %9126 = vmatprep.subr.bf16.mxu1 %v12251_v52  ;;  %v12281_v61 = vld [vmem:[%s17581_s8 + $0x1084] ss:$16 sps:$4 sm:$0xff]  }
 0x913   : > { %9167 = vmatprep.subr.bf16.mxu0 %v12254_v37  ;;  %v12284_v52 = vld [vmem:[%s17581_s8 + $0x1284] ss:$16 sps:$4 sm:$0xff]   ;;  %v12279_v37 = vld [vmem:[%s17581_s8 + $0x1080] ss:$16 sps:$4 sm:$0xff]  }
 0x915   : > { %9127 = vmatpush2.bf16.msra.mxu1 %v12249_v6  ;;  %v12282_v6 = vld [vmem:[%s17581_s8 + $0x1280] ss:$16 sps:$4 sm:$0xff]  }
 0x916   : > { %9168 = vmatpush2.bf16.msra.mxu0 %v12252_v32  ;;  %9128 = vmatprep.subr.bf16.mxu1 %v12257_v29  ;;  %v12287_v32 = vld [vmem:[%s17581_s8 + $0x1064] ss:$16 sps:$4 sm:$0xff]  }
 0x917   : > { %9169 = vmatprep.subr.bf16.mxu0 %v12260_v39  ;;  %v12290_v29 = vld [vmem:[%s17581_s8 + $0x1264] ss:$16 sps:$4 sm:$0xff]   ;;  %v12285_v39 = vld [vmem:[%s17581_s8 + $0x1060] ss:$16 sps:$4 sm:$0xff]  }
 0x919   : > { %9129 = vmatpush2.bf16.msra.mxu1 %v12255_v4  ;;  %v12288_v4 = vld [vmem:[%s17581_s8 + $0x1260] ss:$16 sps:$4 sm:$0xff]  }
 0x91a   : > { %9170 = vmatpush2.bf16.msra.mxu0 %v12258_v34  ;;  %9180 = vmatprep.subr.bf16.mxu1 %v12263_v44  ;;  %v12293_v34 = vld [vmem:[%s17581_s8 + $0x1044] ss:$16 sps:$4 sm:$0xff]  }
 0x91b   : > { %9221 = vmatprep.subr.bf16.mxu0 %v12266_v47  ;;  %v12296_v44 = vld [vmem:[%s17581_s8 + $0x1244] ss:$16 sps:$4 sm:$0xff]   ;;  %v12294_v47 = vld [vmem:[%s17581_s8 + $0x1240] ss:$16 sps:$4 sm:$0xff]  }
 0x91c   : > { %9131 = vmatmul.mubr.bf16.vlgmr.msra.gmra.mxu1 %v15764_v54  ;;  %v8886_v26 = vpop.f32.mrf.mxu1  ;;  %v8927_v63 = vpop.f32.mrf.mxu0 }
 0x91d   : > { %9172 = vmatmul.mubr.bf16.vlgmr.msra.gmra.mxu0 %v15771_v22  ;;  %v8887_v15 = vadd.f32 %v8886_v26, %v8832_v36  ;;  %9181 = vmatpush1.bf16.msra.mxu1 %v12261_v27  ;;  %v12302_v27 = vld [vmem:[%s17581_s8 + $0x1224] ss:$16 sps:$4 sm:$0xff]   ;;  %v12297_v36 = vld [vmem:[%s17581_s8 + $0x1020] ss:$16 sps:$4 sm:$0xff]  }
 0x91e   : > { %9212 = vmatprep.mubr.bf16.mxu1 %v15778_v12  ;;  %9222 = vmatpush1.bf16.msra.mxu0 %v12264_v58  ;;  %v8888_v53 = vpop.f32.mrf.mxu1  ;;  %v8929_v7 = vpop.f32.mrf.mxu0  ;;  %v12305_v58 = vld [vmem:[%s17581_s8 + $0x1004] ss:$16 sps:$4 sm:$0xff]   ;;  %v12306_v26 = vld [vmem:[%s17581_s8 + $0x1200] ss:$16 sps:$4 sm:$0xff]  }
 0x91f   : > { %v15796_v10 = vadd.f32 %v8927_v63, %v8887_v15  ;;  %9253 = vmatprep.mubr.bf16.mxu0 %v15784_v18  ;;  %v8889_v25 = vadd.f32 %v8888_v53, %v8836_v23  ;;  %9182 = vmatprep.subr.bf16.mxu1 %v12269_v50  ;;  %v12308_v23 = vld [vmem:[%s17581_s8 + $0x1204] ss:$16 sps:$4 sm:$0xff]   ;;  %v12303_v50 = vld [vmem:[%s17581_s8 + $0x1000] ss:$16 sps:$4 sm:$0xff]  }
 0x920   : > { %9223 = vmatprep.subr.bf16.mxu0 %v12272_v20  ;;  %v8890_v19 = vpop.f32.mrf.mxu1  ;;  %v8931_v51 = vpop.f32.mrf.mxu0  ;;  %v12311_v63 = vld [vmem:[%s17581_s8 + $0x11e4] ss:$16 sps:$4 sm:$0xff]   ;;  %v12309_v15 = vld [vmem:[%s17581_s8 + $0x11e0] ss:$16 sps:$4 sm:$0xff]  }
 0x921   : > { %v15802_v14 = vadd.f32 %v8929_v7, %v8889_v25  ;;  %9183 = vmatpush1.bf16.msra.mxu1 %v12267_v8  ;;  %v12314_v20 = vld [vmem:[%s17581_s8 + $0x13e4] ss:$16 sps:$4 sm:$0xff]   ;;  %v12312_v8 = vld [vmem:[%s17581_s8 + $0x13e0] ss:$16 sps:$4 sm:$0xff]  }
 0x922   : > { %9224 = vmatpush1.bf16.msra.mxu0 %v12270_v60  ;;  %v8891_v46 = vpop.f32.mrf.mxu1  ;;  %v8932_v2 = vpop.f32.mrf.mxu0  ;;  %9184 = vmatprep.subr.bf16.mxu1 %v12275_v49  ;;  %v12317_v53 = vld [vmem:[%s17581_s8 + $0x11c4] ss:$16 sps:$4 sm:$0xff]   ;;  %v12315_v60 = vld [vmem:[%s17581_s8 + $0x11c0] ss:$16 sps:$4 sm:$0xff]  }
 0x923   : > { %9225 = vmatprep.subr.bf16.mxu0 %v12278_v59  ;;  %v12320_v7 = vld [vmem:[%s17581_s8 + $0x13c4] ss:$16 sps:$4 sm:$0xff]   ;;  %v12318_v49 = vld [vmem:[%s17581_s8 + $0x13c0] ss:$16 sps:$4 sm:$0xff]  }
 0x924   : > { %v12323_v25 = vld [vmem:[%s17581_s8 + $0x11a4] ss:$16 sps:$4 sm:$0xff]   ;;  %v12321_v19 = vld [vmem:[%s17581_s8 + $0x11a0] ss:$16 sps:$4 sm:$0xff]  }
 0x925   : > { %9185 = vmatpush1.bf16.msra.mxu1 %v12273_v16  ;;  %v12326_v59 = vld [vmem:[%s17581_s8 + $0x13a4] ss:$16 sps:$4 sm:$0xff]   ;;  %v12324_v51 = vld [vmem:[%s17581_s8 + $0x13a0] ss:$16 sps:$4 sm:$0xff]  }
 0x926   : > { %9226 = vmatpush1.bf16.msra.mxu0 %v12276_v17  ;;  %9186 = vmatprep.subr.bf16.mxu1 %v12281_v61  ;;  %v12329_v16 = vld [vmem:[%s17581_s8 + $0x1184] ss:$16 sps:$4 sm:$0xff]   ;;  %v12327_v2 = vld [vmem:[%s17581_s8 + $0x1180] ss:$16 sps:$4 sm:$0xff]  }
 0x927   : > { %9227 = vmatprep.subr.bf16.mxu0 %v12284_v52  ;;  %v12332_v46 = vld [vmem:[%s17581_s8 + $0x1384] ss:$16 sps:$4 sm:$0xff]   ;;  %v12330_v17 = vld [vmem:[%s17581_s8 + $0x1380] ss:$16 sps:$4 sm:$0xff]  }
 0x928   : > { %v12335_v61 = vld [vmem:[%s17581_s8 + $0x1164] ss:$16 sps:$4 sm:$0xff]  }
 0x929   : > { %9187 = vmatpush1.bf16.msra.mxu1 %v12279_v37  ;;  %v12338_v52 = vld [vmem:[%s17581_s8 + $0x1364] ss:$16 sps:$4 sm:$0xff]   ;;  %v12333_v37 = vld [vmem:[%s17581_s8 + $0x1160] ss:$16 sps:$4 sm:$0xff]  }
 0x92a   : > { %9228 = vmatpush1.bf16.msra.mxu0 %v12282_v6  ;;  %9188 = vmatprep.subr.bf16.mxu1 %v12287_v32  ;;  %v12336_v6 = vld [vmem:[%s17581_s8 + $0x1360] ss:$16 sps:$4 sm:$0xff]   ;;  %v12341_v32 = vld [vmem:[%s17581_s8 + $0x1144] ss:$16 sps:$4 sm:$0xff]  }
 0x92b   : > { %9229 = vmatprep.subr.bf16.mxu0 %v12290_v29  ;;  %v12344_v29 = vld [vmem:[%s17581_s8 + $0x1344] ss:$16 sps:$4 sm:$0xff]  }
 0x92d   : > { %9189 = vmatpush1.bf16.msra.mxu1 %v12285_v39  ;;  %v12339_v39 = vld [vmem:[%s17581_s8 + $0x1140] ss:$16 sps:$4 sm:$0xff]  }
 0x92e   : > { %9230 = vmatpush1.bf16.msra.mxu0 %v12288_v4  ;;  %9190 = vmatprep.subr.bf16.mxu1 %v12293_v34  ;;  %v12342_v4 = vld [vmem:[%s17581_s8 + $0x1340] ss:$16 sps:$4 sm:$0xff]   ;;  %v12347_v34 = vld [vmem:[%s17581_s8 + $0x1124] ss:$16 sps:$4 sm:$0xff]  }
 0x92f   : > { %9231 = vmatprep.subr.bf16.mxu0 %v12296_v44  ;;  %v12350_v44 = vld [vmem:[%s17581_s8 + $0x1324] ss:$16 sps:$4 sm:$0xff]  }
 0x931   : > { %9191 = vmatpush1.bf16.msra.mxu1 %v12291_v38  ;;  %v12345_v38 = vld [vmem:[%s17581_s8 + $0x1120] ss:$16 sps:$4 sm:$0xff]  }
 0x932   : > { %9232 = vmatpush1.bf16.msra.mxu0 %v12294_v47  ;;  %9192 = vmatprep.subr.bf16.mxu1 %v12299_v41  ;;  %v12348_v47 = vld [vmem:[%s17581_s8 + $0x1320] ss:$16 sps:$4 sm:$0xff]   ;;  %v12353_v41 = vld [vmem:[%s17581_s8 + $0x1104] ss:$16 sps:$4 sm:$0xff]  }
 0x933   : > { %9233 = vmatprep.subr.bf16.mxu0 %v12302_v27  ;;  %v12356_v27 = vld [vmem:[%s17581_s8 + $0x1304] ss:$16 sps:$4 sm:$0xff]  }
 0x935   : > { %9193 = vmatpush1.bf16.msra.mxu1 %v12297_v36  ;;  %v12351_v36 = vld [vmem:[%s17581_s8 + $0x1100] ss:$16 sps:$4 sm:$0xff]  }
 0x936   : > { %9234 = vmatpush1.bf16.msra.mxu0 %v12300_v24  ;;  %9194 = vmatprep.subr.bf16.mxu1 %v12305_v58  ;;  %v12354_v24 = vld [vmem:[%s17581_s8 + $0x1300] ss:$16 sps:$4 sm:$0xff]   ;;  %v4040_v58 = vrot.slane %v15213_v5, %v15022_v43 }
 0x937   : > { %9235 = vmatprep.subr.bf16.mxu0 %v12308_v23  ;;  %v12359_v23 = vld [vmem:[%s17581_s8 + $0x14e4] ss:$16 sps:$4 sm:$0xff]  }
 0x939   : > { %9195 = vmatpush1.bf16.msra.mxu1 %v12303_v50  ;;  %v4048_v50 = vrot.slane %v15213_v5, %v15025_v45  ;;  %v12365_v5 = vld [vmem:[%s17581_s8 + $0x14c4] ss:$16 sps:$4 sm:$0xff]  }
 0x93a   : > { %9236 = vmatpush1.bf16.msra.mxu0 %v12306_v26  ;;  %9196 = vmatprep.subr.bf16.mxu1 %v12311_v63  ;;  %v12362_v26 = vld [vmem:[%s17581_s8 + $0x16e4] ss:$16 sps:$4 sm:$0xff]   ;;  %v12357_v63 = vld [vmem:[%s17581_s8 + $0x14e0] ss:$16 sps:$4 sm:$0xff]  }
 0x93b   : > { %9237 = vmatprep.subr.bf16.mxu0 %v12314_v20  ;;  %v15979_v20 = vpack.c.bf16 %v4040_v58, %v4040_v58  ;;  %v12390_v58 = vld [vmem:[%s17581_s8 + $0x1640] ss:$16 sps:$4 sm:$0xff]  }
 0x93d   : > { %9197 = vmatpush2.bf16.msra.mxu1 %v12309_v15  ;;  %v12360_v15 = vld [vmem:[%s17581_s8 + $0x16e0] ss:$16 sps:$4 sm:$0xff]  }
 0x93e   : > { %9238 = vmatpush2.bf16.msra.mxu0 %v12312_v8  ;;  %9198 = vmatprep.subr.bf16.mxu1 %v12317_v53  ;;  %v15984_v8 = vpack.c.bf16 %v4048_v50, %v4048_v50  ;;  %v12398_v50 = vld [vmem:[%s17581_s8 + $0x1624] ss:$16 sps:$4 sm:$0xff]  }
 0x93f   : > { %9239 = vmatprep.subr.bf16.mxu0 %v12320_v7 }
 0x941   : > { %9199 = vmatpush2.bf16.msra.mxu1 %v12315_v60  ;;  %v15992_v60 = vpack.c.bf16 %v15223_v31, %v15223_v31 }
 0x942   : > { %9240 = vmatpush2.bf16.msra.mxu0 %v12318_v49  ;;  %9200 = vmatprep.subr.bf16.mxu1 %v12323_v25  ;;  %v12368_v49 = vld [vmem:[%s17581_s8 + $0x16c4] ss:$16 sps:$4 sm:$0xff]  }
 0x943   : > { %9241 = vmatprep.subr.bf16.mxu0 %v12326_v59  ;;  %v16001_v59 = vpack.c.bf16 %v15227_v35, %v15227_v35 }
 0x945   : > { %9201 = vmatpush2.bf16.msra.mxu1 %v12321_v19  ;;  %v12363_v19 = vld [vmem:[%s17581_s8 + $0x14c0] ss:$16 sps:$4 sm:$0xff]  }
 0x946   : > { %9242 = vmatpush2.bf16.msra.mxu0 %v12324_v51  ;;  %9202 = vmatprep.subr.bf16.mxu1 %v12329_v16  ;;  %v12371_v16 = vld [vmem:[%s17581_s8 + $0x14a4] ss:$16 sps:$4 sm:$0xff]  }
 0x947   : > { %9243 = vmatprep.subr.bf16.mxu0 %v12332_v46 }
 0x949   : > { %9203 = vmatpush2.bf16.msra.mxu1 %v12327_v2  ;;  %v12374_v2 = vld [vmem:[%s17581_s8 + $0x16a4] ss:$16 sps:$4 sm:$0xff]  }
 0x94a   : > { %9244 = vmatpush2.bf16.msra.mxu0 %v12330_v17  ;;  %9204 = vmatprep.subr.bf16.mxu1 %v12335_v61 }
 0x94b   : > { %9245 = vmatprep.subr.bf16.mxu0 %v12338_v52 }
 0x94d   : > { %9205 = vmatpush2.bf16.msra.mxu1 %v12333_v37  ;;  %v12369_v37 = vld [vmem:[%s17581_s8 + $0x14a0] ss:$16 sps:$4 sm:$0xff]  }
 0x94e   : > { %9246 = vmatpush2.bf16.msra.mxu0 %v12336_v6  ;;  %9206 = vmatprep.subr.bf16.mxu1 %v12341_v32 }
 0x94f   : > { %9247 = vmatprep.subr.bf16.mxu0 %v12344_v29  ;;  %v12377_v29 = vld [vmem:[%s17581_s8 + $0x1484] ss:$16 sps:$4 sm:$0xff]  }
 0x951   : > { %9207 = vmatpush2.bf16.msra.mxu1 %v12339_v39  ;;  %v12380_v39 = vld [vmem:[%s17581_s8 + $0x1684] ss:$16 sps:$4 sm:$0xff]  }
 0x952   : > { %9248 = vmatpush2.bf16.msra.mxu0 %v12342_v4  ;;  %9208 = vmatprep.subr.bf16.mxu1 %v12347_v34  ;;  %v12375_v4 = vld [vmem:[%s17581_s8 + $0x1480] ss:$16 sps:$4 sm:$0xff]  }
 0x953   : > { %9249 = vmatprep.subr.bf16.mxu0 %v12350_v44  ;;  %v12378_v34 = vld [vmem:[%s17581_s8 + $0x1680] ss:$16 sps:$4 sm:$0xff]   ;;  %v12383_v44 = vld [vmem:[%s17581_s8 + $0x1464] ss:$16 sps:$4 sm:$0xff]  }
 0x955   : > { %9209 = vmatpush2.bf16.msra.mxu1 %v12345_v38  ;;  %v12386_v38 = vld [vmem:[%s17581_s8 + $0x1664] ss:$16 sps:$4 sm:$0xff]  }
 0x956   : > { %9250 = vmatpush2.bf16.msra.mxu0 %v12348_v47  ;;  %9210 = vmatprep.subr.bf16.mxu1 %v12353_v41  ;;  %v12381_v47 = vld [vmem:[%s17581_s8 + $0x1460] ss:$16 sps:$4 sm:$0xff]  }
 0x957   : > { %9251 = vmatprep.subr.bf16.mxu0 %v12356_v27  ;;  %v12384_v41 = vld [vmem:[%s17581_s8 + $0x1660] ss:$16 sps:$4 sm:$0xff]   ;;  %v12389_v27 = vld [vmem:[%s17581_s8 + $0x1444] ss:$16 sps:$4 sm:$0xff]  }
 0x959   : > { %9211 = vmatpush2.bf16.msra.mxu1 %v12351_v36  ;;  %v12392_v36 = vld [vmem:[%s17581_s8 + $0x1644] ss:$16 sps:$4 sm:$0xff]  }
 0x95a   : > { %9252 = vmatpush2.bf16.msra.mxu0 %v12354_v24  ;;  %9262 = vmatprep.subr.bf16.mxu1 %v12359_v23  ;;  %v12387_v24 = vld [vmem:[%s17581_s8 + $0x1440] ss:$16 sps:$4 sm:$0xff]   ;;  %v12395_v23 = vld [vmem:[%s17581_s8 + $0x1424] ss:$16 sps:$4 sm:$0xff]  }
 0x95b   : > { %9303 = vmatprep.subr.bf16.mxu0 %v12362_v26  ;;  %v12393_v26 = vld [vmem:[%s17581_s8 + $0x1420] ss:$16 sps:$4 sm:$0xff]  }
 0x95c   : > { %v8968_v53 = vpop.f32.mrf.mxu1  ;;  %v9009_v7 = vpop.f32.mrf.mxu0  ;;  %9213 = vmatmul.mubr.bf16.vlgmr.msra.gmra.mxu1 %v15979_v20 }
 0x95d   : > { %v8969_v25 = vadd.f32 %v8968_v53, %v15796_v10  ;;  %9254 = vmatmul.mubr.bf16.vlgmr.msra.gmra.mxu0 %v15984_v8  ;;  %9263 = vmatpush1.bf16.msra.mxu1 %v12357_v63  ;;  %v12366_v10 = vld [vmem:[%s17581_s8 + $0x16c0] ss:$16 sps:$4 sm:$0xff]  }
 0x95e   : > { %9294 = vmatprep.mubr.bf16.mxu1 %v15992_v60  ;;  %9304 = vmatpush1.bf16.msra.mxu0 %v12360_v15  ;;  %v8970_v31 = vpop.f32.mrf.mxu1  ;;  %v9011_v51 = vpop.f32.mrf.mxu0  ;;  %v12396_v63 = vld [vmem:[%s17581_s8 + $0x1620] ss:$16 sps:$4 sm:$0xff]   ;;  %v12401_v15 = vld [vmem:[%s17581_s8 + $0x1404] ss:$16 sps:$4 sm:$0xff]  }
 0x95f   : > { %v16013_v46 = vadd.f32 %v9009_v7, %v8969_v25  ;;  %9335 = vmatprep.mubr.bf16.mxu0 %v16001_v59  ;;  %v8971_v35 = vadd.f32 %v8970_v31, %v15802_v14  ;;  %9264 = vmatprep.subr.bf16.mxu1 %v12365_v5  ;;  %v12372_v14 = vld [vmem:[%s17581_s8 + $0x16a0] ss:$16 sps:$4 sm:$0xff]   ;;  %v12404_v5 = vld [vmem:[%s17581_s8 + $0x1604] ss:$16 sps:$4 sm:$0xff]  }
 0x960   : > { %v8972_v17 = vpop.f32.mrf.mxu1  ;;  %v9013_v61 = vpop.f32.mrf.mxu0  ;;  %9305 = vmatprep.subr.bf16.mxu0 %v12368_v49  ;;  %v12399_v53 = vld [vmem:[%s17581_s8 + $0x1400] ss:$16 sps:$4 sm:$0xff]   ;;  %v12407_v49 = vld [vmem:[%s17581_s8 + $0x15e4] ss:$16 sps:$4 sm:$0xff]  }
 0x961   : > { %v16020_v52 = vadd.f32 %v9011_v51, %v8971_v35  ;;  %9265 = vmatpush1.bf16.msra.mxu1 %v12363_v19  ;;  %v12402_v7 = vld [vmem:[%s17581_s8 + $0x1600] ss:$16 sps:$4 sm:$0xff]   ;;  %v12410_v25 = vld [vmem:[%s17581_s8 + $0x17e4] ss:$16 sps:$4 sm:$0xff]  }
 0x962   : > { %9306 = vmatpush1.bf16.msra.mxu0 %v12366_v10  ;;  %v8973_v6 = vpop.f32.mrf.mxu1  ;;  %v9014_v32 = vpop.f32.mrf.mxu0  ;;  %9266 = vmatprep.subr.bf16.mxu1 %v12371_v16  ;;  %v12405_v19 = vld [vmem:[%s17581_s8 + $0x15e0] ss:$16 sps:$4 sm:$0xff]   ;;  %v12413_v51 = vld [vmem:[%s17581_s8 + $0x15c4] ss:$16 sps:$4 sm:$0xff]  }
 0x963   : > { %9307 = vmatprep.subr.bf16.mxu0 %v12374_v2  ;;  %v12408_v31 = vld [vmem:[%s17581_s8 + $0x17e0] ss:$16 sps:$4 sm:$0xff]   ;;  %v12416_v10 = vld [vmem:[%s17581_s8 + $0x17c4] ss:$16 sps:$4 sm:$0xff]  }
 0x964   : > { %v12411_v16 = vld [vmem:[%s17581_s8 + $0x15c0] ss:$16 sps:$4 sm:$0xff]   ;;  %v12419_v2 = vld [vmem:[%s17581_s8 + $0x15a4] ss:$16 sps:$4 sm:$0xff]  }
 0x965   : > { %9267 = vmatpush1.bf16.msra.mxu1 %v12369_v37  ;;  %v12414_v35 = vld [vmem:[%s17581_s8 + $0x17c0] ss:$16 sps:$4 sm:$0xff]   ;;  %v12422_v17 = vld [vmem:[%s17581_s8 + $0x17a4] ss:$16 sps:$4 sm:$0xff]  }
 0x966   : > { %9308 = vmatpush1.bf16.msra.mxu0 %v12372_v14  ;;  %9268 = vmatprep.subr.bf16.mxu1 %v12377_v29  ;;  %v12417_v61 = vld [vmem:[%s17581_s8 + $0x15a0] ss:$16 sps:$4 sm:$0xff]   ;;  %v12425_v6 = vld [vmem:[%s17581_s8 + $0x1584] ss:$16 sps:$4 sm:$0xff]  }
 0x967   : > { %9309 = vmatprep.subr.bf16.mxu0 %v12380_v39  ;;  %v12420_v37 = vld [vmem:[%s17581_s8 + $0x17a0] ss:$16 sps:$4 sm:$0xff]   ;;  %v12428_v32 = vld [vmem:[%s17581_s8 + $0x1784] ss:$16 sps:$4 sm:$0xff]  }
 0x968   : > { %v12423_v14 = vld [vmem:[%s17581_s8 + $0x1580] ss:$16 sps:$4 sm:$0xff]   ;;  %v12431_v39 = vld [vmem:[%s17581_s8 + $0x1564] ss:$16 sps:$4 sm:$0xff]  }
 0x969   : > { %9269 = vmatpush1.bf16.msra.mxu1 %v12375_v4  ;;  %v12426_v29 = vld [vmem:[%s17581_s8 + $0x1780] ss:$16 sps:$4 sm:$0xff]   ;;  %v12434_v4 = vld [vmem:[%s17581_s8 + $0x1764] ss:$16 sps:$4 sm:$0xff]  }
 0x96a   : > { %9310 = vmatpush1.bf16.msra.mxu0 %v12378_v34  ;;  %9270 = vmatprep.subr.bf16.mxu1 %v12383_v44  ;;  %v12429_v34 = vld [vmem:[%s17581_s8 + $0x1560] ss:$16 sps:$4 sm:$0xff]  }
 0x96b   : > { %9311 = vmatprep.subr.bf16.mxu0 %v12386_v38  ;;  %v12432_v44 = vld [vmem:[%s17581_s8 + $0x1760] ss:$16 sps:$4 sm:$0xff]   ;;  %v12437_v38 = vld [vmem:[%s17581_s8 + $0x1544] ss:$16 sps:$4 sm:$0xff]  }
 0x96d   : > { %9271 = vmatpush1.bf16.msra.mxu1 %v12381_v47  ;;  %v12440_v47 = vld [vmem:[%s17581_s8 + $0x1744] ss:$16 sps:$4 sm:$0xff]  }
 0x96e   : > { %9312 = vmatpush1.bf16.msra.mxu0 %v12384_v41  ;;  %9272 = vmatprep.subr.bf16.mxu1 %v12389_v27  ;;  %v12435_v41 = vld [vmem:[%s17581_s8 + $0x1540] ss:$16 sps:$4 sm:$0xff]  }
 0x96f   : > { %9313 = vmatprep.subr.bf16.mxu0 %v12392_v36  ;;  %v12438_v27 = vld [vmem:[%s17581_s8 + $0x1740] ss:$16 sps:$4 sm:$0xff]   ;;  %v12443_v36 = vld [vmem:[%s17581_s8 + $0x1524] ss:$16 sps:$4 sm:$0xff]  }
 0x971   : > { %9273 = vmatpush1.bf16.msra.mxu1 %v12387_v24  ;;  %v12446_v24 = vld [vmem:[%s17581_s8 + $0x1724] ss:$16 sps:$4 sm:$0xff]  }
 0x972   : > { %9314 = vmatpush1.bf16.msra.mxu0 %v12390_v58  ;;  %9274 = vmatprep.subr.bf16.mxu1 %v12395_v23  ;;  %v12441_v58 = vld [vmem:[%s17581_s8 + $0x1520] ss:$16 sps:$4 sm:$0xff]  }
 0x973   : > { %9315 = vmatprep.subr.bf16.mxu0 %v12398_v50  ;;  %v12444_v23 = vld [vmem:[%s17581_s8 + $0x1720] ss:$16 sps:$4 sm:$0xff]   ;;  %v12449_v50 = vld [vmem:[%s17581_s8 + $0x1504] ss:$16 sps:$4 sm:$0xff]  }
 0x975   : > { %9275 = vmatpush1.bf16.msra.mxu1 %v12393_v26  ;;  %v12452_v26 = vld [vmem:[%s17581_s8 + $0x1704] ss:$16 sps:$4 sm:$0xff]  }
 0x976   : > { %9316 = vmatpush1.bf16.msra.mxu0 %v12396_v63  ;;  %9276 = vmatprep.subr.bf16.mxu1 %v12401_v15  ;;  %v12447_v63 = vld [vmem:[%s17581_s8 + $0x1500] ss:$16 sps:$4 sm:$0xff]  }
 0x977   : > { %9317 = vmatprep.subr.bf16.mxu0 %v12404_v5  ;;  %v12450_v15 = vld [vmem:[%s17581_s8 + $0x1700] ss:$16 sps:$4 sm:$0xff]   ;;  %v12455_v5 = vld [vmem:[%s17581_s8 + $0x1864] ss:$16 sps:$4 sm:$0xff]  }
 0x979   : > { %9277 = vmatpush1.bf16.msra.mxu1 %v12399_v53  ;;  %v12458_v53 = vld [vmem:[%s17581_s8 + $0xec] ss:$16 sps:$4 sm:$0xff]  }
 0x97a   : > { %9318 = vmatpush1.bf16.msra.mxu0 %v12402_v7  ;;  %9278 = vmatprep.subr.bf16.mxu1 %v12407_v49  ;;  %v12453_v7 = vld [vmem:[%s17581_s8 + $0x1860] ss:$16 sps:$4 sm:$0xff]   ;;  %v16195_v49 = vpack.c.bf16 %v15231_v28, %v15231_v28 }
 0x97b   : > { %9319 = vmatprep.subr.bf16.mxu0 %v12410_v25  ;;  %v12456_v25 = vld [vmem:[%s17581_s8 + $0xe8] ss:$16 sps:$4 sm:$0xff]  }
 0x97d   : > { %9279 = vmatpush2.bf16.msra.mxu1 %v12405_v19  ;;  %v16202_v19 = vpack.c.bf16 %v15241_v13, %v15241_v13  ;;  %v12459_v13 = vld [vmem:[%s17581_s8 + $0x1840] ss:$16 sps:$4 sm:$0xff]  }
 0x97e   : > { %9320 = vmatpush2.bf16.msra.mxu0 %v12408_v31  ;;  %9280 = vmatprep.subr.bf16.mxu1 %v12413_v51  ;;  %v12461_v31 = vld [vmem:[%s17581_s8 + $0x1844] ss:$16 sps:$4 sm:$0xff]   ;;  %v12464_v51 = vld [vmem:[%s17581_s8 + $0xcc] ss:$16 sps:$4 sm:$0xff]  }
 0x97f   : > { %9321 = vmatprep.subr.bf16.mxu0 %v12416_v10 }
 0x981   : > { %9281 = vmatpush2.bf16.msra.mxu1 %v12411_v16 }
 0x982   : > { %9322 = vmatpush2.bf16.msra.mxu0 %v12414_v35  ;;  %9282 = vmatprep.subr.bf16.mxu1 %v12419_v2  ;;  %v12462_v2 = vld [vmem:[%s17581_s8 + $0xc8] ss:$16 sps:$4 sm:$0xff]  }
 0x983   : > { %9323 = vmatprep.subr.bf16.mxu0 %v12422_v17 }
 0x985   : > { %9283 = vmatpush2.bf16.msra.mxu1 %v12417_v61 }
 0x986   : > { %9324 = vmatpush2.bf16.msra.mxu0 %v12420_v37  ;;  %9284 = vmatprep.subr.bf16.mxu1 %v12425_v6 }
 0x987   : > { %9325 = vmatprep.subr.bf16.mxu0 %v12428_v32  ;;  %v17616_v32 = vmov 0  }
 0x989   : > { %9285 = vmatpush2.bf16.msra.mxu1 %v12423_v14 }
 0x98a   : > { %9326 = vmatpush2.bf16.msra.mxu0 %v12426_v29  ;;  %9286 = vmatprep.subr.bf16.mxu1 %v12431_v39  ;;  %v12465_v39 = vld [vmem:[%s17581_s8 + $0x1820] ss:$16 sps:$4 sm:$0xff]  }
 0x98b   : > { %9327 = vmatprep.subr.bf16.mxu0 %v12434_v4  ;;  %v12468_v4 = vld [vmem:[%s17581_s8 + $0xa8] ss:$16 sps:$4 sm:$0xff]  }
 0x98d   : > { %9287 = vmatpush2.bf16.msra.mxu1 %v12429_v34  ;;  %v12473_v34 = vld [vmem:[%s17581_s8 + $0x1804] ss:$16 sps:$4 sm:$0xff]  }
 0x98e   : > { %9328 = vmatpush2.bf16.msra.mxu0 %v12432_v44  ;;  %9288 = vmatprep.subr.bf16.mxu1 %v12437_v38  ;;  %v12476_v38 = vld [vmem:[%s17581_s8 + $0x8c] ss:$16 sps:$4 sm:$0xff]  }
 0x98f   : > { %9329 = vmatprep.subr.bf16.mxu0 %v12440_v47  ;;  %v12471_v47 = vld [vmem:[%s17581_s8 + $0x1800] ss:$16 sps:$4 sm:$0xff]  }
 0x991   : > { %9289 = vmatpush2.bf16.msra.mxu1 %v12435_v41  ;;  %v12474_v41 = vld [vmem:[%s17581_s8 + $0x88] ss:$16 sps:$4 sm:$0xff]  }
 0x992   : > { %9330 = vmatpush2.bf16.msra.mxu0 %v12438_v27  ;;  %9290 = vmatprep.subr.bf16.mxu1 %v12443_v36  ;;  %v12482_v27 = vld [vmem:[%s17581_s8 + $0x2ec] ss:$16 sps:$4 sm:$0xff]   ;;  %v10573_v36 = vld [vmem:[#allocation7 + $0x18] ss:$0 sm:$0xff] }
 0x993   : > { %9331 = vmatprep.subr.bf16.mxu0 %v12446_v24  ;;  %v12479_v24 = vld [vmem:[%s17581_s8 + $0x6c] ss:$16 sps:$4 sm:$0xff]  }
 0x995   : > { %9291 = vmatpush2.bf16.msra.mxu1 %v12441_v58  ;;  %v12480_v58 = vld [vmem:[%s17581_s8 + $0x2e8] ss:$16 sps:$4 sm:$0xff]  }
 0x996   : > { %9332 = vmatpush2.bf16.msra.mxu0 %v12444_v23  ;;  %9292 = vmatprep.subr.bf16.mxu1 %v12449_v50  ;;  %v16259_v23 = vpack.c.bf16 %v10573_v36, %v10573_v36  ;;  %v12477_v50 = vld [vmem:[%s17581_s8 + $0x68] ss:$16 sps:$4 sm:$0xff]  }
 0x997   : > { %9333 = vmatprep.subr.bf16.mxu0 %v12452_v26  ;;  %v12488_v26 = vld [vmem:[%s17581_s8 + $0x2cc] ss:$16 sps:$4 sm:$0xff]   ;;  %v12525_v36 = vld [vmem:[%s17581_s8 + $0x168] ss:$16 sps:$4 sm:$0xff]  }
 0x999   : > { %9293 = vmatpush2.bf16.msra.mxu1 %v12447_v63  ;;  %v12485_v63 = vld [vmem:[%s17581_s8 + $0x4c] ss:$16 sps:$4 sm:$0xff]  }
 0x99a   : > { %9334 = vmatpush2.bf16.msra.mxu0 %v12450_v15  ;;  %9352 = vmatprep.subr.bf16.mxu1 %v12455_v5  ;;  %v12486_v15 = vld [vmem:[%s17581_s8 + $0x2c8] ss:$16 sps:$4 sm:$0xff]  }
 0x99b   : > { %9385 = vmatprep.subr.bf16.mxu0 %v12458_v53  ;;  %v12483_v5 = vld [vmem:[%s17581_s8 + $0x48] ss:$16 sps:$4 sm:$0xff]   ;;  %v12494_v53 = vld [vmem:[%s17581_s8 + $0x2ac] ss:$16 sps:$4 sm:$0xff]  }
 0x99c   : > { %v9050_v28 = vpop.f32.mrf.mxu1  ;;  %9295 = vmatmul.mubr.bf16.vlgmr.msra.gmra.mxu1 %v16195_v49 }
 0x99d   : > { %v9051_v10 = vadd.f32 %v9050_v28, %v16013_v46  ;;  %v9091_v16 = vpop.f32.mrf.mxu0  ;;  %9336 = vmatmul.mubr.bf16.vlgmr.msra.gmra.mxu0 %v16202_v19  ;;  %9353 = vmatpush1.bf16.msra.mxu1 %v12453_v7  ;;  %v12467_v46 = vld [vmem:[%s17581_s8 + $0x1824] ss:$16 sps:$4 sm:$0xff]   ;;  %v12491_v7 = vld [vmem:[%s17581_s8 + $0x2c] ss:$16 sps:$4 sm:$0xff]   ;;  %v12498_v28 = vld [vmem:[%s17581_s8 + $0x288] ss:$16 sps:$4 sm:$0xff]  }
 0x99e   : > { %9386 = vmatpush1.bf16.msra.mxu0 %v12456_v25  ;;  %9417 = vmatprep.mubr.bf16.mxu0 %v15053_v56  ;;  %v9052_v35 = vpop.f32.mrf.mxu1  ;;  %v12470_v56 = vld [vmem:[%s17581_s8 + $0xac] ss:$16 sps:$4 sm:$0xff]   ;;  %v12489_v25 = vld [vmem:[%s17581_s8 + $0x28] ss:$16 sps:$4 sm:$0xff]  }
 0x99f   : > { %v16223_v17 = vadd.f32 %v9091_v16, %v9051_v10  ;;  %v9053_v61 = vadd.f32 %v9052_v35, %v16020_v52  ;;  %v9093_v37 = vpop.f32.mrf.mxu0  ;;  %9354 = vmatprep.subr.bf16.mxu1 %v12461_v31  ;;  %9387 = vmatprep.subr.bf16.mxu0 %v12464_v51  ;;  %v12500_v31 = vld [vmem:[%s17581_s8 + $0x28c] ss:$16 sps:$4 sm:$0xff]   ;;  %v12495_v10 = vld [vmem:[%s17581_s8 + $0x8] ss:$16 sps:$4 sm:$0xff]  }
 0x9a0   : > { %v9054_v6 = vpop.f32.mrf.mxu1  ;;  %9376 = vmatprep.mubr.bf16.mxu1 %v17616_v32  ;;  %v12497_v51 = vld [vmem:[%s17581_s8 + $0xc] ss:$16 sps:$4 sm:$0xff]   ;;  %v12504_v35 = vld [vmem:[%s17581_s8 + $0x268] ss:$16 sps:$4 sm:$0xff]  }
 0x9a1   : > { %v16230_v14 = vadd.f32 %v9093_v37, %v9053_v61  ;;  %v9095_v29 = vpop.f32.mrf.mxu0  ;;  %9355 = vmatpush1.bf16.msra.mxu1 %v12459_v13  ;;  %v12506_v16 = vld [vmem:[%s17581_s8 + $0x26c] ss:$16 sps:$4 sm:$0xff]   ;;  %v12510_v37 = vld [vmem:[%s17581_s8 + $0x248] ss:$16 sps:$4 sm:$0xff]  }
 0x9a2   : > { %9388 = vmatpush1.bf16.msra.mxu0 %v12462_v2  ;;  %v9055_v52 = vpop.f32.mrf.mxu1  ;;  %9356 = vmatprep.subr.bf16.mxu1 %v12467_v46  ;;  %v12503_v13 = vld [vmem:[%s17581_s8 + $0x1ec] ss:$16 sps:$4 sm:$0xff]   ;;  %v12501_v2 = vld [vmem:[%s17581_s8 + $0x1e8] ss:$16 sps:$4 sm:$0xff]  }
 0x9a3   : > { %v9096_v44 = vpop.f32.mrf.mxu0  ;;  %9389 = vmatprep.subr.bf16.mxu0 %v12470_v56  ;;  %v12512_v46 = vld [vmem:[%s17581_s8 + $0x24c] ss:$16 sps:$4 sm:$0xff]   ;;  %v12507_v56 = vld [vmem:[%s17581_s8 + $0x1c8] ss:$16 sps:$4 sm:$0xff]  }
 0x9a4   : > { %v12509_v61 = vld [vmem:[%s17581_s8 + $0x1cc] ss:$16 sps:$4 sm:$0xff]   ;;  %v12513_v52 = vld [vmem:[%s17581_s8 + $0x1a8] ss:$16 sps:$4 sm:$0xff]  }
 0x9a5   : > { %9357 = vmatpush1.bf16.msra.mxu1 %v12465_v39  ;;  %v12518_v6 = vld [vmem:[%s17581_s8 + $0x22c] ss:$16 sps:$4 sm:$0xff]   ;;  %v12516_v39 = vld [vmem:[%s17581_s8 + $0x228] ss:$16 sps:$4 sm:$0xff]  }
 0x9a6   : > { %9390 = vmatpush1.bf16.msra.mxu0 %v12468_v4  ;;  %9358 = vmatprep.subr.bf16.mxu1 %v12473_v34  ;;  %v12515_v29 = vld [vmem:[%s17581_s8 + $0x1ac] ss:$16 sps:$4 sm:$0xff]   ;;  %v12522_v44 = vld [vmem:[%s17581_s8 + $0x208] ss:$16 sps:$4 sm:$0xff]  }
 0x9a7   : > { %9391 = vmatprep.subr.bf16.mxu0 %v12476_v38  ;;  %v12524_v4 = vld [vmem:[%s17581_s8 + $0x20c] ss:$16 sps:$4 sm:$0xff]   ;;  %v12519_v38 = vld [vmem:[%s17581_s8 + $0x188] ss:$16 sps:$4 sm:$0xff]  }
 0x9a8   : > { %v12521_v34 = vld [vmem:[%s17581_s8 + $0x18c] ss:$16 sps:$4 sm:$0xff]  }
 0x9a9   : > { %9359 = vmatpush1.bf16.msra.mxu1 %v12471_v47  ;;  %v12530_v47 = vld [vmem:[%s17581_s8 + $0x3ec] ss:$16 sps:$4 sm:$0xff]  }
 0x9aa   : > { %9392 = vmatpush1.bf16.msra.mxu0 %v12474_v41  ;;  %9426 = vmatprep.subr.bf16.mxu1 %v12482_v27  ;;  %v12527_v41 = vld [vmem:[%s17581_s8 + $0x16c] ss:$16 sps:$4 sm:$0xff]   ;;  %v12528_v27 = vld [vmem:[%s17581_s8 + $0x3e8] ss:$16 sps:$4 sm:$0xff]  }
 0x9ab   : > { %9393 = vmatprep.subr.bf16.mxu0 %v12479_v24  ;;  %v12536_v24 = vld [vmem:[%s17581_s8 + $0x3cc] ss:$16 sps:$4 sm:$0xff]  }
 0x9ac   : > { %11358 = vmatmul.mubr.msk.bf16.vlgmr.msra.gmra.mxu1 %vm2822_vm12, %v16259_v23 }
 0x9ad   : > { %9427 = vmatpush1.bf16.msra.mxu1 %v12480_v58  ;;  %9458 = vmatprep.mubr.bf16.mxu1 %v15055_v62  ;;  %v12492_v62 = vld [vmem:[%s17581_s8 + $0x2a8] ss:$16 sps:$4 sm:$0xff]   ;;  %v12533_v58 = vld [vmem:[%s17581_s8 + $0x14c] ss:$16 sps:$4 sm:$0xff]  }
 0x9ae   : > { %9394 = vmatpush1.bf16.msra.mxu0 %v12477_v50  ;;  %9428 = vmatprep.subr.bf16.mxu1 %v12488_v26  ;;  %v12534_v50 = vld [vmem:[%s17581_s8 + $0x3c8] ss:$16 sps:$4 sm:$0xff]  }
 0x9af   : > { %9395 = vmatprep.subr.bf16.mxu0 %v12485_v63  ;;  %v12531_v26 = vld [vmem:[%s17581_s8 + $0x148] ss:$16 sps:$4 sm:$0xff]   ;;  %v12542_v63 = vld [vmem:[%s17581_s8 + $0x3ac] ss:$16 sps:$4 sm:$0xff]  }
 0x9b1   : > { %9429 = vmatpush1.bf16.msra.mxu1 %v12486_v15  ;;  %v12539_v15 = vld [vmem:[%s17581_s8 + $0x12c] ss:$16 sps:$4 sm:$0xff]  }
 0x9b2   : > { %9396 = vmatpush1.bf16.msra.mxu0 %v12483_v5  ;;  %9430 = vmatprep.subr.bf16.mxu1 %v12494_v53  ;;  %v12540_v5 = vld [vmem:[%s17581_s8 + $0x3a8] ss:$16 sps:$4 sm:$0xff]  }
 0x9b3   : > { %9397 = vmatprep.subr.bf16.mxu0 %v12491_v7  ;;  %v12537_v53 = vld [vmem:[%s17581_s8 + $0x128] ss:$16 sps:$4 sm:$0xff]   ;;  %v12548_v7 = vld [vmem:[%s17581_s8 + $0x38c] ss:$16 sps:$4 sm:$0xff]  }
 0x9b5   : > { %9431 = vmatpush1.bf16.msra.mxu1 %v12492_v62  ;;  %v12545_v62 = vld [vmem:[%s17581_s8 + $0x10c] ss:$16 sps:$4 sm:$0xff]  }
 0x9b6   : > { %9398 = vmatpush1.bf16.msra.mxu0 %v12489_v25  ;;  %9432 = vmatprep.subr.bf16.mxu1 %v12500_v31  ;;  %v12546_v25 = vld [vmem:[%s17581_s8 + $0x388] ss:$16 sps:$4 sm:$0xff]  }
 0x9b7   : > { %9399 = vmatprep.subr.bf16.mxu0 %v12497_v51  ;;  %v12543_v31 = vld [vmem:[%s17581_s8 + $0x108] ss:$16 sps:$4 sm:$0xff]   ;;  %v12551_v51 = vld [vmem:[%s17581_s8 + $0x36c] ss:$16 sps:$4 sm:$0xff]  }
 0x9b9   : > { %9433 = vmatpush1.bf16.msra.mxu1 %v12498_v28  ;;  %v12554_v28 = vld [vmem:[%s17581_s8 + $0x4ec] ss:$16 sps:$4 sm:$0xff]  }
 0x9ba   : > { %9400 = vmatpush1.bf16.msra.mxu0 %v12495_v10  ;;  %9434 = vmatprep.subr.bf16.mxu1 %v12506_v16  ;;  %v12549_v10 = vld [vmem:[%s17581_s8 + $0x368] ss:$16 sps:$4 sm:$0xff]  }
 0x9bb   : > { %9401 = vmatprep.subr.bf16.mxu0 %v12503_v13  ;;  %v12552_v16 = vld [vmem:[%s17581_s8 + $0x4e8] ss:$16 sps:$4 sm:$0xff]   ;;  %v12557_v13 = vld [vmem:[%s17581_s8 + $0x34c] ss:$16 sps:$4 sm:$0xff]  }
 0x9bd   : > { %9435 = vmatpush1.bf16.msra.mxu1 %v12504_v35  ;;  %v12560_v35 = vld [vmem:[%s17581_s8 + $0x4cc] ss:$16 sps:$4 sm:$0xff]  }
 0x9be   : > { %9402 = vmatpush2.bf16.msra.mxu0 %v12501_v2  ;;  %9436 = vmatprep.subr.bf16.mxu1 %v12512_v46 }
 0x9bf   : > { %9403 = vmatprep.subr.bf16.mxu0 %v12509_v61 }
 0x9c1   : > { %9437 = vmatpush1.bf16.msra.mxu1 %v12510_v37  ;;  %v12555_v37 = vld [vmem:[%s17581_s8 + $0x348] ss:$16 sps:$4 sm:$0xff]  }
 0x9c2   : > { %9404 = vmatpush2.bf16.msra.mxu0 %v12507_v56  ;;  %9438 = vmatprep.subr.bf16.mxu1 %v12518_v6  ;;  %v12558_v6 = vld [vmem:[%s17581_s8 + $0x4c8] ss:$16 sps:$4 sm:$0xff]  }
 0x9c3   : > { %9405 = vmatprep.subr.bf16.mxu0 %v12515_v29 }
 0x9c5   : > { %9439 = vmatpush1.bf16.msra.mxu1 %v12516_v39 }
 0x9c6   : > { %9406 = vmatpush2.bf16.msra.mxu0 %v12513_v52  ;;  %9440 = vmatprep.subr.bf16.mxu1 %v12524_v4 }
 0x9c7   : > { %9407 = vmatprep.subr.bf16.mxu0 %v12521_v34 }
 0x9c9   : > { %9441 = vmatpush1.bf16.msra.mxu1 %v12522_v44  ;;  %v12561_v44 = vld [vmem:[%s17581_s8 + $0x328] ss:$16 sps:$4 sm:$0xff]  }
 0x9ca   : > { %9408 = vmatpush2.bf16.msra.mxu0 %v12519_v38  ;;  %9442 = vmatprep.subr.bf16.mxu1 %v12530_v47  ;;  %v12569_v47 = vld [vmem:[%s17581_s8 + $0x30c] ss:$16 sps:$4 sm:$0xff]  }
 0x9cb   : > { %9409 = vmatprep.subr.bf16.mxu0 %v12527_v41 }
 0x9cd   : > { %9443 = vmatpush2.bf16.msra.mxu1 %v12528_v27  ;;  %v12572_v27 = vld [vmem:[%s17581_s8 + $0x48c] ss:$16 sps:$4 sm:$0xff]  }
 0x9ce   : > { %9410 = vmatpush2.bf16.msra.mxu0 %v12525_v36  ;;  %9444 = vmatprep.subr.bf16.mxu1 %v12536_v24  ;;  %v12567_v36 = vld [vmem:[%s17581_s8 + $0x308] ss:$16 sps:$4 sm:$0xff]  }
 0x9cf   : > { %9411 = vmatprep.subr.bf16.mxu0 %v12533_v58  ;;  %v12570_v24 = vld [vmem:[%s17581_s8 + $0x488] ss:$16 sps:$4 sm:$0xff]   ;;  %v12578_v58 = vld [vmem:[%s17581_s8 + $0x6ec] ss:$16 sps:$4 sm:$0xff]  }
 0x9d1   : > { %9445 = vmatpush2.bf16.msra.mxu1 %v12534_v50  ;;  %v12575_v50 = vld [vmem:[%s17581_s8 + $0x46c] ss:$16 sps:$4 sm:$0xff]  }
 0x9d2   : > { %9412 = vmatpush2.bf16.msra.mxu0 %v12531_v26  ;;  %9446 = vmatprep.subr.bf16.mxu1 %v12542_v63  ;;  %v12576_v26 = vld [vmem:[%s17581_s8 + $0x6e8] ss:$16 sps:$4 sm:$0xff]  }
 0x9d3   : > { %9413 = vmatprep.subr.bf16.mxu0 %v12539_v15  ;;  %v12573_v63 = vld [vmem:[%s17581_s8 + $0x468] ss:$16 sps:$4 sm:$0xff]   ;;  %v12584_v15 = vld [vmem:[%s17581_s8 + $0x6cc] ss:$16 sps:$4 sm:$0xff]  }
 0x9d5   : > { %9447 = vmatpush2.bf16.msra.mxu1 %v12540_v5  ;;  %v12581_v5 = vld [vmem:[%s17581_s8 + $0x44c] ss:$16 sps:$4 sm:$0xff]  }
 0x9d6   : > { %9414 = vmatpush2.bf16.msra.mxu0 %v12537_v53  ;;  %9448 = vmatprep.subr.bf16.mxu1 %v12548_v7  ;;  %v12582_v53 = vld [vmem:[%s17581_s8 + $0x6c8] ss:$16 sps:$4 sm:$0xff]  }
 0x9d7   : > { %9415 = vmatprep.subr.bf16.mxu0 %v12545_v62  ;;  %v12579_v7 = vld [vmem:[%s17581_s8 + $0x448] ss:$16 sps:$4 sm:$0xff]   ;;  %v12590_v62 = vld [vmem:[%s17581_s8 + $0x6ac] ss:$16 sps:$4 sm:$0xff]  }
 0x9d9   : > { %9449 = vmatpush2.bf16.msra.mxu1 %v12546_v25  ;;  %v12585_v25 = vld [vmem:[%s17581_s8 + $0x428] ss:$16 sps:$4 sm:$0xff]  }
 0x9da   : > { %9416 = vmatpush2.bf16.msra.mxu0 %v12543_v31  ;;  %9450 = vmatprep.subr.bf16.mxu1 %v12551_v51  ;;  %v12596_v31 = vld [vmem:[%s17581_s8 + $0x68c] ss:$16 sps:$4 sm:$0xff]  }
 0x9db   : > { %9467 = vmatprep.subr.bf16.mxu0 %v12554_v28  ;;  %v12593_v51 = vld [vmem:[%s17581_s8 + $0x40c] ss:$16 sps:$4 sm:$0xff]   ;;  %v12594_v28 = vld [vmem:[%s17581_s8 + $0x688] ss:$16 sps:$4 sm:$0xff]  }
 0x9dc   : > { %v9132_v2 = vpop.f32.mrf.mxu1 }
 0x9dd   : > { %v9133_v46 = vadd.f32 %v9132_v2, %v16223_v17  ;;  %v9173_v61 = vpop.f32.mrf.mxu0  ;;  %9418 = vmatmul.mubr.bf16.vlgmr.msra.gmra.mxu0 %v15063_v0  ;;  %9451 = vmatpush2.bf16.msra.mxu1 %v12549_v10  ;;  %v12563_v17 = vld [vmem:[%s17581_s8 + $0x32c] ss:$16 sps:$4 sm:$0xff]   ;;  %v12591_v10 = vld [vmem:[%s17581_s8 + $0x408] ss:$16 sps:$4 sm:$0xff]  }
 0x9de   : > { %9468 = vmatpush1.bf16.msra.mxu0 %v12552_v16  ;;  %9499 = vmatprep.mubr.bf16.mxu0 %v15081_v40  ;;  %v9134_v56 = vpop.f32.mrf.mxu1  ;;  %v12566_v40 = vld [vmem:[%s17581_s8 + $0x4ac] ss:$16 sps:$4 sm:$0xff]   ;;  %v12597_v2 = vld [vmem:[%s17581_s8 + $0x5e8] ss:$16 sps:$4 sm:$0xff]  }
 0x9df   : > { %v16429_v29 = vadd.f32 %v9173_v61, %v9133_v46  ;;  %v9135_v0 = vadd.f32 %v9134_v56, %v16230_v14  ;;  %v9175_v39 = vpop.f32.mrf.mxu0  ;;  %9452 = vmatprep.subr.bf16.mxu1 %v12557_v13  ;;  %9469 = vmatprep.subr.bf16.mxu0 %v12560_v35  ;;  %v12564_v14 = vld [vmem:[%s17581_s8 + $0x4a8] ss:$16 sps:$4 sm:$0xff]   ;;  %v12602_v16 = vld [vmem:[%s17581_s8 + $0x66c] ss:$16 sps:$4 sm:$0xff]  }
 0x9e0   : > { %v9136_v52 = vpop.f32.mrf.mxu1  ;;  %v12599_v13 = vld [vmem:[%s17581_s8 + $0x5ec] ss:$16 sps:$4 sm:$0xff]   ;;  %v12600_v35 = vld [vmem:[%s17581_s8 + $0x668] ss:$16 sps:$4 sm:$0xff]  }
 0x9e1   : > { %v16435_v4 = vadd.f32 %v9175_v39, %v9135_v0  ;;  %v9177_v34 = vpop.f32.mrf.mxu0  ;;  %9453 = vmatpush2.bf16.msra.mxu1 %v12555_v37  ;;  %v12608_v46 = vld [vmem:[%s17581_s8 + $0x64c] ss:$16 sps:$4 sm:$0xff]   ;;  %v12606_v37 = vld [vmem:[%s17581_s8 + $0x648] ss:$16 sps:$4 sm:$0xff]  }
 0x9e2   : > { %9470 = vmatpush1.bf16.msra.mxu0 %v12558_v6  ;;  %v9137_v38 = vpop.f32.mrf.mxu1  ;;  %9454 = vmatprep.subr.bf16.mxu1 %v12563_v17  ;;  %v12605_v61 = vld [vmem:[%s17581_s8 + $0x5cc] ss:$16 sps:$4 sm:$0xff]   ;;  %v12603_v56 = vld [vmem:[%s17581_s8 + $0x5c8] ss:$16 sps:$4 sm:$0xff]  }
 0x9e3   : > { %v9178_v41 = vpop.f32.mrf.mxu0  ;;  %9471 = vmatprep.subr.bf16.mxu0 %v12566_v40  ;;  %v12614_v6 = vld [vmem:[%s17581_s8 + $0x62c] ss:$16 sps:$4 sm:$0xff]   ;;  %v12612_v0 = vld [vmem:[%s17581_s8 + $0x628] ss:$16 sps:$4 sm:$0xff]  }
 0x9e4   : > { %v12611_v17 = vld [vmem:[%s17581_s8 + $0x5ac] ss:$16 sps:$4 sm:$0xff]   ;;  %v12609_v39 = vld [vmem:[%s17581_s8 + $0x5a8] ss:$16 sps:$4 sm:$0xff]  }
 0x9e5   : > { %9455 = vmatpush2.bf16.msra.mxu1 %v12561_v44  ;;  %v12620_v40 = vld [vmem:[%s17581_s8 + $0x60c] ss:$16 sps:$4 sm:$0xff]   ;;  %v12618_v34 = vld [vmem:[%s17581_s8 + $0x608] ss:$16 sps:$4 sm:$0xff]  }
 0x9e6   : > { %9472 = vmatpush1.bf16.msra.mxu0 %v12564_v14  ;;  %9456 = vmatprep.subr.bf16.mxu1 %v12569_v47  ;;  %v12617_v52 = vld [vmem:[%s17581_s8 + $0x58c] ss:$16 sps:$4 sm:$0xff]   ;;  %v12615_v44 = vld [vmem:[%s17581_s8 + $0x588] ss:$16 sps:$4 sm:$0xff]  }
 0x9e7   : > { %9473 = vmatprep.subr.bf16.mxu0 %v12572_v27  ;;  %v12626_v38 = vld [vmem:[%s17581_s8 + $0x7ec] ss:$16 sps:$4 sm:$0xff]   ;;  %v12624_v47 = vld [vmem:[%s17581_s8 + $0x7e8] ss:$16 sps:$4 sm:$0xff]  }
 0x9e8   : > { %v12623_v14 = vld [vmem:[%s17581_s8 + $0x56c] ss:$16 sps:$4 sm:$0xff]   ;;  %v12621_v41 = vld [vmem:[%s17581_s8 + $0x568] ss:$16 sps:$4 sm:$0xff]  }
 0x9e9   : > { %9457 = vmatpush2.bf16.msra.mxu1 %v12567_v36  ;;  %v12632_v27 = vld [vmem:[%s17581_s8 + $0x7cc] ss:$16 sps:$4 sm:$0xff]  }
 0x9ea   : > { %9474 = vmatpush1.bf16.msra.mxu0 %v12570_v24  ;;  %9508 = vmatprep.subr.bf16.mxu1 %v12578_v58  ;;  %v12629_v36 = vld [vmem:[%s17581_s8 + $0x54c] ss:$16 sps:$4 sm:$0xff]   ;;  %v12630_v24 = vld [vmem:[%s17581_s8 + $0x7c8] ss:$16 sps:$4 sm:$0xff]  }
 0x9eb   : > { %9475 = vmatprep.subr.bf16.mxu0 %v12575_v50  ;;  %v12627_v58 = vld [vmem:[%s17581_s8 + $0x548] ss:$16 sps:$4 sm:$0xff]   ;;  %v12638_v50 = vld [vmem:[%s17581_s8 + $0x7ac] ss:$16 sps:$4 sm:$0xff]  }
 0x9ec   : > { %9459 = vmatmul.mubr.bf16.vlgmr.msra.gmra.mxu1 %v15065_v30  ;;  %v12587_v30 = vld [vmem:[%s17581_s8 + $0x42c] ss:$16 sps:$4 sm:$0xff]  }
 0x9ed   : > { %9509 = vmatpush1.bf16.msra.mxu1 %v12576_v26  ;;  %9540 = vmatprep.mubr.bf16.mxu1 %v15083_v33  ;;  %v12588_v33 = vld [vmem:[%s17581_s8 + $0x6a8] ss:$16 sps:$4 sm:$0xff]   ;;  %v12635_v26 = vld [vmem:[%s17581_s8 + $0x52c] ss:$16 sps:$4 sm:$0xff]  }
 0x9ee   : > { %9476 = vmatpush1.bf16.msra.mxu0 %v12573_v63  ;;  %9510 = vmatprep.subr.bf16.mxu1 %v12584_v15  ;;  %v12636_v63 = vld [vmem:[%s17581_s8 + $0x7a8] ss:$16 sps:$4 sm:$0xff]  }
 0x9ef   : > { %9477 = vmatprep.subr.bf16.mxu0 %v12581_v5  ;;  %v12633_v15 = vld [vmem:[%s17581_s8 + $0x528] ss:$16 sps:$4 sm:$0xff]   ;;  %v12644_v5 = vld [vmem:[%s17581_s8 + $0x78c] ss:$16 sps:$4 sm:$0xff]  }
 0x9f1   : > { %9511 = vmatpush1.bf16.msra.mxu1 %v12582_v53  ;;  %v12641_v53 = vld [vmem:[%s17581_s8 + $0x50c] ss:$16 sps:$4 sm:$0xff]  }
 0x9f2   : > { %9478 = vmatpush1.bf16.msra.mxu0 %v12579_v7  ;;  %9512 = vmatprep.subr.bf16.mxu1 %v12590_v62  ;;  %v12642_v7 = vld [vmem:[%s17581_s8 + $0x788] ss:$16 sps:$4 sm:$0xff]  }
 0x9f3   : > { %9479 = vmatprep.subr.bf16.mxu0 %v12587_v30  ;;  %v12639_v62 = vld [vmem:[%s17581_s8 + $0x508] ss:$16 sps:$4 sm:$0xff]   ;;  %v12647_v30 = vld [vmem:[%s17581_s8 + $0x76c] ss:$16 sps:$4 sm:$0xff]  }
 0x9f5   : > { %9513 = vmatpush1.bf16.msra.mxu1 %v12588_v33  ;;  %v12650_v33 = vld [vmem:[%s17581_s8 + $0x8ec] ss:$16 sps:$4 sm:$0xff]  }
 0x9f6   : > { %9480 = vmatpush1.bf16.msra.mxu0 %v12585_v25  ;;  %9514 = vmatprep.subr.bf16.mxu1 %v12596_v31  ;;  %v12645_v25 = vld [vmem:[%s17581_s8 + $0x768] ss:$16 sps:$4 sm:$0xff]  }
 0x9f7   : > { %9481 = vmatprep.subr.bf16.mxu0 %v12593_v51  ;;  %v12648_v31 = vld [vmem:[%s17581_s8 + $0x8e8] ss:$16 sps:$4 sm:$0xff]   ;;  %v12653_v51 = vld [vmem:[%s17581_s8 + $0x74c] ss:$16 sps:$4 sm:$0xff]  }
 0x9f9   : > { %9515 = vmatpush1.bf16.msra.mxu1 %v12594_v28  ;;  %v12656_v28 = vld [vmem:[%s17581_s8 + $0x8cc] ss:$16 sps:$4 sm:$0xff]  }
 0x9fa   : > { %9482 = vmatpush1.bf16.msra.mxu0 %v12591_v10  ;;  %9516 = vmatprep.subr.bf16.mxu1 %v12602_v16 }
 0x9fb   : > { %9483 = vmatprep.subr.bf16.mxu0 %v12599_v13 }
 0x9fd   : > { %9517 = vmatpush1.bf16.msra.mxu1 %v12600_v35  ;;  %v12651_v35 = vld [vmem:[%s17581_s8 + $0x748] ss:$16 sps:$4 sm:$0xff]  }
 0x9fe   : > { %9484 = vmatpush2.bf16.msra.mxu0 %v12597_v2  ;;  %9518 = vmatprep.subr.bf16.mxu1 %v12608_v46  ;;  %v12654_v46 = vld [vmem:[%s17581_s8 + $0x8c8] ss:$16 sps:$4 sm:$0xff]  }
 0x9ff   : > { %9485 = vmatprep.subr.bf16.mxu0 %v12605_v61 }
 0xa01   : > { %9519 = vmatpush1.bf16.msra.mxu1 %v12606_v37 }
 0xa02   : > { %9486 = vmatpush2.bf16.msra.mxu0 %v12603_v56  ;;  %9520 = vmatprep.subr.bf16.mxu1 %v12614_v6 }
 0xa03   : > { %9487 = vmatprep.subr.bf16.mxu0 %v12611_v17 }
 0xa05   : > { %9521 = vmatpush1.bf16.msra.mxu1 %v12612_v0  ;;  %v12657_v0 = vld [vmem:[%s17581_s8 + $0x728] ss:$16 sps:$4 sm:$0xff]  }
 0xa06   : > { %9488 = vmatpush2.bf16.msra.mxu0 %v12609_v39  ;;  %9522 = vmatprep.subr.bf16.mxu1 %v12620_v40  ;;  %v12665_v40 = vld [vmem:[%s17581_s8 + $0x70c] ss:$16 sps:$4 sm:$0xff]  }
 0xa07   : > { %9489 = vmatprep.subr.bf16.mxu0 %v12617_v52 }
 0xa09   : > { %9523 = vmatpush1.bf16.msra.mxu1 %v12618_v34  ;;  %v12668_v34 = vld [vmem:[%s17581_s8 + $0x88c] ss:$16 sps:$4 sm:$0xff]  }
 0xa0a   : > { %9490 = vmatpush2.bf16.msra.mxu0 %v12615_v44  ;;  %9524 = vmatprep.subr.bf16.mxu1 %v12626_v38  ;;  %v12663_v44 = vld [vmem:[%s17581_s8 + $0x708] ss:$16 sps:$4 sm:$0xff]  }
 0xa0b   : > { %9491 = vmatprep.subr.bf16.mxu0 %v12623_v14  ;;  %v12666_v38 = vld [vmem:[%s17581_s8 + $0x888] ss:$16 sps:$4 sm:$0xff]   ;;  %v12674_v14 = vld [vmem:[%s17581_s8 + $0xaec] ss:$16 sps:$4 sm:$0xff]  }
 0xa0d   : > { %9525 = vmatpush2.bf16.msra.mxu1 %v12624_v47  ;;  %v12671_v47 = vld [vmem:[%s17581_s8 + $0x86c] ss:$16 sps:$4 sm:$0xff]  }
 0xa0e   : > { %9492 = vmatpush2.bf16.msra.mxu0 %v12621_v41  ;;  %9526 = vmatprep.subr.bf16.mxu1 %v12632_v27  ;;  %v12672_v41 = vld [vmem:[%s17581_s8 + $0xae8] ss:$16 sps:$4 sm:$0xff]  }
 0xa0f   : > { %9493 = vmatprep.subr.bf16.mxu0 %v12629_v36  ;;  %v12669_v27 = vld [vmem:[%s17581_s8 + $0x868] ss:$16 sps:$4 sm:$0xff]   ;;  %v12680_v36 = vld [vmem:[%s17581_s8 + $0xacc] ss:$16 sps:$4 sm:$0xff]  }
 0xa11   : > { %9527 = vmatpush2.bf16.msra.mxu1 %v12630_v24  ;;  %v12677_v24 = vld [vmem:[%s17581_s8 + $0x84c] ss:$16 sps:$4 sm:$0xff]  }
 0xa12   : > { %9494 = vmatpush2.bf16.msra.mxu0 %v12627_v58  ;;  %9528 = vmatprep.subr.bf16.mxu1 %v12638_v50  ;;  %v12678_v58 = vld [vmem:[%s17581_s8 + $0xac8] ss:$16 sps:$4 sm:$0xff]  }
 0xa13   : > { %9495 = vmatprep.subr.bf16.mxu0 %v12635_v26  ;;  %v12675_v50 = vld [vmem:[%s17581_s8 + $0x848] ss:$16 sps:$4 sm:$0xff]   ;;  %v12686_v26 = vld [vmem:[%s17581_s8 + $0xaac] ss:$16 sps:$4 sm:$0xff]  }
 0xa15   : > { %9529 = vmatpush2.bf16.msra.mxu1 %v12636_v63  ;;  %v12681_v63 = vld [vmem:[%s17581_s8 + $0x828] ss:$16 sps:$4 sm:$0xff]  }
 0xa16   : > { %9496 = vmatpush2.bf16.msra.mxu0 %v12633_v15  ;;  %9530 = vmatprep.subr.bf16.mxu1 %v12644_v5  ;;  %v12692_v15 = vld [vmem:[%s17581_s8 + $0xa8c] ss:$16 sps:$4 sm:$0xff]  }
 0xa17   : > { %9497 = vmatprep.subr.bf16.mxu0 %v12641_v53  ;;  %v12689_v5 = vld [vmem:[%s17581_s8 + $0x80c] ss:$16 sps:$4 sm:$0xff]   ;;  %v12690_v53 = vld [vmem:[%s17581_s8 + $0xa88] ss:$16 sps:$4 sm:$0xff]  }
 0xa19   : > { %9531 = vmatpush2.bf16.msra.mxu1 %v12642_v7  ;;  %v12687_v7 = vld [vmem:[%s17581_s8 + $0x808] ss:$16 sps:$4 sm:$0xff]  }
 0xa1a   : > { %9498 = vmatpush2.bf16.msra.mxu0 %v12639_v62  ;;  %9532 = vmatprep.subr.bf16.mxu1 %v12647_v30  ;;  %v12698_v62 = vld [vmem:[%s17581_s8 + $0xa6c] ss:$16 sps:$4 sm:$0xff]  }
 0xa1b   : > { %9549 = vmatprep.subr.bf16.mxu0 %v12650_v33  ;;  %v12695_v30 = vld [vmem:[%s17581_s8 + $0x9ec] ss:$16 sps:$4 sm:$0xff]   ;;  %v12696_v33 = vld [vmem:[%s17581_s8 + $0xa68] ss:$16 sps:$4 sm:$0xff]  }
 0xa1c   : > { %v9214_v10 = vpop.f32.mrf.mxu1 }
 0xa1d   : > { %v9215_v16 = vadd.f32 %v9214_v10, %v16429_v29  ;;  %v9255_v13 = vpop.f32.mrf.mxu0  ;;  %9500 = vmatmul.mubr.bf16.vlgmr.msra.gmra.mxu0 %v15338_v9  ;;  %9533 = vmatpush2.bf16.msra.mxu1 %v12645_v25  ;;  %v12659_v29 = vld [vmem:[%s17581_s8 + $0x72c] ss:$16 sps:$4 sm:$0xff]   ;;  %v12693_v25 = vld [vmem:[%s17581_s8 + $0x9e8] ss:$16 sps:$4 sm:$0xff]  }
 0xa1e   : > { %9550 = vmatpush1.bf16.msra.mxu0 %v12648_v31  ;;  %9581 = vmatprep.mubr.bf16.mxu0 %v15345_v42  ;;  %v9216_v2 = vpop.f32.mrf.mxu1  ;;  %v12662_v42 = vld [vmem:[%s17581_s8 + $0x8ac] ss:$16 sps:$4 sm:$0xff]   ;;  %v12699_v10 = vld [vmem:[%s17581_s8 + $0x9c8] ss:$16 sps:$4 sm:$0xff]  }
 0xa1f   : > { %v16631_v61 = vadd.f32 %v9255_v13, %v9215_v16  ;;  %v9217_v9 = vadd.f32 %v9216_v2, %v16435_v4  ;;  %v9257_v37 = vpop.f32.mrf.mxu0  ;;  %9534 = vmatprep.subr.bf16.mxu1 %v12653_v51  ;;  %9551 = vmatprep.subr.bf16.mxu0 %v12656_v28  ;;  %v12660_v4 = vld [vmem:[%s17581_s8 + $0x8a8] ss:$16 sps:$4 sm:$0xff]   ;;  %v12704_v31 = vld [vmem:[%s17581_s8 + $0xa4c] ss:$16 sps:$4 sm:$0xff]  }
 0xa20   : > { %v9218_v56 = vpop.f32.mrf.mxu1  ;;  %v12701_v51 = vld [vmem:[%s17581_s8 + $0x9cc] ss:$16 sps:$4 sm:$0xff]   ;;  %v12702_v28 = vld [vmem:[%s17581_s8 + $0xa48] ss:$16 sps:$4 sm:$0xff]  }
 0xa21   : > { %v16637_v6 = vadd.f32 %v9257_v37, %v9217_v9  ;;  %v9259_v17 = vpop.f32.mrf.mxu0  ;;  %9535 = vmatpush2.bf16.msra.mxu1 %v12651_v35  ;;  %v12710_v16 = vld [vmem:[%s17581_s8 + $0xa2c] ss:$16 sps:$4 sm:$0xff]   ;;  %v12708_v35 = vld [vmem:[%s17581_s8 + $0xa28] ss:$16 sps:$4 sm:$0xff]  }
 0xa22   : > { %9552 = vmatpush1.bf16.msra.mxu0 %v12654_v46  ;;  %v9219_v39 = vpop.f32.mrf.mxu1  ;;  %9536 = vmatprep.subr.bf16.mxu1 %v12659_v29  ;;  %v12707_v13 = vld [vmem:[%s17581_s8 + $0x9ac] ss:$16 sps:$4 sm:$0xff]   ;;  %v12705_v2 = vld [vmem:[%s17581_s8 + $0x9a8] ss:$16 sps:$4 sm:$0xff]  }
 0xa23   : > { %v9260_v52 = vpop.f32.mrf.mxu0  ;;  %9553 = vmatprep.subr.bf16.mxu0 %v12662_v42  ;;  %v12716_v46 = vld [vmem:[%s17581_s8 + $0xa0c] ss:$16 sps:$4 sm:$0xff]   ;;  %v12714_v9 = vld [vmem:[%s17581_s8 + $0xa08] ss:$16 sps:$4 sm:$0xff]  }
 0xa24   : > { %v12713_v29 = vld [vmem:[%s17581_s8 + $0x98c] ss:$16 sps:$4 sm:$0xff]   ;;  %v12711_v37 = vld [vmem:[%s17581_s8 + $0x988] ss:$16 sps:$4 sm:$0xff]  }
 0xa25   : > { %9537 = vmatpush2.bf16.msra.mxu1 %v12657_v0  ;;  %v12722_v42 = vld [vmem:[%s17581_s8 + $0xbec] ss:$16 sps:$4 sm:$0xff]   ;;  %v12720_v17 = vld [vmem:[%s17581_s8 + $0xbe8] ss:$16 sps:$4 sm:$0xff]  }
 0xa26   : > { %9554 = vmatpush1.bf16.msra.mxu0 %v12660_v4  ;;  %9538 = vmatprep.subr.bf16.mxu1 %v12665_v40  ;;  %v12719_v56 = vld [vmem:[%s17581_s8 + $0x96c] ss:$16 sps:$4 sm:$0xff]   ;;  %v12717_v0 = vld [vmem:[%s17581_s8 + $0x968] ss:$16 sps:$4 sm:$0xff]  }
 0xa27   : > { %9555 = vmatprep.subr.bf16.mxu0 %v12668_v34  ;;  %v12728_v39 = vld [vmem:[%s17581_s8 + $0xbcc] ss:$16 sps:$4 sm:$0xff]   ;;  %v12726_v40 = vld [vmem:[%s17581_s8 + $0xbc8] ss:$16 sps:$4 sm:$0xff]  }
 0xa28   : > { %v12725_v4 = vld [vmem:[%s17581_s8 + $0x94c] ss:$16 sps:$4 sm:$0xff]   ;;  %v12723_v52 = vld [vmem:[%s17581_s8 + $0x948] ss:$16 sps:$4 sm:$0xff]  }
 0xa29   : > { %9539 = vmatpush2.bf16.msra.mxu1 %v12663_v44  ;;  %v12734_v34 = vld [vmem:[%s17581_s8 + $0xbac] ss:$16 sps:$4 sm:$0xff]  }
 0xa2a   : > { %9556 = vmatpush1.bf16.msra.mxu0 %v12666_v38  ;;  %9590 = vmatprep.subr.bf16.mxu1 %v12674_v14  ;;  %v12731_v44 = vld [vmem:[%s17581_s8 + $0x92c] ss:$16 sps:$4 sm:$0xff]   ;;  %v12732_v38 = vld [vmem:[%s17581_s8 + $0xba8] ss:$16 sps:$4 sm:$0xff]  }
 0xa2b   : > { %9557 = vmatprep.subr.bf16.mxu0 %v12671_v47  ;;  %v12729_v14 = vld [vmem:[%s17581_s8 + $0x928] ss:$16 sps:$4 sm:$0xff]   ;;  %v12740_v47 = vld [vmem:[%s17581_s8 + $0xb8c] ss:$16 sps:$4 sm:$0xff]  }
 0xa2c   : > { %9541 = vmatmul.mubr.bf16.vlgmr.msra.gmra.mxu1 %v15340_v55  ;;  %v12683_v55 = vld [vmem:[%s17581_s8 + $0x82c] ss:$16 sps:$4 sm:$0xff]  }
 0xa2d   : > { %9591 = vmatpush1.bf16.msra.mxu1 %v12672_v41  ;;  %9622 = vmatprep.mubr.bf16.mxu1 %v15355_v11  ;;  %v12684_v11 = vld [vmem:[%s17581_s8 + $0xaa8] ss:$16 sps:$4 sm:$0xff]   ;;  %v12737_v41 = vld [vmem:[%s17581_s8 + $0x90c] ss:$16 sps:$4 sm:$0xff]  }
 0xa2e   : > { %9558 = vmatpush1.bf16.msra.mxu0 %v12669_v27  ;;  %9592 = vmatprep.subr.bf16.mxu1 %v12680_v36  ;;  %v12738_v27 = vld [vmem:[%s17581_s8 + $0xb88] ss:$16 sps:$4 sm:$0xff]  }
 0xa2f   : > { %9559 = vmatprep.subr.bf16.mxu0 %v12677_v24  ;;  %v12735_v36 = vld [vmem:[%s17581_s8 + $0x908] ss:$16 sps:$4 sm:$0xff]   ;;  %v12743_v24 = vld [vmem:[%s17581_s8 + $0xb6c] ss:$16 sps:$4 sm:$0xff]  }
 0xa31   : > { %9593 = vmatpush1.bf16.msra.mxu1 %v12678_v58  ;;  %v12746_v58 = vld [vmem:[%s17581_s8 + $0xcec] ss:$16 sps:$4 sm:$0xff]  }
 0xa32   : > { %9560 = vmatpush1.bf16.msra.mxu0 %v12675_v50  ;;  %9594 = vmatprep.subr.bf16.mxu1 %v12686_v26  ;;  %v12741_v50 = vld [vmem:[%s17581_s8 + $0xb68] ss:$16 sps:$4 sm:$0xff]  }
 0xa33   : > { %9561 = vmatprep.subr.bf16.mxu0 %v12683_v55  ;;  %v12744_v26 = vld [vmem:[%s17581_s8 + $0xce8] ss:$16 sps:$4 sm:$0xff]   ;;  %v12749_v55 = vld [vmem:[%s17581_s8 + $0xb4c] ss:$16 sps:$4 sm:$0xff]  }
 0xa35   : > { %9595 = vmatpush1.bf16.msra.mxu1 %v12684_v11  ;;  %v12752_v11 = vld [vmem:[%s17581_s8 + $0xccc] ss:$16 sps:$4 sm:$0xff]  }
 0xa36   : > { %9562 = vmatpush1.bf16.msra.mxu0 %v12681_v63  ;;  %9596 = vmatprep.subr.bf16.mxu1 %v12692_v15 }
 0xa37   : > { %9563 = vmatprep.subr.bf16.mxu0 %v12689_v5 }
 0xa39   : > { %9597 = vmatpush1.bf16.msra.mxu1 %v12690_v53  ;;  %v12747_v53 = vld [vmem:[%s17581_s8 + $0xb48] ss:$16 sps:$4 sm:$0xff]  }
 0xa3a   : > { %9564 = vmatpush1.bf16.msra.mxu0 %v12687_v7  ;;  %9598 = vmatprep.subr.bf16.mxu1 %v12698_v62  ;;  %v12750_v62 = vld [vmem:[%s17581_s8 + $0xcc8] ss:$16 sps:$4 sm:$0xff]  }
 0xa3b   : > { %9565 = vmatprep.subr.bf16.mxu0 %v12695_v30 }
 0xa3d   : > { %9599 = vmatpush1.bf16.msra.mxu1 %v12696_v33 }
 0xa3e   : > { %9566 = vmatpush2.bf16.msra.mxu0 %v12693_v25  ;;  %9600 = vmatprep.subr.bf16.mxu1 %v12704_v31  ;;  %v12758_v25 = vld [vmem:[%s17581_s8 + $0xcac] ss:$16 sps:$4 sm:$0xff]  }
 0xa3f   : > { %9567 = vmatprep.subr.bf16.mxu0 %v12701_v51 }
 0xa41   : > { %9601 = vmatpush1.bf16.msra.mxu1 %v12702_v28  ;;  %v12753_v28 = vld [vmem:[%s17581_s8 + $0xb28] ss:$16 sps:$4 sm:$0xff]  }
 0xa42   : > { %9568 = vmatpush2.bf16.msra.mxu0 %v12699_v10  ;;  %9602 = vmatprep.subr.bf16.mxu1 %v12710_v16  ;;  %v12761_v16 = vld [vmem:[%s17581_s8 + $0xb0c] ss:$16 sps:$4 sm:$0xff]  }
 0xa43   : > { %9569 = vmatprep.subr.bf16.mxu0 %v12707_v13 }
 0xa45   : > { %9603 = vmatpush1.bf16.msra.mxu1 %v12708_v35  ;;  %v12764_v35 = vld [vmem:[%s17581_s8 + $0xc8c] ss:$16 sps:$4 sm:$0xff]  }
 0xa46   : > { %9570 = vmatpush2.bf16.msra.mxu0 %v12705_v2  ;;  %9604 = vmatprep.subr.bf16.mxu1 %v12716_v46  ;;  %v12759_v2 = vld [vmem:[%s17581_s8 + $0xb08] ss:$16 sps:$4 sm:$0xff]  }
 0xa47   : > { %9571 = vmatprep.subr.bf16.mxu0 %v12713_v29  ;;  %v12762_v46 = vld [vmem:[%s17581_s8 + $0xc88] ss:$16 sps:$4 sm:$0xff]   ;;  %v12770_v29 = vld [vmem:[%s17581_s8 + $0xeec] ss:$16 sps:$4 sm:$0xff]  }
 0xa49   : > { %9605 = vmatpush1.bf16.msra.mxu1 %v12714_v9  ;;  %v12767_v9 = vld [vmem:[%s17581_s8 + $0xc6c] ss:$16 sps:$4 sm:$0xff]  }
 0xa4a   : > { %9572 = vmatpush2.bf16.msra.mxu0 %v12711_v37  ;;  %9606 = vmatprep.subr.bf16.mxu1 %v12722_v42  ;;  %v12768_v37 = vld [vmem:[%s17581_s8 + $0xee8] ss:$16 sps:$4 sm:$0xff]  }
 0xa4b   : > { %9573 = vmatprep.subr.bf16.mxu0 %v12719_v56  ;;  %v12765_v42 = vld [vmem:[%s17581_s8 + $0xc68] ss:$16 sps:$4 sm:$0xff]   ;;  %v12776_v56 = vld [vmem:[%s17581_s8 + $0xecc] ss:$16 sps:$4 sm:$0xff]  }
 0xa4d   : > { %9607 = vmatpush2.bf16.msra.mxu1 %v12720_v17  ;;  %v12773_v17 = vld [vmem:[%s17581_s8 + $0xc4c] ss:$16 sps:$4 sm:$0xff]  }
 0xa4e   : > { %9574 = vmatpush2.bf16.msra.mxu0 %v12717_v0  ;;  %9608 = vmatprep.subr.bf16.mxu1 %v12728_v39 }
 0xa4f   : > { %9575 = vmatprep.subr.bf16.mxu0 %v12725_v4  ;;  %v12774_v4 = vld [vmem:[%s17581_s8 + $0xec8] ss:$16 sps:$4 sm:$0xff]  }
 0xa51   : > { %9609 = vmatpush2.bf16.msra.mxu1 %v12726_v40 }
 0xa52   : > { %9576 = vmatpush2.bf16.msra.mxu0 %v12723_v52  ;;  %9610 = vmatprep.subr.bf16.mxu1 %v12734_v34  ;;  %v12771_v52 = vld [vmem:[%s17581_s8 + $0xc48] ss:$16 sps:$4 sm:$0xff]  }
 0xa53   : > { %9577 = vmatprep.subr.bf16.mxu0 %v12731_v44 }
 0xa55   : > { %9611 = vmatpush2.bf16.msra.mxu1 %v12732_v38  ;;  %v12780_v38 = vld [vmem:[%s17581_s8 + $0xea8] ss:$16 sps:$4 sm:$0xff]  }
 0xa56   : > { %9578 = vmatpush2.bf16.msra.mxu0 %v12729_v14  ;;  %9612 = vmatprep.subr.bf16.mxu1 %v12740_v47  ;;  %v12777_v47 = vld [vmem:[%s17581_s8 + $0xc28] ss:$16 sps:$4 sm:$0xff]  }
 0xa57   : > { %9579 = vmatprep.subr.bf16.mxu0 %v12737_v41  ;;  %v12788_v41 = vld [vmem:[%s17581_s8 + $0xe8c] ss:$16 sps:$4 sm:$0xff]  }
 0xa59   : > { %9613 = vmatpush2.bf16.msra.mxu1 %v12738_v27  ;;  %v12785_v27 = vld [vmem:[%s17581_s8 + $0xc0c] ss:$16 sps:$4 sm:$0xff]  }
 0xa5a   : > { %9580 = vmatpush2.bf16.msra.mxu0 %v12735_v36  ;;  %9614 = vmatprep.subr.bf16.mxu1 %v12743_v24  ;;  %v12786_v36 = vld [vmem:[%s17581_s8 + $0xe88] ss:$16 sps:$4 sm:$0xff]  }
 0xa5b   : > { %9631 = vmatprep.subr.bf16.mxu0 %v12746_v58  ;;  %v12783_v24 = vld [vmem:[%s17581_s8 + $0xc08] ss:$16 sps:$4 sm:$0xff]   ;;  %v12794_v58 = vld [vmem:[%s17581_s8 + $0xe6c] ss:$16 sps:$4 sm:$0xff]  }
 0xa5c   : > { %v9296_v63 = vpop.f32.mrf.mxu1 }
 0xa5d   : > { %v9297_v15 = vadd.f32 %v9296_v63, %v16631_v61  ;;  %v9337_v5 = vpop.f32.mrf.mxu0  ;;  %9582 = vmatmul.mubr.bf16.vlgmr.msra.gmra.mxu0 %v15546_v3  ;;  %9615 = vmatpush2.bf16.msra.mxu1 %v12741_v50  ;;  %v12755_v61 = vld [vmem:[%s17581_s8 + $0xb2c] ss:$16 sps:$4 sm:$0xff]  }
 0xa5e   : > { %9632 = vmatpush1.bf16.msra.mxu0 %v12744_v26  ;;  %9663 = vmatprep.mubr.bf16.mxu0 %v15559_v48  ;;  %v9298_v7 = vpop.f32.mrf.mxu1  ;;  %v12791_v50 = vld [vmem:[%s17581_s8 + $0xdec] ss:$16 sps:$4 sm:$0xff]   ;;  %v12792_v26 = vld [vmem:[%s17581_s8 + $0xe68] ss:$16 sps:$4 sm:$0xff]  }
 0xa5f   : > { %v9338_v30 = vadd.f32 %v9337_v5, %v9297_v15  ;;  %v9299_v3 = vadd.f32 %v9298_v7, %v16637_v6  ;;  %v9339_v33 = vpop.f32.mrf.mxu0  ;;  %9616 = vmatprep.subr.bf16.mxu1 %v12749_v55  ;;  %9633 = vmatprep.subr.bf16.mxu0 %v12752_v11  ;;  %v12756_v6 = vld [vmem:[%s17581_s8 + $0xca8] ss:$16 sps:$4 sm:$0xff]   ;;  %v12800_v11 = vld [vmem:[%s17581_s8 + $0xe4c] ss:$16 sps:$4 sm:$0xff]  }
 0xa60   : > { %v9300_v48 = vpop.f32.mrf.mxu1  ;;  %v12789_v55 = vld [vmem:[%s17581_s8 + $0xde8] ss:$16 sps:$4 sm:$0xff]   ;;  %v12797_v63 = vld [vmem:[%s17581_s8 + $0xdcc] ss:$16 sps:$4 sm:$0xff]  }
 0xa61   : > { %v9340_v31 = vadd.f32 %v9339_v33, %v9299_v3  ;;  %v9341_v51 = vpop.f32.mrf.mxu0  ;;  %9617 = vmatpush2.bf16.msra.mxu1 %v12747_v53  ;;  %v12798_v15 = vld [vmem:[%s17581_s8 + $0xe48] ss:$16 sps:$4 sm:$0xff]   ;;  %v12806_v53 = vld [vmem:[%s17581_s8 + $0xe2c] ss:$16 sps:$4 sm:$0xff]  }
 0xa62   : > { %9634 = vmatpush1.bf16.msra.mxu0 %v12750_v62  ;;  %v9301_v10 = vpop.f32.mrf.mxu1  ;;  %9618 = vmatprep.subr.bf16.mxu1 %v12755_v61  ;;  %v12795_v5 = vld [vmem:[%s17581_s8 + $0xdc8] ss:$16 sps:$4 sm:$0xff]   ;;  %v12803_v7 = vld [vmem:[%s17581_s8 + $0xdac] ss:$16 sps:$4 sm:$0xff]  }
 0xa63   : > { %v9342_v13 = vpop.f32.mrf.mxu0  ;;  %9635 = vmatprep.subr.bf16.mxu0 %v12758_v25  ;;  %v12804_v62 = vld [vmem:[%s17581_s8 + $0xe28] ss:$16 sps:$4 sm:$0xff]   ;;  %v12809_v3 = vld [vmem:[%s17581_s8 + $0xd8c] ss:$16 sps:$4 sm:$0xff]  }
 0xa64   : > { %v12801_v61 = vld [vmem:[%s17581_s8 + $0xda8] ss:$16 sps:$4 sm:$0xff]   ;;  %v12818_v48 = vld [vmem:[%s17581_s8 + $0xfec] ss:$16 sps:$4 sm:$0xff]  }
 0xa65   : > { %9619 = vmatpush2.bf16.msra.mxu1 %v12753_v28  ;;  %v12810_v33 = vld [vmem:[%s17581_s8 + $0xe08] ss:$16 sps:$4 sm:$0xff]   ;;  %v12824_v10 = vld [vmem:[%s17581_s8 + $0xfcc] ss:$16 sps:$4 sm:$0xff]  }
 0xa66   : > { %9636 = vmatpush1.bf16.msra.mxu0 %v12756_v6  ;;  %9620 = vmatprep.subr.bf16.mxu1 %v12761_v16  ;;  %v12807_v25 = vld [vmem:[%s17581_s8 + $0xd88] ss:$16 sps:$4 sm:$0xff]   ;;  %v12821_v6 = vld [vmem:[%s17581_s8 + $0xd4c] ss:$16 sps:$4 sm:$0xff]  }
 0xa67   : > { %9637 = vmatprep.subr.bf16.mxu0 %v12764_v35  ;;  %v12816_v51 = vld [vmem:[%s17581_s8 + $0xfe8] ss:$16 sps:$4 sm:$0xff]   ;;  %v12830_v35 = vld [vmem:[%s17581_s8 + $0xfac] ss:$16 sps:$4 sm:$0xff]  }
 0xa68   : > { %v12813_v28 = vld [vmem:[%s17581_s8 + $0xd68] ss:$16 sps:$4 sm:$0xff]  }
 0xa69   : > { %9621 = vmatpush2.bf16.msra.mxu1 %v12759_v2  ;;  %v12822_v16 = vld [vmem:[%s17581_s8 + $0xfc8] ss:$16 sps:$4 sm:$0xff]   ;;  %v12827_v2 = vld [vmem:[%s17581_s8 + $0xd2c] ss:$16 sps:$4 sm:$0xff]  }
 0xa6a   : > { %9638 = vmatpush1.bf16.msra.mxu0 %v12762_v46  ;;  %9672 = vmatprep.subr.bf16.mxu1 %v12770_v29  ;;  %v12819_v13 = vld [vmem:[%s17581_s8 + $0xd48] ss:$16 sps:$4 sm:$0xff]  }
 0xa6b   : > { %9639 = vmatprep.subr.bf16.mxu0 %v12767_v9  ;;  %v12828_v46 = vld [vmem:[%s17581_s8 + $0xfa8] ss:$16 sps:$4 sm:$0xff]   ;;  %v12836_v9 = vld [vmem:[%s17581_s8 + $0xf8c] ss:$16 sps:$4 sm:$0xff]  }
 0xa6c   : > { %v9378_v0 = vpop.f32.mrf.mxu1  ;;  %9623 = vmatmul.mubr.bf16.vlgmr.msra.gmra.mxu1 %v15551_v21  ;;  %v12782_v21 = vld [vmem:[%s17581_s8 + $0xeac] ss:$16 sps:$4 sm:$0xff]   ;;  %v12825_v29 = vld [vmem:[%s17581_s8 + $0xd28] ss:$16 sps:$4 sm:$0xff]  }
 0xa6d   : > { %v16874_v39 = vadd.f32 %v9378_v0, %v9338_v30  ;;  %9673 = vmatpush1.bf16.msra.mxu1 %v12768_v37  ;;  %9704 = vmatprep.mubr.bf16.mxu1 %v15567_v1  ;;  %v12779_v1 = vld [vmem:[%s17581_s8 + $0xc2c] ss:$16 sps:$4 sm:$0xff]  }
 0xa6e   : > { %9640 = vmatpush1.bf16.msra.mxu0 %v12765_v42  ;;  %v9380_v40 = vpop.f32.mrf.mxu1  ;;  %9674 = vmatprep.subr.bf16.mxu1 %v12776_v56  ;;  %v12812_v30 = vld [vmem:[%s17581_s8 + $0xe0c] ss:$16 sps:$4 sm:$0xff]   ;;  %v12834_v42 = vld [vmem:[%s17581_s8 + $0xf88] ss:$16 sps:$4 sm:$0xff]  }
 0xa6f   : > { %v16886_v34 = vadd.f32 %v9380_v40, %v9340_v31  ;;  %9641 = vmatprep.subr.bf16.mxu0 %v12773_v17  ;;  %v12815_v31 = vld [vmem:[%s17581_s8 + $0xd6c] ss:$16 sps:$4 sm:$0xff]   ;;  %v12831_v56 = vld [vmem:[%s17581_s8 + $0xd08] ss:$16 sps:$4 sm:$0xff]  }
 0xa70   : > { %v9382_v44 = vpop.f32.mrf.mxu1  ;;  %v12833_v37 = vld [vmem:[%s17581_s8 + $0xd0c] ss:$16 sps:$4 sm:$0xff]   ;;  %v12840_v40 = vld [vmem:[%s17581_s8 + $0x10e8] ss:$16 sps:$4 sm:$0xff]  }
 0xa71   : > { %9675 = vmatpush1.bf16.msra.mxu1 %v12774_v4  ;;  %v12839_v17 = vld [vmem:[%s17581_s8 + $0xf6c] ss:$16 sps:$4 sm:$0xff]   ;;  %v12837_v4 = vld [vmem:[%s17581_s8 + $0xf68] ss:$16 sps:$4 sm:$0xff]  }
 0xa72   : > { %9642 = vmatpush1.bf16.msra.mxu0 %v12771_v52  ;;  %v9383_v14 = vpop.f32.mrf.mxu1  ;;  %9676 = vmatprep.subr.bf16.mxu1 %v12782_v21  ;;  %v12842_v0 = vld [vmem:[%s17581_s8 + $0x10ec] ss:$16 sps:$4 sm:$0xff]   ;;  %v12843_v44 = vld [vmem:[%s17581_s8 + $0xf48] ss:$16 sps:$4 sm:$0xff]  }
 0xa73   : > { %9643 = vmatprep.subr.bf16.mxu0 %v12779_v1  ;;  %v12845_v52 = vld [vmem:[%s17581_s8 + $0xf4c] ss:$16 sps:$4 sm:$0xff]  }
 0xa74   : > { %v12848_v21 = vld [vmem:[%s17581_s8 + $0x10cc] ss:$16 sps:$4 sm:$0xff]  }
 0xa75   : > { %9677 = vmatpush1.bf16.msra.mxu1 %v12780_v38  ;;  %v12846_v38 = vld [vmem:[%s17581_s8 + $0x10c8] ss:$16 sps:$4 sm:$0xff]   ;;  %v12851_v14 = vld [vmem:[%s17581_s8 + $0xf2c] ss:$16 sps:$4 sm:$0xff]  }
 0xa76   : > { %9644 = vmatpush1.bf16.msra.mxu0 %v12777_v47  ;;  %9678 = vmatprep.subr.bf16.mxu1 %v12788_v41 }
 0xa77   : > { %9645 = vmatprep.subr.bf16.mxu0 %v12785_v27  ;;  %v12852_v27 = vld [vmem:[%s17581_s8 + $0x10a8] ss:$16 sps:$4 sm:$0xff]  }
 0xa79   : > { %9679 = vmatpush1.bf16.msra.mxu1 %v12786_v36  ;;  %v12857_v36 = vld [vmem:[%s17581_s8 + $0xf0c] ss:$16 sps:$4 sm:$0xff]  }
 0xa7a   : > { %9646 = vmatpush1.bf16.msra.mxu0 %v12783_v24  ;;  %9680 = vmatprep.subr.bf16.mxu1 %v12794_v58  ;;  %v12860_v58 = vld [vmem:[%s17581_s8 + $0x108c] ss:$16 sps:$4 sm:$0xff]  }
 0xa7b   : > { %9647 = vmatprep.subr.bf16.mxu0 %v12791_v50  ;;  %v12855_v50 = vld [vmem:[%s17581_s8 + $0xf08] ss:$16 sps:$4 sm:$0xff]  }
 0xa7d   : > { %9681 = vmatpush1.bf16.msra.mxu1 %v12792_v26  ;;  %v12858_v26 = vld [vmem:[%s17581_s8 + $0x1088] ss:$16 sps:$4 sm:$0xff]  }
 0xa7e   : > { %9648 = vmatpush2.bf16.msra.mxu0 %v12789_v55  ;;  %9682 = vmatprep.subr.bf16.mxu1 %v12800_v11  ;;  %v12866_v55 = vld [vmem:[%s17581_s8 + $0x12ec] ss:$16 sps:$4 sm:$0xff]   ;;  %v13085_v11 = vld [vmem:[%s17582_s9] sm:$0xf] }
 0xa7f   : > { %9649 = vmatprep.subr.bf16.mxu0 %v12797_v63  ;;  %v8840_v63 = vrot.slane %v13085_v11, %v15025_v45  ;;  %v12872_v45 = vld [vmem:[%s17581_s8 + $0x12cc] ss:$16 sps:$4 sm:$0xff]  }
 0xa81   : > { %9683 = vmatpush1.bf16.msra.mxu1 %v12798_v15  ;;  %v12863_v15 = vld [vmem:[%s17581_s8 + $0x106c] ss:$16 sps:$4 sm:$0xff]  }
 0xa82   : > { %9650 = vmatpush2.bf16.msra.mxu0 %v12795_v5  ;;  %9684 = vmatprep.subr.bf16.mxu1 %v12806_v53  ;;  %v8844_v5 = vrot.slane %v13085_v11, %v15019_v57  ;;  %v12864_v53 = vld [vmem:[%s17581_s8 + $0x12e8] ss:$16 sps:$4 sm:$0xff]   ;;  %v12869_v57 = vld [vmem:[%s17581_s8 + $0x104c] ss:$16 sps:$4 sm:$0xff]  }
 0xa83   : > { %9651 = vmatprep.subr.bf16.mxu0 %v12803_v7  ;;  %v12861_v7 = vld [vmem:[%s17581_s8 + $0x1068] ss:$16 sps:$4 sm:$0xff]  }
 0xa84   : > { %v12921_v11 = vld [vmem:[%s17581_s8 + $0x1128] ss:$16 sps:$4 sm:$0xff]  }
 0xa85   : > { %9685 = vmatpush1.bf16.msra.mxu1 %v12804_v62 }
 0xa86   : > { %9652 = vmatpush2.bf16.msra.mxu0 %v12801_v61  ;;  %9686 = vmatprep.subr.bf16.mxu1 %v12812_v30 }
 0xa87   : > { %9653 = vmatprep.subr.bf16.mxu0 %v12809_v3 }
 0xa89   : > { %9687 = vmatpush1.bf16.msra.mxu1 %v12810_v33  ;;  %v12870_v33 = vld [vmem:[%s17581_s8 + $0x12c8] ss:$16 sps:$4 sm:$0xff]  }
 0xa8a   : > { %9654 = vmatpush2.bf16.msra.mxu0 %v12807_v25  ;;  %9688 = vmatprep.subr.bf16.mxu1 %v12818_v48  ;;  %v12867_v48 = vld [vmem:[%s17581_s8 + $0x1048] ss:$16 sps:$4 sm:$0xff]  }
 0xa8b   : > { %9655 = vmatprep.subr.bf16.mxu0 %v12815_v31 }
 0xa8d   : > { %9689 = vmatpush2.bf16.msra.mxu1 %v12816_v51 }
 0xa8e   : > { %9656 = vmatpush2.bf16.msra.mxu0 %v12813_v28  ;;  %9690 = vmatprep.subr.bf16.mxu1 %v12824_v10  ;;  %v12876_v28 = vld [vmem:[%s17581_s8 + $0x12a8] ss:$16 sps:$4 sm:$0xff]  }
 0xa8f   : > { %9657 = vmatprep.subr.bf16.mxu0 %v12821_v6  ;;  %v12873_v6 = vld [vmem:[%s17581_s8 + $0x1028] ss:$16 sps:$4 sm:$0xff]  }
 0xa91   : > { %9691 = vmatpush2.bf16.msra.mxu1 %v12822_v16  ;;  %v12884_v16 = vld [vmem:[%s17581_s8 + $0x128c] ss:$16 sps:$4 sm:$0xff]  }
 0xa92   : > { %9658 = vmatpush2.bf16.msra.mxu0 %v12819_v13  ;;  %9692 = vmatprep.subr.bf16.mxu1 %v12830_v35  ;;  %v12881_v13 = vld [vmem:[%s17581_s8 + $0x100c] ss:$16 sps:$4 sm:$0xff]   ;;  %v12882_v35 = vld [vmem:[%s17581_s8 + $0x1288] ss:$16 sps:$4 sm:$0xff]  }
 0xa93   : > { %9659 = vmatprep.subr.bf16.mxu0 %v12827_v2  ;;  %v12879_v2 = vld [vmem:[%s17581_s8 + $0x1008] ss:$16 sps:$4 sm:$0xff]  }
 0xa95   : > { %9693 = vmatpush2.bf16.msra.mxu1 %v12828_v46  ;;  %v12890_v46 = vld [vmem:[%s17581_s8 + $0x126c] ss:$16 sps:$4 sm:$0xff]  }
 0xa96   : > { %9660 = vmatpush2.bf16.msra.mxu0 %v12825_v29  ;;  %9694 = vmatprep.subr.bf16.mxu1 %v12836_v9  ;;  %v12887_v29 = vld [vmem:[%s17581_s8 + $0x11ec] ss:$16 sps:$4 sm:$0xff]   ;;  %v12888_v9 = vld [vmem:[%s17581_s8 + $0x1268] ss:$16 sps:$4 sm:$0xff]  }
 0xa97   : > { %9661 = vmatprep.subr.bf16.mxu0 %v12833_v37  ;;  %v12885_v37 = vld [vmem:[%s17581_s8 + $0x11e8] ss:$16 sps:$4 sm:$0xff]  }
 0xa99   : > { %9695 = vmatpush2.bf16.msra.mxu1 %v12834_v42  ;;  %v12896_v42 = vld [vmem:[%s17581_s8 + $0x124c] ss:$16 sps:$4 sm:$0xff]  }
 0xa9a   : > { %9662 = vmatpush2.bf16.msra.mxu0 %v12831_v56  ;;  %9696 = vmatprep.subr.bf16.mxu1 %v12839_v17  ;;  %v12893_v56 = vld [vmem:[%s17581_s8 + $0x11cc] ss:$16 sps:$4 sm:$0xff]   ;;  %v12894_v17 = vld [vmem:[%s17581_s8 + $0x1248] ss:$16 sps:$4 sm:$0xff]  }
 0xa9b   : > { %9713 = vmatprep.subr.bf16.mxu0 %v12842_v0  ;;  %v12891_v0 = vld [vmem:[%s17581_s8 + $0x11c8] ss:$16 sps:$4 sm:$0xff]  }
 0xa9d   : > { %v9419_v1 = vpop.f32.mrf.mxu0  ;;  %9664 = vmatmul.mubr.bf16.vlgmr.msra.gmra.mxu0 %v15764_v54  ;;  %9697 = vmatpush2.bf16.msra.mxu1 %v12837_v4  ;;  %v12854_v54 = vld [vmem:[%s17581_s8 + $0x10ac] ss:$16 sps:$4 sm:$0xff]  }
 0xa9e   : > { %9714 = vmatpush1.bf16.msra.mxu0 %v12840_v40  ;;  %9745 = vmatprep.mubr.bf16.mxu0 %v15778_v12  ;;  %v12849_v12 = vld [vmem:[%s17581_s8 + $0xf28] ss:$16 sps:$4 sm:$0xff]   ;;  %v9420_v62 = vadd.f32 %v9419_v1, %v8840_v63  ;;  %v12902_v4 = vld [vmem:[%s17581_s8 + $0x122c] ss:$16 sps:$4 sm:$0xff]  }
 0xa9f   : > { %v9421_v47 = vpop.f32.mrf.mxu0  ;;  %9698 = vmatprep.subr.bf16.mxu1 %v12845_v52  ;;  %9715 = vmatprep.subr.bf16.mxu0 %v12848_v21  ;;  %v12899_v40 = vld [vmem:[%s17581_s8 + $0x11ac] ss:$16 sps:$4 sm:$0xff]   ;;  %v12900_v52 = vld [vmem:[%s17581_s8 + $0x1228] ss:$16 sps:$4 sm:$0xff]  }
 0xaa0   : > { %v9422_v30 = vadd.f32 %v9421_v47, %v8844_v5  ;;  %v12897_v21 = vld [vmem:[%s17581_s8 + $0x11a8] ss:$16 sps:$4 sm:$0xff]   ;;  %v12908_v1 = vld [vmem:[%s17581_s8 + $0x120c] ss:$16 sps:$4 sm:$0xff]  }
 0xaa1   : > { %v9423_v41 = vpop.f32.mrf.mxu0  ;;  %9699 = vmatpush2.bf16.msra.mxu1 %v12843_v44  ;;  %v12905_v44 = vld [vmem:[%s17581_s8 + $0x118c] ss:$16 sps:$4 sm:$0xff]   ;;  %v12930_v5 = vld [vmem:[%s17581_s8 + $0x1388] ss:$16 sps:$4 sm:$0xff]  }
 0xaa2   : > { %9716 = vmatpush1.bf16.msra.mxu0 %v12846_v38  ;;  %9700 = vmatprep.subr.bf16.mxu1 %v12851_v14  ;;  %v12906_v38 = vld [vmem:[%s17581_s8 + $0x1208] ss:$16 sps:$4 sm:$0xff]   ;;  %v12914_v47 = vld [vmem:[%s17581_s8 + $0x13ec] ss:$16 sps:$4 sm:$0xff]  }
 0xaa3   : > { %v9424_v24 = vpop.f32.mrf.mxu0  ;;  %9717 = vmatprep.subr.bf16.mxu0 %v12854_v54  ;;  %v12903_v14 = vld [vmem:[%s17581_s8 + $0x1188] ss:$16 sps:$4 sm:$0xff]   ;;  %v12911_v54 = vld [vmem:[%s17581_s8 + $0x116c] ss:$16 sps:$4 sm:$0xff]  }
 0xaa4   : > { %v12912_v41 = vld [vmem:[%s17581_s8 + $0x13e8] ss:$16 sps:$4 sm:$0xff]   ;;  %v12932_v63 = vld [vmem:[%s17581_s8 + $0x138c] ss:$16 sps:$4 sm:$0xff]  }
 0xaa5   : > { %9701 = vmatpush2.bf16.msra.mxu1 %v12849_v12  ;;  %v12909_v12 = vld [vmem:[%s17581_s8 + $0x1168] ss:$16 sps:$4 sm:$0xff]  }
 0xaa6   : > { %9718 = vmatpush1.bf16.msra.mxu0 %v12852_v27  ;;  %9702 = vmatprep.subr.bf16.mxu1 %v12857_v36  ;;  %v12920_v27 = vld [vmem:[%s17581_s8 + $0x13cc] ss:$16 sps:$4 sm:$0xff]   ;;  %v12918_v24 = vld [vmem:[%s17581_s8 + $0x13c8] ss:$16 sps:$4 sm:$0xff]  }
 0xaa7   : > { %9719 = vmatprep.subr.bf16.mxu0 %v12860_v58  ;;  %v12917_v36 = vld [vmem:[%s17581_s8 + $0x114c] ss:$16 sps:$4 sm:$0xff]   ;;  %v12915_v58 = vld [vmem:[%s17581_s8 + $0x1148] ss:$16 sps:$4 sm:$0xff]  }
 0xaa9   : > { %9703 = vmatpush2.bf16.msra.mxu1 %v12855_v50  ;;  %v12926_v50 = vld [vmem:[%s17581_s8 + $0x13ac] ss:$16 sps:$4 sm:$0xff]  }
 0xaaa   : > { %9720 = vmatpush1.bf16.msra.mxu0 %v12858_v26  ;;  %9754 = vmatprep.subr.bf16.mxu1 %v12866_v55  ;;  %v12923_v26 = vld [vmem:[%s17581_s8 + $0x112c] ss:$16 sps:$4 sm:$0xff]   ;;  %v12924_v55 = vld [vmem:[%s17581_s8 + $0x13a8] ss:$16 sps:$4 sm:$0xff]  }
 0xaab   : > { %9721 = vmatprep.subr.bf16.mxu0 %v12863_v15  ;;  %v12929_v15 = vld [vmem:[%s17581_s8 + $0x110c] ss:$16 sps:$4 sm:$0xff]  }
 0xaac   : > { %v9460_v61 = vpop.f32.mrf.mxu1  ;;  %9705 = vmatmul.mubr.bf16.vlgmr.msra.gmra.mxu1 %v15771_v22  ;;  %v12878_v22 = vld [vmem:[%s17581_s8 + $0x12ac] ss:$16 sps:$4 sm:$0xff]  }
 0xaad   : > { %v17079_v3 = vadd.f32 %v9460_v61, %v9420_v62  ;;  %9755 = vmatpush1.bf16.msra.mxu1 %v12864_v53  ;;  %9786 = vmatprep.mubr.bf16.mxu1 %v15784_v18  ;;  %v12875_v18 = vld [vmem:[%s17581_s8 + $0x102c] ss:$16 sps:$4 sm:$0xff]   ;;  %v12927_v53 = vld [vmem:[%s17581_s8 + $0x1108] ss:$16 sps:$4 sm:$0xff]  }
 0xaae   : > { %9722 = vmatpush1.bf16.msra.mxu0 %v12861_v7  ;;  %v9462_v25 = vpop.f32.mrf.mxu1  ;;  %9756 = vmatprep.subr.bf16.mxu1 %v12872_v45  ;;  %v12935_v7 = vld [vmem:[%s17581_s8 + $0x136c] ss:$16 sps:$4 sm:$0xff]   ;;  %v12933_v62 = vld [vmem:[%s17581_s8 + $0x1368] ss:$16 sps:$4 sm:$0xff]  }
 0xaaf   : > { %v17091_v31 = vadd.f32 %v9462_v25, %v9422_v30  ;;  %9723 = vmatprep.subr.bf16.mxu0 %v12869_v57  ;;  %v12938_v45 = vld [vmem:[%s17581_s8 + $0x14ec] ss:$16 sps:$4 sm:$0xff]   ;;  %v12936_v57 = vld [vmem:[%s17581_s8 + $0x14e8] ss:$16 sps:$4 sm:$0xff]  }
 0xab0   : > { %v9464_v51 = vpop.f32.mrf.mxu1  ;;  %v12941_v61 = vld [vmem:[%s17581_s8 + $0x134c] ss:$16 sps:$4 sm:$0xff]   ;;  %v12939_v25 = vld [vmem:[%s17581_s8 + $0x1348] ss:$16 sps:$4 sm:$0xff]  }
 0xab1   : > { %9757 = vmatpush1.bf16.msra.mxu1 %v12870_v33  ;;  %v12944_v30 = vld [vmem:[%s17581_s8 + $0x14cc] ss:$16 sps:$4 sm:$0xff]  }
 0xab2   : > { %9724 = vmatpush1.bf16.msra.mxu0 %v12867_v48  ;;  %v9465_v10 = vpop.f32.mrf.mxu1  ;;  %9758 = vmatprep.subr.bf16.mxu1 %v12878_v22  ;;  %v12942_v22 = vld [vmem:[%s17581_s8 + $0x14c8] ss:$16 sps:$4 sm:$0xff]  }
 0xab3   : > { %9725 = vmatprep.subr.bf16.mxu0 %v12875_v18  ;;  %v12947_v18 = vld [vmem:[%s17581_s8 + $0x132c] ss:$16 sps:$4 sm:$0xff]   ;;  %v12948_v10 = vld [vmem:[%s17581_s8 + $0x14a8] ss:$16 sps:$4 sm:$0xff]  }
 0xab5   : > { %9759 = vmatpush1.bf16.msra.mxu1 %v12876_v28 }
 0xab6   : > { %9726 = vmatpush1.bf16.msra.mxu0 %v12873_v6  ;;  %9760 = vmatprep.subr.bf16.mxu1 %v12884_v16  ;;  %v12953_v6 = vld [vmem:[%s17581_s8 + $0x130c] ss:$16 sps:$4 sm:$0xff]  }
 0xab7   : > { %9727 = vmatprep.subr.bf16.mxu0 %v12881_v13  ;;  %v12951_v13 = vld [vmem:[%s17581_s8 + $0x1308] ss:$16 sps:$4 sm:$0xff]  }
 0xab9   : > { %9761 = vmatpush1.bf16.msra.mxu1 %v12882_v35  ;;  %v12954_v35 = vld [vmem:[%s17581_s8 + $0x1488] ss:$16 sps:$4 sm:$0xff]  }
 0xaba   : > { %9728 = vmatpush1.bf16.msra.mxu0 %v12879_v2  ;;  %9762 = vmatprep.subr.bf16.mxu1 %v12890_v46  ;;  %v12962_v2 = vld [vmem:[%s17581_s8 + $0x16ec] ss:$16 sps:$4 sm:$0xff]  }
 0xabb   : > { %9729 = vmatprep.subr.bf16.mxu0 %v12887_v29  ;;  %v12959_v46 = vld [vmem:[%s17581_s8 + $0x146c] ss:$16 sps:$4 sm:$0xff]   ;;  %v12960_v29 = vld [vmem:[%s17581_s8 + $0x16e8] ss:$16 sps:$4 sm:$0xff]  }
 0xabd   : > { %9763 = vmatpush1.bf16.msra.mxu1 %v12888_v9  ;;  %v12957_v9 = vld [vmem:[%s17581_s8 + $0x1468] ss:$16 sps:$4 sm:$0xff]  }
 0xabe   : > { %9730 = vmatpush2.bf16.msra.mxu0 %v12885_v37  ;;  %9764 = vmatprep.subr.bf16.mxu1 %v12896_v42  ;;  %v12968_v37 = vld [vmem:[%s17581_s8 + $0x16cc] ss:$16 sps:$4 sm:$0xff]  }
 0xabf   : > { %9731 = vmatprep.subr.bf16.mxu0 %v12893_v56  ;;  %v12965_v42 = vld [vmem:[%s17581_s8 + $0x144c] ss:$16 sps:$4 sm:$0xff]  }
 0xac1   : > { %9765 = vmatpush1.bf16.msra.mxu1 %v12894_v17 }
 0xac2   : > { %9732 = vmatpush2.bf16.msra.mxu0 %v12891_v0  ;;  %9766 = vmatprep.subr.bf16.mxu1 %v12902_v4  ;;  %v12966_v0 = vld [vmem:[%s17581_s8 + $0x16c8] ss:$16 sps:$4 sm:$0xff]  }
 0xac3   : > { %9733 = vmatprep.subr.bf16.mxu0 %v12899_v40  ;;  %v12963_v40 = vld [vmem:[%s17581_s8 + $0x1448] ss:$16 sps:$4 sm:$0xff]  }
 0xac5   : > { %9767 = vmatpush1.bf16.msra.mxu1 %v12900_v52 }
 0xac6   : > { %9734 = vmatpush2.bf16.msra.mxu0 %v12897_v21  ;;  %9768 = vmatprep.subr.bf16.mxu1 %v12908_v1  ;;  %v12972_v1 = vld [vmem:[%s17581_s8 + $0x16a8] ss:$16 sps:$4 sm:$0xff]  }
 0xac7   : > { %9735 = vmatprep.subr.bf16.mxu0 %v12905_v44 }
 0xac9   : > { %9769 = vmatpush1.bf16.msra.mxu1 %v12906_v38  ;;  %v12969_v38 = vld [vmem:[%s17581_s8 + $0x1428] ss:$16 sps:$4 sm:$0xff]  }
 0xaca   : > { %9736 = vmatpush2.bf16.msra.mxu0 %v12903_v14  ;;  %9770 = vmatprep.subr.bf16.mxu1 %v12914_v47  ;;  %v12980_v14 = vld [vmem:[%s17581_s8 + $0x168c] ss:$16 sps:$4 sm:$0xff]  }
 0xacb   : > { %9737 = vmatprep.subr.bf16.mxu0 %v12911_v54  ;;  %v12977_v47 = vld [vmem:[%s17581_s8 + $0x140c] ss:$16 sps:$4 sm:$0xff]   ;;  %v12978_v54 = vld [vmem:[%s17581_s8 + $0x1688] ss:$16 sps:$4 sm:$0xff]  }
 0xacd   : > { %9771 = vmatpush2.bf16.msra.mxu1 %v12912_v41  ;;  %v12975_v41 = vld [vmem:[%s17581_s8 + $0x1408] ss:$16 sps:$4 sm:$0xff]  }
 0xace   : > { %9738 = vmatpush2.bf16.msra.mxu0 %v12909_v12  ;;  %9772 = vmatprep.subr.bf16.mxu1 %v12920_v27  ;;  %v12986_v12 = vld [vmem:[%s17581_s8 + $0x166c] ss:$16 sps:$4 sm:$0xff]  }
 0xacf   : > { %9739 = vmatprep.subr.bf16.mxu0 %v12917_v36  ;;  %v12983_v27 = vld [vmem:[%s17581_s8 + $0x15ec] ss:$16 sps:$4 sm:$0xff]   ;;  %v12984_v36 = vld [vmem:[%s17581_s8 + $0x1668] ss:$16 sps:$4 sm:$0xff]  }
 0xad1   : > { %9773 = vmatpush2.bf16.msra.mxu1 %v12918_v24  ;;  %v12981_v24 = vld [vmem:[%s17581_s8 + $0x15e8] ss:$16 sps:$4 sm:$0xff]  }
 0xad2   : > { %9740 = vmatpush2.bf16.msra.mxu0 %v12915_v58  ;;  %9774 = vmatprep.subr.bf16.mxu1 %v12926_v50  ;;  %v12992_v58 = vld [vmem:[%s17581_s8 + $0x164c] ss:$16 sps:$4 sm:$0xff]  }
 0xad3   : > { %9741 = vmatprep.subr.bf16.mxu0 %v12923_v26  ;;  %v12989_v50 = vld [vmem:[%s17581_s8 + $0x15cc] ss:$16 sps:$4 sm:$0xff]   ;;  %v12990_v26 = vld [vmem:[%s17581_s8 + $0x1648] ss:$16 sps:$4 sm:$0xff]  }
 0xad5   : > { %9775 = vmatpush2.bf16.msra.mxu1 %v12924_v55  ;;  %v12987_v55 = vld [vmem:[%s17581_s8 + $0x15c8] ss:$16 sps:$4 sm:$0xff]  }
 0xad6   : > { %9742 = vmatpush2.bf16.msra.mxu0 %v12921_v11  ;;  %9776 = vmatprep.subr.bf16.mxu1 %v12932_v63  ;;  %v12998_v11 = vld [vmem:[%s17581_s8 + $0x162c] ss:$16 sps:$4 sm:$0xff]  }
 0xad7   : > { %9743 = vmatprep.subr.bf16.mxu0 %v12929_v15  ;;  %v12995_v63 = vld [vmem:[%s17581_s8 + $0x15ac] ss:$16 sps:$4 sm:$0xff]   ;;  %v12996_v15 = vld [vmem:[%s17581_s8 + $0x1628] ss:$16 sps:$4 sm:$0xff]  }
 0xad9   : > { %9777 = vmatpush2.bf16.msra.mxu1 %v12930_v5  ;;  %v12993_v5 = vld [vmem:[%s17581_s8 + $0x15a8] ss:$16 sps:$4 sm:$0xff]  }
 0xada   : > { %9744 = vmatpush2.bf16.msra.mxu0 %v12927_v53  ;;  %9778 = vmatprep.subr.bf16.mxu1 %v12935_v7  ;;  %v13004_v53 = vld [vmem:[%s17581_s8 + $0x160c] ss:$16 sps:$4 sm:$0xff]  }
 0xadb   : > { %9795 = vmatprep.subr.bf16.mxu0 %v12938_v45  ;;  %v13001_v7 = vld [vmem:[%s17581_s8 + $0x158c] ss:$16 sps:$4 sm:$0xff]   ;;  %v13002_v45 = vld [vmem:[%s17581_s8 + $0x1608] ss:$16 sps:$4 sm:$0xff]  }
 0xadd   : > { %v9501_v33 = vpop.f32.mrf.mxu0  ;;  %9746 = vmatmul.mubr.bf16.vlgmr.msra.gmra.mxu0 %v15979_v20  ;;  %9779 = vmatpush2.bf16.msra.mxu1 %v12933_v62  ;;  %v12950_v20 = vld [vmem:[%s17581_s8 + $0x14ac] ss:$16 sps:$4 sm:$0xff]   ;;  %v12999_v62 = vld [vmem:[%s17581_s8 + $0x1588] ss:$16 sps:$4 sm:$0xff]  }
 0xade   : > { %v9502_v48 = vadd.f32 %v9501_v33, %v17079_v3  ;;  %9796 = vmatpush1.bf16.msra.mxu0 %v12936_v57  ;;  %9827 = vmatprep.mubr.bf16.mxu0 %v15992_v60  ;;  %v12945_v60 = vld [vmem:[%s17581_s8 + $0x1328] ss:$16 sps:$4 sm:$0xff]   ;;  %v13010_v57 = vld [vmem:[%s17581_s8 + $0x17ec] ss:$16 sps:$4 sm:$0xff]  }
 0xadf   : > { %v9503_v51 = vpop.f32.mrf.mxu0  ;;  %9780 = vmatprep.subr.bf16.mxu1 %v12941_v61  ;;  %9797 = vmatprep.subr.bf16.mxu0 %v12944_v30  ;;  %v13007_v61 = vld [vmem:[%s17581_s8 + $0x156c] ss:$16 sps:$4 sm:$0xff]   ;;  %v13008_v30 = vld [vmem:[%s17581_s8 + $0x17e8] ss:$16 sps:$4 sm:$0xff]  }
 0xae0   : > { %v9504_v3 = vadd.f32 %v9503_v51, %v17091_v31  ;;  %v12956_v31 = vld [vmem:[%s17581_s8 + $0x148c] ss:$16 sps:$4 sm:$0xff]   ;;  %v13005_v33 = vld [vmem:[%s17581_s8 + $0x1568] ss:$16 sps:$4 sm:$0xff]  }
 0xae1   : > { %v9505_v28 = vpop.f32.mrf.mxu0  ;;  %9781 = vmatpush2.bf16.msra.mxu1 %v12939_v25  ;;  %v13016_v25 = vld [vmem:[%s17581_s8 + $0x17cc] ss:$16 sps:$4 sm:$0xff]  }
 0xae2   : > { %9798 = vmatpush1.bf16.msra.mxu0 %v12942_v22  ;;  %9782 = vmatprep.subr.bf16.mxu1 %v12947_v18  ;;  %v13014_v22 = vld [vmem:[%s17581_s8 + $0x17c8] ss:$16 sps:$4 sm:$0xff]   ;;  %v13022_v51 = vld [vmem:[%s17581_s8 + $0x17ac] ss:$16 sps:$4 sm:$0xff]  }
 0xae3   : > { %v9506_v16 = vpop.f32.mrf.mxu0  ;;  %9799 = vmatprep.subr.bf16.mxu0 %v12950_v20  ;;  %v13011_v18 = vld [vmem:[%s17581_s8 + $0x1548] ss:$16 sps:$4 sm:$0xff]   ;;  %v13019_v20 = vld [vmem:[%s17581_s8 + $0x152c] ss:$16 sps:$4 sm:$0xff]  }
 0xae4   : > { %v13017_v28 = vld [vmem:[%s17581_s8 + $0x1528] ss:$16 sps:$4 sm:$0xff]  }
 0xae5   : > { %9783 = vmatpush2.bf16.msra.mxu1 %v12945_v60  ;;  %v13028_v60 = vld [vmem:[%s17581_s8 + $0x178c] ss:$16 sps:$4 sm:$0xff]   ;;  %v13023_v16 = vld [vmem:[%s17581_s8 + $0x1508] ss:$16 sps:$4 sm:$0xff]  }
 0xae6   : > { %9800 = vmatpush1.bf16.msra.mxu0 %v12948_v10  ;;  %9784 = vmatprep.subr.bf16.mxu1 %v12953_v6  ;;  %v13025_v10 = vld [vmem:[%s17581_s8 + $0x150c] ss:$16 sps:$4 sm:$0xff]   ;;  %v13026_v6 = vld [vmem:[%s17581_s8 + $0x1788] ss:$16 sps:$4 sm:$0xff]  }
 0xae7   : > { %9801 = vmatprep.subr.bf16.mxu0 %v12956_v31  ;;  %v13031_v31 = vld [vmem:[%s17581_s8 + $0x176c] ss:$16 sps:$4 sm:$0xff]  }
 0xae9   : > { %9785 = vmatpush2.bf16.msra.mxu1 %v12951_v13  ;;  %v13034_v13 = vld [vmem:[%s17581_s8 + $0x186c] ss:$16 sps:$4 sm:$0xff]  }
 0xaea   : > { %9802 = vmatpush1.bf16.msra.mxu0 %v12954_v35  ;;  %9836 = vmatprep.subr.bf16.mxu1 %v12962_v2  ;;  %v13029_v35 = vld [vmem:[%s17581_s8 + $0x1768] ss:$16 sps:$4 sm:$0xff]  }
 0xaeb   : > { %9803 = vmatprep.subr.bf16.mxu0 %v12959_v46  ;;  %v13032_v2 = vld [vmem:[%s17581_s8 + $0x1868] ss:$16 sps:$4 sm:$0xff]   ;;  %v13037_v46 = vld [vmem:[%s17581_s8 + $0x174c] ss:$16 sps:$4 sm:$0xff]  }
 0xaec   : > { %v9542_v56 = vpop.f32.mrf.mxu1  ;;  %9787 = vmatmul.mubr.bf16.vlgmr.msra.gmra.mxu1 %v15984_v8  ;;  %v12974_v8 = vld [vmem:[%s17581_s8 + $0x16ac] ss:$16 sps:$4 sm:$0xff]  }
 0xaed   : > { %v17281_v17 = vadd.f32 %v9542_v56, %v9502_v48  ;;  %9837 = vmatpush1.bf16.msra.mxu1 %v12960_v29  ;;  %9868 = vmatprep.mubr.bf16.mxu1 %v16001_v59  ;;  %v12971_v59 = vld [vmem:[%s17581_s8 + $0x142c] ss:$16 sps:$4 sm:$0xff]   ;;  %v13038_v56 = vld [vmem:[%s17581_s8 + $0x1848] ss:$16 sps:$4 sm:$0xff]  }
 0xaee   : > { %9804 = vmatpush1.bf16.msra.mxu0 %v12957_v9  ;;  %v9544_v4 = vpop.f32.mrf.mxu1  ;;  %9838 = vmatprep.subr.bf16.mxu1 %v12968_v37  ;;  %v13013_v48 = vld [vmem:[%s17581_s8 + $0x154c] ss:$16 sps:$4 sm:$0xff]   ;;  %v13035_v37 = vld [vmem:[%s17581_s8 + $0x1748] ss:$16 sps:$4 sm:$0xff]  }
 0xaef   : > { %v17293_v52 = vadd.f32 %v9544_v4, %v9504_v3  ;;  %9805 = vmatprep.subr.bf16.mxu0 %v12965_v42  ;;  %v13020_v3 = vld [vmem:[%s17581_s8 + $0x17a8] ss:$16 sps:$4 sm:$0xff]   ;;  %v13040_v29 = vld [vmem:[%s17581_s8 + $0x184c] ss:$16 sps:$4 sm:$0xff]  }
 0xaf0   : > { %v9546_v21 = vpop.f32.mrf.mxu1 }
 0xaf1   : > { %9839 = vmatpush1.bf16.msra.mxu1 %v12966_v0  ;;  %v13043_v0 = vld [vmem:[%s17581_s8 + $0x172c] ss:$16 sps:$4 sm:$0xff]  }
 0xaf2   : > { %9806 = vmatpush1.bf16.msra.mxu0 %v12963_v40  ;;  %v9547_v44 = vpop.f32.mrf.mxu1  ;;  %9840 = vmatprep.subr.bf16.mxu1 %v12974_v8  ;;  %v13041_v8 = vld [vmem:[%s17581_s8 + $0x1728] ss:$16 sps:$4 sm:$0xff]   ;;  %v13049_v21 = vld [vmem:[%s17581_s8 + $0x170c] ss:$16 sps:$4 sm:$0xff]  }
 0xaf3   : > { %9807 = vmatprep.subr.bf16.mxu0 %v12971_v59  ;;  %v13044_v59 = vld [vmem:[%s17581_s8 + $0x1828] ss:$16 sps:$4 sm:$0xff]  }
 0xaf4   : > { %v13050_v44 = vld [vmem:[%s17581_s8 + $0x1808] ss:$16 sps:$4 sm:$0xff]  }
 0xaf5   : > { %9841 = vmatpush1.bf16.msra.mxu1 %v12972_v1 }
 0xaf6   : > { %9808 = vmatpush1.bf16.msra.mxu0 %v12969_v38  ;;  %9842 = vmatprep.subr.bf16.mxu1 %v12980_v14  ;;  %v13053_v38 = vld [vmem:[%s17583_s10 + $0x78] sm:$0xff]   ;;  %v9919_v14 = vmax.f32 %v16886_v34, 0.0  ;;  %v13056_v34 = vld [vmem:[%s17583_s10 + $0x30] sm:$0xff]  }
 0xaf7   : > { %9809 = vmatprep.subr.bf16.mxu0 %v12977_v47  ;;  %v13054_v47 = vld [vmem:[%s17583_s10 + $0x38] sm:$0xff]  }
 0xaf9   : > { %9843 = vmatpush1.bf16.msra.mxu1 %v12978_v54  ;;  %v13055_v54 = vld [vmem:[%s17583_s10 + $0x70] sm:$0xff]  }
 0xafa   : > { %9810 = vmatpush1.bf16.msra.mxu0 %v12975_v41  ;;  %9844 = vmatprep.subr.bf16.mxu1 %v12986_v12  ;;  %v9923_v41 = vpack.c.bf16 %v9919_v14, %v9919_v14 }
 0xafb   : > { %9811 = vmatprep.subr.bf16.mxu0 %v12983_v27 }
 0xafd   : > { %9845 = vmatpush1.bf16.msra.mxu1 %v12984_v36 }
 0xafe   : > { %9812 = vmatpush2.bf16.msra.mxu0 %v12981_v24  ;;  %9846 = vmatprep.subr.bf16.mxu1 %v12992_v58  ;;  %v13057_v24 = vld [vmem:[%s17583_s10 + $0x68] sm:$0xff]  }
 0xaff   : > { %9813 = vmatprep.subr.bf16.mxu0 %v12989_v50 }
 0xb01   : > { %9847 = vmatpush1.bf16.msra.mxu1 %v12990_v26  ;;  %v13059_v26 = vld [vmem:[%s17583_s10 + $0x60] sm:$0xff]  }
 0xb02   : > { %9814 = vmatpush2.bf16.msra.mxu0 %v12987_v55  ;;  %9848 = vmatprep.subr.bf16.mxu1 %v12998_v11  ;;  %v13069_v55 = vld [vmem:[%s17583_s10 + $0xf8] sm:$0xff]  }
 0xb03   : > { %9815 = vmatprep.subr.bf16.mxu0 %v12995_v63  ;;  %v13070_v11 = vld [vmem:[%s17583_s10 + $0xb8] sm:$0xff]   ;;  %v13060_v63 = vld [vmem:[%s17583_s10 + $0x20] sm:$0xff]  }
 0xb05   : > { %9849 = vmatpush1.bf16.msra.mxu1 %v12996_v15  ;;  %v13061_v15 = vld [vmem:[%s17583_s10 + $0x58] sm:$0xff]  }
 0xb06   : > { %9816 = vmatpush2.bf16.msra.mxu0 %v12993_v5  ;;  %9850 = vmatprep.subr.bf16.mxu1 %v13004_v53  ;;  %v13062_v5 = vld [vmem:[%s17583_s10 + $0x18] sm:$0xff]   ;;  %v13063_v53 = vld [vmem:[%s17583_s10 + $0x50] sm:$0xff]  }
 0xb07   : > { %9817 = vmatprep.subr.bf16.mxu0 %v13001_v7  ;;  %v13064_v7 = vld [vmem:[%s17583_s10 + $0x10] sm:$0xff]  }
 0xb09   : > { %9851 = vmatpush1.bf16.msra.mxu1 %v13002_v45  ;;  %v13065_v45 = vld [vmem:[%s17583_s10 + $0x48] sm:$0xff]  }
 0xb0a   : > { %9818 = vmatpush2.bf16.msra.mxu0 %v12999_v62  ;;  %9852 = vmatprep.subr.bf16.mxu1 %v13010_v57  ;;  %v13066_v62 = vld [vmem:[%s17583_s10 + $0x8] sm:$0xff]   ;;  %v13067_v57 = vld [vmem:[%s17583_s10 + $0x40] sm:$0xff]  }
 0xb0b   : > { %9819 = vmatprep.subr.bf16.mxu0 %v13007_v61  ;;  %v13068_v61 = vld [vmem:[%s17583_s10] sm:$0xff]  }
 0xb0d   : > { %9853 = vmatpush2.bf16.msra.mxu1 %v13008_v30  ;;  %v9918_v30 = vmax.f32 %v16874_v39, 0.0  ;;  %v13073_v39 = vld [vmem:[%s17583_s10 + $0xe8] sm:$0xff]  }
 0xb0e   : > { %9820 = vmatpush2.bf16.msra.mxu0 %v13005_v33  ;;  %9854 = vmatprep.subr.bf16.mxu1 %v13016_v25 }
 0xb0f   : > { %9821 = vmatprep.subr.bf16.mxu0 %v13013_v48  ;;  %v9922_v33 = vpack.c.bf16 %v9918_v30, %v9918_v30 }
 0xb11   : > { %9855 = vmatpush2.bf16.msra.mxu1 %v13014_v22  ;;  %v13071_v22 = vld [vmem:[%s17583_s10 + $0xf0] sm:$0xff]  }
 0xb12   : > { %9822 = vmatpush2.bf16.msra.mxu0 %v13011_v18  ;;  %9856 = vmatprep.subr.bf16.mxu1 %v13022_v51  ;;  %v13072_v18 = vld [vmem:[%s17583_s10 + $0xb0] sm:$0xff]  }
 0xb13   : > { %9823 = vmatprep.subr.bf16.mxu0 %v13019_v20 }
 0xb15   : > { %9857 = vmatpush2.bf16.msra.mxu1 %v13020_v3 }
 0xb16   : > { %9824 = vmatpush2.bf16.msra.mxu0 %v13017_v28  ;;  %9858 = vmatprep.subr.bf16.mxu1 %v13028_v60  ;;  %v13074_v28 = vld [vmem:[%s17583_s10 + $0xa8] sm:$0xff]  }
 0xb17   : > { %9825 = vmatprep.subr.bf16.mxu0 %v13025_v10  ;;  %v13075_v10 = vld [vmem:[%s17583_s10 + $0xe0] sm:$0xff]  }
 0xb19   : > { %9859 = vmatpush2.bf16.msra.mxu1 %v13026_v6  ;;  %v13076_v6 = vld [vmem:[%s17583_s10 + $0xa0] sm:$0xff]  }
 0xb1a   : > { %9826 = vmatpush2.bf16.msra.mxu0 %v13023_v16  ;;  %9860 = vmatprep.subr.bf16.mxu1 %v13031_v31  ;;  %v13077_v16 = vld [vmem:[%s17583_s10 + $0xd8] sm:$0xff]  }
 0xb1b   : > { %9885 = vmatprep.subr.bf16.mxu0 %v13034_v13  ;;  %v13078_v31 = vld [vmem:[%s17583_s10 + $0x98] sm:$0xff]  }
 0xb1d   : > { %v9583_v9 = vpop.f32.mrf.mxu0  ;;  %9828 = vmatmul.mubr.bf16.vlgmr.msra.gmra.mxu0 %v16195_v49  ;;  %9861 = vmatpush2.bf16.msra.mxu1 %v13029_v35  ;;  %v13046_v49 = vld [vmem:[%s17581_s8 + $0x182c] ss:$16 sps:$4 sm:$0xff]  }
 0xb1e   : > { %v9584_v42 = vadd.f32 %v9583_v9, %v17281_v17  ;;  %9886 = vmatpush1.bf16.msra.mxu0 %v13032_v2  ;;  %9862 = vmatprep.subr.bf16.mxu1 %v13037_v46 }
 0xb1f   : > { %v9585_v4 = vpop.f32.mrf.mxu0  ;;  %9887 = vmatprep.subr.bf16.mxu0 %v13040_v29  ;;  %9909 = vmatprep.mubr.bf16.mxu0 %v17616_v32  ;;  %v13052_v32 = vld [vmem:[%s17581_s8 + $0x180c] ss:$16 sps:$4 sm:$0xff]  }
 0xb20   : > { %v9586_v17 = vadd.f32 %v9585_v4, %v17293_v52  ;;  %v13047_v52 = vld [vmem:[%s17581_s8 + $0x1708] ss:$16 sps:$4 sm:$0xff]   ;;  %v13083_v4 = vld [vmem:[%s17583_s10 + $0xc0] sm:$0xff]  }
 0xb21   : > { %v9587_v40 = vpop.f32.mrf.mxu0  ;;  %9863 = vmatpush2.bf16.msra.mxu1 %v13035_v37  ;;  %v13079_v37 = vld [vmem:[%s17583_s10 + $0xd0] sm:$0xff]  }
 0xb22   : > { %9888 = vmatpush1.bf16.msra.mxu0 %v13038_v56  ;;  %9864 = vmatprep.subr.bf16.mxu1 %v13043_v0  ;;  %v13081_v56 = vld [vmem:[%s17583_s10 + $0xc8] sm:$0xff]  }
 0xb23   : > { %v9588_v1 = vpop.f32.mrf.mxu0  ;;  %9889 = vmatprep.subr.bf16.mxu0 %v13046_v49  ;;  %v13082_v0 = vld [vmem:[%s17583_s10 + $0x88] sm:$0xff]   ;;  %v13084_v49 = vld [vmem:[%s17583_s10 + $0x80] sm:$0xff]  }
 0xb25   : > { %9865 = vmatpush2.bf16.msra.mxu1 %v13041_v8 }
 0xb26   : > { %9890 = vmatpush1.bf16.msra.mxu0 %v13044_v59  ;;  %9866 = vmatprep.subr.bf16.mxu1 %v13049_v21 }
 0xb27   : > { %9891 = vmatprep.subr.bf16.mxu0 %v13052_v32 }
 0xb29   : > { %9867 = vmatpush2.bf16.msra.mxu1 %v13047_v52 }
 0xb2a   : > { %9892 = vmatpush1.bf16.msra.mxu0 %v13050_v44  ;;  %11685 = vmatprep.subr.bf16.mxu1 %v13053_v38 }
 0xb2b   : > { %11707 = vmatprep.subr.bf16.mxu0 %v13069_v55 }
 0xb2c   : > { %v9624_v12 = vpop.f32.mrf.mxu1  ;;  %9869 = vmatmul.mubr.bf16.vlgmr.msra.gmra.mxu1 %v16202_v19  ;;  %v13058_v19 = vld [vmem:[%s17583_s10 + $0x28] sm:$0xff]  }
 0xb2d   : > { %v9625_v27 = vadd.f32 %v9624_v12, %v9584_v42  ;;  %11359 = vmatmul.mubr.msk.bf16.vlgmr.msra.gmra.mxu0 %vm2822_vm12, %v16259_v23  ;;  %11686 = vmatpush3.bf16.msra.mxu1 %v13054_v47  ;;  %v13080_v42 = vld [vmem:[%s17583_s10 + $0x90] sm:$0xff]  }
 0xb2e   : > { %10215 = vmatprep.mubr.bf16.mxu1 %v9923_v41  ;;  %v9626_v36 = vpop.f32.mrf.mxu1  ;;  %11687 = vmatprep.subr.bf16.mxu1 %v13055_v54 }
 0xb2f   : > { %v9627_v58 = vadd.f32 %v9626_v36, %v9586_v17  ;;  %11708 = vmatpush3.bf16.msra.mxu0 %v13070_v11 }
 0xb30   : > { %v9628_v50 = vpop.f32.mrf.mxu1  ;;  %11709 = vmatprep.subr.bf16.mxu0 %v13071_v22  ;;  %v9990_v22 = vld [vmem:[%s17584_s11] sm:$0x1] }
 0xb31   : > { %11688 = vmatpush3.bf16.msra.mxu1 %v13056_v34 }
 0xb32   : > { %v9629_v23 = vpop.f32.mrf.mxu1  ;;  %11689 = vmatprep.subr.bf16.mxu1 %v13057_v24 }
 0xb33   : > { %11710 = vmatpush3.bf16.msra.mxu0 %v13072_v18 }
 0xb34   : > { %11711 = vmatprep.subr.bf16.mxu0 %v13073_v39 }
 0xb35   : > { %11690 = vmatpush3.bf16.msra.mxu1 %v13058_v19 }
 0xb36   : > { %11691 = vmatprep.subr.bf16.mxu1 %v13059_v26 }
 0xb37   : > { %11712 = vmatpush3.bf16.msra.mxu0 %v13074_v28 }
 0xb38   : > { %11713 = vmatprep.subr.bf16.mxu0 %v13075_v10 }
 0xb39   : > { %11692 = vmatpush3.bf16.msra.mxu1 %v13060_v63 }
 0xb3a   : > { %11693 = vmatprep.subr.bf16.mxu1 %v13061_v15 }
 0xb3b   : > { %11714 = vmatpush3.bf16.msra.mxu0 %v13076_v6 }
 0xb3c   : > { %11715 = vmatprep.subr.bf16.mxu0 %v13077_v16 }
 0xb3d   : > { %11694 = vmatpush3.bf16.msra.mxu1 %v13062_v5 }
 0xb3e   : > { %11695 = vmatprep.subr.bf16.mxu1 %v13063_v53 }
 0xb3f   : > { %11716 = vmatpush3.bf16.msra.mxu0 %v13078_v31 }
 0xb40   : > { %11717 = vmatprep.subr.bf16.mxu0 %v13079_v37 }
 0xb41   : > { %11696 = vmatpush3.bf16.msra.mxu1 %v13064_v7 }
 0xb42   : > { %11697 = vmatprep.subr.bf16.mxu1 %v13065_v45 }
 0xb43   : > { %11718 = vmatpush3.bf16.msra.mxu0 %v13080_v42 }
 0xb44   : > { %11719 = vmatprep.subr.bf16.mxu0 %v13081_v56 }
 0xb45   : > { %11698 = vmatpush3.bf16.msra.mxu1 %v13066_v62 }
 0xb46   : > { %11699 = vmatprep.subr.bf16.mxu1 %v13067_v57 }
 0xb47   : > { %11720 = vmatpush3.bf16.msra.mxu0 %v13082_v0 }
 0xb48   : > { %11721 = vmatprep.subr.bf16.mxu0 %v13083_v4 }
 0xb49   : > { %11700 = vmatpush3.bf16.msra.mxu1 %v13068_v61 }
 0xb4b   : > { %11722 = vmatpush3.bf16.msra.mxu0 %v13084_v49 }
 0xb4c   : > { %10216 = vmatmul.mubr.bf16.vlgmr.msra.gmra.mxu1 %v9922_v33 }
 0xb5d   : > { %v9665_v25 = vpop.f32.mrf.mxu0 }
 0xb5e   : > { %v9666_v48 = vadd.f32 %v9665_v25, %v9625_v27 }
 0xb5f   : > { %v9667_v51 = vpop.f32.mrf.mxu0 }
 0xb60   : > { %v9668_v20 = vadd.f32 %v9667_v51, %v9627_v58 }
 0xb61   : > { %v9669_v3 = vpop.f32.mrf.mxu0 }
 0xb63   : > { %v9670_v60 = vpop.f32.mrf.mxu0 }
 0xb6c   : > { %v9706_v13 = vpop.f32.mrf.mxu1 }
 0xb6d   : > { %v9707_v35 = vadd.f32 %v9706_v13, %v9666_v48 }
 0xb6e   : > { %v9708_v2 = vpop.f32.mrf.mxu1 }
 0xb6f   : > { %v9709_v46 = vadd.f32 %v9708_v2, %v9668_v20 }
 0xb70   : > { %v9710_v29 = vpop.f32.mrf.mxu1 }
 0xb72   : > { %v9711_v9 = vpop.f32.mrf.mxu1 }
 0xb9d   : > { %v9747_v17 = vpop.f32.mrf.mxu0 }
 0xb9e   : > { %v9748_v40 = vadd.f32 %v9747_v17, %v9707_v35 }
 0xb9f   : > { %v9749_v8 = vpop.f32.mrf.mxu0 }
 0xba0   : > { %v9750_v59 = vadd.f32 %v9749_v8, %v9709_v46 }
 0xba1   : > { %v9751_v21 = vpop.f32.mrf.mxu0 }
 0xba3   : > { %v9752_v1 = vpop.f32.mrf.mxu0 }
 0xbac   : > { %v9788_v32 = vpop.f32.mrf.mxu1 }
 0xbad   : > { %v9789_v12 = vadd.f32 %v9788_v32, %v9748_v40 }
 0xbae   : > { %v9790_v52 = vpop.f32.mrf.mxu1 }
 0xbaf   : > { %v9791_v27 = vadd.f32 %v9790_v52, %v9750_v59 }
 0xbb0   : > { %v9792_v44 = vpop.f32.mrf.mxu1 }
 0xbb2   : > { %v9793_v38 = vpop.f32.mrf.mxu1 }
 0xbdd   : > { %v9829_v14 = vpop.f32.mrf.mxu0 }
 0xbde   : > { %v9830_v34 = vadd.f32 %v9829_v14, %v9789_v12 }
 0xbdf   : > { %v9831_v47 = vpop.f32.mrf.mxu0 }
 0xbe0   : > { %v9832_v24 = vadd.f32 %v9831_v47, %v9791_v27 }
 0xbe1   : > { %v9833_v54 = vpop.f32.mrf.mxu0 }
 0xbe3   : > { %v9834_v41 = vpop.f32.mrf.mxu0 }
 0xbec   : > { %v9870_v36 = vpop.f32.mrf.mxu1 }
 0xbed   : > { %v9871_v58 = vadd.f32 %v9870_v36, %v9830_v34  ;;  %v9911_v50 = vpop.f32.mrf.mxu0 }
 0xbee   : > { %v9872_v19 = vpop.f32.mrf.mxu1 }
 0xbef   : > { %v9912_v23 = vadd.f32 %v9911_v50, %v9871_v58  ;;  %v9873_v26 = vadd.f32 %v9872_v19, %v9832_v24  ;;  %v9913_v55 = vpop.f32.mrf.mxu0 }
 0xbf0   : > { %v9874_v11 = vpop.f32.mrf.mxu1 }
 0xbf1   : > { %v9914_v63 = vadd.f32 %v9913_v55, %v9873_v26  ;;  %v9915_v15 = vpop.f32.mrf.mxu0  ;;  %v9920_v5 = vmax.f32 %v9912_v23, 0.0 }
 0xbf2   : > { %v9875_v53 = vpop.f32.mrf.mxu1 }
 0xbf3   : > { %v9921_v7 = vmax.f32 %v9914_v63, 0.0  ;;  %v9916_v45 = vpop.f32.mrf.mxu0  ;;  %v9924_v57 = vpack.c.bf16 %v9920_v5, %v9920_v5 }
 0xbf5   : > { %v9925_v62 = vpack.c.bf16 %v9921_v7, %v9921_v7 }
 0xbf7   : > { %10255 = vmatprep.mubr.bf16.mxu0 %v9925_v62 }
 0xbf8   : > { %10256 = vmatmul.mubr.bf16.vlgmr.msra.gmra.mxu0 %v9924_v57 }
 0xc0c   : > { %v11701_v61 = vpop.f32.mrf.mxu1 }
 0xc0e   : > { %v11702_v30 = vpop.f32.mrf.mxu1 }
 0xc0f   : > { %v11703_v33 = vadd.f32 %v11702_v30, %v11701_v61 }
 0xc10   : > { %v11704_v25 = vpop.f32.mrf.mxu1 }
 0xc11   : > { %v10218_v20 = vadd.f32 %v11703_v33, %v9990_v22 }
 0xc12   : > { %v11705_v48 = vpop.f32.mrf.mxu1 }
 0xcb8   : > { %v11723_v18 = vpop.f32.mrf.mxu0 }
 0xcba   : > { %v11724_v51 = vpop.f32.mrf.mxu0 }
 0xcbb   : > { %v11725_v3 = vadd.f32 %v11724_v51, %v11723_v18 }
 0xcbc   : > { %v11726_v39 = vpop.f32.mrf.mxu0 }
 0xcbd   : > { %v10258_v28 = vadd.f32 %v11725_v3, %v10218_v20 }
 0xcbe   : > { %v11727_v60 = vpop.f32.mrf.mxu0 }
 0xcbf   : > { %v10266_v10 = vrot.slane %v10258_v28, %v15022_v43 }
 0xcc1   : > { %10267 = vst [vmem:[%s13327_s28] sm:$0xff] %v10266_v10 }
 0xcc2 PF: > { %s22_s21 = sadd.s32 1, %s13104_s21  }
 0xcc3   : > { %p19_p7 = scmp.ge.s32.totalorder %s22_s21, 4  }
 0xcc5   :  { %21 = sbr.rel (!%p19_p7) target bundleno = 1 (0x1), region = 170 }

</bundles_post_ra>
